<compile_context>
chip_gen: v7x
topology: tpu7x:2x2x1
jax: 0.10.0
libtpu: 0.0.40
codegen_flags: <defaults>
</compile_context>

<pallas_src>
import functools

import numpy as np
import jax
import jax.numpy as jnp
from jax.experimental import pallas as pl
from jax.experimental.pallas import tpu as pltpu


def _basic_block_kernel(xpad_ref, w1_ref, b1_ref, w2_ref, b2_ref,
                        out_ref, mid_ref, *, H, W, mid_lp):
    """One grid step = one image (batch element).

    xpad_ref : (H+2, WPAD, C)   zero-padded input (data at rows 1..H, cols 1..W,
                                rest of the row zero), bf16
    w1_ref   : (9*C, C)         conv1 weights, im2col layout, BN1 scale folded, bf16
    b1_ref   : (1, C)           folded BN1 bias, f32
    w2_ref   : (9*C, C)         conv2 weights, BN2 scale folded, bf16
    b2_ref   : (1, C)           folded BN2 bias, f32
    out_ref  : (H*W, C)         output, bf16
    mid_ref  : (H+2, MIDW, C)   VMEM conv2 input; data stored at rows 1..H,
                                cols mid_lp..mid_lp+W-1 (8-aligned store), bf16
    """
    C = xpad_ref.shape[-1]
    M = H * W
    mid_w = mid_ref.shape[1]

    # Hoisted column masks: zero the contribution of the (never-written) left /
    # right halo columns of mid_ref at tap-load time, instead of issuing
    # single-sublane masked column stores every grid step.
    col = jax.lax.broadcasted_iota(jnp.int32, (1, W, C), 1)
    keep_left = col >= 1           # kx == 0 tap: tap-local col 0 is the halo
    keep_right = col <= W - 2      # kx == 2 tap: tap-local col W-1 is the halo
    conv2_masks = {0: keep_left, 1: None, 2: keep_right}

    def conv3x3(src_ref, w_ref, col0, masks):
        # Direct 9-tap accumulation: each tap is one lane-dense (H, W, C)
        # window load (uniform sublane shift) feeding one K=C MXU dot.
        # No im2col staging stores at all.
        acc = jnp.zeros((M, C), jnp.float32)
        for ky in range(3):
            for kx in range(3):
                t = ky * 3 + kx
                tap = src_ref[ky:ky + H, col0 + kx:col0 + kx + W, :]
                if masks is not None and masks[kx] is not None:
                    tap = jnp.where(masks[kx], tap, jnp.zeros_like(tap))
                acc = acc + jnp.dot(tap.reshape(M, C),
                                    w_ref[t * C:(t + 1) * C, :],
                                    preferred_element_type=jnp.float32)
        return acc

    # ---- conv1 (3x3, pad 1) + folded bn1 bias + relu ----
    # xpad_ref is fully zero-padded by the wrapper -> no edge masks needed.
    acc1 = conv3x3(xpad_ref, w1_ref, 0, None)
    out1 = jnp.maximum(acc1 + b1_ref[...], 0.0)

    # ---- stage conv2 input ----
    # Zero only the two halo rows (unmasked row stores); the interior store is
    # 8-aligned (column offset mid_lp) so it is unmasked as well.  Halo
    # columns are handled by the tap masks above.
    mid_ref[0:1, :, :] = jnp.zeros((1, mid_w, C), mid_ref.dtype)
    mid_ref[H + 1:H + 2, :, :] = jnp.zeros((1, mid_w, C), mid_ref.dtype)
    mid_ref[1:H + 1, mid_lp:mid_lp + W, :] = (
        out1.astype(mid_ref.dtype).reshape(H, W, C))

    # ---- conv2 (3x3, pad 1) + folded bn2 bias + residual + relu ----
    acc2 = conv3x3(mid_ref, w2_ref, mid_lp - 1, conv2_masks)
    ident = xpad_ref[1:H + 1, 1:W + 1, :].reshape(M, C).astype(jnp.float32)
    out_ref[...] = jnp.maximum(acc2 + b2_ref[...] + ident,
                               0.0).astype(out_ref.dtype)


def basic_block_forward(x_nchw, w1, g1, be1, rm1, rv1, w2, g2, be2, rm2, rv2,
                        eps=1e-5):
    """x_nchw: (N, C, H, W). Conv weights in PyTorch OIHW layout."""
    N, Cin, H, W = x_nchw.shape
    C = w1.shape[0]
    assert Cin == C, "downsample=None requires inplanes == planes"

    def round_up(a, b):
        return (a + b - 1) // b * b

    xp_w = round_up(W + 2, 8)                 # padded input row width (e.g. 24)
    mid_lp = 8                                # left pad -> aligned interior store
    mid_w = round_up(mid_lp + W + 1, 8)       # conv2 intermediate row width

    # ---- glue: layout conversion, padding, BN folding, bf16 casts ----
    x = jnp.transpose(x_nchw, (0, 2, 3, 1)).astype(jnp.float32)       # NHWC
    xpad = jnp.pad(x, ((0, 0), (1, 1), (1, xp_w - W - 1), (0, 0))
                   ).astype(jnp.bfloat16)

    s1 = g1 / jnp.sqrt(rv1 + eps)
    s2 = g2 / jnp.sqrt(rv2 + eps)
    b1 = (be1 - rm1 * s1).reshape(1, C).astype(jnp.float32)
    b2 = (be2 - rm2 * s2).reshape(1, C).astype(jnp.float32)
    # OIHW -> (ky, kx, ci, co) -> (9*C, C) tap-major weight matrix, scale folded.
    w1m = (jnp.transpose(w1, (2, 3, 1, 0)).reshape(9 * C, C)
           * s1[None, :]).astype(jnp.bfloat16)
    w2m = (jnp.transpose(w2, (2, 3, 1, 0)).reshape(9 * C, C)
           * s2[None, :]).astype(jnp.bfloat16)

    kernel = functools.partial(_basic_block_kernel, H=H, W=W, mid_lp=mid_lp)

    out = pl.pallas_call(
        kernel,
        out_shape=jax.ShapeDtypeStruct((N, H * W, C), jnp.bfloat16),
        grid=(N,),
        in_specs=[
            pl.BlockSpec((None, H + 2, xp_w, C), lambda n: (n, 0, 0, 0)),
            pl.BlockSpec((9 * C, C), lambda n: (0, 0)),
            pl.BlockSpec((1, C), lambda n: (0, 0)),
            pl.BlockSpec((9 * C, C), lambda n: (0, 0)),
            pl.BlockSpec((1, C), lambda n: (0, 0)),
        ],
        out_specs=pl.BlockSpec((None, H * W, C), lambda n: (n, 0, 0)),
        scratch_shapes=[
            pltpu.VMEM((H + 2, mid_w, C), jnp.bfloat16),   # conv2 intermediate
        ],
        compiler_params=pltpu.CompilerParams(
            dimension_semantics=("parallel",),
            vmem_limit_bytes=32 * 1024 * 1024),
    )(xpad, w1m, b1, w2m, b2)

    out = out.astype(x_nchw.dtype)
    return jnp.transpose(out.reshape(N, H, W, C), (0, 3, 1, 2))       # NCHW


def _reference(x_nchw, w1, g1, be1, rm1, rv1, w2, g2, be2, rm2, rv2, eps=1e-5):
    """Pure-JAX f32 reference (NHWC conv) for correctness checking."""
    x = jnp.transpose(x_nchw, (0, 2, 3, 1))
    dn = ("NHWC", "HWIO", "NHWC")

    def conv(a, w_oihw):
        return jax.lax.conv_general_dilated(
            a, jnp.transpose(w_oihw, (2, 3, 1, 0)), (1, 1), "SAME",
            dimension_numbers=dn)

    def bn(a, g, b, m, v):
        return (a - m) / jnp.sqrt(v + eps) * g + b

    o = jax.nn.relu(bn(conv(x, w1), g1, be1, rm1, rv1))
    o = bn(conv(o, w2), g2, be2, rm2, rv2)
    o = jax.nn.relu(o + x)
    return jnp.transpose(o, (0, 3, 1, 2))


if __name__ == "__main__":
    # BasicBlock(inplanes=128, planes=128, stride=1, downsample=None):
    # C = 128 keeps the channel (lane) axis a full multiple of 128; W = 16 keeps
    # the sublane axis a multiple of 8; N = 4 gives each v7x TensorCore >= 2
    # grid steps so the input DMAs pipeline behind compute.
    N, C, H, W = 4, 128, 16, 16
    key = jax.random.PRNGKey(0)
    kx_, kw1, kw2 = jax.random.split(key, 3)

    x = jax.random.normal(kx_, (N, C, H, W), dtype=jnp.float32)

    # conv weights, PyTorch OIHW shape (planes, inplanes, 3, 3)
    fan_in = C * 3 * 3
    w1 = jax.random.normal(kw1, (C, C, 3, 3), jnp.float32) * (2.0 / fan_in) ** 0.5
    w2 = jax.random.normal(kw2, (C, C, 3, 3), jnp.float32) * (2.0 / fan_in) ** 0.5

    # deterministic, non-trivial BN parameters (eval-mode running stats)
    ar = jnp.arange(C, dtype=jnp.float32)
    g1, be1 = 1.0 + 0.10 * ar / C, 0.05 * ar / C
    rm1, rv1 = 0.01 * ar / C, 1.0 + 0.02 * ar / C
    g2, be2 = 1.0 - 0.05 * ar / C, -0.03 * ar / C
    rm2, rv2 = -0.02 * ar / C, 1.0 + 0.03 * ar / C

    out = basic_block_forward(x, w1, g1, be1, rm1, rv1, w2, g2, be2, rm2, rv2)
    out = jax.block_until_ready(out)

    ref = _reference(x, w1, g1, be1, rm1, rv1, w2, g2, be2, rm2, rv2)
    # bf16 MXU operands / intermediate / residual / output (f32 accumulation)
    # -> loosened tolerance vs the f32 reference.
    np.testing.assert_allclose(np.asarray(out), np.asarray(ref),
                               rtol=5e-2, atol=5e-2)
    print("KERNEL_OK")
</pallas_src>

<mosaic_0001>
module attributes {stable_mosaic.version = 11 : i64} {
  func.func @_basic_block_kernel(%arg0: i32, %arg1: memref<1x18x24x128xbf16, #tpu.memory_space<vmem>>, %arg2: memref<1152x128xbf16, #tpu.memory_space<vmem>>, %arg3: memref<1x128xf32, #tpu.memory_space<vmem>>, %arg4: memref<1152x128xbf16, #tpu.memory_space<vmem>>, %arg5: memref<1x128xf32, #tpu.memory_space<vmem>>, %arg6: memref<1x256x128xbf16, #tpu.memory_space<vmem>>, %arg7: memref<18x32x128xbf16, #tpu.memory_space<vmem>>) attributes {dimension_semantics = [#tpu.dimension_semantics<parallel>], iteration_bounds = array<i64: 4>, scalar_prefetch = 0 : i64, scratch_operands = 1 : i64, tpu.core_type = #tpu.core_type<tc>, window_params = [{transform_indices = @transform_0, window_bounds = array<i64: 1, 18, 24, 128>}, {pipeline_mode = #tpu.pipeline_mode<synchronous>, transform_indices = @transform_1, window_bounds = array<i64: 1152, 128>}, {pipeline_mode = #tpu.pipeline_mode<synchronous>, transform_indices = @transform_2, window_bounds = array<i64: 1, 128>}, {pipeline_mode = #tpu.pipeline_mode<synchronous>, transform_indices = @transform_3, window_bounds = array<i64: 1152, 128>}, {pipeline_mode = #tpu.pipeline_mode<synchronous>, transform_indices = @transform_4, window_bounds = array<i64: 1, 128>}, {transform_indices = @transform_5, window_bounds = array<i64: 1, 256, 128>}]} {
    %0 = tpu.iota {dimensions = array<i32: 1>} : vector<1x16x128xi32>
    %c1_i32 = arith.constant 1 : i32
    %1 = vector.broadcast %c1_i32 : i32 to vector<1x16x128xi32>
    %2 = arith.cmpi sge, %0, %1 : vector<1x16x128xi32>
    %c14_i32 = arith.constant 14 : i32
    %3 = vector.broadcast %c14_i32 : i32 to vector<1x16x128xi32>
    %4 = arith.cmpi sle, %0, %3 : vector<1x16x128xi32>
    %cst = arith.constant 0.000000e+00 : f32
    %5 = vector.broadcast %cst : f32 to vector<256x128xf32>
    %c0 = arith.constant 0 : index
    %c0_0 = arith.constant 0 : index
    %c0_1 = arith.constant 0 : index
    %c0_2 = arith.constant 0 : index
    %6 = vector.load %arg1[%c0, %c0_0, %c0_1, %c0_2] : memref<1x18x24x128xbf16, #tpu.memory_space<vmem>>, vector<1x16x16x128xbf16>
    %7 = vector.shape_cast %6 : vector<1x16x16x128xbf16> to vector<16x16x128xbf16>
    %8 = vector.shape_cast %7 : vector<16x16x128xbf16> to vector<256x128xbf16>
    %c0_3 = arith.constant 0 : index
    %c0_4 = arith.constant 0 : index
    %9 = vector.load %arg2[%c0_3, %c0_4] : memref<1152x128xbf16, #tpu.memory_space<vmem>>, vector<128x128xbf16>
    %cst_5 = arith.constant dense<0.000000e+00> : vector<256x128xf32>
    %10 = tpu.matmul %8, %9, %cst_5 {dimension_numbers = #tpu.dot_dimension_numbers<[1], [0], [0], [1], [0, 0, 1, 1], [], []>} : vector<256x128xbf16>, vector<128x128xbf16>, vector<256x128xf32> -> vector<256x128xf32>
    %11 = arith.addf %5, %10 : vector<256x128xf32>
    %c0_6 = arith.constant 0 : index
    %c0_7 = arith.constant 0 : index
    %c1 = arith.constant 1 : index
    %c0_8 = arith.constant 0 : index
    %12 = vector.load %arg1[%c0_6, %c0_7, %c1, %c0_8] : memref<1x18x24x128xbf16, #tpu.memory_space<vmem>>, vector<1x16x16x128xbf16>
    %13 = vector.shape_cast %12 : vector<1x16x16x128xbf16> to vector<16x16x128xbf16>
    %14 = vector.shape_cast %13 : vector<16x16x128xbf16> to vector<256x128xbf16>
    %c128 = arith.constant 128 : index
    %c0_9 = arith.constant 0 : index
    %15 = vector.load %arg2[%c128, %c0_9] : memref<1152x128xbf16, #tpu.memory_space<vmem>>, vector<128x128xbf16>
    %cst_10 = arith.constant dense<0.000000e+00> : vector<256x128xf32>
    %16 = tpu.matmul %14, %15, %cst_10 {dimension_numbers = #tpu.dot_dimension_numbers<[1], [0], [0], [1], [0, 0, 1, 1], [], []>} : vector<256x128xbf16>, vector<128x128xbf16>, vector<256x128xf32> -> vector<256x128xf32>
    %17 = arith.addf %11, %16 : vector<256x128xf32>
    %c0_11 = arith.constant 0 : index
    %c0_12 = arith.constant 0 : index
    %c2 = arith.constant 2 : index
    %c0_13 = arith.constant 0 : index
    %18 = vector.load %arg1[%c0_11, %c0_12, %c2, %c0_13] : memref<1x18x24x128xbf16, #tpu.memory_space<vmem>>, vector<1x16x16x128xbf16>
    %19 = vector.shape_cast %18 : vector<1x16x16x128xbf16> to vector<16x16x128xbf16>
    %20 = vector.shape_cast %19 : vector<16x16x128xbf16> to vector<256x128xbf16>
    %c256 = arith.constant 256 : index
    %c0_14 = arith.constant 0 : index
    %21 = vector.load %arg2[%c256, %c0_14] : memref<1152x128xbf16, #tpu.memory_space<vmem>>, vector<128x128xbf16>
    %cst_15 = arith.constant dense<0.000000e+00> : vector<256x128xf32>
    %22 = tpu.matmul %20, %21, %cst_15 {dimension_numbers = #tpu.dot_dimension_numbers<[1], [0], [0], [1], [0, 0, 1, 1], [], []>} : vector<256x128xbf16>, vector<128x128xbf16>, vector<256x128xf32> -> vector<256x128xf32>
    %23 = arith.addf %17, %22 : vector<256x128xf32>
    %c0_16 = arith.constant 0 : index
    %c1_17 = arith.constant 1 : index
    %c0_18 = arith.constant 0 : index
    %c0_19 = arith.constant 0 : index
    %24 = vector.load %arg1[%c0_16, %c1_17, %c0_18, %c0_19] : memref<1x18x24x128xbf16, #tpu.memory_space<vmem>>, vector<1x16x16x128xbf16>
    %25 = vector.shape_cast %24 : vector<1x16x16x128xbf16> to vector<16x16x128xbf16>
    %26 = vector.shape_cast %25 : vector<16x16x128xbf16> to vector<256x128xbf16>
    %c384 = arith.constant 384 : index
    %c0_20 = arith.constant 0 : index
    %27 = vector.load %arg2[%c384, %c0_20] : memref<1152x128xbf16, #tpu.memory_space<vmem>>, vector<128x128xbf16>
    %cst_21 = arith.constant dense<0.000000e+00> : vector<256x128xf32>
    %28 = tpu.matmul %26, %27, %cst_21 {dimension_numbers = #tpu.dot_dimension_numbers<[1], [0], [0], [1], [0, 0, 1, 1], [], []>} : vector<256x128xbf16>, vector<128x128xbf16>, vector<256x128xf32> -> vector<256x128xf32>
    %29 = arith.addf %23, %28 : vector<256x128xf32>
    %c0_22 = arith.constant 0 : index
    %c1_23 = arith.constant 1 : index
    %c1_24 = arith.constant 1 : index
    %c0_25 = arith.constant 0 : index
    %30 = vector.load %arg1[%c0_22, %c1_23, %c1_24, %c0_25] : memref<1x18x24x128xbf16, #tpu.memory_space<vmem>>, vector<1x16x16x128xbf16>
    %31 = vector.shape_cast %30 : vector<1x16x16x128xbf16> to vector<16x16x128xbf16>
    %32 = vector.shape_cast %31 : vector<16x16x128xbf16> to vector<256x128xbf16>
    %c512 = arith.constant 512 : index
    %c0_26 = arith.constant 0 : index
    %33 = vector.load %arg2[%c512, %c0_26] : memref<1152x128xbf16, #tpu.memory_space<vmem>>, vector<128x128xbf16>
    %cst_27 = arith.constant dense<0.000000e+00> : vector<256x128xf32>
    %34 = tpu.matmul %32, %33, %cst_27 {dimension_numbers = #tpu.dot_dimension_numbers<[1], [0], [0], [1], [0, 0, 1, 1], [], []>} : vector<256x128xbf16>, vector<128x128xbf16>, vector<256x128xf32> -> vector<256x128xf32>
    %35 = arith.addf %29, %34 : vector<256x128xf32>
    %c0_28 = arith.constant 0 : index
    %c1_29 = arith.constant 1 : index
    %c2_30 = arith.constant 2 : index
    %c0_31 = arith.constant 0 : index
    %36 = vector.load %arg1[%c0_28, %c1_29, %c2_30, %c0_31] : memref<1x18x24x128xbf16, #tpu.memory_space<vmem>>, vector<1x16x16x128xbf16>
    %37 = vector.shape_cast %36 : vector<1x16x16x128xbf16> to vector<16x16x128xbf16>
    %38 = vector.shape_cast %37 : vector<16x16x128xbf16> to vector<256x128xbf16>
    %c640 = arith.constant 640 : index
    %c0_32 = arith.constant 0 : index
    %39 = vector.load %arg2[%c640, %c0_32] : memref<1152x128xbf16, #tpu.memory_space<vmem>>, vector<128x128xbf16>
    %cst_33 = arith.constant dense<0.000000e+00> : vector<256x128xf32>
    %40 = tpu.matmul %38, %39, %cst_33 {dimension_numbers = #tpu.dot_dimension_numbers<[1], [0], [0], [1], [0, 0, 1, 1], [], []>} : vector<256x128xbf16>, vector<128x128xbf16>, vector<256x128xf32> -> vector<256x128xf32>
    %41 = arith.addf %35, %40 : vector<256x128xf32>
    %c0_34 = arith.constant 0 : index
    %c2_35 = arith.constant 2 : index
    %c0_36 = arith.constant 0 : index
    %c0_37 = arith.constant 0 : index
    %42 = vector.load %arg1[%c0_34, %c2_35, %c0_36, %c0_37] : memref<1x18x24x128xbf16, #tpu.memory_space<vmem>>, vector<1x16x16x128xbf16>
    %43 = vector.shape_cast %42 : vector<1x16x16x128xbf16> to vector<16x16x128xbf16>
    %44 = vector.shape_cast %43 : vector<16x16x128xbf16> to vector<256x128xbf16>
    %c768 = arith.constant 768 : index
    %c0_38 = arith.constant 0 : index
    %45 = vector.load %arg2[%c768, %c0_38] : memref<1152x128xbf16, #tpu.memory_space<vmem>>, vector<128x128xbf16>
    %cst_39 = arith.constant dense<0.000000e+00> : vector<256x128xf32>
    %46 = tpu.matmul %44, %45, %cst_39 {dimension_numbers = #tpu.dot_dimension_numbers<[1], [0], [0], [1], [0, 0, 1, 1], [], []>} : vector<256x128xbf16>, vector<128x128xbf16>, vector<256x128xf32> -> vector<256x128xf32>
    %47 = arith.addf %41, %46 : vector<256x128xf32>
    %c0_40 = arith.constant 0 : index
    %c2_41 = arith.constant 2 : index
    %c1_42 = arith.constant 1 : index
    %c0_43 = arith.constant 0 : index
    %48 = vector.load %arg1[%c0_40, %c2_41, %c1_42, %c0_43] : memref<1x18x24x128xbf16, #tpu.memory_space<vmem>>, vector<1x16x16x128xbf16>
    %49 = vector.shape_cast %48 : vector<1x16x16x128xbf16> to vector<16x16x128xbf16>
    %50 = vector.shape_cast %49 : vector<16x16x128xbf16> to vector<256x128xbf16>
    %c896 = arith.constant 896 : index
    %c0_44 = arith.constant 0 : index
    %51 = vector.load %arg2[%c896, %c0_44] : memref<1152x128xbf16, #tpu.memory_space<vmem>>, vector<128x128xbf16>
    %cst_45 = arith.constant dense<0.000000e+00> : vector<256x128xf32>
    %52 = tpu.matmul %50, %51, %cst_45 {dimension_numbers = #tpu.dot_dimension_numbers<[1], [0], [0], [1], [0, 0, 1, 1], [], []>} : vector<256x128xbf16>, vector<128x128xbf16>, vector<256x128xf32> -> vector<256x128xf32>
    %53 = arith.addf %47, %52 : vector<256x128xf32>
    %c0_46 = arith.constant 0 : index
    %c2_47 = arith.constant 2 : index
    %c2_48 = arith.constant 2 : index
    %c0_49 = arith.constant 0 : index
    %54 = vector.load %arg1[%c0_46, %c2_47, %c2_48, %c0_49] : memref<1x18x24x128xbf16, #tpu.memory_space<vmem>>, vector<1x16x16x128xbf16>
    %55 = vector.shape_cast %54 : vector<1x16x16x128xbf16> to vector<16x16x128xbf16>
    %56 = vector.shape_cast %55 : vector<16x16x128xbf16> to vector<256x128xbf16>
    %c1024 = arith.constant 1024 : index
    %c0_50 = arith.constant 0 : index
    %57 = vector.load %arg2[%c1024, %c0_50] : memref<1152x128xbf16, #tpu.memory_space<vmem>>, vector<128x128xbf16>
    %cst_51 = arith.constant dense<0.000000e+00> : vector<256x128xf32>
    %58 = tpu.matmul %56, %57, %cst_51 {dimension_numbers = #tpu.dot_dimension_numbers<[1], [0], [0], [1], [0, 0, 1, 1], [], []>} : vector<256x128xbf16>, vector<128x128xbf16>, vector<256x128xf32> -> vector<256x128xf32>
    %59 = arith.addf %53, %58 : vector<256x128xf32>
    %c0_52 = arith.constant 0 : index
    %c0_53 = arith.constant 0 : index
    %60 = vector.load %arg3[%c0_52, %c0_53] : memref<1x128xf32, #tpu.memory_space<vmem>>, vector<1x128xf32>
    %61 = vector.broadcast %60 : vector<1x128xf32> to vector<256x128xf32>
    %62 = arith.addf %59, %61 : vector<256x128xf32>
    %cst_54 = arith.constant 0.000000e+00 : f32
    %63 = vector.broadcast %cst_54 : f32 to vector<256x128xf32>
    %64 = arith.maximumf %62, %63 : vector<256x128xf32>
    %cst_55 = arith.constant 0.000000e+00 : bf16
    %65 = vector.broadcast %cst_55 : bf16 to vector<1x32x128xbf16>
    %c0_56 = arith.constant 0 : index
    %c0_57 = arith.constant 0 : index
    %c0_58 = arith.constant 0 : index
    %66 = vector.load %arg7[%c0_56, %c0_57, %c0_58] : memref<18x32x128xbf16, #tpu.memory_space<vmem>>, vector<1x32x128xbf16>
    tpu.vector_store %arg7[%c0_56, %c0_57, %c0_58], %65 {strides = array<i32>} : memref<18x32x128xbf16, #tpu.memory_space<vmem>>, vector<1x32x128xbf16>,
    %cst_59 = arith.constant 0.000000e+00 : bf16
    %67 = vector.broadcast %cst_59 : bf16 to vector<1x32x128xbf16>
    %c17 = arith.constant 17 : index
    %c0_60 = arith.constant 0 : index
    %c0_61 = arith.constant 0 : index
    %68 = vector.load %arg7[%c17, %c0_60, %c0_61] : memref<18x32x128xbf16, #tpu.memory_space<vmem>>, vector<1x32x128xbf16>
    tpu.vector_store %arg7[%c17, %c0_60, %c0_61], %67 {strides = array<i32>} : memref<18x32x128xbf16, #tpu.memory_space<vmem>>, vector<1x32x128xbf16>,
    %69 = arith.truncf %64 : vector<256x128xf32> to vector<256x128xbf16>
    %70 = vector.shape_cast %69 : vector<256x128xbf16> to vector<16x16x128xbf16>
    %c1_62 = arith.constant 1 : index
    %c8 = arith.constant 8 : index
    %c0_63 = arith.constant 0 : index
    %71 = vector.load %arg7[%c1_62, %c8, %c0_63] : memref<18x32x128xbf16, #tpu.memory_space<vmem>>, vector<16x16x128xbf16>
    tpu.vector_store %arg7[%c1_62, %c8, %c0_63], %70 {strides = array<i32>} : memref<18x32x128xbf16, #tpu.memory_space<vmem>>, vector<16x16x128xbf16>,
    %cst_64 = arith.constant 0.000000e+00 : f32
    %72 = vector.broadcast %cst_64 : f32 to vector<256x128xf32>
    %c0_65 = arith.constant 0 : index
    %c7 = arith.constant 7 : index
    %c0_66 = arith.constant 0 : index
    %73 = vector.load %arg7[%c0_65, %c7, %c0_66] : memref<18x32x128xbf16, #tpu.memory_space<vmem>>, vector<16x16x128xbf16>
    %cst_67 = arith.constant 0.000000e+00 : bf16
    %74 = vector.broadcast %cst_67 : bf16 to vector<16x16x128xbf16>
    %75 = vector.shape_cast %2 : vector<1x16x128xi1> to vector<1x16x128xi1>
    %76 = vector.broadcast %75 : vector<1x16x128xi1> to vector<16x16x128xi1>
    %77 = arith.select %76, %73, %74 : vector<16x16x128xi1>, vector<16x16x128xbf16>
    %78 = vector.shape_cast %77 : vector<16x16x128xbf16> to vector<256x128xbf16>
    %c0_68 = arith.constant 0 : index
    %c0_69 = arith.constant 0 : index
    %79 = vector.load %arg4[%c0_68, %c0_69] : memref<1152x128xbf16, #tpu.memory_space<vmem>>, vector<128x128xbf16>
    %cst_70 = arith.constant dense<0.000000e+00> : vector<256x128xf32>
    %80 = tpu.matmul %78, %79, %cst_70 {dimension_numbers = #tpu.dot_dimension_numbers<[1], [0], [0], [1], [0, 0, 1, 1], [], []>} : vector<256x128xbf16>, vector<128x128xbf16>, vector<256x128xf32> -> vector<256x128xf32>
    %81 = arith.addf %72, %80 : vector<256x128xf32>
    %c0_71 = arith.constant 0 : index
    %c8_72 = arith.constant 8 : index
    %c0_73 = arith.constant 0 : index
    %82 = vector.load %arg7[%c0_71, %c8_72, %c0_73] : memref<18x32x128xbf16, #tpu.memory_space<vmem>>, vector<16x16x128xbf16>
    %83 = vector.shape_cast %82 : vector<16x16x128xbf16> to vector<256x128xbf16>
    %c128_74 = arith.constant 128 : index
    %c0_75 = arith.constant 0 : index
    %84 = vector.load %arg4[%c128_74, %c0_75] : memref<1152x128xbf16, #tpu.memory_space<vmem>>, vector<128x128xbf16>
    %cst_76 = arith.constant dense<0.000000e+00> : vector<256x128xf32>
    %85 = tpu.matmul %83, %84, %cst_76 {dimension_numbers = #tpu.dot_dimension_numbers<[1], [0], [0], [1], [0, 0, 1, 1], [], []>} : vector<256x128xbf16>, vector<128x128xbf16>, vector<256x128xf32> -> vector<256x128xf32>
    %86 = arith.addf %81, %85 : vector<256x128xf32>
    %c0_77 = arith.constant 0 : index
    %c9 = arith.constant 9 : index
    %c0_78 = arith.constant 0 : index
    %87 = vector.load %arg7[%c0_77, %c9, %c0_78] : memref<18x32x128xbf16, #tpu.memory_space<vmem>>, vector<16x16x128xbf16>
    %cst_79 = arith.constant 0.000000e+00 : bf16
    %88 = vector.broadcast %cst_79 : bf16 to vector<16x16x128xbf16>
    %89 = vector.shape_cast %4 : vector<1x16x128xi1> to vector<1x16x128xi1>
    %90 = vector.broadcast %89 : vector<1x16x128xi1> to vector<16x16x128xi1>
    %91 = arith.select %90, %87, %88 : vector<16x16x128xi1>, vector<16x16x128xbf16>
    %92 = vector.shape_cast %91 : vector<16x16x128xbf16> to vector<256x128xbf16>
    %c256_80 = arith.constant 256 : index
    %c0_81 = arith.constant 0 : index
    %93 = vector.load %arg4[%c256_80, %c0_81] : memref<1152x128xbf16, #tpu.memory_space<vmem>>, vector<128x128xbf16>
    %cst_82 = arith.constant dense<0.000000e+00> : vector<256x128xf32>
    %94 = tpu.matmul %92, %93, %cst_82 {dimension_numbers = #tpu.dot_dimension_numbers<[1], [0], [0], [1], [0, 0, 1, 1], [], []>} : vector<256x128xbf16>, vector<128x128xbf16>, vector<256x128xf32> -> vector<256x128xf32>
    %95 = arith.addf %86, %94 : vector<256x128xf32>
    %c1_83 = arith.constant 1 : index
    %c7_84 = arith.constant 7 : index
    %c0_85 = arith.constant 0 : index
    %96 = vector.load %arg7[%c1_83, %c7_84, %c0_85] : memref<18x32x128xbf16, #tpu.memory_space<vmem>>, vector<16x16x128xbf16>
    %cst_86 = arith.constant 0.000000e+00 : bf16
    %97 = vector.broadcast %cst_86 : bf16 to vector<16x16x128xbf16>
    %98 = vector.shape_cast %2 : vector<1x16x128xi1> to vector<1x16x128xi1>
    %99 = vector.broadcast %98 : vector<1x16x128xi1> to vector<16x16x128xi1>
    %100 = arith.select %99, %96, %97 : vector<16x16x128xi1>, vector<16x16x128xbf16>
    %101 = vector.shape_cast %100 : vector<16x16x128xbf16> to vector<256x128xbf16>
    %c384_87 = arith.constant 384 : index
    %c0_88 = arith.constant 0 : index
    %102 = vector.load %arg4[%c384_87, %c0_88] : memref<1152x128xbf16, #tpu.memory_space<vmem>>, vector<128x128xbf16>
    %cst_89 = arith.constant dense<0.000000e+00> : vector<256x128xf32>
    %103 = tpu.matmul %101, %102, %cst_89 {dimension_numbers = #tpu.dot_dimension_numbers<[1], [0], [0], [1], [0, 0, 1, 1], [], []>} : vector<256x128xbf16>, vector<128x128xbf16>, vector<256x128xf32> -> vector<256x128xf32>
    %104 = arith.addf %95, %103 : vector<256x128xf32>
    %c1_90 = arith.constant 1 : index
    %c8_91 = arith.constant 8 : index
    %c0_92 = arith.constant 0 : index
    %105 = vector.load %arg7[%c1_90, %c8_91, %c0_92] : memref<18x32x128xbf16, #tpu.memory_space<vmem>>, vector<16x16x128xbf16>
    %106 = vector.shape_cast %105 : vector<16x16x128xbf16> to vector<256x128xbf16>
    %c512_93 = arith.constant 512 : index
    %c0_94 = arith.constant 0 : index
    %107 = vector.load %arg4[%c512_93, %c0_94] : memref<1152x128xbf16, #tpu.memory_space<vmem>>, vector<128x128xbf16>
    %cst_95 = arith.constant dense<0.000000e+00> : vector<256x128xf32>
    %108 = tpu.matmul %106, %107, %cst_95 {dimension_numbers = #tpu.dot_dimension_numbers<[1], [0], [0], [1], [0, 0, 1, 1], [], []>} : vector<256x128xbf16>, vector<128x128xbf16>, vector<256x128xf32> -> vector<256x128xf32>
    %109 = arith.addf %104, %108 : vector<256x128xf32>
    %c1_96 = arith.constant 1 : index
    %c9_97 = arith.constant 9 : index
    %c0_98 = arith.constant 0 : index
    %110 = vector.load %arg7[%c1_96, %c9_97, %c0_98] : memref<18x32x128xbf16, #tpu.memory_space<vmem>>, vector<16x16x128xbf16>
    %cst_99 = arith.constant 0.000000e+00 : bf16
    %111 = vector.broadcast %cst_99 : bf16 to vector<16x16x128xbf16>
    %112 = vector.shape_cast %4 : vector<1x16x128xi1> to vector<1x16x128xi1>
    %113 = vector.broadcast %112 : vector<1x16x128xi1> to vector<16x16x128xi1>
    %114 = arith.select %113, %110, %111 : vector<16x16x128xi1>, vector<16x16x128xbf16>
    %115 = vector.shape_cast %114 : vector<16x16x128xbf16> to vector<256x128xbf16>
    %c640_100 = arith.constant 640 : index
    %c0_101 = arith.constant 0 : index
    %116 = vector.load %arg4[%c640_100, %c0_101] : memref<1152x128xbf16, #tpu.memory_space<vmem>>, vector<128x128xbf16>
    %cst_102 = arith.constant dense<0.000000e+00> : vector<256x128xf32>
    %117 = tpu.matmul %115, %116, %cst_102 {dimension_numbers = #tpu.dot_dimension_numbers<[1], [0], [0], [1], [0, 0, 1, 1], [], []>} : vector<256x128xbf16>, vector<128x128xbf16>, vector<256x128xf32> -> vector<256x128xf32>
    %118 = arith.addf %109, %117 : vector<256x128xf32>
    %c2_103 = arith.constant 2 : index
    %c7_104 = arith.constant 7 : index
    %c0_105 = arith.constant 0 : index
    %119 = vector.load %arg7[%c2_103, %c7_104, %c0_105] : memref<18x32x128xbf16, #tpu.memory_space<vmem>>, vector<16x16x128xbf16>
    %cst_106 = arith.constant 0.000000e+00 : bf16
    %120 = vector.broadcast %cst_106 : bf16 to vector<16x16x128xbf16>
    %121 = vector.shape_cast %2 : vector<1x16x128xi1> to vector<1x16x128xi1>
    %122 = vector.broadcast %121 : vector<1x16x128xi1> to vector<16x16x128xi1>
    %123 = arith.select %122, %119, %120 : vector<16x16x128xi1>, vector<16x16x128xbf16>
    %124 = vector.shape_cast %123 : vector<16x16x128xbf16> to vector<256x128xbf16>
    %c768_107 = arith.constant 768 : index
    %c0_108 = arith.constant 0 : index
    %125 = vector.load %arg4[%c768_107, %c0_108] : memref<1152x128xbf16, #tpu.memory_space<vmem>>, vector<128x128xbf16>
    %cst_109 = arith.constant dense<0.000000e+00> : vector<256x128xf32>
    %126 = tpu.matmul %124, %125, %cst_109 {dimension_numbers = #tpu.dot_dimension_numbers<[1], [0], [0], [1], [0, 0, 1, 1], [], []>} : vector<256x128xbf16>, vector<128x128xbf16>, vector<256x128xf32> -> vector<256x128xf32>
    %127 = arith.addf %118, %126 : vector<256x128xf32>
    %c2_110 = arith.constant 2 : index
    %c8_111 = arith.constant 8 : index
    %c0_112 = arith.constant 0 : index
    %128 = vector.load %arg7[%c2_110, %c8_111, %c0_112] : memref<18x32x128xbf16, #tpu.memory_space<vmem>>, vector<16x16x128xbf16>
    %129 = vector.shape_cast %128 : vector<16x16x128xbf16> to vector<256x128xbf16>
    %c896_113 = arith.constant 896 : index
    %c0_114 = arith.constant 0 : index
    %130 = vector.load %arg4[%c896_113, %c0_114] : memref<1152x128xbf16, #tpu.memory_space<vmem>>, vector<128x128xbf16>
    %cst_115 = arith.constant dense<0.000000e+00> : vector<256x128xf32>
    %131 = tpu.matmul %129, %130, %cst_115 {dimension_numbers = #tpu.dot_dimension_numbers<[1], [0], [0], [1], [0, 0, 1, 1], [], []>} : vector<256x128xbf16>, vector<128x128xbf16>, vector<256x128xf32> -> vector<256x128xf32>
    %132 = arith.addf %127, %131 : vector<256x128xf32>
    %c2_116 = arith.constant 2 : index
    %c9_117 = arith.constant 9 : index
    %c0_118 = arith.constant 0 : index
    %133 = vector.load %arg7[%c2_116, %c9_117, %c0_118] : memref<18x32x128xbf16, #tpu.memory_space<vmem>>, vector<16x16x128xbf16>
    %cst_119 = arith.constant 0.000000e+00 : bf16
    %134 = vector.broadcast %cst_119 : bf16 to vector<16x16x128xbf16>
    %135 = vector.shape_cast %4 : vector<1x16x128xi1> to vector<1x16x128xi1>
    %136 = vector.broadcast %135 : vector<1x16x128xi1> to vector<16x16x128xi1>
    %137 = arith.select %136, %133, %134 : vector<16x16x128xi1>, vector<16x16x128xbf16>
    %138 = vector.shape_cast %137 : vector<16x16x128xbf16> to vector<256x128xbf16>
    %c1024_120 = arith.constant 1024 : index
    %c0_121 = arith.constant 0 : index
    %139 = vector.load %arg4[%c1024_120, %c0_121] : memref<1152x128xbf16, #tpu.memory_space<vmem>>, vector<128x128xbf16>
    %cst_122 = arith.constant dense<0.000000e+00> : vector<256x128xf32>
    %140 = tpu.matmul %138, %139, %cst_122 {dimension_numbers = #tpu.dot_dimension_numbers<[1], [0], [0], [1], [0, 0, 1, 1], [], []>} : vector<256x128xbf16>, vector<128x128xbf16>, vector<256x128xf32> -> vector<256x128xf32>
    %141 = arith.addf %132, %140 : vector<256x128xf32>
    %c0_123 = arith.constant 0 : index
    %c1_124 = arith.constant 1 : index
    %c1_125 = arith.constant 1 : index
    %c0_126 = arith.constant 0 : index
    %142 = vector.load %arg1[%c0_123, %c1_124, %c1_125, %c0_126] : memref<1x18x24x128xbf16, #tpu.memory_space<vmem>>, vector<1x16x16x128xbf16>
    %143 = vector.shape_cast %142 : vector<1x16x16x128xbf16> to vector<16x16x128xbf16>
    %144 = vector.shape_cast %143 : vector<16x16x128xbf16> to vector<256x128xbf16>
    %145 = arith.extf %144 : vector<256x128xbf16> to vector<256x128xf32>
    %c0_127 = arith.constant 0 : index
    %c0_128 = arith.constant 0 : index
    %146 = vector.load %arg5[%c0_127, %c0_128] : memref<1x128xf32, #tpu.memory_space<vmem>>, vector<1x128xf32>
    %147 = vector.broadcast %146 : vector<1x128xf32> to vector<256x128xf32>
    %148 = arith.addf %141, %147 : vector<256x128xf32>
    %149 = arith.addf %148, %145 : vector<256x128xf32>
    %cst_129 = arith.constant 0.000000e+00 : f32
    %150 = vector.broadcast %cst_129 : f32 to vector<256x128xf32>
    %151 = arith.maximumf %149, %150 : vector<256x128xf32>
    %152 = arith.truncf %151 : vector<256x128xf32> to vector<256x128xbf16>
    %c0_130 = arith.constant 0 : index
    %c0_131 = arith.constant 0 : index
    %c0_132 = arith.constant 0 : index
    %153 = vector.load %arg6[%c0_130, %c0_131, %c0_132] : memref<1x256x128xbf16, #tpu.memory_space<vmem>>, vector<1x256x128xbf16>
    %154 = vector.shape_cast %153 : vector<1x256x128xbf16> to vector<256x128xbf16>
    %155 = vector.shape_cast %152 : vector<256x128xbf16> to vector<1x256x128xbf16>
    tpu.vector_store %arg6[%c0_130, %c0_131, %c0_132], %155 {strides = array<i32>} : memref<1x256x128xbf16, #tpu.memory_space<vmem>>, vector<1x256x128xbf16>,
    return
  }
  func.func @transform_0(%arg0: i32) -> (i32, i32, i32, i32) {
    %c0_i32 = arith.constant 0 : i32
    %c0_i32_0 = arith.constant 0 : i32
    %c0_i32_1 = arith.constant 0 : i32
    %c0_i32_2 = arith.constant 0 : i32
    return %arg0, %c0_i32, %c0_i32_0, %c0_i32_1 : i32, i32, i32, i32
  }
  func.func @transform_1(%arg0: i32) -> (i32, i32) {
    %c0_i32 = arith.constant 0 : i32
    %c0_i32_0 = arith.constant 0 : i32
    %c0_i32_1 = arith.constant 0 : i32
    return %c0_i32, %c0_i32_0 : i32, i32
  }
  func.func @transform_2(%arg0: i32) -> (i32, i32) {
    %c0_i32 = arith.constant 0 : i32
    %c0_i32_0 = arith.constant 0 : i32
    %c0_i32_1 = arith.constant 0 : i32
    return %c0_i32, %c0_i32_0 : i32, i32
  }
  func.func @transform_3(%arg0: i32) -> (i32, i32) {
    %c0_i32 = arith.constant 0 : i32
    %c0_i32_0 = arith.constant 0 : i32
    %c0_i32_1 = arith.constant 0 : i32
    return %c0_i32, %c0_i32_0 : i32, i32
  }
  func.func @transform_4(%arg0: i32) -> (i32, i32) {
    %c0_i32 = arith.constant 0 : i32
    %c0_i32_0 = arith.constant 0 : i32
    %c0_i32_1 = arith.constant 0 : i32
    return %c0_i32, %c0_i32_0 : i32, i32
  }
  func.func @transform_5(%arg0: i32) -> (i32, i32, i32) {
    %c0_i32 = arith.constant 0 : i32
    %c0_i32_0 = arith.constant 0 : i32
    %c0_i32_1 = arith.constant 0 : i32
    return %arg0, %c0_i32, %c0_i32_0 : i32, i32, i32
  }
}

</mosaic_0001>

<bundles_post_ra>
// kernel: tpu_custom_call.1
= control target key start
LH: loop header
LB: loop body
LE: loop exit
PB: predicated region body
PF: predicated region fallthrough
CT: control target
= control target key end

     0   :  { %10 = vsyncpa [#allocation4], 0  ;;  %s17072_s0 = inlined_call_operand.hbm [shape: bf16[4,18,24,128], index: 0, kind: input, shape index: {}]   ;;  %s17073_s1 = inlined_call_operand.hbm [shape: bf16[1152,128], index: 1, kind: input, shape index: {}]   ;;  %s17074_s2 = inlined_call_operand.vmem [shape: f32[1,128], index: 2, kind: input, shape index: {}]   ;;  %s17075_s3 = inlined_call_operand.hbm [shape: bf16[1152,128], index: 3, kind: input, shape index: {}]   ;;  %s17076_s4 = inlined_call_operand.vmem [shape: f32[1,128], index: 4, kind: input, shape index: {}]   ;;  %s17077_s5 = inlined_call_operand.hbm [shape: bf16[4,256,128], index: 5, kind: output, shape index: {}]  }
   0x1   :  { %12 = vsyncpa [#allocation4 + $0x1], 0 }
   0x2   :  { %13 = vsyncpa [#allocation7], 0 }
   0x3   :  { %14 = vsyncpa [#allocation5], 0 }
   0x4   :  { %16 = vsyncpa [#allocation5 + $0x1], 0  ;;  %s13855_s18 = smov 0   ;;  %s13857_s19 = smov 0  }
   0x5   :  { %s13859_s20 = smov 0   ;;  %s13861_s21 = smov 0  }
   0x6 LB: > { %s13876_s22 = sadd.s32 4294967295, %s13813_s21   ;;  %s10813_s23 = sadd.s32 4294967294, %s13813_s21   ;;  %s13813_s21 = sphi %s13861_s21, %s17289_s21   ;;  %s13809_s20 = sphi %s13859_s20, %s17288_s20   ;;  %s13805_s19 = sphi %s13857_s19, %s17287_s19   ;;  %s13801_s18 = sphi %s13855_s18, %s17286_s18  }
   0x7   : > { %p42_p0 = scmp.ne.s32.totalorder %s13805_s19, %s13801_s18  ;;  %p17078_p1 = scmp.eq.s32.totalorder %s13876_s22, 0 }
   0x8   : > { %p156_p3 = scmp.eq.s32.totalorder %s10813_s23, 3  ;;  %p10814_p5 = scmp.ge.s32.totalorder %s13813_s21, 1 }
   0x9   : > { %p13885_p4 = por %p17078_p1, %p42_p0  ;;  %p163_p7 = scmp.lt.s32.totalorder %s13813_s21, 5 }
   0xa   : > { %p13890_p6 = por %p156_p3, %p42_p0  ;;  %s13815_s27 = smov [#allocation6]  }
   0xb   : > { %s17130_s24 = scalar_select %p13885_p4, 1, 0 }
   0xc   : > { %s17131_s25 = scalar_select %p13890_p6, 1, 0 }
   0xd   : > { %p13895_p8 = pnand %p10814_p5, %p163_p7  ;;  %s175_s28 = sshll.u32 %s13815_s27, 4  ;;  %s176_s28 = int_to_ptr.vmem [resolvable:$true] %s175_s28 }
   0xe   : > { %s13816_s30 = smov [#allocation8]   ;;  %s13657_s9 = scalar_lea.hbm %s17073_s1, 9216 }
   0xf   : > { %s17132_s26 = scalar_select %p13895_p8, 1, 0 }
  0x10   : > { %p13391_p9 = pneg %p13895_p8  ;;  %s191_s6 = sshll.u32 %s13816_s30, 4  ;;  %s13907_s6 = int_to_ptr.vmem [resolvable:$true] %s191_s6 }
  0x11   : > { %p13658_p11 = scmp.ne.s32.totalorder %s17073_s1, %s13657_s9  ;;  %p13664_p3 = scmp.lt.u32.totalorder %s13657_s9, %s17073_s1 }
  0x12   : > { %p13903_p10 = pnand %p13391_p9, %p17078_p1 }
  0x14   : > { %p13659_p12 = pneg %p13903_p10 }
  0x16   : > { %p13660_p13 = pnand %p13659_p12, %p13658_p11 }
  0x18   : > { %p13661_p0 = pneg %p13660_p13 }
  0x1a   : > { %p13666_p5 = pnand %p13664_p3, %p13661_p0 }
  0x1c   : > { %13669 = shalt.err (!%p13666_p5)
}
  0x1d   : > { %s13670_s14 = scalar_lea.vmem %s176_s28, 9216  ;;  %p13678_p2 = scmp.lt.s32.totalorder %s176_s28, %s176_s28 }
  0x1e   : > { %p13671_p7 = scmp.ne.s32.totalorder %s176_s28, %s13670_s14  ;;  %p13679_p6 = scmp.lt.s32.totalorder %s13670_s14, %s13670_s14 }
  0x20   : > { %p13673_p9 = pnand %p13671_p7, %p13659_p12  ;;  %p13680_p4 = por %p13679_p6, %p13678_p2 }
  0x22   : > { %p13674_p1 = pneg %p13673_p9 }
  0x24   : > { %p13681_p8 = pnand %p13680_p4, %p13674_p1 }
  0x26   : > { %13684 = shalt.err (!%p13681_p8)
}
  0x27   : > { %s17081_s15 = smov 64   ;;  %s13818_s16 = smov 4  }
  0x28   : > { %13394 = dma.hbm_to_vmem [thread:$0]  (!%p13903_p10), %s17073_s1, 9216, %s176_s28, [#allocation7], %s17081_s15, %s17081_s15, %s13818_s16  }
  0x29   : > { %s13685_s7 = scalar_lea.hbm %s17075_s3, 9216 }
  0x2a   : > { %p13686_p1 = scmp.ne.s32.totalorder %s17075_s3, %s13685_s7  ;;  %p13692_p6 = scmp.lt.u32.totalorder %s13685_s7, %s17075_s3 }
  0x2c   : > { %p13688_p2 = pnand %p13686_p1, %p13659_p12 }
  0x2e   : > { %p13689_p4 = pneg %p13688_p2 }
  0x30   : > { %p13694_p8 = pnand %p13692_p6, %p13689_p4 }
  0x32   : > { %13697 = shalt.err (!%p13694_p8)
}
  0x33   : > { %s13698_s28 = scalar_lea.vmem %s13907_s6, 9216  ;;  %p13706_p3 = scmp.lt.s32.totalorder %s13907_s6, %s13907_s6 }
  0x34   : > { %p13699_p11 = scmp.ne.s32.totalorder %s13907_s6, %s13698_s28  ;;  %p13707_p5 = scmp.lt.s32.totalorder %s13698_s28, %s13698_s28 }
  0x36   : > { %p13701_p13 = pnand %p13699_p11, %p13659_p12  ;;  %p13708_p7 = por %p13707_p5, %p13706_p3 }
  0x38   : > { %p13702_p0 = pneg %p13701_p13 }
  0x3a   : > { %p13709_p9 = pnand %p13708_p7, %p13702_p0 }
  0x3c   : > { %13712 = shalt.err (!%p13709_p9)
}
  0x3d   : > { %13397 = dma.hbm_to_vmem [thread:$0]  (!%p13903_p10), %s17075_s3, 9216, %s13907_s6, [#allocation7], %s17081_s15, %s17081_s15, %s13818_s16  }
  0x3e   : > { %s13963_s29 = sadd.s32 1, %s13813_s21   ;;  %s29_s14 = sadd.s32 1, %s13809_s20 }
  0x3f   : > { %s26_s17 = ssub.s32 %s13813_s21, %s13963_s29  ;;  %p36_p12 = scmp.ne.s32.totalorder %s13809_s20, %s13805_s19 }
  0x40   : > { %p27_p1 = scmp.eq.s32.totalorder %s26_s17, 0  ;;  %p37_p2 = scmp.eq.s32.totalorder %s13813_s21, 0 }
  0x41   : > { %p17134_p4 = scmp.eq.s32.totalorder %s13876_s22, 3  ;;  %p13408_p8 = scmp.lt.s32.totalorder %s13813_s21, 4 }
  0x42   : > { %s13979_s27 = scalar_select %p27_p1, %s13809_s20, %s29_s14  }
  0x43   : > { %p13973_p6 = por %p17134_p4, %p36_p12  ;;  %p38_p11 = por %p37_p2, %p36_p12 }
  0x44   : > { %s208_s30 = sand.u32 1, %s13809_s20   ;;  %s13377_s6 = smul.u32 3456, %s13813_s21 }
  0x45   : > { %s13376_s7 = smul.u32 216, %s208_s30  ;;  %p13983_p10 = pnand %p13408_p8, %p38_p11 }
  0x46   : > { %s13990_s11 = scalar_lea.hbm %s17072_s0, %s13377_s6  ;;  %s13994_s13 = scalar_lea.sflag [#allocation4], %s208_s30 }
  0x47   : > { %s212_s28 = scalar_lea.vmem [#allocation3], %s13376_s7  ;;  %s13713_s14 = scalar_lea.hbm %s13990_s11, 3456 }
  0x48   : > { %s219_s12 = sshll.u32 %s212_s28, 4  ;;  %p13714_p13 = scmp.ne.s32.totalorder %s13990_s11, %s13713_s14  ;;  %s13992_s12 = int_to_ptr.vmem [resolvable:$true] %s219_s12 }
  0x49   : > { %p13715_p0 = pneg %p13983_p10  ;;  %s13718_s9 = scalar_lea.hbm %s17072_s0, 13824 }
  0x4a   : > { %p13719_p7 = scmp.lt.u32.totalorder %s13990_s11, %s17072_s0  ;;  %p13720_p9 = scmp.lt.u32.totalorder %s13718_s9, %s13713_s14 }
  0x4b   : > { %p13716_p3 = pnand %p13715_p0, %p13714_p13  ;;  %p13722_p1 = scmp.lt.u32.totalorder %s13713_s14, %s13990_s11 }
  0x4c   : > { %p13721_p12 = por %p13720_p9, %p13719_p7 }
  0x4d   : > { %p13717_p5 = pneg %p13716_p3 }
  0x4e   : > { %p13723_p2 = por %p13722_p1, %p13721_p12 }
  0x50   : > { %p13724_p4 = pnand %p13723_p2, %p13717_p5 }
  0x52   : > { %13727 = shalt.err (!%p13724_p4)
}
  0x53   : > { %s13728_s30 = scalar_lea.vmem %s13992_s12, 3456  ;;  %s13819_s7 = smov [#allocation3]  }
  0x54   : > { %p13729_p8 = scmp.ne.s32.totalorder %s13992_s12, %s13728_s30  ;;  %s13733_s28 = sshll.u32 %s13819_s7, 4  ;;  %s13734_s28 = int_to_ptr.vmem [resolvable:$false] %s13733_s28 }
  0x55   : > { %s13735_s15 = scalar_lea.vmem %s13734_s28, 6912  ;;  %p13736_p3 = scmp.lt.s32.totalorder %s13992_s12, %s13734_s28 }
  0x56   : > { %p13731_p11 = pnand %p13729_p8, %p13715_p0  ;;  %p13737_p7 = scmp.lt.s32.totalorder %s13735_s15, %s13728_s30 }
  0x58   : > { %p13732_p13 = pneg %p13731_p11  ;;  %p13738_p9 = por %p13737_p7, %p13736_p3 }
  0x5a   : > { %p13739_p12 = pnand %p13738_p9, %p13732_p13 }
  0x5c   : > { %13742 = shalt.err (!%p13739_p12)
}
  0x5d   : > { %s17137_s14 = smov 64   ;;  %p17138_p0 = scmp.ne.s32.totalorder %s17132_s26, 0 }
  0x5e   : > { %13401 = dma.hbm_to_vmem [thread:$0]  (!%p13983_p10), %s13990_s11, 3456, %s13992_s12, %s13994_s13, %s17137_s14, %s17137_s14, %s13818_s16  }
  0x5f   : > { %231 = sbr.rel (%p17138_p0) target bundleno = 1696 (0x6a0), region = 40 }
  0x66   : > { %s14028_s17 = sand.u32 1, %s13805_s19   ;;  %p17139_p5 = scmp.ne.s32.totalorder %s17130_s24, 0 }
  0x67   : > { %s13378_s6 = smul.u32 216, %s14028_s17  ;;  %s234_s9 = scalar_lea.sflag [#allocation4], %s14028_s17 }
  0x69   : > { %s14032_s10 = scalar_lea.vmem [#allocation3], %s13378_s6 }
  0x6a   : > { %13788 = dma.done.wait (%p17139_p5), %s234_s9, 3456  }
  0x6b   : > { %13790 = vsyncadd (%p17139_p5), %s234_s9, 4294963840  ;;  %p17140_p10 = scmp.eq.s32.totalorder %s13876_s22, 0 }
  0x6d   : > { %13792 = dma.done.wait (%p17140_p10), [#allocation7], 18432   ;;  %p17141_p1 = pmov %p17140_p10 }
  0x6e   : > { %v13452_v0 = vld [vmem:[#allocation6 + $0x40] sm:$0xff]   ;;  %v13453_v1 = vld [vmem:[#allocation6 + $0x48] sm:$0xff]   ;;  %v13454_v2 = vld [vmem:[#allocation6 + $0x50] sm:$0xff]   ;;  %vm346_vm0 = vsmask.f32 3328  ;;  %v17142_v29 = vmov 0 }
  0x6f   : > { %13794 = vsyncadd (%p17141_p1), [#allocation7], 4294948864  ;;  %12000 = vmatprep.subr.bf16.mxu0 %v13452_v0  ;;  %vm347_vm1 = vsmask.f32 7440  ;;  %v13455_v3 = vld [vmem:[#allocation6 + $0x58] sm:$0xff]   ;;  %v13456_v12 = vld [vmem:[#allocation6 + $0x60] sm:$0xff]  }
  0x70   : > { %12001 = vmatpush3.bf16.msra.mxu0 %v13452_v0  ;;  %v14043_v4 = vld [vmem:[%s14032_s10] sm:$0xf]  ;;  %v14046_v5 = vld [vmem:[%s14032_s10 + $0x4] sm:$0xf]  ;;  %v330_v6 = vld [vmem:[%s14032_s10 + $0x8] sm:$0x1] }
  0x71   : > { %12002 = vmatprep.subr.bf16.mxu0 %v13453_v1  ;;  %v350_v7 = vshrl.u32 %v14043_v4, 16  ;;  %v353_v8 = vshll.u32 %v14043_v4, 16  ;;  %v359_v9 = vshll.u32 %v14046_v5, 16  ;;  %v363_v10 = vshrl.u32 %v14046_v5, 16  ;;  %v14054_v11 = vld [vmem:[%s14032_s10 + $0xc] sm:$0xf]  ;;  %vm14069_vm2 = vmor %vm346_vm0, %vm347_vm1 }
  0x72   : > { %v369_v13 = vshll.u32 %v330_v6, 16  ;;  %v14057_v14 = vld [vmem:[%s14032_s10 + $0x10] sm:$0xf]  ;;  %v331_v15 = vld [vmem:[%s14032_s10 + $0x14] sm:$0x1]  ;;  %v374_v21 = vshrl.u32 %v14054_v11, 16 }
  0x73   : > { %v352_v16 = vrot.slane %v350_v7, 4  ;;  %v355_v17 = vrot.slane %v353_v8, 5  ;;  %v361_v18 = vrot.slane %v359_v9, 5  ;;  %v365_v19 = vrot.slane %v363_v10, 4  ;;  %v14065_v28 = vld [vmem:[%s14032_s10 + $0x18] sm:$0xf] }
  0x74   : > { %12003 = vmatpush3.bf16.msra.mxu0 %v13453_v1  ;;  %v371_v20 = vrot.slane %v369_v13, 5  ;;  %v377_v22 = vshll.u32 %v14054_v11, 16  ;;  %v383_v23 = vshll.u32 %v14057_v14, 16  ;;  %v387_v26 = vshrl.u32 %v14057_v14, 16  ;;  %v14074_v33 = vld [vmem:[%s14032_s10 + $0x1c] sm:$0xf] }
  0x75   : > { %12004 = vmatprep.subr.bf16.mxu0 %v13454_v2  ;;  %v356_v24 = vor.u32 %v355_v17, %v352_v16  ;;  %v366_v25 = vor.u32 %v365_v19, %v361_v18  ;;  %v393_v27 = vshll.u32 %v331_v15, 16  ;;  %v17143_v29 = vsel %vm14069_vm2, 4294967295, %v17142_v29  ;;  %v13457_v38 = vld [vmem:[#allocation6 + $0x68] sm:$0xff]   ;;  %v14089_v49 = vld [vmem:[%s14032_s10 + $0x28] sm:$0xf]  ;;  %s10822_s11 = sshll.u32 %s14028_s17, 7 }
  0x76   : > { %17144 = vst [vmem:[#allocation13_spill] sm:$0xff] %v17143_v29  ;;  %v376_v30 = vrot.slane %v374_v21, 4  ;;  %v379_v31 = vrot.slane %v377_v22, 5  ;;  %v385_v32 = vrot.slane %v383_v23, 5  ;;  %v389_v36 = vrot.slane %v387_v26, 4  ;;  %v13458_v58 = vld [vmem:[#allocation6 + $0x70] sm:$0xff]  }
  0x77   : > { %v357_v34 = vrot.slane %v356_v24, 4  ;;  %v367_v35 = vrot.slane %v366_v25, 4  ;;  %v395_v37 = vrot.slane %v393_v27, 5  ;;  %v332_v40 = vld [vmem:[%s14032_s10 + $0x20] sm:$0x1]  ;;  %v398_v41 = vshrl.u32 %v14065_v28, 16 }
  0x78   : > { %12005 = vmatpush3.bf16.msra.mxu0 %v13454_v2  ;;  %v380_v39 = vor.u32 %v379_v31, %v376_v30  ;;  %v401_v42 = vshll.u32 %v14065_v28, 16  ;;  %v407_v43 = vshll.u32 %v14074_v33, 16  ;;  %v390_v46 = vor.u32 %v389_v36, %v385_v32  ;;  %v14086_v48 = vld [vmem:[%s14032_s10 + $0x24] sm:$0xf]  ;;  %v14094_v61 = vld [vmem:[%s14032_s10 + $0x2c] sm:$0x1] }
  0x79   : > { %12006 = vmatprep.subr.bf16.mxu0 %v13455_v3  ;;  %v362_v44 = vsel %vm14069_vm2, %v357_v34, %v361_v18  ;;  %v372_v45 = vsel %vm14069_vm2, %v367_v35, %v371_v20  ;;  %v411_v47 = vshrl.u32 %v14074_v33, 16  ;;  %v400_v52 = vrot.slane %v398_v41, 4  ;;  %v14102_v6 = vld [vmem:[%s14032_s10 + $0x30] sm:$0xf]  ;;  %v14107_v13 = vld [vmem:[%s14032_s10 + $0x34] sm:$0xf] }
  0x7a   : > { %v10823_v50 = vcombine.low %v362_v44, %v372_v45  ;;  %v381_v51 = vrot.slane %v380_v39, 4  ;;  %v403_v53 = vrot.slane %v401_v42, 5  ;;  %v391_v54 = vrot.slane %v390_v46, 4  ;;  %v13459_v7 = vld [vmem:[#allocation6 + $0x78] sm:$0xff]   ;;  %v14112_v19 = vld [vmem:[%s14032_s10 + $0x38] sm:$0x1] }
  0x7b   : > { %v409_v55 = vrot.slane %v407_v43, 5  ;;  %v413_v56 = vrot.slane %v411_v47, 4  ;;  %v417_v57 = vshll.u32 %v332_v40, 16  ;;  %v422_v62 = vshrl.u32 %v14086_v48, 16  ;;  %v14122_v30 = vld [vmem:[%s14032_s10 + $0x3c] sm:$0xf] }
  0x7c   : > { %12007 = vmatpush3.bf16.msra.mxu0 %v13455_v3  ;;  %12016 = vmatprep.mubr.bf16.mxu0 %v10823_v50  ;;  %v386_v59 = vsel %vm14069_vm2, %v381_v51, %v385_v32  ;;  %v404_v60 = vor.u32 %v403_v53, %v400_v52  ;;  %v425_v63 = vshll.u32 %v14086_v48, 16  ;;  %v396_v0 = vsel %vm14069_vm2, %v391_v54, %v395_v37  ;;  %v14125_v36 = vld [vmem:[%s14032_s10 + $0x40] sm:$0xf]  ;;  %v13460_v41 = vld [vmem:[#allocation6] sm:$0xff]   ;;  %v14132_v44 = vld [vmem:[%s14032_s10 + $0x44] sm:$0x1] }
  0x7d   : > { %12008 = vmatprep.subr.bf16.mxu0 %v13456_v12  ;;  %v414_v1 = vor.u32 %v413_v56, %v409_v55  ;;  %v419_v2 = vrot.slane %v417_v57, 5  ;;  %v431_v3 = vshll.u32 %v14089_v49, 16  ;;  %v14104_v8 = vcombine.low %v386_v59, %v396_v0  ;;  %v14138_v53 = vld [vmem:[%s14032_s10 + $0x48] sm:$0xf]  ;;  %s16880_s12 = scalar_lea.vmem [#allocation9], %s10822_s11  ;;  %s11472_s13 = sshll.u32 %s13876_s22, 11 }
  0x7e   : > { %v405_v9 = vrot.slane %v404_v60, 4  ;;  %v424_v10 = vrot.slane %v422_v62, 4  ;;  %v435_v17 = vshrl.u32 %v14089_v49, 16  ;;  %v441_v18 = vshll.u32 %v14094_v61, 16  ;;  %s10721_s30 = sshll.u32 %s16880_s12, 4  ;;  %s17025_s15 = scalar_lea.hbm %s17077_s5, %s11472_s13  ;;  %s17027_s30 = int_to_ptr.vmem [resolvable:$true] %s10721_s30 }
  0x7f   : > { %v415_v15 = vrot.slane %v414_v1, 4  ;;  %v433_v16 = vrot.slane %v431_v3, 5  ;;  %v446_v22 = vshrl.u32 %v14102_v6, 16  ;;  %v449_v23 = vshll.u32 %v14102_v6, 16  ;;  %v13461_v1 = vld [vmem:[#allocation6 + $0x8] sm:$0xff]   ;;  %s10708_s22 = scalar_lea.sflag [#allocation5], %s14028_s17 }
  0x80   : > { %12009 = vmatpush3.bf16.msra.mxu0 %v13456_v12  ;;  %v427_v12 = vrot.slane %v425_v63, 5  ;;  %v410_v20 = vsel %vm14069_vm2, %v405_v9, %v409_v55  ;;  %v437_v25 = vrot.slane %v435_v17, 4  ;;  %v443_v26 = vrot.slane %v441_v18, 5  ;;  %v14145_v63 = vld [vmem:[%s14032_s10 + $0x4c] sm:$0xf]  ;;  %s13743_s14 = scalar_lea.vmem %s17027_s30, 2048 }
  0x81   : > { %12010 = vmatprep.subr.bf16.mxu0 %v13457_v38  ;;  %v420_v24 = vsel %vm14069_vm2, %v415_v15, %v419_v2  ;;  %v455_v27 = vshll.u32 %v14107_v13, 16  ;;  %v448_v34 = vrot.slane %v446_v22, 4  ;;  %v451_v35 = vrot.slane %v449_v23, 5  ;;  %v14158_v22 = vld [vmem:[%s14032_s10 + $0x54] sm:$0xf]  ;;  %p13744_p2 = scmp.ne.s32.totalorder %s17027_s30, %s13743_s14  ;;  %s13822_s6 = smov [#allocation9]  }
  0x82   : > { %v428_v21 = vor.u32 %v427_v12, %v424_v10  ;;  %v10825_v31 = vcombine.low %v410_v20, %v420_v24  ;;  %v438_v37 = vor.u32 %v437_v25, %v433_v16  ;;  %v459_v39 = vshrl.u32 %v14107_v13, 16  ;;  %v14150_v10 = vld [vmem:[%s14032_s10 + $0x50] sm:$0x1]  ;;  %v13462_v24 = vld [vmem:[#allocation6 + $0x10] sm:$0xff]   ;;  %s13747_s9 = sshll.u32 %s13822_s6, 4  ;;  %s13748_s9 = int_to_ptr.vmem [resolvable:$false] %s13747_s9 }
  0x83   : > { %v465_v40 = vshll.u32 %v14112_v19, 16  ;;  %v452_v43 = vor.u32 %v451_v35, %v448_v34  ;;  %v470_v45 = vshrl.u32 %v14122_v30, 16  ;;  %v473_v46 = vshll.u32 %v14122_v30, 16  ;;  %p13745_p4 = pnand %p13744_p2, %p13973_p6  ;;  %p13750_p11 = scmp.lt.s32.totalorder %s17027_s30, %s13748_s9 }
  0x84   : > { %12011 = vmatpush3.bf16.msra.mxu0 %v13457_v38  ;;  %v429_v32 = vrot.slane %v428_v21, 4  ;;  %v457_v38 = vrot.slane %v455_v27, 5  ;;  %v439_v47 = vrot.slane %v438_v37, 4  ;;  %v461_v50 = vrot.slane %v459_v39, 4 }
  0x85   : > { %12012 = vmatprep.subr.bf16.mxu0 %v13458_v58  ;;  %v467_v51 = vrot.slane %v465_v40, 5  ;;  %v479_v52 = vshll.u32 %v14125_v36, 16  ;;  %v453_v54 = vrot.slane %v452_v43, 4  ;;  %v472_v55 = vrot.slane %v470_v45, 4  ;;  %v14169_v40 = vld [vmem:[%s14032_s10 + $0x5c] sm:$0x1]  ;;  %p13746_p8 = pneg %p13745_p4 }
  0x86   : > { %v434_v42 = vsel %vm14069_vm2, %v429_v32, %v433_v16  ;;  %v475_v56 = vrot.slane %v473_v46, 5  ;;  %v483_v57 = vshrl.u32 %v14125_v36, 16  ;;  %v462_v59 = vor.u32 %v461_v50, %v457_v38 }
  0x87   : > { %v481_v60 = vrot.slane %v479_v52, 5  ;;  %v489_v62 = vshll.u32 %v14132_v44, 16  ;;  %v458_v2 = vsel %vm14069_vm2, %v453_v54, %v457_v38  ;;  %v494_v15 = vshrl.u32 %v14138_v53, 16 }
  0x88   : > { %12013 = vmatpush3.bf16.msra.mxu0 %v13458_v58  ;;  %v444_v58 = vsel %vm14069_vm2, %v439_v47, %v443_v26  ;;  %v476_v3 = vor.u32 %v475_v56, %v472_v55  ;;  %v485_v9 = vrot.slane %v483_v57, 4  ;;  %v497_v16 = vshll.u32 %v14138_v53, 16  ;;  %v14178_v47 = vld [vmem:[%s14032_s10 + $0x60] sm:$0xf]  ;;  %v13463_v55 = vld [vmem:[#allocation6 + $0x18] sm:$0xff]  }
  0x89   : > { %12014 = vmatprep.subr.bf16.mxu0 %v13459_v7  ;;  %v10826_v0 = vcombine.low %v434_v42, %v444_v58  ;;  %v491_v12 = vrot.slane %v489_v62, 5  ;;  %v503_v20 = vshll.u32 %v14145_v63, 16  ;;  %v507_v21 = vshrl.u32 %v14145_v63, 16  ;;  %v14181_v56 = vld [vmem:[%s14032_s10 + $0x64] sm:$0xf] }
  0x8a   : > { %v477_v17 = vrot.slane %v476_v3, 4  ;;  %v486_v18 = vor.u32 %v485_v9, %v481_v60  ;;  %v496_v25 = vrot.slane %v494_v15, 4  ;;  %v499_v26 = vrot.slane %v497_v16, 5  ;;  %v14185_v62 = vld [vmem:[%s14032_s10 + $0x68] sm:$0x1] }
  0x8b   : > { %v513_v27 = vshll.u32 %v14150_v10, 16  ;;  %v505_v37 = vrot.slane %v503_v20, 5  ;;  %v521_v43 = vshll.u32 %v14158_v22, 16  ;;  %17145 = vst [vmem:[#allocation14_spill] sm:$0xff] %v14185_v62  ;;  %v542_v3 = vshrl.u32 %v14178_v47, 16 }
  0x8c   : > { %12015 = vmatpush3.bf16.msra.mxu0 %v13459_v7  ;;  %v463_v7 = vrot.slane %v462_v59, 4  ;;  %v482_v34 = vsel %vm14069_vm2, %v477_v17, %v481_v60  ;;  %v487_v35 = vrot.slane %v486_v18, 4  ;;  %v500_v38 = vor.u32 %v499_v26, %v496_v25  ;;  %v14199_v25 = vld [vmem:[%s14032_s10 + $0x70] sm:$0xf] }
  0x8d   : > { %12048 = vmatprep.subr.bf16.mxu0 %v13460_v41  ;;  %v515_v39 = vrot.slane %v513_v27, 5  ;;  %v523_v57 = vrot.slane %v521_v43, 5  ;;  %v537_v60 = vshll.u32 %v14169_v40, 16  ;;  %v545_v9 = vshll.u32 %v14178_v47, 16 }
  0x8e   : > { %v468_v23 = vsel %vm14069_vm2, %v463_v7, %v467_v51  ;;  %v492_v42 = vsel %vm14069_vm2, %v487_v35, %v491_v12  ;;  %v501_v51 = vrot.slane %v500_v38, 4  ;;  %v14192_v7 = vld [vmem:[%s14032_s10 + $0x6c] sm:$0xf]  ;;  %v551_v17 = vshll.u32 %v14181_v56, 16  ;;  %v13464_v35 = vld [vmem:[#allocation6 + $0x20] sm:$0xff]  }
  0x8f   : > { %12017 = vmatmul.mubr.bf16.vlgmr.msra.gmra.mrb[0].mxu0 %v14104_v8  ;;  %v14164_v8 = vld [vmem:[%s14032_s10 + $0x58] sm:$0xf]  ;;  %v10827_v32 = vcombine.low %v458_v2, %v468_v23  ;;  %v10828_v50 = vcombine.low %v482_v34, %v492_v42  ;;  %v539_v16 = vrot.slane %v537_v60, 5  ;;  %v544_v20 = vrot.slane %v542_v3, 4 }
  0x90   : > { %12049 = vmatpush3.bf16.msra.mxu0 %v13460_v41  ;;  %12020 = vmatprep.mubr.bf16.mxu0 %v10825_v31  ;;  %v509_v31 = vrot.slane %v507_v21, 4  ;;  %v518_v41 = vshrl.u32 %v14158_v22, 16  ;;  %v527_v45 = vshll.u32 %v14164_v8, 16  ;;  %v531_v46 = vshrl.u32 %v14164_v8, 16 }
  0x91   : > { %12050 = vmatprep.subr.bf16.mxu0 %v13461_v1  ;;  %v506_v2 = vsel %vm14069_vm2, %v501_v51, %v505_v37  ;;  %v547_v21 = vrot.slane %v545_v9, 5  ;;  %v555_v23 = vshrl.u32 %v14181_v56, 16  ;;  %v553_v34 = vrot.slane %v551_v17, 5 }
  0x92   : > { %v510_v52 = vor.u32 %v509_v31, %v505_v37  ;;  %v520_v54 = vrot.slane %v518_v41, 4  ;;  %v529_v58 = vrot.slane %v527_v45, 5  ;;  %v533_v59 = vrot.slane %v531_v46, 4  ;;  %v14208_v41 = vld [vmem:[%s14032_s10 + $0x74] sm:$0x1]  ;;  %v13465_v46 = vld [vmem:[#allocation6 + $0x28] sm:$0xff]  }
  0x93   : > { %v548_v37 = vor.u32 %v547_v21, %v544_v20  ;;  %v566_v38 = vshrl.u32 %v14192_v7, 16  ;;  %17146 = vst [vmem:[#allocation15_spill] sm:$0xff] %v14208_v41  ;;  %v569_v42 = vshll.u32 %v14192_v7, 16  ;;  %v575_v43 = vshll.u32 %v14199_v25, 16  ;;  %v14213_v45 = vld [vmem:[%s14032_s10 + $0x78] sm:$0xf] }
  0x94   : > { %12051 = vmatpush3.bf16.msra.mxu0 %v13461_v1  ;;  %v511_v1 = vrot.slane %v510_v52, 4  ;;  %v524_v12 = vor.u32 %v523_v57, %v520_v54  ;;  %v534_v15 = vor.u32 %v533_v59, %v529_v58  ;;  %v14216_v59 = vld [vmem:[%s14032_s10 + $0x7c] sm:$0xf]  ;;  %v14229_v21 = vld [vmem:[%s14032_s10 + $0x84] sm:$0xf]  ;;  %vm1375_vm3 = vcmask 1042432  }
  0x95   : > { %12052 = vmatprep.subr.bf16.mxu0 %v13462_v24  ;;  %v549_v52 = vrot.slane %v548_v37, 4  ;;  %v571_v60 = vrot.slane %v569_v42, 5  ;;  %v599_v20 = vshll.u32 %v14216_v59, 16  ;;  %vm1376_vm4 = vcmask 1046532  }
  0x96   : > { %v516_v18 = vsel %vm14069_vm2, %v511_v1, %v515_v39  ;;  %v535_v27 = vrot.slane %v534_v15, 4  ;;  %v579_v1 = vshrl.u32 %v14199_v25, 16  ;;  %v14223_v15 = vld [vmem:[%s14032_s10 + $0x80] sm:$0x1]  ;;  %vm14363_vm5 = vmor %vm1375_vm3, %vm1376_vm4  ;;  %vm13821_vm7 = vmmov 1  }
  0x97   : > { %12021 = vmatmul.mubr.bf16.gmra.mrb[4].mxu0 %v10826_v0  ;;  %v10829_v26 = vcombine.low %v506_v2, %v516_v18  ;;  %v525_v0 = vrot.slane %v524_v12, 4  ;;  %v577_v2 = vrot.slane %v575_v43, 5  ;;  %v554_v3 = vsel %vm14069_vm2, %v549_v52, %v553_v34  ;;  %17147 = vst [vmem:[#allocation16_spill] sm:$0xff] %v14223_v15  ;;  %v14243_v52 = vld [vmem:[%s14032_s10 + $0x90] sm:$0xf]  ;;  %vm5293_vm8 = vmpackc.low %vm13821_vm7, %vm13821_vm7 }
  0x98   : > { %12024 = vmatprep.mubr.bf16.mxu0 %v10827_v32  ;;  %12053 = vmatpush3.bf16.msra.mxu0 %v13462_v24  ;;  %v557_v24 = vrot.slane %v555_v23, 4  ;;  %v561_v32 = vshll.u32 %v14185_v62, 16  ;;  %v540_v39 = vsel %vm14069_vm2, %v535_v27, %v539_v16  ;;  %v585_v12 = vshll.u32 %v14208_v41, 16 }
  0x99   : > { %12054 = vmatprep.subr.bf16.mxu0 %v13463_v55  ;;  %v530_v31 = vsel %vm14069_vm2, %v525_v0, %v529_v58  ;;  %v568_v58 = vrot.slane %v566_v38, 4  ;;  %v581_v17 = vrot.slane %v579_v1, 4  ;;  %v593_v18 = vshll.u32 %v14213_v45, 16  ;;  %v14249_v1 = vld [vmem:[%s14032_s10 + $0x94] sm:$0xf] }
  0x9a   : > { %v10830_v51 = vcombine.low %v530_v31, %v540_v39  ;;  %v558_v54 = vor.u32 %v557_v24, %v553_v34  ;;  %v563_v57 = vrot.slane %v561_v32, 5  ;;  %v587_v0 = vrot.slane %v585_v12, 5  ;;  %v13466_v34 = vld [vmem:[#allocation6 + $0x30] sm:$0xff]  }
  0x9b   : > { %v572_v16 = vor.u32 %v571_v60, %v568_v58  ;;  %v582_v32 = vor.u32 %v581_v17, %v577_v2  ;;  %v595_v38 = vrot.slane %v593_v18, 5  ;;  %v14235_v31 = vld [vmem:[%s14032_s10 + $0x88] sm:$0xf]  ;;  %v14238_v39 = vld [vmem:[%s14032_s10 + $0x8c] sm:$0x1]  ;;  %v609_v43 = vshll.u32 %v14223_v15, 16 }
  0x9c   : > { %12055 = vmatpush3.bf16.msra.mxu0 %v13463_v55  ;;  %v559_v9 = vrot.slane %v558_v54, 4  ;;  %v590_v55 = vshrl.u32 %v14213_v45, 16  ;;  %17148 = vst [vmem:[#allocation17_spill] sm:$0xff] %v14238_v39  ;;  %v617_v60 = vshll.u32 %v14229_v21, 16  ;;  %vm5693_vm10 = vcmask 1043456  }
  0x9d   : > { %12056 = vmatprep.subr.bf16.mxu0 %v13464_v35  ;;  %v573_v24 = vrot.slane %v572_v16, 4  ;;  %vm5340_vm14 = vsmask.f32 4352 }
  0x9e   : > { %v564_v23 = vsel %vm14069_vm2, %v559_v9, %v563_v57  ;;  %v592_v27 = vrot.slane %v590_v55, 4  ;;  %v583_v57 = vrot.slane %v582_v32, 4  ;;  %v611_v9 = vrot.slane %v609_v43, 5 }
  0x9f   : > { %12025 = vmatmul.mubr.bf16.gmra.mrb[8].mxu0 %v10828_v50  ;;  %v603_v50 = vshrl.u32 %v14216_v59, 16  ;;  %v10831_v37 = vcombine.low %v554_v3, %v564_v23  ;;  %v578_v54 = vsel %vm14069_vm2, %v573_v24, %v577_v2  ;;  %v623_v55 = vshll.u32 %v14235_v31, 16  ;;  %v13467_v23 = vld [vmem:[#allocation6 + $0x38] sm:$0xff]  }
  0xa0   : > { %12028 = vmatprep.mubr.bf16.mxu0 %v10829_v26  ;;  %12057 = vmatpush3.bf16.msra.mxu0 %v13464_v35  ;;  %v601_v26 = vrot.slane %v599_v20, 5  ;;  %v614_v35 = vshrl.u32 %v14229_v21, 16  ;;  %v596_v58 = vor.u32 %v595_v38, %v592_v27  ;;  %v588_v16 = vsel %vm14069_vm2, %v583_v57, %v587_v0  ;;  %v14256_v20 = vld [vmem:[%s14032_s10 + $0x98] sm:$0x1]  ;;  %v14260_v38 = vld [vmem:[%s14032_s10 + $0x9c] sm:$0xf] }
  0xa1   : > { %12058 = vmatprep.subr.bf16.mxu0 %v13465_v46  ;;  %v605_v42 = vrot.slane %v603_v50, 4  ;;  %v619_v18 = vrot.slane %v617_v60, 5  ;;  %v627_v2 = vshrl.u32 %v14235_v31, 16  ;;  %17149 = vst [vmem:[#allocation18_spill] sm:$0xff] %v14256_v20  ;;  %v10832_v27 = vcombine.low %v578_v54, %v588_v16  ;;  %v14272_v60 = vld [vmem:[#allocation6 + $0x80] sm:$0xff]  }
  0xa2   : > { %v616_v12 = vrot.slane %v614_v35, 4  ;;  %v597_v17 = vrot.slane %v596_v58, 4  ;;  %v625_v24 = vrot.slane %v623_v55, 5  ;;  %v633_v32 = vshll.u32 %v14238_v39, 16  ;;  %v14266_v35 = vld [vmem:[%s14032_s10 + $0xa0] sm:$0xf] }
  0xa3   : > { %v606_v3 = vor.u32 %v605_v42, %v601_v26  ;;  %v629_v42 = vrot.slane %v627_v2, 4  ;;  %v638_v43 = vshrl.u32 %v14243_v52, 16  ;;  %v641_v58 = vshll.u32 %v14243_v52, 16  ;;  %17150 = vst [vmem:[#allocation19_spill] sm:$0xff] %v14272_v60  ;;  %v14280_v2 = vld [vmem:[%s14032_s10 + $0xa8] sm:$0xf] }
  0xa4   : > { %12059 = vmatpush3.bf16.msra.mxu0 %v13465_v46  ;;  %v602_v46 = vsel %vm14069_vm2, %v597_v17, %v601_v26  ;;  %v620_v0 = vor.u32 %v619_v18, %v616_v12  ;;  %v635_v57 = vrot.slane %v633_v32, 5  ;;  %v651_v17 = vshrl.u32 %v14249_v1, 16  ;;  %v14277_v18 = vld [vmem:[%s14032_s10 + $0xa4] sm:$0x1] }
  0xa5   : > { %12060 = vmatprep.subr.bf16.mxu0 %v13466_v34  ;;  %v607_v50 = vrot.slane %v606_v3, 4  ;;  %v630_v12 = vor.u32 %v629_v42, %v625_v24  ;;  %v640_v55 = vrot.slane %v638_v43, 4  ;;  %17151 = vst [vmem:[#allocation20_spill] sm:$0xff] %v14277_v18  ;;  %v662_v32 = vshrl.u32 %v14260_v38, 16 }
  0xa6   : > { %v621_v3 = vrot.slane %v620_v0, 4  ;;  %v14287_v0 = vld [vmem:[%s14032_s10 + $0xac] sm:$0xf]  ;;  %v653_v43 = vrot.slane %v651_v17, 4 }
  0xa7   : > { %12029 = vmatmul.mubr.bf16.gmra.mrb[12].mxu0 %v10830_v51  ;;  %v612_v54 = vsel %vm14069_vm2, %v607_v50, %v611_v9  ;;  %v647_v51 = vshll.u32 %v14249_v1, 16  ;;  %v657_v9 = vshll.u32 %v14256_v20, 16  ;;  %v631_v50 = vrot.slane %v630_v12, 4 }
  0xa8   : > { %12032 = vmatprep.mubr.bf16.mxu0 %v10831_v37  ;;  %12061 = vmatpush3.bf16.msra.mxu0 %v13466_v34  ;;  %v10833_v26 = vcombine.low %v602_v46, %v612_v54  ;;  %v643_v37 = vrot.slane %v641_v58, 5  ;;  %v626_v34 = vsel %vm14069_vm2, %v621_v3, %v625_v24  ;;  %v665_v46 = vshll.u32 %v14260_v38, 16 }
  0xa9   : > { %12062 = vmatprep.subr.bf16.mxu0 %v13467_v23  ;;  %v649_v16 = vrot.slane %v647_v51, 5  ;;  %v659_v54 = vrot.slane %v657_v9, 5  ;;  %v671_v58 = vshll.u32 %v14266_v35, 16  ;;  %v636_v51 = vsel %vm14069_vm2, %v631_v50, %v635_v57 }
  0xaa   : > { %v644_v42 = vor.u32 %v643_v37, %v640_v55  ;;  %v664_v20 = vrot.slane %v662_v32, 4  ;;  %v667_v39 = vrot.slane %v665_v46, 5  ;;  %v675_v24 = vshrl.u32 %v14266_v35, 16  ;;  %v14295_v55 = vld [vmem:[%s14032_s10 + $0xb0] sm:$0x1] }
  0xab   : > { %v10834_v3 = vcombine.low %v626_v34, %v636_v51  ;;  %v654_v15 = vor.u32 %v653_v43, %v649_v16  ;;  %v673_v41 = vrot.slane %v671_v58, 5  ;;  %17152 = vst [vmem:[#allocation21_spill] sm:$0xff] %v14295_v55  ;;  %v686_v57 = vshrl.u32 %v14280_v2, 16 }
  0xac   : > { %12063 = vmatpush3.bf16.msra.mxu0 %v13467_v23  ;;  %v645_v12 = vrot.slane %v644_v42, 4  ;;  %v668_v37 = vor.u32 %v667_v39, %v664_v20  ;;  %v677_v17 = vrot.slane %v675_v24, 4  ;;  %v681_v23 = vshll.u32 %v14277_v18, 16  ;;  %v14304_v20 = vld [vmem:[%s14032_s10 + $0xb4] sm:$0xf] }
  0xad   : > { %12096 = vmatprep.subr.bf16.mxu0 %v14272_v60  ;;  %v655_v50 = vrot.slane %v654_v15, 4  ;;  %v689_v34 = vshll.u32 %v14280_v2, 16  ;;  %v695_v32 = vshll.u32 %v14287_v0, 16  ;;  %v688_v39 = vrot.slane %v686_v57, 4  ;;  %v14316_v57 = vld [vmem:[%s14032_s10 + $0xbc] sm:$0x1] }
  0xae   : > { %v650_v9 = vsel %vm14069_vm2, %v645_v12, %v649_v16  ;;  %v669_v46 = vrot.slane %v668_v37, 4  ;;  %v678_v42 = vor.u32 %v677_v17, %v673_v41  ;;  %v699_v51 = vshrl.u32 %v14287_v0, 16  ;;  %v14310_v16 = vld [vmem:[%s14032_s10 + $0xb8] sm:$0xf] }
  0xaf   : > { %12033 = vmatmul.mubr.bf16.gmra.mrb[16].mxu0 %v10832_v27  ;;  %v683_v27 = vrot.slane %v681_v23, 5  ;;  %v660_v43 = vsel %vm14069_vm2, %v655_v50, %v659_v54  ;;  %v691_v58 = vrot.slane %v689_v34, 5  ;;  %v705_v37 = vshll.u32 %v14295_v55, 16 }
  0xb0   : > { %12036 = vmatprep.mubr.bf16.mxu0 %v10833_v26  ;;  %v697_v26 = vrot.slane %v695_v32, 5  ;;  %v10835_v15 = vcombine.low %v650_v9, %v660_v43  ;;  %v674_v24 = vsel %vm14069_vm2, %v669_v46, %v673_v41  ;;  %v679_v12 = vrot.slane %v678_v42, 4 }
  0xb1   : > { %v692_v17 = vor.u32 %v691_v58, %v688_v39  ;;  %v701_v23 = vrot.slane %v699_v51, 4  ;;  %v710_v18 = vshrl.u32 %v14304_v20, 16  ;;  %v713_v54 = vshll.u32 %v14304_v20, 16 }
  0xb2   : > { %v684_v50 = vsel %vm14069_vm2, %v679_v12, %v683_v27  ;;  %v707_v34 = vrot.slane %v705_v37, 5  ;;  %v719_v9 = vshll.u32 %v14310_v16, 16  ;;  %v723_v32 = vshrl.u32 %v14310_v16, 16 }
  0xb3   : > { %v693_v41 = vrot.slane %v692_v17, 4  ;;  %v702_v46 = vor.u32 %v701_v23, %v697_v26  ;;  %v712_v42 = vrot.slane %v710_v18, 4  ;;  %v715_v39 = vrot.slane %v713_v54, 5  ;;  %v1342_v17 = vld [vmem:[%s14032_s10 + $0xb4] sm:$0xe] }
  0xb4   : > { %v721_v43 = vrot.slane %v719_v9, 5  ;;  %v725_v58 = vrot.slane %v723_v32, 4  ;;  %v729_v51 = vshll.u32 %v14316_v57, 16  ;;  %v10836_v55 = vcombine.low %v674_v24, %v684_v50  ;;  %v1339_v9 = vld [vmem:[%s14032_s10 + $0x90] sm:$0xe] }
  0xb5   : > { %v698_v60 = vsel %vm14069_vm2, %v693_v41, %v697_v26  ;;  %v703_v27 = vrot.slane %v702_v46, 4  ;;  %v716_v12 = vor.u32 %v715_v39, %v712_v42  ;;  %v1332_v42 = vld [vmem:[%s14032_s10 + $0x3c] sm:$0xe]  ;;  %v10849_v41 = vcombine.low %v14065_v28, %v14074_v33  ;;  %v17157_v50 = vld [vmem:[#allocation16_spill] sm:$0xff] }
  0xb6   : > { %v726_v37 = vor.u32 %v725_v58, %v721_v43  ;;  %v731_v62 = vrot.slane %v729_v51, 5  ;;  %v1330_v58 = vld [vmem:[%s14032_s10 + $0x24] sm:$0xe]  ;;  %v1418_v28 = vrot.slane %v14132_v44, 5  ;;  %v1429_v44 = vrot.slane %v14164_v8, 5 }
  0xb7   : > { %12037 = vmatmul.mubr.bf16.gmra.mrb[20].mxu0 %v10834_v3  ;;  %v708_v18 = vsel %vm14069_vm2, %v703_v27, %v707_v34  ;;  %v717_v23 = vrot.slane %v716_v12, 4  ;;  %v10874_v12 = vrot.slane %v1330_v58, 9  ;;  %v1334_v58 = vld [vmem:[%s14032_s10 + $0x54] sm:$0xe]  ;;  %v1453_v26 = vrot.slane %v17157_v50, 5 }
  0xb8   : > { %12040 = vmatprep.mubr.bf16.mxu0 %v10835_v15  ;;  %v10837_v24 = vcombine.low %v698_v60, %v708_v18  ;;  %v727_v54 = vrot.slane %v726_v37, 4  ;;  %v1401_v37 = vrot.slane %v14089_v49, 5  ;;  %v1331_v18 = vld [vmem:[%s14032_s10 + $0x30] sm:$0xe]  ;;  %v10848_v60 = vcombine.low %v14054_v11, %v14057_v14  ;;  %v17158_v15 = vld [vmem:[#allocation19_spill] sm:$0xff] }
  0xb9   : > { %v722_v51 = vsel %vm14069_vm2, %v717_v23, %v721_v43  ;;  %v1404_v23 = vrot.slane %v14094_v61, 5  ;;  %v13473_v61 = vld [vmem:[#allocation6 + $0x88] sm:$0xff]   ;;  %v13479_v3 = vld [vmem:[#allocation6 + $0x98] sm:$0xff]  }
  0xba   : > { %v732_v27 = vsel %vm14069_vm2, %v727_v54, %v731_v62  ;;  %v1403_v43 = vrot.slane %v1401_v37, 4  ;;  %v10847_v62 = vcombine.low %v14043_v4, %v14046_v5  ;;  %v10875_v54 = vrot.slane %v1331_v18, 9  ;;  %v1336_v18 = vld [vmem:[%s14032_s10 + $0x6c] sm:$0xe] }
  0xbb   : > { %v10838_v39 = vcombine.low %v722_v51, %v732_v27  ;;  %v1408_v27 = vrot.slane %v14107_v13, 5  ;;  %v1411_v4 = vrot.slane %v14112_v19, 5  ;;  %v10876_v5 = vrot.slane %v1332_v42, 9 }
  0xbc   : > { %v14382_v51 = vsel %vm14363_vm5, %v1403_v43, %v1404_v23  ;;  %v1422_v42 = vrot.slane %v14145_v63, 5  ;;  %v10880_v32 = vrot.slane %v1336_v18, 9 }
  0xbd   : > { %v14392_v11 = vsel %vm14363_vm5, %v10875_v54, %v1408_v27  ;;  %v1410_v14 = vrot.slane %v1408_v27, 4  ;;  %v10878_v54 = vrot.slane %v1334_v58, 9  ;;  %v1338_v27 = vld [vmem:[%s14032_s10 + $0x84] sm:$0xe]  ;;  %v1340_v58 = vld [vmem:[%s14032_s10 + $0x9c] sm:$0xe] }
  0xbf   : > { %12041 = vmatmul.mubr.bf16.gmra.mrb[24].mxu0 %v10836_v55  ;;  %v1333_v55 = vld [vmem:[%s14032_s10 + $0x48] sm:$0xe]  ;;  %v14404_v23 = vsel %vm14363_vm5, %v1410_v14, %v1411_v4  ;;  %v1424_v4 = vrot.slane %v1422_v42, 4 }
  0xc0   : > { %12044 = vmatprep.mubr.bf16.mxu0 %v10837_v24  ;;  %v14370_v24 = vsel %vm14363_vm5, %v10874_v12, %v1401_v37  ;;  %v1415_v12 = vrot.slane %v14125_v36, 5  ;;  %v1335_v37 = vld [vmem:[%s14032_s10 + $0x60] sm:$0xe]  ;;  %v10877_v33 = vrot.slane %v1333_v55, 9  ;;  %v1432_v55 = vrot.slane %v14169_v40, 5 }
  0xc1   : > { %v14423_v40 = vsel %vm14363_vm5, %v10878_v54, %v1429_v44  ;;  %v10879_v14 = vrot.slane %v1335_v37, 9  ;;  %v1443_v37 = vrot.slane %v14199_v25, 5 }
  0xc2   : > { %v14398_v43 = vsel %vm14363_vm5, %v10876_v5, %v1415_v12  ;;  %v1417_v19 = vrot.slane %v1415_v12, 4  ;;  %v1431_v12 = vrot.slane %v1429_v44, 4  ;;  %v17156_v44 = vld [vmem:[#allocation15_spill] sm:$0xff] }
  0xc3   : > { %v1446_v34 = vrot.slane %v17156_v44, 5  ;;  %v1450_v44 = vrot.slane %v14216_v59, 5 }
  0xc4   : > { %v14413_v5 = vsel %vm14363_vm5, %v1417_v19, %v1418_v28  ;;  %v17155_v19 = vld [vmem:[#allocation14_spill] sm:$0xff]  ;;  %v14436_v54 = vsel %vm14363_vm5, %v1431_v12, %v1432_v55  ;;  %v14450_v55 = vsel %vm14363_vm5, %v10880_v32, %v1443_v37  ;;  %v1445_v12 = vrot.slane %v1443_v37, 4  ;;  %v1341_v32 = vld [vmem:[%s14032_s10 + $0xa8] sm:$0xe] }
  0xc5   : > { %v13476_v37 = vld [vmem:[#allocation6 + $0x90] sm:$0xff]  }
  0xc7   : > { %12045 = vmatmul.mubr.bf16.gmra.mrb[28].mxu0 %v10838_v39  ;;  %v1425_v39 = vrot.slane %v14150_v10, 5  ;;  %v14417_v10 = vsel %vm14363_vm5, %v10877_v33, %v1422_v42  ;;  %v1436_v33 = vrot.slane %v14181_v56, 5  ;;  %v1439_v42 = vrot.slane %v17155_v19, 5 }
  0xc8   : > { %12064 = vmatprep.mubr.bf16.mxu0 %v10847_v62  ;;  %v1337_v62 = vld [vmem:[%s14032_s10 + $0x78] sm:$0xe] }
  0xc9   : > { %v14428_v28 = vsel %vm14363_vm5, %v1424_v4, %v1425_v39  ;;  %v14445_v4 = vsel %vm14363_vm5, %v10879_v14, %v1436_v33  ;;  %v1438_v18 = vrot.slane %v1436_v33, 4  ;;  %v10881_v19 = vrot.slane %v1337_v62, 9  ;;  %v17159_v33 = vld [vmem:[#allocation17_spill] sm:$0xff] }
  0xca   : > { %v10882_v62 = vrot.slane %v1338_v27, 9  ;;  %v1460_v39 = vrot.slane %v17159_v33, 5  ;;  %v10883_v33 = vrot.slane %v1339_v9, 9  ;;  %v1471_v9 = vrot.slane %v14266_v35, 5  ;;  %v17164_v27 = vld [vmem:[#allocation21_spill] sm:$0xff] }
  0xcb   : > { %v14457_v14 = vsel %vm14363_vm5, %v1438_v18, %v1439_v42  ;;  %v14470_v50 = vsel %vm14363_vm5, %v10881_v19, %v1450_v44  ;;  %v17162_v19 = vld [vmem:[#allocation18_spill] sm:$0xff] }
  0xcc   : > { %v1467_v29 = vrot.slane %v17162_v19, 5 }
  0xcf   : > { %12065 = vmatmul.mubr.bf16.vlgmr.msra.gmra.mrb[0].mxu0 %v10848_v60  ;;  %v1457_v60 = vrot.slane %v14235_v31, 5 }
  0xd0   : > { %12097 = vmatpush3.bf16.msra.mxu0 %v17158_v15  ;;  %12068 = vmatprep.mubr.bf16.mxu0 %v10849_v41  ;;  %v14466_v15 = vsel %vm14363_vm5, %v1445_v12, %v1446_v34  ;;  %v1452_v41 = vrot.slane %v1450_v44, 4  ;;  %v1464_v12 = vrot.slane %v14249_v1, 5  ;;  %v10884_v44 = vrot.slane %v1340_v58, 9 }
  0xd1   : > { %12098 = vmatprep.subr.bf16.mxu0 %v13473_v61  ;;  %17160 = vst [vmem:[#allocation14_spill] sm:$0xff] %v14466_v15  ;;  %v14476_v42 = vsel %vm14363_vm5, %v10882_v62, %v1457_v60  ;;  %v1459_v18 = vrot.slane %v1457_v60, 4  ;;  %v17163_v60 = vld [vmem:[#allocation20_spill] sm:$0xff]  ;;  %v10885_v58 = vrot.slane %v1341_v32, 9  ;;  %v1485_v32 = vrot.slane %v14310_v16, 5 }
  0xd2   : > { %v14481_v34 = vsel %vm14363_vm5, %v1452_v41, %v1453_v26  ;;  %v1474_v15 = vrot.slane %v17163_v60, 5  ;;  %v14497_v41 = vsel %vm14363_vm5, %v10883_v33, %v1464_v12  ;;  %v14501_v19 = vsel %vm14363_vm5, %v10884_v44, %v1471_v9 }
  0xd3   : > { %17161 = vst [vmem:[#allocation15_spill] sm:$0xff] %v14481_v34  ;;  %v14489_v62 = vsel %vm14363_vm5, %v1459_v18, %v1460_v39  ;;  %v1473_v39 = vrot.slane %v1471_v9, 4  ;;  %v1478_v18 = vrot.slane %v14287_v0, 5  ;;  %v1481_v34 = vrot.slane %v17164_v27, 5 }
  0xd4   : > { %12099 = vmatpush3.bf16.msra.mxu0 %v13473_v61  ;;  %v1466_v61 = vrot.slane %v1464_v12, 4  ;;  %v17165_v60 = vcombine.low %v14086_v48, %v14089_v49  ;;  %v10886_v33 = vrot.slane %v1342_v17, 9  ;;  %v1488_v12 = vrot.slane %v14316_v57, 5  ;;  %v13482_v17 = vld [vmem:[#allocation6 + $0xa0] sm:$0xff]  }
  0xd5   : > { %12100 = vmatprep.subr.bf16.mxu0 %v13476_v37  ;;  %v17166_v44 = vcombine.low %v14102_v6, %v14107_v13  ;;  %v14521_v48 = vsel %vm14363_vm5, %v1473_v39, %v1474_v15  ;;  %v1480_v49 = vrot.slane %v1478_v18, 4  ;;  %v1487_v13 = vrot.slane %v1485_v32, 4  ;;  %v13485_v15 = vld [vmem:[#allocation6 + $0xa8] sm:$0xff]  }
  0xd6   : > { %v14510_v26 = vsel %vm14363_vm5, %v1466_v61, %v1467_v29  ;;  %v14525_v29 = vsel %vm14363_vm5, %v10885_v58, %v1478_v18  ;;  %v10900_v57 = vcombine.low %v14501_v19, %v14521_v48  ;;  %v14531_v6 = vsel %vm14363_vm5, %v10886_v33, %v1485_v32  ;;  %v13488_v18 = vld [vmem:[#allocation6 + $0xb0] sm:$0xff]  }
  0xd7   : > { %12069 = vmatmul.mubr.bf16.gmra.mrb[4].mxu0 %v17165_v60  ;;  %v10899_v27 = vcombine.low %v14497_v41, %v14510_v26  ;;  %v14541_v61 = vsel %vm14363_vm5, %v1487_v13, %v1488_v12  ;;  %v17167_v39 = vcombine.low %v14122_v30, %v14125_v36  ;;  %v13491_v60 = vld [vmem:[#allocation6 + $0xb8] sm:$0xff]   ;;  %v17170_v30 = vcombine.low %v14178_v47, %v14181_v56  ;;  %v13492_v36 = vld [vmem:[#allocation6 + $0xc0] sm:$0xff]   ;;  %v1327_v47 = vld [vmem:[%s14032_s10] sm:$0xe] }
  0xd8   : > { %12072 = vmatprep.mubr.bf16.mxu0 %v17166_v44  ;;  %12101 = vmatpush3.bf16.msra.mxu0 %v13476_v37  ;;  %v14535_v37 = vsel %vm14363_vm5, %v1480_v49, %v1481_v34  ;;  %v10902_v58 = vcombine.low %v14531_v6, %v14541_v61  ;;  %v17168_v34 = vcombine.low %v14138_v53, %v14145_v63  ;;  %v13645_v56 = vld [vmem:[%s14032_s10 + $0x8] sm:$0x1]  ;;  %v13646_v49 = vld [vmem:[%s14032_s10 + $0x10] sm:$0xf]  ;;  %v1329_v13 = vld [vmem:[%s14032_s10 + $0x18] sm:$0xe] }
  0xd9   : > { %12102 = vmatprep.subr.bf16.mxu0 %v13479_v3  ;;  %v10901_v9 = vcombine.low %v14525_v29, %v14535_v37  ;;  %v17171_v53 = vcombine.low %v14192_v7, %v14199_v25  ;;  %v17172_v63 = vcombine.low %v14213_v45, %v14216_v59  ;;  %v1383_v33 = vrot.slane %v13645_v56, 5  ;;  %v1328_v59 = vld [vmem:[%s14032_s10 + $0xc] sm:$0xe]  ;;  %v13493_v56 = vld [vmem:[#allocation6 + $0xc8] sm:$0xff]   ;;  %v10969_v29 = vld [vmem:[%s14032_s10 + $0x14] sm:$0x1] }
  0xda   : > { %v17173_v32 = vcombine.low %v14229_v21, %v14235_v31  ;;  %v17174_v7 = vcombine.low %v14243_v52, %v14249_v1  ;;  %v10871_v25 = vrot.slane %v1327_v47, 9  ;;  %v17175_v45 = vcombine.low %v14260_v38, %v14266_v35  ;;  %v13647_v21 = vld [vmem:[%s14032_s10 + $0x1c] sm:$0xf]  ;;  %v13500_v26 = vld [vmem:[%s14032_s10 + $0xc] sm:$0xff]  }
  0xdb   : > { %v17176_v44 = vcombine.low %v14280_v2, %v14287_v0  ;;  %v1394_v31 = vrot.slane %v13647_v21, 5  ;;  %v13649_v0 = vld [vmem:[%s14032_s10 + $0x20] sm:$0x1] }
  0xdc   : > { %12103 = vmatpush3.bf16.msra.mxu0 %v13479_v3  ;;  %v17169_v3 = vcombine.low %v14158_v22, %v14164_v8  ;;  %v13644_v22 = vld [vmem:[%s14032_s10 + $0x4] sm:$0xf] }
  0xdd   : > { %12104 = vmatprep.subr.bf16.mxu0 %v13482_v17  ;;  %v1380_v8 = vrot.slane %v13644_v22, 5  ;;  %v1396_v2 = vrot.slane %v1394_v31, 4  ;;  %v13505_v6 = vld [vmem:[#allocation6 + $0x108] sm:$0xff]  }
  0xdf   : > { %12073 = vmatmul.mubr.bf16.gmra.mrb[8].mxu0 %v17167_v39  ;;  %v1382_v12 = vrot.slane %v1380_v8, 4  ;;  %v1381_v52 = vsel %vm14363_vm5, %v10871_v25, %v1380_v8  ;;  %v10872_v39 = vrot.slane %v1328_v59, 9  ;;  %v17180_v25 = vcombine.low %v14398_v43, %v14413_v5  ;;  %v17184_v5 = vld [vmem:[#allocation14_spill] sm:$0xff] }
  0xe0   : > { %12076 = vmatprep.mubr.bf16.mxu0 %v17168_v34  ;;  %12105 = vmatpush3.bf16.msra.mxu0 %v13482_v17  ;;  %v1387_v17 = vrot.slane %v13646_v49, 5  ;;  %v17183_v43 = vcombine.low %v14445_v4, %v14457_v14  ;;  %v10967_v4 = vld [vmem:[%s14032_s10 + $0xc] sm:$0xf]  ;;  %v10972_v49 = vld [vmem:[%s14032_s10 + $0x20] sm:$0x1] }
  0xe1   : > { %12106 = vmatprep.subr.bf16.mxu0 %v13485_v15  ;;  %v1384_v1 = vsel %vm14363_vm5, %v1382_v12, %v1383_v33  ;;  %v17178_v33 = vcombine.low %v14370_v24, %v14382_v51  ;;  %v17181_v12 = vcombine.low %v14417_v10, %v14428_v28  ;;  %v13498_v24 = vld [vmem:[#allocation6 + $0xf0] sm:$0xff]   ;;  %v13499_v51 = vld [vmem:[#allocation6 + $0xf8] sm:$0xff]   ;;  %v17185_v10 = vcombine.low %v14450_v55, %v17184_v5 }
  0xe2   : > { %v10887_v35 = vcombine.low %v1381_v52, %v1384_v1  ;;  %v1389_v34 = vrot.slane %v1387_v17, 4  ;;  %v17186_v28 = vld [vmem:[#allocation15_spill] sm:$0xff]  ;;  %v10968_v55 = vld [vmem:[%s14032_s10 + $0x10] sm:$0xf]  ;;  %v2246_v14 = vshrl.u32 %v10967_v4, 16  ;;  %v13501_v52 = vld [vmem:[%s14032_s10 + $0x18] sm:$0xff]  }
  0xe3   : > { %v2259_v59 = vshrl.u32 %v10968_v55, 16  ;;  %v2289_v61 = vshll.u32 %v10972_v49, 16  ;;  %v11044_v5 = vld [vmem:[%s14032_s10 + $0x48] sm:$0xe]  ;;  %v11046_v49 = vld [vmem:[%s14032_s10 + $0x60] sm:$0xe] }
  0xe4   : > { %12107 = vmatpush3.bf16.msra.mxu0 %v13485_v15  ;;  %v13648_v15 = vld [vmem:[%s14032_s10 + $0x14] sm:$0x1] }
  0xe5   : > { %12108 = vmatprep.subr.bf16.mxu0 %v13488_v18  ;;  %v1390_v38 = vrot.slane %v13648_v15, 5  ;;  %v13503_v15 = vld [vmem:[%s14032_s10 + $0x24] sm:$0xff]  }
  0xe7   : > { %12077 = vmatmul.mubr.bf16.gmra.mrb[12].mxu0 %v17169_v3  ;;  %v17177_v3 = vcombine.low %v14304_v20, %v14310_v16  ;;  %v13494_v20 = vld [vmem:[#allocation6 + $0xd0] sm:$0xff]   ;;  %v13495_v16 = vld [vmem:[#allocation6 + $0xd8] sm:$0xff]  }
  0xe8   : > { %12080 = vmatprep.mubr.bf16.mxu0 %v17170_v30  ;;  %12109 = vmatpush3.bf16.msra.mxu0 %v13488_v18  ;;  %v10873_v18 = vrot.slane %v1329_v13, 9  ;;  %v1388_v30 = vsel %vm14363_vm5, %v10872_v39, %v1387_v17 }
  0xe9   : > { %12110 = vmatprep.subr.bf16.mxu0 %v13491_v60 }
  0xec   : > { %12111 = vmatpush3.bf16.msra.mxu0 %v13491_v60  ;;  %v1397_v60 = vrot.slane %v13649_v0, 5  ;;  %v13508_v0 = vld [vmem:[#allocation6 + $0x110] sm:$0xff]  }
  0xed   : > { %12144 = vmatprep.subr.bf16.mxu0 %v13492_v36 }
  0xee   : > { %v1398_v22 = vsel %vm14363_vm5, %v1396_v2, %v1397_v60 }
  0xef   : > { %12081 = vmatmul.mubr.bf16.gmra.mrb[16].mxu0 %v17171_v53  ;;  %v1391_v53 = vsel %vm14363_vm5, %v1389_v34, %v1390_v38  ;;  %v2265_v38 = vshll.u32 %v10969_v29, 16  ;;  %v14706_v29 = vld [vmem:[%s14032_s10 + $0x64] sm:$0xf] }
  0xf0   : > { %12084 = vmatprep.mubr.bf16.mxu0 %v17172_v63  ;;  %v1395_v63 = vsel %vm14363_vm5, %v10873_v18, %v1394_v31  ;;  %v10888_v8 = vcombine.low %v1388_v30, %v1391_v53  ;;  %v10973_v31 = vld [vmem:[%s14032_s10 + $0x24] sm:$0xf]  ;;  %v10974_v18 = vld [vmem:[%s14032_s10 + $0x28] sm:$0xf] }
  0xf1   : > { %v10889_v47 = vcombine.low %v1395_v63, %v1398_v22  ;;  %v14659_v30 = vrot.slane %v2265_v38, 5  ;;  %v13504_v63 = vld [vmem:[%s14032_s10 + $0x30] sm:$0xff]  }
  0xf7   : > { %12085 = vmatmul.mubr.bf16.gmra.mrb[20].mxu0 %v17173_v32  ;;  %v17179_v32 = vcombine.low %v14392_v11, %v14404_v23  ;;  %v17182_v11 = vcombine.low %v14423_v40, %v14436_v54  ;;  %v13502_v23 = vld [vmem:[#allocation6 + $0x100] sm:$0xff]   ;;  %v17187_v40 = vcombine.low %v14470_v50, %v17186_v28  ;;  %v17188_v54 = vcombine.low %v14476_v42, %v14489_v62 }
  0xf8   : > { %12088 = vmatprep.mubr.bf16.mxu0 %v17174_v7  ;;  %v13496_v7 = vld [vmem:[#allocation6 + $0xe0] sm:$0xff]   ;;  %v2249_v50 = vshll.u32 %v10967_v4, 16  ;;  %v2255_v62 = vshll.u32 %v10968_v55, 16  ;;  %v11060_v4 = vrot.slane %v11044_v5, 9  ;;  %v14763_v5 = vld [vmem:[%s14032_s10 + $0x88] sm:$0xf] }
  0xf9   : > { %v10971_v42 = vld [vmem:[%s14032_s10 + $0x1c] sm:$0xf]  ;;  %v13509_v55 = vld [vmem:[%s14032_s10 + $0x54] sm:$0xff]  }
  0xfa   : > { %v2279_v19 = vshll.u32 %v10971_v42, 16  ;;  %v2283_v48 = vshrl.u32 %v10971_v42, 16  ;;  %v2251_v37 = vrot.slane %v2249_v50, 5  ;;  %v13517_v42 = vld [vmem:[#allocation6 + $0x128] sm:$0xff]  }
  0xfc   : > { %v14649_v1 = vrot.slane %v2279_v19, 5  ;;  %v2285_v13 = vrot.slane %v2283_v48, 4 }
  0xfe   : > { %v2286_v2 = vor.u32 %v2285_v13, %v14649_v1  ;;  %v11062_v13 = vrot.slane %v11046_v49, 9  ;;  %v11050_v49 = vld [vmem:[%s14032_s10 + $0x90] sm:$0xe] }
  0xff   : > { %12089 = vmatmul.mubr.bf16.gmra.mrb[24].mxu0 %v17175_v45  ;;  %v10970_v45 = vld [vmem:[%s14032_s10 + $0x18] sm:$0xf] }
 0x100   : > { %12092 = vmatprep.mubr.bf16.mxu0 %v17176_v44  ;;  %v2270_v41 = vshrl.u32 %v10970_v45, 16  ;;  %v2261_v44 = vrot.slane %v2259_v59, 4  ;;  %v14664_v22 = vrot.slane %v2286_v2, 4  ;;  %v14739_v2 = vld [vmem:[%s14032_s10 + $0x3c] sm:$0xf] }
 0x102   : > { %v2272_v17 = vrot.slane %v2270_v41, 4 }
 0x107   : > { %12093 = vmatmul.mubr.bf16.gmra.mrb[28].mxu0 %v17177_v3 }
 0x108   : > { %12112 = vmatprep.mubr.bf16.mxu0 %v10887_v35 }
 0x10f   : > { %12113 = vmatmul.mubr.bf16.vlgmr.msra.gmra.mrb[0].mxu0 %v10888_v8  ;;  %v14666_v8 = vrot.slane %v2289_v61, 5  ;;  %v13523_v61 = vld [vmem:[#allocation6 + $0x138] sm:$0xff]  }
 0x110   : > { %12145 = vmatpush3.bf16.msra.mxu0 %v13492_v36  ;;  %12116 = vmatprep.mubr.bf16.mxu0 %v10889_v47  ;;  %v13497_v36 = vld [vmem:[#allocation6 + $0xe8] sm:$0xff]   ;;  %v2297_v47 = vshll.u32 %v10973_v31, 16 }
 0x111   : > { %12146 = vmatprep.subr.bf16.mxu0 %v13493_v56 }
 0x114   : > { %12147 = vmatpush3.bf16.msra.mxu0 %v13493_v56  ;;  %v2303_v56 = vshll.u32 %v10974_v18, 16 }
 0x115   : > { %12148 = vmatprep.subr.bf16.mxu0 %v13494_v20 }
 0x117   : > { %12117 = vmatmul.mubr.bf16.gmra.mrb[4].mxu0 %v17178_v33  ;;  %v2307_v33 = vshrl.u32 %v10974_v18, 16  ;;  %v14736_v18 = vld [vmem:[#allocation6 + $0x140] sm:$0xff]  }
 0x118   : > { %12120 = vmatprep.mubr.bf16.mxu0 %v17179_v32  ;;  %12149 = vmatpush3.bf16.msra.mxu0 %v13494_v20  ;;  %v13506_v20 = vld [vmem:[%s14032_s10 + $0x3c] sm:$0xff]   ;;  %v10976_v32 = vld [vmem:[%s14032_s10 + $0x30] sm:$0xf] }
 0x119   : > { %12150 = vmatprep.subr.bf16.mxu0 %v13495_v16  ;;  %v14690_v50 = vrot.slane %v2307_v33, 4 }
 0x11c   : > { %12151 = vmatpush3.bf16.msra.mxu0 %v13495_v16 }
 0x11d   : > { %12152 = vmatprep.subr.bf16.mxu0 %v13496_v7 }
 0x11f   : > { %12121 = vmatmul.mubr.bf16.gmra.mrb[8].mxu0 %v17180_v25  ;;  %v13514_v25 = vld [vmem:[#allocation6 + $0x120] sm:$0xff]  }
 0x120   : > { %12124 = vmatprep.mubr.bf16.mxu0 %v17181_v12  ;;  %12153 = vmatpush3.bf16.msra.mxu0 %v13496_v7  ;;  %v13511_v7 = vld [vmem:[#allocation6 + $0x118] sm:$0xff]   ;;  %v2299_v12 = vrot.slane %v2297_v47, 5 }
 0x121   : > { %12154 = vmatprep.subr.bf16.mxu0 %v13497_v36 }
 0x124   : > { %12155 = vmatpush3.bf16.msra.mxu0 %v13497_v36  ;;  %v14671_v36 = vld [vmem:[%s14032_s10 + $0x34] sm:$0xf] }
 0x125   : > { %12156 = vmatprep.subr.bf16.mxu0 %v13498_v24 }
 0x127   : > { %12125 = vmatmul.mubr.bf16.gmra.mrb[12].mxu0 %v17182_v11  ;;  %v14677_v11 = vld [vmem:[%s14032_s10 + $0x50] sm:$0x1] }
 0x128   : > { %12128 = vmatprep.mubr.bf16.mxu0 %v17183_v43  ;;  %12157 = vmatpush3.bf16.msra.mxu0 %v13498_v24  ;;  %v2318_v24 = vshrl.u32 %v10976_v32, 16  ;;  %v14679_v43 = vrot.slane %v2303_v56, 5  ;;  %v3054_v28 = vrot.slane %v14677_v11, 5 }
 0x129   : > { %12158 = vmatprep.subr.bf16.mxu0 %v13499_v51 }
 0x12a   : > { %v14703_v48 = vrot.slane %v2318_v24, 4 }
 0x12c   : > { %12159 = vmatpush3.bf16.msra.mxu0 %v13499_v51  ;;  %v14674_v51 = vld [vmem:[%s14032_s10 + $0x4c] sm:$0xf] }
 0x12d   : > { %12192 = vmatprep.subr.bf16.mxu0 %v13502_v23 }
 0x12f   : > { %12129 = vmatmul.mubr.bf16.gmra.mrb[16].mxu0 %v17185_v10  ;;  %v3051_v10 = vrot.slane %v14674_v51, 5 }
 0x130   : > { %12132 = vmatprep.mubr.bf16.mxu0 %v17187_v40  ;;  %v13507_v40 = vld [vmem:[%s14032_s10 + $0x48] sm:$0xff]  }
 0x137   : > { %12133 = vmatmul.mubr.bf16.gmra.mrb[20].mxu0 %v17188_v54  ;;  %v2327_v54 = vshll.u32 %v14671_v36, 16 }
 0x138   : > { %12136 = vmatprep.mubr.bf16.mxu0 %v10899_v27  ;;  %v2273_v27 = vshll.u32 %v10970_v45, 16  ;;  %v3053_v45 = vrot.slane %v3051_v10, 4 }
 0x13a   : > { %v2275_v21 = vrot.slane %v2273_v27, 5  ;;  %v14698_v59 = vsel %vm14363_vm5, %v3053_v45, %v3054_v28  ;;  %v13520_v27 = vld [vmem:[#allocation6 + $0x130] sm:$0xff]  }
 0x13b   : > { %v11049_v45 = vld [vmem:[%s14032_s10 + $0x84] sm:$0xe] }
 0x13c   : > { %v2276_v34 = vor.u32 %v2275_v21, %v2272_v17  ;;  %v3065_v17 = vrot.slane %v14706_v29, 5 }
 0x13e   : > { %v14661_v53 = vrot.slane %v2276_v34, 4 }
 0x13f   : > { %12137 = vmatmul.mubr.bf16.gmra.mrb[24].mxu0 %v10900_v57  ;;  %v2248_v57 = vrot.slane %v2246_v14, 4  ;;  %v14688_v14 = vld [vmem:[%s14032_s10 + $0x2c] sm:$0x1] }
 0x140   : > { %12140 = vmatprep.mubr.bf16.mxu0 %v10901_v9  ;;  %v14644_v9 = vrot.slane %v2255_v62, 5  ;;  %v14694_v62 = vsel %vm14363_vm5, %v11060_v4, %v3051_v10  ;;  %v2313_v19 = vshll.u32 %v14688_v14, 16  ;;  %v14766_v10 = vld [vmem:[%s14032_s10 + $0x8c] sm:$0x1]  ;;  %v13521_v4 = vld [vmem:[%s14032_s10 + $0xb4] sm:$0xff]  }
 0x141   : > { %v2252_v35 = vor.u32 %v2251_v37, %v2248_v57  ;;  %v14709_v57 = vld [vmem:[%s14032_s10 + $0x68] sm:$0x1] }
 0x142   : > { %v2262_v39 = vor.u32 %v2261_v44, %v14644_v9  ;;  %v14713_v44 = vrot.slane %v2327_v54, 5  ;;  %v3068_v21 = vrot.slane %v14709_v57, 5  ;;  %v14747_v47 = vrot.slane %v2313_v19, 5  ;;  %v14777_v54 = vld [vmem:[%s14032_s10 + $0x94] sm:$0xf] }
 0x143   : > { %v14655_v60 = vrot.slane %v2252_v35, 4  ;;  %v14728_v35 = vsel %vm14363_vm5, %v11062_v13, %v3065_v17  ;;  %v11065_v19 = vrot.slane %v11049_v45, 9  ;;  %v11066_v13 = vrot.slane %v11050_v49, 9 }
 0x144   : > { %v14657_v3 = vrot.slane %v2262_v39, 4 }
 0x145   : > { %v2258_v56 = vsel %vm14069_vm2, %v14655_v60, %v14644_v9 }
 0x147   : > { %12141 = vmatmul.mubr.bf16.gmra.mrb[28].mxu0 %v10902_v58  ;;  %v2294_v58 = vshrl.u32 %v10973_v31, 16  ;;  %v13510_v31 = vld [vmem:[%s14032_s10 + $0x60] sm:$0xff]  }
 0x148   : > { %12160 = vmatprep.mubr.bf16.mxu0 %v13500_v26 }
 0x149   : > { %v2296_v16 = vrot.slane %v2294_v58, 4  ;;  %v14724_v58 = vld [vmem:[%s14032_s10 + $0x38] sm:$0x1] }
 0x14b   : > { %v2300_v41 = vor.u32 %v2299_v12, %v2296_v16  ;;  %v2342_v12 = vshrl.u32 %v14739_v2, 16 }
 0x14d   : > { %v14721_v38 = vrot.slane %v2300_v41, 4  ;;  %v3089_v41 = vrot.slane %v14766_v10, 5  ;;  %v2344_v60 = vrot.slane %v2342_v12, 4  ;;  %v2282_v12 = vsel %vm14069_vm2, %v14661_v53, %v14649_v1 }
 0x14f   : > { %12161 = vmatmul.mubr.bf16.vlgmr.msra.gmra.mrb[0].mxu0 %v13501_v52  ;;  %v2331_v52 = vshrl.u32 %v14671_v36, 16  ;;  %v2306_v1 = vsel %vm14069_vm2, %v14721_v38, %v14679_v43 }
 0x150   : > { %12193 = vmatpush3.bf16.msra.mxu0 %v13502_v23  ;;  %12164 = vmatprep.mubr.bf16.mxu0 %v13503_v15  ;;  %v2321_v23 = vshll.u32 %v10976_v32, 16  ;;  %v13512_v15 = vld [vmem:[%s14032_s10 + $0x6c] sm:$0xff]   ;;  %v13513_v32 = vld [vmem:[%s14032_s10 + $0x78] sm:$0xff]  }
 0x151   : > { %12194 = vmatprep.subr.bf16.mxu0 %v13505_v6 }
 0x152   : > { %v14711_v37 = vrot.slane %v2321_v23, 5 }
 0x154   : > { %12195 = vmatpush3.bf16.msra.mxu0 %v13505_v6  ;;  %v3067_v6 = vrot.slane %v3065_v17, 4  ;;  %v3093_v17 = vrot.slane %v14777_v54, 5 }
 0x155   : > { %12196 = vmatprep.subr.bf16.mxu0 %v13508_v0 }
 0x156   : > { %v14732_v39 = vsel %vm14363_vm5, %v3067_v6, %v3068_v21 }
 0x157   : > { %12165 = vmatmul.mubr.bf16.gmra.mrb[4].mxu0 %v13504_v63  ;;  %17189 = vst [vmem:[#allocation16_spill] sm:$0xff] %v14732_v39  ;;  %v14745_v63 = vld [vmem:[%s14032_s10 + $0x80] sm:$0x1] }
 0x158   : > { %12168 = vmatprep.mubr.bf16.mxu0 %v13506_v20  ;;  %12197 = vmatpush3.bf16.msra.mxu0 %v13508_v0  ;;  %v14742_v0 = vld [vmem:[%s14032_s10 + $0x7c] sm:$0xf]  ;;  %v11048_v20 = vld [vmem:[%s14032_s10 + $0x78] sm:$0xe]  ;;  %v3082_v33 = vrot.slane %v14745_v63, 5 }
 0x159   : > { %12198 = vmatprep.subr.bf16.mxu0 %v13511_v7  ;;  %v3079_v16 = vrot.slane %v14742_v0, 5  ;;  %v11064_v36 = vrot.slane %v11048_v20, 9 }
 0x15b   : > { %v3081_v24 = vrot.slane %v3079_v16, 4  ;;  %v14760_v23 = vsel %vm14363_vm5, %v11064_v36, %v3079_v16  ;;  %v14804_v16 = vsel %vm14363_vm5, %v11066_v13, %v3093_v17  ;;  %v11052_v13 = vld [vmem:[%s14032_s10 + $0xa8] sm:$0xe] }
 0x15c   : > { %12199 = vmatpush3.bf16.msra.mxu0 %v13511_v7  ;;  %v14754_v7 = vrot.slane %v2331_v52, 4  ;;  %17190 = vst [vmem:[#allocation19_spill] sm:$0xff] %v14760_v23  ;;  %17194 = vst [vmem:[#allocation21_spill] sm:$0xff] %v14804_v16  ;;  %v13519_v36 = vld [vmem:[%s14032_s10 + $0xa8] sm:$0xff]  }
 0x15d   : > { %12200 = vmatprep.subr.bf16.mxu0 %v13514_v25  ;;  %v14770_v28 = vsel %vm14363_vm5, %v3081_v24, %v3082_v33  ;;  %v14807_v33 = vld [vmem:[%s14032_s10 + $0xa0] sm:$0xf]  ;;  %v14819_v24 = vld [vmem:[%s14032_s10 + $0xac] sm:$0xf]  ;;  %v10982_v16 = vld [vmem:[%s14032_s10 + $0x48] sm:$0xf] }
 0x15e   : > { %17191 = vst [vmem:[#allocation17_spill] sm:$0xff] %v14770_v28  ;;  %v3100_v49 = vrot.slane %v14807_v33, 5  ;;  %v2334_v53 = vor.u32 %v14754_v7, %v14713_v44  ;;  %v2375_v28 = vshll.u32 %v14674_v51, 16 }
 0x15f   : > { %12169 = vmatmul.mubr.bf16.gmra.mrb[8].mxu0 %v13507_v40  ;;  %v14774_v40 = vld [vmem:[%s14032_s10 + $0x40] sm:$0xf] }
 0x160   : > { %12172 = vmatprep.mubr.bf16.mxu0 %v13509_v55  ;;  %12201 = vmatpush3.bf16.msra.mxu0 %v13514_v25  ;;  %v13515_v25 = vld [vmem:[%s14032_s10 + $0x84] sm:$0xff]   ;;  %v14782_v55 = vld [vmem:[%s14032_s10 + $0x98] sm:$0x1]  ;;  %v2351_v6 = vshll.u32 %v14774_v40, 16 }
 0x161   : > { %12202 = vmatprep.subr.bf16.mxu0 %v13517_v42  ;;  %v3096_v21 = vrot.slane %v14782_v55, 5 }
 0x164   : > { %12203 = vmatpush3.bf16.msra.mxu0 %v13517_v42  ;;  %v3086_v42 = vrot.slane %v14763_v5, 5 }
 0x165   : > { %12204 = vmatprep.subr.bf16.mxu0 %v13520_v27 }
 0x166   : > { %v3088_v52 = vrot.slane %v3086_v42, 4 }
 0x167   : > { %12173 = vmatmul.mubr.bf16.gmra.mrb[12].mxu0 %v13510_v31  ;;  %v13516_v31 = vld [vmem:[%s14032_s10 + $0x90] sm:$0xff]  }
 0x168   : > { %12176 = vmatprep.mubr.bf16.mxu0 %v13512_v15  ;;  %12205 = vmatpush3.bf16.msra.mxu0 %v13520_v27  ;;  %v2345_v27 = vshll.u32 %v14739_v2, 16  ;;  %v13518_v15 = vld [vmem:[%s14032_s10 + $0x9c] sm:$0xff]   ;;  %v3095_v2 = vrot.slane %v3093_v17, 4  ;;  %v14800_v20 = vsel %vm14363_vm5, %v3088_v52, %v3089_v41  ;;  %v14826_v41 = vld [vmem:[%s14032_s10 + $0xb0] sm:$0x1] }
 0x169   : > { %12206 = vmatprep.subr.bf16.mxu0 %v13523_v61  ;;  %17193 = vst [vmem:[#allocation20_spill] sm:$0xff] %v14800_v20  ;;  %v3110_v45 = vrot.slane %v14826_v41, 5  ;;  %v14915_v20 = vld [vmem:[%s14032_s10 + $0x58] sm:$0xf] }
 0x16c   : > { %12207 = vmatpush3.bf16.msra.mxu0 %v13523_v61  ;;  %v14796_v61 = vsel %vm14363_vm5, %v11065_v19, %v3086_v42  ;;  %v2310_v42 = vor.u32 %v14690_v50, %v14679_v43  ;;  %v11051_v19 = vld [vmem:[%s14032_s10 + $0x9c] sm:$0xe]  ;;  %v3102_v50 = vrot.slane %v3100_v49, 4 }
 0x16d   : > { %12240 = vmatprep.subr.bf16.mxu0 %v14736_v18  ;;  %17192 = vst [vmem:[#allocation18_spill] sm:$0xff] %v14796_v61  ;;  %v11067_v52 = vrot.slane %v11051_v19, 9  ;;  %v13522_v61 = vld [vmem:[%s14032_s10 + $0xc0] sm:$0xff]  }
 0x16e   : > { %v14837_v34 = vrot.slane %v2310_v42, 4 }
 0x16f   : > { %12177 = vmatmul.mubr.bf16.gmra.mrb[16].mxu0 %v13513_v32  ;;  %v14810_v32 = vld [vmem:[%s14032_s10 + $0xa4] sm:$0x1]  ;;  %v14841_v26 = vsel %vm14363_vm5, %v11067_v52, %v3100_v49  ;;  %v17200_v52 = vshll.u32 %v14724_v58, 16 }
 0x170   : > { %12180 = vmatprep.mubr.bf16.mxu0 %v13515_v25  ;;  %v14816_v25 = vsel %vm14363_vm5, %v3095_v2, %v3096_v21  ;;  %v3103_v17 = vrot.slane %v14810_v32, 5  ;;  %v2355_v21 = vshrl.u32 %v14774_v40, 16  ;;  %v3107_v2 = vrot.slane %v14819_v24, 5  ;;  %17196 = vst [vmem:[#allocation15_spill] sm:$0xff] %v14841_v26 }
 0x171   : > { %17195 = vst [vmem:[#allocation14_spill] sm:$0xff] %v14816_v25  ;;  %v2268_v25 = vsel %vm14069_vm2, %v14657_v3, %v14659_v30  ;;  %v14862_v9 = vrot.slane %v17200_v52, 5  ;;  %v10985_v3 = vld [vmem:[%s14032_s10 + $0x54] sm:$0xf]  ;;  %v2369_v26 = vshll.u32 %v10982_v16, 16 }
 0x172   : > { %v14854_v42 = vsel %vm14363_vm5, %v3102_v50, %v3103_v17  ;;  %v14871_v17 = vld [vmem:[%s14032_s10 + $0x44] sm:$0x1]  ;;  %v2357_v50 = vrot.slane %v2355_v21, 4  ;;  %v11015_v52 = vcombine.low %v2258_v56, %v2268_v25  ;;  %v14891_v21 = vld [vmem:[%s14032_s10 + $0xbc] sm:$0x1]  ;;  %v2366_v56 = vshrl.u32 %v10982_v16, 16 }
 0x173   : > { %17198 = vst [vmem:[#allocation13_spill] sm:$0xff] %v14854_v42  ;;  %v11054_v25 = vld [vmem:[%s14032_s10 + $0xc0] sm:$0xe]  ;;  %v2361_v7 = vshll.u32 %v14871_v17, 16 }
 0x177   : > { %12181 = vmatmul.mubr.bf16.gmra.mrb[20].mxu0 %v13516_v31  ;;  %v11068_v31 = vrot.slane %v11052_v13, 9  ;;  %v2347_v13 = vrot.slane %v2345_v27, 5  ;;  %v2324_v27 = vor.u32 %v14711_v37, %v14703_v48  ;;  %v3117_v37 = vrot.slane %v14891_v21, 5 }
 0x178   : > { %12184 = vmatprep.mubr.bf16.mxu0 %v13518_v15  ;;  %v3109_v15 = vrot.slane %v3107_v2, 4 }
 0x179   : > { %v14858_v49 = vsel %vm14363_vm5, %v11068_v31, %v3107_v2  ;;  %v14873_v2 = vrot.slane %v2351_v6, 5  ;;  %v14888_v6 = vld [vmem:[%s14032_s10 + $0xb8] sm:$0xf]  ;;  %v2348_v38 = vor.u32 %v2347_v13, %v2344_v60  ;;  %v2379_v60 = vshrl.u32 %v14674_v51, 16 }
 0x17a   : > { %17199 = vst [vmem:[#allocation22_spill] sm:$0xff] %v14858_v49  ;;  %v14868_v30 = vsel %vm14363_vm5, %v3109_v15, %v3110_v45  ;;  %v2292_v45 = vsel %vm14069_vm2, %v14664_v22, %v14666_v8  ;;  %v14894_v15 = vld [vmem:[%s14032_s10 + $0xc4] sm:$0xf]  ;;  %v14903_v22 = vld [vmem:[%s14032_s10 + $0xc8] sm:$0x1]  ;;  %v3114_v48 = vrot.slane %v14888_v6, 5  ;;  %v2316_v51 = vsel %vm14069_vm2, %v14837_v34, %v14747_v47 }
 0x17b   : > { %17201 = vst [vmem:[#allocation23_spill] sm:$0xff] %v14868_v30  ;;  %v11053_v8 = vld [vmem:[%s14032_s10 + $0xb4] sm:$0xe]  ;;  %v3121_v31 = vrot.slane %v14894_v15, 5  ;;  %v3124_v43 = vrot.slane %v14903_v22, 5  ;;  %v11070_v49 = vrot.slane %v11054_v25, 9  ;;  %v2358_v42 = vor.u32 %v2357_v50, %v14873_v2 }
 0x17c   : > { %v3116_v30 = vrot.slane %v3114_v48, 4  ;;  %v2390_v50 = vshrl.u32 %v10985_v3, 16  ;;  %v2393_v25 = vshll.u32 %v10985_v3, 16  ;;  %v14947_v3 = vrot.slane %v2334_v53, 4 }
 0x17d   : > { %v14930_v16 = vsel %vm14363_vm5, %v11070_v49, %v3121_v31  ;;  %v2371_v34 = vrot.slane %v2369_v26, 5  ;;  %v14953_v47 = vrot.slane %v2375_v28, 5  ;;  %v2385_v49 = vshll.u32 %v14677_v11, 16 }
 0x17e   : > { %v14926_v13 = vsel %vm14363_vm5, %v3116_v30, %v3117_v37  ;;  %17204 = vst [vmem:[#allocation26_spill] sm:$0xff] %v14930_v16  ;;  %v14942_v30 = vrot.slane %v2324_v27, 4  ;;  %v2399_v37 = vshll.u32 %v14915_v20, 16  ;;  %v2381_v27 = vrot.slane %v2379_v60, 4 }
 0x17f   : > { %12185 = vmatmul.mubr.bf16.gmra.mrb[24].mxu0 %v13519_v36  ;;  %v11069_v36 = vrot.slane %v11053_v8, 9  ;;  %v3123_v8 = vrot.slane %v3121_v31, 4  ;;  %17203 = vst [vmem:[#allocation25_spill] sm:$0xff] %v14926_v13  ;;  %v14949_v31 = vrot.slane %v2361_v7, 5  ;;  %v2349_v13 = vrot.slane %v2348_v38, 4 }
 0x180   : > { %12188 = vmatprep.mubr.bf16.mxu0 %v13521_v4  ;;  %v2392_v53 = vrot.slane %v2390_v50, 4  ;;  %v11016_v7 = vcombine.low %v2282_v12, %v2292_v45  ;;  %v11017_v16 = vcombine.low %v2306_v1, %v2316_v51  ;;  %v14959_v23 = vrot.slane %v2399_v37, 5  ;;  %v14975_v50 = vld [vmem:[%s14032_s10 + $0x70] sm:$0xf]  ;;  %v13525_v51 = vld [vmem:[#allocation6 + $0x148] sm:$0xff]  }
 0x181   : > { %v14919_v4 = vsel %vm14363_vm5, %v11069_v36, %v3114_v48  ;;  %v14936_v36 = vsel %vm14363_vm5, %v3123_v8, %v3124_v43  ;;  %v2368_v48 = vrot.slane %v2366_v56, 4  ;;  %v2403_v43 = vshrl.u32 %v14915_v20, 16  ;;  %v10988_v8 = vld [vmem:[%s14032_s10 + $0x60] sm:$0xf]  ;;  %v14957_v56 = vld [vmem:[%s14032_s10 + $0x5c] sm:$0x1] }
 0x182   : > { %17202 = vst [vmem:[#allocation24_spill] sm:$0xff] %v14919_v4  ;;  %17205 = vst [vmem:[#allocation27_spill] sm:$0xff] %v14936_v36  ;;  %v2359_v4 = vrot.slane %v2358_v42, 4  ;;  %v2395_v36 = vrot.slane %v2393_v25, 5  ;;  %v2414_v39 = vshrl.u32 %v10988_v8, 16  ;;  %v2417_v26 = vshll.u32 %v10988_v8, 16 }
 0x183   : > { %v2405_v38 = vrot.slane %v2403_v43, 4  ;;  %v2423_v28 = vshll.u32 %v14706_v29, 16  ;;  %v2330_v11 = vsel %vm14069_vm2, %v14942_v30, %v14713_v44  ;;  %v2340_v42 = vsel %vm14069_vm2, %v14947_v3, %v14862_v9  ;;  %v10994_v8 = vld [vmem:[%s14032_s10 + $0x78] sm:$0xf] }
 0x184   : > { %v2372_v12 = vor.u32 %v2371_v34, %v2368_v48  ;;  %v2382_v45 = vor.u32 %v2381_v27, %v14953_v47  ;;  %v2396_v1 = vor.u32 %v2395_v36, %v2392_v53  ;;  %v2409_v60 = vshll.u32 %v14957_v56, 16 }
 0x185   : > { %v2354_v44 = vsel %vm14069_vm2, %v2349_v13, %v14873_v2  ;;  %v2364_v9 = vsel %vm14069_vm2, %v2359_v4, %v14949_v31  ;;  %v14983_v48 = vrot.slane %v2385_v49, 5  ;;  %v2416_v30 = vrot.slane %v2414_v39, 4  ;;  %v13526_v31 = vld [vmem:[#allocation6 + $0x150] sm:$0xff]  }
 0x186   : > { %v2406_v36 = vor.u32 %v2405_v38, %v14959_v23  ;;  %v2419_v37 = vrot.slane %v2417_v26, 5  ;;  %v14986_v3 = vrot.slane %v2423_v28, 5  ;;  %v2373_v34 = vrot.slane %v2372_v12, 4 }
 0x187   : > { %12189 = vmatmul.mubr.bf16.gmra.mrb[28].mxu0 %v13522_v61  ;;  %v10991_v61 = vld [vmem:[%s14032_s10 + $0x6c] sm:$0xf]  ;;  %v2383_v27 = vrot.slane %v2382_v45, 4  ;;  %v2447_v53 = vshll.u32 %v14975_v50, 16  ;;  %v2451_v2 = vshrl.u32 %v14975_v50, 16  ;;  %v2397_v4 = vrot.slane %v2396_v1, 4 }
 0x188   : > { %12208 = vmatprep.mubr.bf16.mxu0 %v11015_v52  ;;  %v2427_v52 = vshrl.u32 %v14706_v29, 16  ;;  %v2438_v29 = vshrl.u32 %v10991_v61, 16  ;;  %v2441_v25 = vshll.u32 %v10991_v61, 16  ;;  %v2411_v13 = vrot.slane %v2409_v60, 5 }
 0x189   : > { %v2462_v61 = vshrl.u32 %v10994_v8, 16  ;;  %v2465_v38 = vshll.u32 %v10994_v8, 16  ;;  %v2475_v26 = vshrl.u32 %v14742_v0, 16  ;;  %v2407_v28 = vrot.slane %v2406_v36, 4 }
 0x18a   : > { %v2429_v43 = vrot.slane %v2427_v52, 4  ;;  %v2440_v39 = vrot.slane %v2438_v29, 4  ;;  %v2443_v49 = vrot.slane %v2441_v25, 5  ;;  %v2420_v52 = vor.u32 %v2419_v37, %v2416_v30  ;;  %v15008_v30 = vld [vmem:[%s14032_s10 + $0x74] sm:$0x1] }
 0x18b   : > { %v11019_v45 = vcombine.low %v2354_v44, %v2364_v9  ;;  %v14996_v1 = vrot.slane %v2447_v53, 5  ;;  %v2453_v60 = vrot.slane %v2451_v2, 4  ;;  %v2378_v29 = vsel %vm14069_vm2, %v2373_v34, %v14953_v47 }
 0x18c   : > { %v2430_v12 = vor.u32 %v2429_v43, %v14986_v3  ;;  %v2402_v25 = vsel %vm14069_vm2, %v2397_v4, %v14959_v23  ;;  %v2464_v44 = vrot.slane %v2462_v61, 4  ;;  %v2477_v36 = vrot.slane %v2475_v26, 4  ;;  %v13528_v61 = vld [vmem:[#allocation6 + $0x160] sm:$0xff]  }
 0x18d   : > { %v2412_v47 = vsel %vm14069_vm2, %v2407_v28, %v2411_v13  ;;  %v2421_v37 = vrot.slane %v2420_v52, 4  ;;  %v2454_v23 = vor.u32 %v2453_v60, %v14996_v1  ;;  %v2457_v8 = vshll.u32 %v15008_v30, 16 }
 0x18e   : > { %v2495_v53 = vshll.u32 %v14763_v5, 16  ;;  %v2499_v2 = vshrl.u32 %v14763_v5, 16  ;;  %v11021_v26 = vcombine.low %v2402_v25, %v2412_v47 }
 0x18f   : > { %12209 = vmatmul.mubr.bf16.vlgmr.msra.gmra.mrb[0].mxu0 %v11016_v7  ;;  %v2471_v7 = vshll.u32 %v14742_v0, 16  ;;  %v2388_v0 = vsel %vm14069_vm2, %v2383_v27, %v14983_v48  ;;  %v2431_v48 = vrot.slane %v2430_v12, 4  ;;  %v2455_v5 = vrot.slane %v2454_v23, 4 }
 0x190   : > { %12241 = vmatpush3.bf16.msra.mxu0 %v14736_v18  ;;  %12212 = vmatprep.mubr.bf16.mxu0 %v11017_v16  ;;  %v2433_v18 = vshll.u32 %v14709_v57, 16  ;;  %v11018_v16 = vcombine.low %v2330_v11, %v2340_v42  ;;  %v2444_v57 = vor.u32 %v2443_v49, %v2440_v39  ;;  %v10997_v11 = vld [vmem:[%s14032_s10 + $0x84] sm:$0xf]  ;;  %v13527_v42 = vld [vmem:[#allocation6 + $0x158] sm:$0xff]   ;;  %v2481_v49 = vshll.u32 %v14745_v63, 16 }
 0x191   : > { %12242 = vmatprep.subr.bf16.mxu0 %v13525_v51  ;;  %v15011_v9 = vrot.slane %v2471_v7, 5  ;;  %v2486_v34 = vshrl.u32 %v10997_v11, 16  ;;  %v2489_v27 = vshll.u32 %v10997_v11, 16  ;;  %v11020_v7 = vcombine.low %v2378_v29, %v2388_v0  ;;  %v13529_v11 = vld [vmem:[#allocation6 + $0x168] sm:$0xff]  }
 0x192   : > { %v2435_v43 = vrot.slane %v2433_v18, 5  ;;  %v2445_v4 = vrot.slane %v2444_v57, 4  ;;  %v2459_v52 = vrot.slane %v2457_v8, 5  ;;  %v2501_v63 = vrot.slane %v2499_v2, 4 }
 0x193   : > { %v2478_v39 = vor.u32 %v2477_v36, %v15011_v9  ;;  %v2488_v12 = vrot.slane %v2486_v34, 4  ;;  %v2491_v18 = vrot.slane %v2489_v27, 5  ;;  %v2483_v25 = vrot.slane %v2481_v49, 5 }
 0x194   : > { %12243 = vmatpush3.bf16.msra.mxu0 %v13525_v51  ;;  %v2467_v51 = vrot.slane %v2465_v38, 5  ;;  %v11000_v38 = vld [vmem:[%s14032_s10 + $0x90] sm:$0xf]  ;;  %v2436_v28 = vsel %vm14069_vm2, %v2431_v48, %v2435_v43  ;;  %v2450_v29 = vsel %vm14069_vm2, %v2445_v4, %v14996_v1  ;;  %v2460_v47 = vsel %vm14069_vm2, %v2455_v5, %v2459_v52 }
 0x195   : > { %12244 = vmatprep.subr.bf16.mxu0 %v13526_v31  ;;  %v2510_v60 = vshrl.u32 %v11000_v38, 16  ;;  %v2513_v57 = vshll.u32 %v11000_v38, 16  ;;  %v2543_v48 = vshll.u32 %v14807_v33, 16  ;;  %v2547_v1 = vshrl.u32 %v14807_v33, 16  ;;  %v13531_v52 = vld [vmem:[#allocation6 + $0x178] sm:$0xff]  }
 0x196   : > { %v2468_v13 = vor.u32 %v2467_v51, %v2464_v44  ;;  %v2519_v44 = vshll.u32 %v14777_v54, 16  ;;  %v2523_v51 = vshrl.u32 %v14777_v54, 16  ;;  %v2492_v43 = vor.u32 %v2491_v18, %v2488_v12 }
 0x197   : > { %12213 = vmatmul.mubr.bf16.gmra.mrb[4].mxu0 %v11018_v16  ;;  %v11003_v16 = vld [vmem:[%s14032_s10 + $0x9c] sm:$0xf]  ;;  %v2512_v8 = vrot.slane %v2510_v60, 4  ;;  %v2515_v54 = vrot.slane %v2513_v57, 5  ;;  %v2549_v38 = vrot.slane %v2547_v1, 4 }
 0x198   : > { %12216 = vmatprep.mubr.bf16.mxu0 %v11019_v45  ;;  %12245 = vmatpush3.bf16.msra.mxu0 %v13526_v31  ;;  %v2426_v31 = vsel %vm14069_vm2, %v2421_v37, %v14986_v3  ;;  %v15028_v45 = vrot.slane %v2495_v53, 5  ;;  %v2469_v0 = vrot.slane %v2468_v13, 4  ;;  %v2479_v3 = vrot.slane %v2478_v39, 4  ;;  %v13530_v53 = vld [vmem:[#allocation6 + $0x170] sm:$0xff]   ;;  %v11009_v60 = vld [vmem:[%s14032_s10 + $0xb4] sm:$0xf] }
 0x199   : > { %12246 = vmatprep.subr.bf16.mxu0 %v13527_v42  ;;  %v2534_v36 = vshrl.u32 %v11003_v16, 16  ;;  %v2505_v37 = vshll.u32 %v14766_v10, 16  ;;  %v11022_v34 = vcombine.low %v2426_v31, %v2436_v28  ;;  %v15046_v2 = vrot.slane %v2519_v44, 5 }
 0x19a   : > { %v2502_v23 = vor.u32 %v2501_v63, %v15028_v45  ;;  %v2474_v27 = vsel %vm14069_vm2, %v2469_v0, %v15011_v9  ;;  %v2484_v10 = vsel %vm14069_vm2, %v2479_v3, %v2483_v25  ;;  %v2525_v33 = vrot.slane %v2523_v51, 4 }
 0x19b   : > { %v2536_v4 = vrot.slane %v2534_v36, 4  ;;  %v11023_v39 = vcombine.low %v2450_v29, %v2460_v47  ;;  %v2507_v49 = vrot.slane %v2505_v37, 5  ;;  %v2516_v9 = vor.u32 %v2515_v54, %v2512_v8 }
 0x19c   : > { %12247 = vmatpush3.bf16.msra.mxu0 %v13527_v42  ;;  %v2537_v42 = vshll.u32 %v11003_v16, 16  ;;  %v2503_v31 = vrot.slane %v2502_v23, 4  ;;  %v2529_v28 = vshll.u32 %v14782_v55, 16  ;;  %v11024_v5 = vcombine.low %v2474_v27, %v2484_v10 }
 0x19d   : > { %12248 = vmatprep.subr.bf16.mxu0 %v13528_v61  ;;  %v2526_v12 = vor.u32 %v2525_v33, %v15046_v2  ;;  %v2553_v16 = vshll.u32 %v14810_v32, 16  ;;  %v2567_v0 = vshll.u32 %v14819_v24, 16  ;;  %v2571_v3 = vshrl.u32 %v14819_v24, 16  ;;  %v15065_v24 = vld [vmem:[#allocation6 + $0x180] sm:$0xff]   ;;  %v11012_v33 = vld [vmem:[%s14032_s10 + $0xc0] sm:$0xf] }
 0x19e   : > { %v2539_v13 = vrot.slane %v2537_v42, 5  ;;  %v2508_v25 = vsel %vm14069_vm2, %v2503_v31, %v2507_v49  ;;  %v2531_v32 = vrot.slane %v2529_v28, 5  ;;  %v2582_v44 = vshrl.u32 %v11009_v60, 16 }
 0x19f   : > { %12217 = vmatmul.mubr.bf16.gmra.mrb[8].mxu0 %v11020_v7  ;;  %v11006_v7 = vld [vmem:[%s14032_s10 + $0xa8] sm:$0xf]  ;;  %v2585_v51 = vshll.u32 %v11009_v60, 16  ;;  %v2591_v36 = vshll.u32 %v14888_v6, 16  ;;  %v2595_v42 = vshrl.u32 %v14888_v6, 16  ;;  %v2527_v47 = vrot.slane %v2526_v12, 4 }
 0x1a0   : > { %12220 = vmatprep.mubr.bf16.mxu0 %v11021_v26  ;;  %12249 = vmatpush3.bf16.msra.mxu0 %v13528_v61  ;;  %v15048_v61 = vrot.slane %v2543_v48, 5  ;;  %v2493_v26 = vrot.slane %v2492_v43, 4  ;;  %v2540_v18 = vor.u32 %v2539_v13, %v2536_v4  ;;  %v2558_v63 = vshrl.u32 %v11006_v7, 16 }
 0x1a1   : > { %12250 = vmatprep.subr.bf16.mxu0 %v13529_v11  ;;  %v2561_v29 = vshll.u32 %v11006_v7, 16  ;;  %v2555_v48 = vrot.slane %v2553_v16, 5  ;;  %v2569_v23 = vrot.slane %v2567_v0, 5  ;;  %v2573_v8 = vrot.slane %v2571_v3, 4 }
 0x1a2   : > { %v2550_v57 = vor.u32 %v2549_v38, %v15048_v61  ;;  %v2498_v55 = vsel %vm14069_vm2, %v2493_v26, %v15028_v45  ;;  %v2541_v37 = vrot.slane %v2540_v18, 4  ;;  %v2560_v45 = vrot.slane %v2558_v63, 4 }
 0x1a3   : > { %v2563_v43 = vrot.slane %v2561_v29, 5  ;;  %v11025_v54 = vcombine.low %v2498_v55, %v2508_v25  ;;  %v2587_v27 = vrot.slane %v2585_v51, 5  ;;  %v2593_v10 = vrot.slane %v2591_v36, 5  ;;  %v13650_v36 = vld [vmem:[%s14032_s10 + $0x10] sm:$0xf] }
 0x1a4   : > { %12251 = vmatpush3.bf16.msra.mxu0 %v13529_v11  ;;  %v2517_v11 = vrot.slane %v2516_v9, 4  ;;  %v2551_v1 = vrot.slane %v2550_v57, 4  ;;  %v2532_v4 = vsel %vm14069_vm2, %v2527_v47, %v2531_v32  ;;  %v2577_v13 = vshll.u32 %v14826_v41, 16  ;;  %v11039_v47 = vld [vmem:[%s14032_s10 + $0xc] sm:$0xe] }
 0x1a5   : > { %12252 = vmatprep.subr.bf16.mxu0 %v13530_v53  ;;  %v2564_v38 = vor.u32 %v2563_v43, %v2560_v45  ;;  %v2574_v7 = vor.u32 %v2573_v8, %v2569_v23  ;;  %v2606_v26 = vshrl.u32 %v11012_v33, 16  ;;  %v2609_v31 = vshll.u32 %v11012_v33, 16  ;;  %v13651_v8 = vld [vmem:[%s14032_s10 + $0x14] sm:$0x1] }
 0x1a6   : > { %v2522_v6 = vsel %vm14069_vm2, %v2517_v11, %v15046_v2  ;;  %v2556_v49 = vsel %vm14069_vm2, %v2551_v1, %v2555_v48  ;;  %v2615_v2 = vshll.u32 %v14894_v15, 16  ;;  %v2619_v9 = vshrl.u32 %v14894_v15, 16 }
 0x1a7   : > { %12221 = vmatmul.mubr.bf16.gmra.mrb[12].mxu0 %v11022_v34  ;;  %v2584_v34 = vrot.slane %v2582_v44, 4  ;;  %v2601_v41 = vshll.u32 %v14891_v21, 16  ;;  %v2565_v18 = vrot.slane %v2564_v38, 4  ;;  %v2579_v16 = vrot.slane %v2577_v13, 5  ;;  %v13653_v13 = vld [vmem:[%s14032_s10 + $0x28] sm:$0xf] }
 0x1a8   : > { %12224 = vmatprep.mubr.bf16.mxu0 %v11023_v39  ;;  %12253 = vmatpush3.bf16.msra.mxu0 %v13530_v53  ;;  %v2597_v53 = vrot.slane %v2595_v42, 4  ;;  %v2546_v39 = vsel %vm14069_vm2, %v2541_v37, %v15048_v61  ;;  %v2575_v61 = vrot.slane %v2574_v7, 4  ;;  %v2608_v63 = vrot.slane %v2606_v26, 4 }
 0x1a9   : > { %12254 = vmatprep.subr.bf16.mxu0 %v13531_v52  ;;  %v2588_v28 = vor.u32 %v2587_v27, %v2584_v34  ;;  %v11027_v12 = vcombine.low %v2546_v39, %v2556_v49  ;;  %v2611_v60 = vrot.slane %v2609_v31, 5  ;;  %v2617_v57 = vrot.slane %v2615_v2, 5  ;;  %v11041_v49 = vld [vmem:[%s14032_s10 + $0x24] sm:$0xe]  ;;  %v13654_v2 = vld [vmem:[%s14032_s10 + $0x20] sm:$0x1] }
 0x1aa   : > { %v2621_v29 = vrot.slane %v2619_v9, 4  ;;  %v2603_v55 = vrot.slane %v2601_v41, 5  ;;  %v2570_v15 = vsel %vm14069_vm2, %v2565_v18, %v2569_v23  ;;  %v2580_v21 = vsel %vm14069_vm2, %v2575_v61, %v2579_v16  ;;  %v13655_v18 = vld [vmem:[%s14032_s10 + $0x34] sm:$0xf] }
 0x1ab   : > { %v2589_v0 = vrot.slane %v2588_v28, 4  ;;  %v2612_v25 = vor.u32 %v2611_v60, %v2608_v63  ;;  %v2625_v32 = vshll.u32 %v14903_v22, 16  ;;  %v3016_v42 = vrot.slane %v13650_v36, 5  ;;  %v11042_v60 = vld [vmem:[%s14032_s10 + $0x30] sm:$0xe]  ;;  %v13534_v36 = vld [vmem:[#allocation6 + $0x190] sm:$0xff]  }
 0x1ac   : > { %12255 = vmatpush3.bf16.msra.mxu0 %v13531_v52  ;;  %v2598_v52 = vor.u32 %v2597_v53, %v2593_v10  ;;  %v2622_v11 = vor.u32 %v2621_v29, %v2617_v57  ;;  %v11028_v37 = vcombine.low %v2570_v15, %v2580_v21  ;;  %v11055_v23 = vrot.slane %v11039_v47, 9  ;;  %v13533_v21 = vld [vmem:[#allocation6 + $0x188] sm:$0xff]  }
 0x1ad   : > { %12288 = vmatprep.subr.bf16.mxu0 %v15065_v24  ;;  %v2594_v44 = vsel %vm14069_vm2, %v2589_v0, %v2593_v10  ;;  %v2613_v45 = vrot.slane %v2612_v25, 4  ;;  %v2627_v43 = vrot.slane %v2625_v32, 5  ;;  %v3018_v22 = vrot.slane %v3016_v42, 4  ;;  %v13652_v10 = vld [vmem:[%s14032_s10 + $0x1c] sm:$0xf] }
 0x1ae   : > { %v2599_v3 = vrot.slane %v2598_v52, 4  ;;  %v2623_v1 = vrot.slane %v2622_v11, 4  ;;  %v3023_v53 = vrot.slane %v13652_v10, 5  ;;  %v3017_v33 = vsel %vm14363_vm5, %v11055_v23, %v3016_v42  ;;  %v11045_v42 = vld [vmem:[%s14032_s10 + $0x54] sm:$0xe]  ;;  %v13537_v10 = vld [vmem:[#allocation6 + $0x1a8] sm:$0xff]  }
 0x1af   : > { %12225 = vmatmul.mubr.bf16.gmra.mrb[16].mxu0 %v11024_v5  ;;  %v11026_v5 = vcombine.low %v2522_v6, %v2532_v4  ;;  %v2618_v34 = vsel %vm14069_vm2, %v2613_v45, %v2617_v57  ;;  %v11040_v4 = vld [vmem:[%s14032_s10 + $0x18] sm:$0xe]  ;;  %v3030_v39 = vrot.slane %v13653_v13, 5  ;;  %v3026_v9 = vrot.slane %v13654_v2, 5  ;;  %v17207_v13 = vld [vmem:[#allocation16_spill] sm:$0xff] }
 0x1b0   : > { %12228 = vmatprep.mubr.bf16.mxu0 %v11025_v54  ;;  %v2604_v51 = vsel %vm14069_vm2, %v2599_v3, %v2603_v55  ;;  %v3019_v54 = vrot.slane %v13651_v8, 5  ;;  %v2628_v27 = vsel %vm14069_vm2, %v2623_v1, %v2627_v43  ;;  %v11056_v26 = vrot.slane %v11040_v4, 9  ;;  %v13535_v1 = vld [vmem:[#allocation6 + $0x198] sm:$0xff]   ;;  %v17215_v2 = vld [vmem:[#allocation21_spill] sm:$0xff] }
 0x1b1   : > { %v11029_v48 = vcombine.low %v2594_v44, %v2604_v51  ;;  %v11030_v38 = vcombine.low %v2618_v34, %v2628_v27  ;;  %v3025_v31 = vrot.slane %v3023_v53, 4  ;;  %v11057_v28 = vrot.slane %v11041_v49, 9  ;;  %v11047_v8 = vld [vmem:[%s14032_s10 + $0x6c] sm:$0xe]  ;;  %v17210_v49 = vld [vmem:[#allocation17_spill] sm:$0xff] }
 0x1b2   : > { %v3020_v6 = vsel %vm14363_vm5, %v3018_v22, %v3019_v54  ;;  %v3032_v52 = vrot.slane %v3030_v39, 4  ;;  %v3033_v41 = vrot.slane %v14688_v14, 5  ;;  %v3037_v61 = vrot.slane %v13655_v18, 5  ;;  %v11043_v14 = vld [vmem:[%s14032_s10 + $0x3c] sm:$0xe] }
 0x1b3   : > { %v11071_v7 = vcombine.low %v3017_v33, %v3020_v6  ;;  %v3031_v16 = vsel %vm14363_vm5, %v11057_v28, %v3030_v39  ;;  %v3044_v57 = vrot.slane %v14774_v40, 5  ;;  %v11058_v3 = vrot.slane %v11042_v60, 9  ;;  %v13536_v22 = vld [vmem:[#allocation6 + $0x1a0] sm:$0xff]   ;;  %v13538_v6 = vld [vmem:[#allocation6 + $0x1b0] sm:$0xff]  }
 0x1b4   : > { %v3034_v63 = vsel %vm14363_vm5, %v3032_v52, %v3033_v41  ;;  %v3039_v55 = vrot.slane %v3037_v61, 4  ;;  %v3040_v15 = vrot.slane %v14724_v58, 5  ;;  %v11059_v25 = vrot.slane %v11043_v14, 9  ;;  %v17218_v28 = vld [vmem:[#allocation15_spill] sm:$0xff]  ;;  %v17219_v52 = vld [vmem:[#allocation13_spill] sm:$0xff] }
 0x1b5   : > { %v11073_v0 = vcombine.low %v3031_v16, %v3034_v63  ;;  %v3046_v11 = vrot.slane %v3044_v57, 4  ;;  %v3047_v32 = vrot.slane %v14871_v17, 5  ;;  %v3038_v40 = vsel %vm14363_vm5, %v11058_v3, %v3037_v61  ;;  %v17224_v61 = vld [vmem:[#allocation24_spill] sm:$0xff]  ;;  %v17225_v16 = vld [vmem:[#allocation25_spill] sm:$0xff]  ;;  %v17228_v14 = vld [vmem:[#allocation27_spill] sm:$0xff] }
 0x1b6   : > { %v3041_v44 = vsel %vm14363_vm5, %v3039_v55, %v3040_v15  ;;  %v3045_v51 = vsel %vm14363_vm5, %v11059_v25, %v3044_v57  ;;  %v3058_v17 = vrot.slane %v14915_v20, 5  ;;  %v3061_v45 = vrot.slane %v14957_v56, 5  ;;  %v13540_v60 = vld [vmem:[%s14032_s10 + $0x18] sm:$0xff]   ;;  %v13543_v3 = vld [vmem:[%s14032_s10 + $0x30] sm:$0xff]   ;;  %v13548_v15 = vld [vmem:[#allocation6 + $0x1d0] sm:$0xff]  }
 0x1b7   : > { %12229 = vmatmul.mubr.bf16.gmra.mrb[20].mxu0 %v11026_v5  ;;  %v3024_v5 = vsel %vm14363_vm5, %v11056_v26, %v3023_v53  ;;  %v3048_v58 = vsel %vm14363_vm5, %v3046_v11, %v3047_v32  ;;  %v11074_v47 = vcombine.low %v3038_v40, %v3041_v44  ;;  %v3072_v23 = vrot.slane %v14975_v50, 5  ;;  %v17213_v26 = vld [vmem:[#allocation20_spill] sm:$0xff]  ;;  %v17227_v57 = vld [vmem:[#allocation26_spill] sm:$0xff] }
 0x1b8   : > { %12232 = vmatprep.mubr.bf16.mxu0 %v11027_v12  ;;  %v3027_v12 = vsel %vm14363_vm5, %v3025_v31, %v3026_v9  ;;  %v11063_v34 = vrot.slane %v11047_v8, 9  ;;  %v3075_v56 = vrot.slane %v15008_v30, 5  ;;  %v17206_v53 = vcombine.low %v14694_v62, %v14698_v59  ;;  %v13539_v30 = vld [vmem:[#allocation6 + $0x1b8] sm:$0xff]   ;;  %v13542_v62 = vld [vmem:[#allocation6 + $0x1c0] sm:$0xff]   ;;  %v17209_v59 = vld [vmem:[#allocation19_spill] sm:$0xff] }
 0x1b9   : > { %v11072_v29 = vcombine.low %v3024_v5, %v3027_v12  ;;  %v3074_v27 = vrot.slane %v3072_v23, 4  ;;  %v17208_v39 = vcombine.low %v14728_v35, %v17207_v13  ;;  %v17216_v9 = vld [vmem:[#allocation14_spill] sm:$0xff]  ;;  %v17220_v41 = vcombine.low %v17218_v28, %v17219_v52  ;;  %v17222_v12 = vld [vmem:[#allocation23_spill] sm:$0xff]  ;;  %v13551_v11 = vld [vmem:[#allocation6 + $0x1d8] sm:$0xff]  }
 0x1ba   : > { %v3073_v33 = vsel %vm14363_vm5, %v11063_v34, %v3072_v23  ;;  %v17217_v35 = vcombine.low %v17215_v2, %v17216_v9  ;;  %v17221_v5 = vld [vmem:[#allocation22_spill] sm:$0xff]  ;;  %v17226_v63 = vcombine.low %v17224_v61, %v17225_v16  ;;  %v13546_v25 = vld [vmem:[%s14032_s10 + $0x48] sm:$0xff]   ;;  %v11228_v44 = vld [vmem:[%s14032_s10 + $0x54] sm:$0xe] }
 0x1bb   : > { %v3076_v50 = vsel %vm14363_vm5, %v3074_v27, %v3075_v56  ;;  %v17223_v18 = vcombine.low %v17221_v5, %v17222_v12  ;;  %v13545_v55 = vld [vmem:[#allocation6 + $0x1c8] sm:$0xff]   ;;  %v13563_v61 = vld [vmem:[#allocation6 + $0x1f8] sm:$0xff]  }
 0x1bc   : > { %v11079_v4 = vcombine.low %v3073_v33, %v3076_v50  ;;  %v15179_v32 = vld [vmem:[%s14032_s10 + $0x58] sm:$0xf]  ;;  %v15182_v40 = vld [vmem:[%s14032_s10 + $0x5c] sm:$0x1]  ;;  %v15213_v33 = vld [vmem:[%s14032_s10 + $0x74] sm:$0x1] }
 0x1bd   : > { %v4704_v13 = vrot.slane %v15213_v33, 5  ;;  %v15224_v2 = vld [vmem:[%s14032_s10 + $0x20] sm:$0x1]  ;;  %v13552_v52 = vld [vmem:[%s14032_s10 + $0x78] sm:$0xff]   ;;  %v11157_v16 = vld [vmem:[%s14032_s10 + $0x30] sm:$0xf] }
 0x1be   : > { %v11236_v8 = vld [vmem:[%s14032_s10 + $0xb4] sm:$0xe] }
 0x1bf   : > { %12233 = vmatmul.mubr.bf16.gmra.mrb[24].mxu0 %v11028_v37  ;;  %v11061_v37 = vrot.slane %v11045_v42, 9  ;;  %v11151_v42 = vld [vmem:[%s14032_s10 + $0x18] sm:$0xf] }
 0x1c0   : > { %12236 = vmatprep.mubr.bf16.mxu0 %v11029_v48  ;;  %v3060_v48 = vrot.slane %v3058_v17, 4  ;;  %v3882_v23 = vshrl.u32 %v11151_v42, 16 }
 0x1c1   : > { %v3059_v43 = vsel %vm14363_vm5, %v11061_v37, %v3058_v17  ;;  %v11244_v17 = vrot.slane %v11228_v44, 9  ;;  %v15190_v37 = vld [vmem:[%s14032_s10 + $0x1c] sm:$0xf] }
 0x1c2   : > { %v3062_v20 = vsel %vm14363_vm5, %v3060_v48, %v3061_v45  ;;  %v13549_v45 = vld [vmem:[%s14032_s10 + $0x60] sm:$0xff]   ;;  %v3891_v34 = vshll.u32 %v15190_v37, 16  ;;  %v3895_v27 = vshrl.u32 %v15190_v37, 16 }
 0x1c3   : > { %v11077_v54 = vcombine.low %v3059_v43, %v3062_v20  ;;  %v13557_v20 = vld [vmem:[#allocation6 + $0x1e8] sm:$0xff]  }
 0x1c7   : > { %12237 = vmatmul.mubr.bf16.gmra.mrb[28].mxu0 %v11030_v38  ;;  %v17211_v38 = vcombine.low %v17209_v59, %v17210_v49 }
 0x1c8   : > { %12256 = vmatprep.mubr.bf16.mxu0 %v11071_v7  ;;  %v17212_v7 = vld [vmem:[#allocation18_spill] sm:$0xff] }
 0x1c9   : > { %v17214_v31 = vcombine.low %v17212_v7, %v17213_v26  ;;  %v3897_v7 = vrot.slane %v3895_v27, 4  ;;  %v13555_v27 = vld [vmem:[%s14032_s10 + $0x90] sm:$0xff]  }
 0x1cf   : > { %12257 = vmatmul.mubr.bf16.vlgmr.msra.gmra.mrb[0].mxu0 %v11072_v29  ;;  %v17229_v29 = vcombine.low %v17227_v57, %v17228_v14  ;;  %v3901_v14 = vshll.u32 %v15224_v2, 16 }
 0x1d0   : > { %12289 = vmatpush3.bf16.msra.mxu0 %v15065_v24  ;;  %12260 = vmatprep.mubr.bf16.mxu0 %v11073_v0  ;;  %v11075_v24 = vcombine.low %v3045_v51, %v3048_v58  ;;  %v13541_v0 = vld [vmem:[%s14032_s10 + $0x24] sm:$0xff]   ;;  %v4687_v51 = vrot.slane %v15179_v32, 5  ;;  %v4690_v58 = vrot.slane %v15182_v40, 5 }
 0x1d1   : > { %12290 = vmatprep.subr.bf16.mxu0 %v13533_v21 }
 0x1d2   : > { %v15194_v48 = vsel %vm14363_vm5, %v11244_v17, %v4687_v51 }
 0x1d3   : > { %17230 = vst [vmem:[#allocation16_spill] sm:$0xff] %v15194_v48  ;;  %v13562_v48 = vld [vmem:[%s14032_s10 + $0xcc] sm:$0xff]  }
 0x1d4   : > { %12291 = vmatpush3.bf16.msra.mxu0 %v13533_v21  ;;  %v13544_v21 = vld [vmem:[%s14032_s10 + $0x3c] sm:$0xff]  }
 0x1d5   : > { %12292 = vmatprep.subr.bf16.mxu0 %v13534_v36 }
 0x1d7   : > { %12261 = vmatmul.mubr.bf16.gmra.mrb[4].mxu0 %v11074_v47  ;;  %v4689_v47 = vrot.slane %v4687_v51, 4  ;;  %v15256_v51 = vld [vmem:[#allocation6 + $0x200] sm:$0xff]  }
 0x1d8   : > { %12264 = vmatprep.mubr.bf16.mxu0 %v11075_v24  ;;  %12293 = vmatpush3.bf16.msra.mxu0 %v13534_v36  ;;  %v13554_v36 = vld [vmem:[#allocation6 + $0x1e0] sm:$0xff]  }
 0x1d9   : > { %12294 = vmatprep.subr.bf16.mxu0 %v13535_v1  ;;  %v13547_v24 = vld [vmem:[%s14032_s10 + $0x54] sm:$0xff]   ;;  %v15200_v43 = vsel %vm14363_vm5, %v4689_v47, %v4690_v58  ;;  %v15265_v47 = vrot.slane %v3901_v14, 5 }
 0x1da   : > { %17231 = vst [vmem:[#allocation19_spill] sm:$0xff] %v15200_v43  ;;  %v15259_v58 = vld [vmem:[%s14032_s10 + $0x34] sm:$0xf]  ;;  %v15459_v43 = vld [vmem:[%s14032_s10 + $0x64] sm:$0xf] }
 0x1db   : > { %17246 = vst [vmem:[#allocation29_spill] sm:$0xff] %v15459_v43 }
 0x1dc   : > { %12295 = vmatpush3.bf16.msra.mxu0 %v13535_v1  ;;  %v11154_v1 = vld [vmem:[%s14032_s10 + $0x24] sm:$0xf] }
 0x1dd   : > { %12296 = vmatprep.subr.bf16.mxu0 %v13536_v22  ;;  %v3906_v56 = vshrl.u32 %v11154_v1, 16 }
 0x1df   : > { %12265 = vmatmul.mubr.bf16.gmra.mrb[8].mxu0 %v17206_v53  ;;  %v15210_v53 = vld [vmem:[%s14032_s10 + $0x70] sm:$0xf]  ;;  %v3908_v9 = vrot.slane %v3906_v56, 4 }
 0x1e0   : > { %12268 = vmatprep.mubr.bf16.mxu0 %v11077_v54  ;;  %12297 = vmatpush3.bf16.msra.mxu0 %v13536_v22  ;;  %v15203_v22 = vld [vmem:[%s14032_s10 + $0x28] sm:$0xf]  ;;  %v3885_v54 = vshll.u32 %v11151_v42, 16 }
 0x1e1   : > { %12298 = vmatprep.subr.bf16.mxu0 %v13537_v10  ;;  %v3915_v50 = vshll.u32 %v15203_v22, 16 }
 0x1e2   : > { %v3887_v49 = vrot.slane %v3885_v54, 5  ;;  %v3933_v54 = vshll.u32 %v11157_v16, 16 }
 0x1e3   : > { %v15234_v5 = vrot.slane %v3915_v50, 5  ;;  %v3939_v50 = vshll.u32 %v15259_v58, 16 }
 0x1e4   : > { %12299 = vmatpush3.bf16.msra.mxu0 %v13537_v10  ;;  %v3909_v10 = vshll.u32 %v11154_v1, 16  ;;  %v13553_v1 = vld [vmem:[%s14032_s10 + $0x84] sm:$0xff]   ;;  %v3935_v14 = vrot.slane %v3933_v54, 5 }
 0x1e5   : > { %12300 = vmatprep.subr.bf16.mxu0 %v13538_v6 }
 0x1e7   : > { %12269 = vmatmul.mubr.bf16.gmra.mrb[12].mxu0 %v17208_v39  ;;  %v13560_v39 = vld [vmem:[#allocation6 + $0x1f0] sm:$0xff]  }
 0x1e8   : > { %12272 = vmatprep.mubr.bf16.mxu0 %v11079_v4  ;;  %12301 = vmatpush3.bf16.msra.mxu0 %v13538_v6  ;;  %v3919_v6 = vshrl.u32 %v15203_v22, 16  ;;  %v11230_v4 = vld [vmem:[%s14032_s10 + $0x6c] sm:$0xe] }
 0x1e9   : > { %12302 = vmatprep.subr.bf16.mxu0 %v13539_v30  ;;  %v11246_v59 = vrot.slane %v11230_v4, 9  ;;  %v3943_v4 = vshrl.u32 %v15259_v58, 16 }
 0x1ea   : > { %v3921_v12 = vrot.slane %v3919_v6, 4 }
 0x1ec   : > { %12303 = vmatpush3.bf16.msra.mxu0 %v13539_v30  ;;  %v4701_v30 = vrot.slane %v15210_v53, 5 }
 0x1ed   : > { %12336 = vmatprep.subr.bf16.mxu0 %v13542_v62 }
 0x1ee   : > { %v4703_v26 = vrot.slane %v4701_v30, 4  ;;  %v15228_v28 = vsel %vm14363_vm5, %v11246_v59, %v4701_v30  ;;  %v15290_v30 = vld [vmem:[%s14032_s10 + $0x40] sm:$0xf]  ;;  %v15295_v59 = vld [vmem:[%s14032_s10 + $0x38] sm:$0x1] }
 0x1ef   : > { %12273 = vmatmul.mubr.bf16.gmra.mrb[16].mxu0 %v17211_v38  ;;  %v15220_v38 = vrot.slane %v3891_v34, 5  ;;  %17232 = vst [vmem:[#allocation17_spill] sm:$0xff] %v15228_v28 }
 0x1f0   : > { %12276 = vmatprep.mubr.bf16.mxu0 %v17214_v31  ;;  %v13550_v31 = vld [vmem:[%s14032_s10 + $0x6c] sm:$0xff]  }
 0x1f1   : > { %v3898_v57 = vor.u32 %v3897_v7, %v15220_v38  ;;  %v15301_v7 = vld [vmem:[%s14032_s10 + $0x98] sm:$0x1] }
 0x1f3   : > { %v15263_v42 = vrot.slane %v3898_v57, 4 }
 0x1f7   : > { %12277 = vmatmul.mubr.bf16.gmra.mrb[20].mxu0 %v17217_v35  ;;  %v3911_v35 = vrot.slane %v3909_v10, 5 }
 0x1f8   : > { %12280 = vmatprep.mubr.bf16.mxu0 %v17220_v41  ;;  %v15232_v41 = vld [vmem:[%s14032_s10 + $0x2c] sm:$0x1] }
 0x1ff   : > { %12281 = vmatmul.mubr.bf16.gmra.mrb[24].mxu0 %v17223_v18  ;;  %v15238_v18 = vsel %vm14363_vm5, %v4703_v26, %v4704_v13  ;;  %v15304_v26 = vld [vmem:[%s14032_s10 + $0xa0] sm:$0xf] }
 0x200   : > { %12284 = vmatprep.mubr.bf16.mxu0 %v17226_v63  ;;  %17233 = vst [vmem:[#allocation18_spill] sm:$0xff] %v15238_v18  ;;  %v11235_v63 = vld [vmem:[%s14032_s10 + $0xa8] sm:$0xe] }
 0x207   : > { %12285 = vmatmul.mubr.bf16.gmra.mrb[28].mxu0 %v17229_v29  ;;  %v3912_v29 = vor.u32 %v3911_v35, %v3908_v9  ;;  %v11233_v9 = vld [vmem:[%s14032_s10 + $0x90] sm:$0xe] }
 0x208   : > { %12304 = vmatprep.mubr.bf16.mxu0 %v13540_v60 }
 0x20f   : > { %12305 = vmatmul.mubr.bf16.vlgmr.msra.gmra.mrb[0].mxu0 %v13541_v0  ;;  %v3925_v0 = vshll.u32 %v15232_v41, 16 }
 0x210   : > { %12337 = vmatpush3.bf16.msra.mxu0 %v13542_v62  ;;  %12308 = vmatprep.mubr.bf16.mxu0 %v13543_v3  ;;  %v3884_v62 = vrot.slane %v3882_v23, 4  ;;  %v15247_v3 = vld [vmem:[%s14032_s10 + $0x88] sm:$0xf] }
 0x211   : > { %12338 = vmatprep.subr.bf16.mxu0 %v13545_v55  ;;  %v15271_v23 = vrot.slane %v3925_v0, 5 }
 0x212   : > { %v3888_v60 = vor.u32 %v3887_v49, %v3884_v62  ;;  %v15298_v49 = vld [vmem:[%s14032_s10 + $0x94] sm:$0xf]  ;;  %v15376_v62 = vld [vmem:[%s14032_s10 + $0xbc] sm:$0x1] }
 0x213   : > { %v4722_v35 = vrot.slane %v15298_v49, 5 }
 0x214   : > { %12339 = vmatpush3.bf16.msra.mxu0 %v13545_v55  ;;  %v15250_v55 = vld [vmem:[%s14032_s10 + $0x8c] sm:$0x1]  ;;  %v15261_v17 = vrot.slane %v3888_v60, 4  ;;  %v4729_v60 = vrot.slane %v15304_v26, 5 }
 0x215   : > { %12340 = vmatprep.subr.bf16.mxu0 %v13548_v15  ;;  %v4718_v44 = vrot.slane %v15250_v55, 5  ;;  %v4724_v0 = vrot.slane %v4722_v35, 4 }
 0x217   : > { %12309 = vmatmul.mubr.bf16.gmra.mrb[4].mxu0 %v13544_v21  ;;  %v3930_v21 = vshrl.u32 %v11157_v16, 16  ;;  %v11234_v16 = vld [vmem:[%s14032_s10 + $0x9c] sm:$0xe] }
 0x218   : > { %12312 = vmatprep.mubr.bf16.mxu0 %v13546_v25  ;;  %12341 = vmatpush3.bf16.msra.mxu0 %v13548_v15  ;;  %v3922_v15 = vor.u32 %v3921_v12, %v15234_v5  ;;  %v11232_v25 = vld [vmem:[%s14032_s10 + $0x84] sm:$0xe]  ;;  %v3963_v12 = vshll.u32 %v15290_v30, 16 }
 0x219   : > { %12342 = vmatprep.subr.bf16.mxu0 %v13551_v11  ;;  %v15280_v10 = vrot.slane %v3930_v21, 4  ;;  %v3945_v21 = vrot.slane %v3943_v4, 4 }
 0x21a   : > { %v15278_v56 = vrot.slane %v3922_v15, 4  ;;  %v11250_v15 = vrot.slane %v11234_v16, 9  ;;  %v15352_v16 = vld [vmem:[%s14032_s10 + $0x4c] sm:$0xf] }
 0x21c   : > { %12343 = vmatpush3.bf16.msra.mxu0 %v13551_v11  ;;  %v4715_v11 = vrot.slane %v15247_v3, 5 }
 0x21d   : > { %12344 = vmatprep.subr.bf16.mxu0 %v13554_v36 }
 0x21f   : > { %12313 = vmatmul.mubr.bf16.gmra.mrb[8].mxu0 %v13547_v24  ;;  %v11160_v24 = vld [vmem:[%s14032_s10 + $0x3c] sm:$0xf] }
 0x220   : > { %12316 = vmatprep.mubr.bf16.mxu0 %v13549_v45  ;;  %12345 = vmatpush3.bf16.msra.mxu0 %v13554_v36  ;;  %v11248_v36 = vrot.slane %v11232_v25, 9  ;;  %v4717_v45 = vrot.slane %v4715_v11, 4  ;;  %v3954_v13 = vshrl.u32 %v11160_v24, 16  ;;  %v15319_v25 = vld [vmem:[%s14032_s10 + $0x44] sm:$0x1] }
 0x221   : > { %12346 = vmatprep.subr.bf16.mxu0 %v13557_v20  ;;  %17236 = vst [vmem:[#allocation14_spill] sm:$0xff] %v15319_v25 }
 0x222   : > { %v15275_v34 = vsel %vm14363_vm5, %v11248_v36, %v4715_v11  ;;  %v15285_v6 = vsel %vm14363_vm5, %v4717_v45, %v4718_v44  ;;  %v11163_v11 = vld [vmem:[%s14032_s10 + $0x48] sm:$0xf]  ;;  %v4731_v36 = vrot.slane %v4729_v60, 4  ;;  %v3949_v45 = vshll.u32 %v15295_v59, 16 }
 0x223   : > { %17234 = vst [vmem:[#allocation20_spill] sm:$0xff] %v15275_v34  ;;  %17235 = vst [vmem:[#allocation21_spill] sm:$0xff] %v15285_v6 }
 0x224   : > { %12347 = vmatpush3.bf16.msra.mxu0 %v13557_v20  ;;  %v15269_v20 = vrot.slane %v3912_v29, 4  ;;  %v15316_v29 = vrot.slane %v3939_v50, 5  ;;  %v13558_v50 = vld [vmem:[%s14032_s10 + $0xa8] sm:$0xff]  }
 0x225   : > { %12348 = vmatprep.subr.bf16.mxu0 %v13560_v39 }
 0x227   : > { %12317 = vmatmul.mubr.bf16.gmra.mrb[12].mxu0 %v13550_v31  ;;  %v15307_v31 = vld [vmem:[%s14032_s10 + $0xa4] sm:$0x1] }
 0x228   : > { %12320 = vmatprep.mubr.bf16.mxu0 %v13552_v52  ;;  %12349 = vmatpush3.bf16.msra.mxu0 %v13560_v39  ;;  %v3957_v39 = vshll.u32 %v11160_v24, 16  ;;  %v4725_v52 = vrot.slane %v15301_v7, 5  ;;  %v4732_v57 = vrot.slane %v15307_v31, 5  ;;  %v13556_v24 = vld [vmem:[%s14032_s10 + $0x9c] sm:$0xff]  }
 0x229   : > { %12350 = vmatprep.subr.bf16.mxu0 %v13563_v61 }
 0x22a   : > { %v15332_v54 = vsel %vm14363_vm5, %v4724_v0, %v4725_v52  ;;  %v15339_v4 = vrot.slane %v3957_v39, 5  ;;  %v3967_v52 = vshrl.u32 %v15290_v30, 16  ;;  %v3936_v0 = vor.u32 %v3935_v14, %v15280_v10 }
 0x22b   : > { %17238 = vst [vmem:[#allocation13_spill] sm:$0xff] %v15332_v54  ;;  %v3904_v39 = vsel %vm14069_vm2, %v15263_v42, %v15265_v47  ;;  %v3981_v10 = vshll.u32 %v11163_v11, 16  ;;  %v11251_v14 = vrot.slane %v11235_v63, 9  ;;  %v3987_v42 = vshll.u32 %v15352_v16, 16 }
 0x22c   : > { %12351 = vmatpush3.bf16.msra.mxu0 %v13563_v61  ;;  %v11249_v61 = vrot.slane %v11233_v9, 9  ;;  %v15341_v9 = vrot.slane %v3963_v12, 5  ;;  %v3894_v12 = vsel %vm14069_vm2, %v15261_v17, %v15220_v38  ;;  %v3991_v47 = vshrl.u32 %v15352_v16, 16 }
 0x22d   : > { %12384 = vmatprep.subr.bf16.mxu0 %v15256_v51  ;;  %v15386_v54 = vrot.slane %v3936_v0, 4  ;;  %v3969_v34 = vrot.slane %v3967_v52, 4 }
 0x22e   : > { %v15324_v44 = vsel %vm14363_vm5, %v11249_v61, %v4722_v35  ;;  %v15347_v35 = vsel %vm14363_vm5, %v4731_v36, %v4732_v57  ;;  %v3973_v61 = vshll.u32 %v15319_v25, 16  ;;  %v15362_v57 = vld [vmem:[%s14032_s10 + $0xac] sm:$0xf]  ;;  %v15368_v36 = vld [vmem:[%s14032_s10 + $0xb8] sm:$0xf]  ;;  %v4011_v25 = vshll.u32 %v15179_v32, 16 }
 0x22f   : > { %12321 = vmatmul.mubr.bf16.gmra.mrb[16].mxu0 %v13553_v1  ;;  %17237 = vst [vmem:[#allocation15_spill] sm:$0xff] %v15324_v44  ;;  %v15328_v1 = vrot.slane %v3954_v13, 4  ;;  %17240 = vst [vmem:[#allocation23_spill] sm:$0xff] %v15347_v35  ;;  %v3946_v13 = vor.u32 %v3945_v21, %v15316_v29  ;;  %v4736_v38 = vrot.slane %v15362_v57, 5  ;;  %v4746_v35 = vrot.slane %v15376_v62, 5 }
 0x230   : > { %12324 = vmatprep.mubr.bf16.mxu0 %v13555_v27  ;;  %v15336_v27 = vsel %vm14363_vm5, %v11250_v15, %v4729_v60  ;;  %v3978_v60 = vshrl.u32 %v11163_v11, 16  ;;  %v15365_v15 = vld [vmem:[%s14032_s10 + $0xb0] sm:$0x1]  ;;  %v15388_v44 = vrot.slane %v3949_v45, 5  ;;  %v13561_v45 = vld [vmem:[%s14032_s10 + $0xc0] sm:$0xff]   ;;  %v15406_v0 = vrot.slane %v3973_v61, 5 }
 0x231   : > { %17239 = vst [vmem:[#allocation22_spill] sm:$0xff] %v15336_v27  ;;  %v4739_v17 = vrot.slane %v15365_v15, 5  ;;  %v4738_v21 = vrot.slane %v4736_v38, 4  ;;  %v11252_v27 = vrot.slane %v11236_v8, 9  ;;  %v15392_v63 = vsel %vm14363_vm5, %v11251_v14, %v4736_v38  ;;  %v11166_v14 = vld [vmem:[%s14032_s10 + $0x54] sm:$0xf] }
 0x232   : > { %17241 = vst [vmem:[#allocation24_spill] sm:$0xff] %v15392_v63  ;;  %v15395_v6 = vrot.slane %v3946_v13, 4  ;;  %v3980_v38 = vrot.slane %v3978_v60, 4  ;;  %v11199_v60 = vcombine.low %v3894_v12, %v3904_v39  ;;  %v3918_v13 = vsel %vm14069_vm2, %v15269_v20, %v15234_v5  ;;  %v15447_v39 = vld [vmem:[%s14032_s10 + $0xd4] sm:$0x1] }
 0x233   : > { %v15399_v18 = vsel %vm14363_vm5, %v4738_v21, %v4739_v17  ;;  %v15416_v17 = vld [vmem:[%s14032_s10 + $0x50] sm:$0x1]  ;;  %v3993_v21 = vrot.slane %v3991_v47, 4  ;;  %v15436_v47 = vld [vmem:[%s14032_s10 + $0xc8] sm:$0x1]  ;;  %v3942_v5 = vsel %vm14069_vm2, %v15386_v54, %v15316_v29  ;;  %v3970_v20 = vor.u32 %v3969_v34, %v15341_v9 }
 0x234   : > { %17242 = vst [vmem:[#allocation25_spill] sm:$0xff] %v15399_v18  ;;  %17245 = vst [vmem:[#allocation28_spill] sm:$0xff] %v15416_v17  ;;  %v3997_v34 = vshll.u32 %v15416_v17, 16  ;;  %v11169_v54 = vld [vmem:[%s14032_s10 + $0x60] sm:$0xf]  ;;  %v4005_v28 = vshll.u32 %v11166_v14, 16 }
 0x235   : > { %v13573_v17 = vld [vmem:[#allocation8 + $0x48] sm:$0xff]  }
 0x237   : > { %12325 = vmatmul.mubr.bf16.gmra.mrb[20].mxu0 %v13556_v24  ;;  %v4743_v24 = vrot.slane %v15368_v36, 5 }
 0x238   : > { %12328 = vmatprep.mubr.bf16.mxu0 %v13558_v50  ;;  %v13559_v50 = vld [vmem:[%s14032_s10 + $0xb4] sm:$0xff]  }
 0x239   : > { %v4745_v11 = vrot.slane %v4743_v24, 4  ;;  %v15403_v8 = vsel %vm14363_vm5, %v11252_v27, %v4743_v24  ;;  %v3983_v27 = vrot.slane %v3981_v10, 5  ;;  %v15418_v24 = vrot.slane %v3987_v42, 5  ;;  %v15433_v42 = vld [vmem:[%s14032_s10 + $0xc4] sm:$0xf]  ;;  %v17269_v46 = vld [vmem:[#allocation24_spill] sm:$0xff] }
 0x23a   : > { %17243 = vst [vmem:[#allocation26_spill] sm:$0xff] %v15403_v8  ;;  %v3960_v10 = vor.u32 %v15339_v4, %v15328_v1  ;;  %v4753_v1 = vrot.slane %v15436_v47, 5  ;;  %v4002_v4 = vshrl.u32 %v11166_v14, 16 }
 0x23b   : > { %v15413_v52 = vsel %vm14363_vm5, %v4745_v11, %v4746_v35  ;;  %v3928_v35 = vsel %vm14069_vm2, %v15278_v56, %v15271_v23  ;;  %v15439_v11 = vld [vmem:[%s14032_s10 + $0xd0] sm:$0xf]  ;;  %v11237_v23 = vld [vmem:[%s14032_s10 + $0xc0] sm:$0xe]  ;;  %v4750_v56 = vrot.slane %v15433_v42, 5  ;;  %v3984_v29 = vor.u32 %v3983_v27, %v3980_v38 }
 0x23c   : > { %17244 = vst [vmem:[#allocation27_spill] sm:$0xff] %v15413_v52  ;;  %v11253_v12 = vrot.slane %v11237_v23, 9  ;;  %v4757_v61 = vrot.slane %v15439_v11, 5  ;;  %v4760_v52 = vrot.slane %v15447_v39, 5  ;;  %v3994_v63 = vor.u32 %v3993_v21, %v15418_v24 }
 0x23d   : > { %v4752_v8 = vrot.slane %v4750_v56, 4  ;;  %v4015_v38 = vshrl.u32 %v15179_v32, 16  ;;  %v4026_v21 = vshrl.u32 %v11169_v54, 16  ;;  %v3952_v32 = vsel %vm14069_vm2, %v15395_v6, %v15388_v44 }
 0x23e   : > { %v4759_v23 = vrot.slane %v4757_v61, 4  ;;  %v4007_v6 = vrot.slane %v4005_v28, 5  ;;  %v15499_v44 = vrot.slane %v4011_v25, 5  ;;  %v11175_v28 = vld [vmem:[%s14032_s10 + $0x78] sm:$0xf] }
 0x23f   : > { %12329 = vmatmul.mubr.bf16.gmra.mrb[24].mxu0 %v13559_v50  ;;  %v11238_v50 = vld [vmem:[%s14032_s10 + $0xcc] sm:$0xe]  ;;  %v15470_v27 = vsel %vm14363_vm5, %v4752_v8, %v4753_v1  ;;  %v15486_v8 = vrot.slane %v3960_v10, 4  ;;  %v4035_v1 = vshll.u32 %v15459_v43, 16  ;;  %v4017_v10 = vrot.slane %v4015_v38, 4 }
 0x240   : > { %12332 = vmatprep.mubr.bf16.mxu0 %v13561_v45  ;;  %v11254_v18 = vrot.slane %v11238_v50, 9  ;;  %v15463_v45 = vsel %vm14363_vm5, %v11253_v12, %v4750_v56  ;;  %17248 = vst [vmem:[#allocation31_spill] sm:$0xff] %v15470_v27  ;;  %v4029_v50 = vshll.u32 %v11169_v54, 16  ;;  %v15480_v12 = vsel %vm14363_vm5, %v4759_v23, %v4760_v52  ;;  %v11172_v23 = vld [vmem:[%s14032_s10 + $0x6c] sm:$0xf] }
 0x241   : > { %17247 = vst [vmem:[#allocation30_spill] sm:$0xff] %v15463_v45  ;;  %17250 = vst [vmem:[#allocation33_spill] sm:$0xff] %v15480_v12  ;;  %v15493_v54 = vrot.slane %v3997_v34, 5  ;;  %v4004_v56 = vrot.slane %v4002_v4, 4  ;;  %v4039_v52 = vshrl.u32 %v15459_v43, 16  ;;  %v15497_v27 = vrot.slane %v3984_v29, 4 }
 0x242   : > { %v15474_v14 = vsel %vm14363_vm5, %v11254_v18, %v4757_v61  ;;  %v15491_v61 = vrot.slane %v3970_v20, 4  ;;  %v13572_v45 = vld [vmem:[#allocation8 + $0x40] sm:$0xff]   ;;  %v15501_v20 = vrot.slane %v3994_v63, 4  ;;  %v4021_v34 = vshll.u32 %v15182_v40, 16  ;;  %v15505_v43 = vld [vmem:[%s14032_s10 + $0x68] sm:$0x1] }
 0x243   : > { %17249 = vst [vmem:[#allocation32_spill] sm:$0xff] %v15474_v14  ;;  %v4028_v4 = vrot.slane %v4026_v21, 4  ;;  %v4031_v18 = vrot.slane %v4029_v50, 5  ;;  %v11200_v12 = vcombine.low %v3918_v13, %v3928_v35  ;;  %v11201_v14 = vcombine.low %v3942_v5, %v3952_v32  ;;  %12432 = vmatprep.subr.bf16.mxu1 %v13572_v45  ;;  %v13574_v21 = vld [vmem:[#allocation8 + $0x50] sm:$0xff]  }
 0x244   : > { %v4050_v29 = vshrl.u32 %v11172_v23, 16  ;;  %v4041_v25 = vrot.slane %v4039_v52, 4  ;;  %v4053_v38 = vshll.u32 %v11172_v23, 16  ;;  %v4063_v63 = vshrl.u32 %v15210_v53, 16  ;;  %12433 = vmatpush3.bf16.msra.mxu1 %v13572_v45  ;;  %v15523_v45 = vld [vmem:[%s14032_s10 + $0x7c] sm:$0xf] }
 0x245   : > { %v3966_v40 = vsel %vm14069_vm2, %v15486_v8, %v15341_v9  ;;  %v3976_v13 = vsel %vm14069_vm2, %v15491_v61, %v15406_v0  ;;  %v4008_v35 = vor.u32 %v4007_v6, %v4004_v56  ;;  %v4018_v5 = vor.u32 %v4017_v10, %v15499_v44  ;;  %12434 = vmatprep.subr.bf16.mxu1 %v13573_v17  ;;  %v13565_v52 = vld [vmem:[#allocation6 + $0x208] sm:$0xff]  }
 0x246   : > { %v4032_v50 = vor.u32 %v4031_v18, %v4028_v4  ;;  %v4074_v32 = vshrl.u32 %v11175_v28, 16  ;;  %v3990_v9 = vsel %vm14069_vm2, %v15497_v27, %v15418_v24  ;;  %v4000_v0 = vsel %vm14069_vm2, %v15501_v20, %v15493_v54  ;;  %v11178_v10 = vld [vmem:[%s14032_s10 + $0x84] sm:$0xf] }
 0x247   : > { %12333 = vmatmul.mubr.bf16.gmra.mrb[28].mxu0 %v13562_v48  ;;  %v15507_v48 = vrot.slane %v4035_v1, 5  ;;  %v4077_v1 = vshll.u32 %v11175_v28, 16  ;;  %v15533_v56 = vrot.slane %v4021_v34, 5  ;;  %v4052_v8 = vrot.slane %v4050_v29, 4 }
 0x248   : > { %12352 = vmatprep.mubr.bf16.mxu0 %v11199_v60  ;;  %v4059_v60 = vshll.u32 %v15210_v53, 16  ;;  %v4045_v53 = vshll.u32 %v15505_v43, 16  ;;  %v4055_v61 = vrot.slane %v4053_v38, 5  ;;  %v4065_v6 = vrot.slane %v4063_v63, 4  ;;  %12435 = vmatpush3.bf16.msra.mxu1 %v13573_v17 }
 0x249   : > { %v4042_v18 = vor.u32 %v4041_v25, %v15507_v48  ;;  %v4009_v4 = vrot.slane %v4008_v35, 4  ;;  %v4019_v28 = vrot.slane %v4018_v5, 4  ;;  %v4083_v24 = vshll.u32 %v15523_v45, 16  ;;  %12436 = vmatprep.subr.bf16.mxu1 %v13574_v21  ;;  %v13566_v25 = vld [vmem:[#allocation6 + $0x210] sm:$0xff]  }
 0x24a   : > { %v15536_v23 = vrot.slane %v4059_v60, 5  ;;  %v4087_v27 = vshrl.u32 %v15523_v45, 16  ;;  %v4033_v54 = vrot.slane %v4032_v50, 4  ;;  %v4047_v20 = vrot.slane %v4045_v53, 5 }
 0x24b   : > { %v4076_v34 = vrot.slane %v4074_v32, 4  ;;  %v4079_v29 = vrot.slane %v4077_v1, 5  ;;  %v4098_v38 = vshrl.u32 %v11178_v10, 16  ;;  %v4101_v60 = vshll.u32 %v11178_v10, 16 }
 0x24c   : > { %v4107_v17 = vshll.u32 %v15247_v3, 16  ;;  %v4043_v63 = vrot.slane %v4042_v18, 4  ;;  %v4056_v35 = vor.u32 %v4055_v61, %v4052_v8  ;;  %v4066_v5 = vor.u32 %v4065_v6, %v15536_v23  ;;  %12437 = vmatpush3.bf16.msra.mxu1 %v13574_v21  ;;  %v13567_v21 = vld [vmem:[#allocation6 + $0x218] sm:$0xff]  }
 0x24d   : > { %v11203_v50 = vcombine.low %v3990_v9, %v4000_v0  ;;  %v15546_v53 = vrot.slane %v4083_v24, 5  ;;  %v4089_v32 = vrot.slane %v4087_v27, 4  ;;  %v4014_v1 = vsel %vm14069_vm2, %v4009_v4, %v15499_v44 }
 0x24e   : > { %v4038_v8 = vsel %vm14069_vm2, %v4033_v54, %v15507_v48  ;;  %v4100_v9 = vrot.slane %v4098_v38, 4  ;;  %v15561_v0 = vrot.slane %v4107_v17, 5  ;;  %v4048_v44 = vsel %vm14069_vm2, %v4043_v63, %v4047_v20  ;;  %v13568_v38 = vld [vmem:[#allocation6 + $0x220] sm:$0xff]  }
 0x24f   : > { %12353 = vmatmul.mubr.bf16.vlgmr.msra.gmra.mrb[0].mxu0 %v11200_v12  ;;  %v4111_v12 = vshrl.u32 %v15247_v3, 16  ;;  %v4024_v3 = vsel %vm14069_vm2, %v4019_v28, %v15533_v56  ;;  %v4057_v61 = vrot.slane %v4056_v35, 4  ;;  %v4067_v56 = vrot.slane %v4066_v5, 4 }
 0x250   : > { %12385 = vmatpush3.bf16.msra.mxu0 %v15256_v51  ;;  %12356 = vmatprep.mubr.bf16.mxu0 %v11201_v14  ;;  %v4069_v51 = vshll.u32 %v15213_v33, 16  ;;  %v11202_v14 = vcombine.low %v3966_v40, %v3976_v13  ;;  %v15558_v33 = vld [vmem:[%s14032_s10 + $0x80] sm:$0x1]  ;;  %v4080_v40 = vor.u32 %v4079_v29, %v4076_v34  ;;  %v11181_v13 = vld [vmem:[%s14032_s10 + $0x90] sm:$0xf]  ;;  %v4090_v48 = vor.u32 %v4089_v32, %v15546_v53 }
 0x251   : > { %12386 = vmatprep.subr.bf16.mxu0 %v13565_v52  ;;  %v4113_v18 = vrot.slane %v4111_v12, 4  ;;  %v4093_v10 = vshll.u32 %v15558_v33, 16  ;;  %v4122_v4 = vshrl.u32 %v11181_v13, 16  ;;  %v4125_v28 = vshll.u32 %v11181_v13, 16  ;;  %v13569_v13 = vld [vmem:[#allocation6 + $0x228] sm:$0xff]  }
 0x252   : > { %v4071_v6 = vrot.slane %v4069_v51, 5  ;;  %v4131_v24 = vshll.u32 %v15298_v49, 16  ;;  %v4135_v27 = vshrl.u32 %v15298_v49, 16  ;;  %v4081_v54 = vrot.slane %v4080_v40, 4 }
 0x253   : > { %v4114_v34 = vor.u32 %v4113_v18, %v15561_v0  ;;  %v4117_v29 = vshll.u32 %v15250_v55, 16  ;;  %v11204_v17 = vcombine.low %v4014_v1, %v4024_v3  ;;  %v11205_v12 = vcombine.low %v4038_v8, %v4048_v44 }
 0x254   : > { %12387 = vmatpush3.bf16.msra.mxu0 %v13565_v52  ;;  %v4103_v52 = vrot.slane %v4101_v60, 5  ;;  %v11184_v60 = vld [vmem:[%s14032_s10 + $0x9c] sm:$0xf]  ;;  %v4072_v63 = vsel %vm14069_vm2, %v4067_v56, %v4071_v6  ;;  %v4091_v49 = vrot.slane %v4090_v48, 4  ;;  %v4095_v35 = vrot.slane %v4093_v10, 5 }
 0x255   : > { %12388 = vmatprep.subr.bf16.mxu0 %v13566_v25  ;;  %v4124_v5 = vrot.slane %v4122_v4, 4  ;;  %v4127_v51 = vrot.slane %v4125_v28, 5  ;;  %v4137_v55 = vrot.slane %v4135_v27, 4  ;;  %v4146_v32 = vshrl.u32 %v11184_v60, 16 }
 0x256   : > { %v4104_v20 = vor.u32 %v4103_v52, %v4100_v9  ;;  %v4149_v40 = vshll.u32 %v11184_v60, 16  ;;  %v4086_v1 = vsel %vm14069_vm2, %v4081_v54, %v15546_v53  ;;  %v4119_v8 = vrot.slane %v4117_v29, 5 }
 0x257   : > { %12357 = vmatmul.mubr.bf16.gmra.mrb[4].mxu0 %v11202_v14  ;;  %v11187_v14 = vld [vmem:[%s14032_s10 + $0xa8] sm:$0xf]  ;;  %v4155_v9 = vshll.u32 %v15304_v26, 16  ;;  %v4159_v52 = vshrl.u32 %v15304_v26, 16  ;;  %v4096_v44 = vsel %vm14069_vm2, %v4091_v49, %v4095_v35  ;;  %v4179_v56 = vshll.u32 %v15362_v57, 16 }
 0x258   : > { %12360 = vmatprep.mubr.bf16.mxu0 %v11203_v50  ;;  %12389 = vmatpush3.bf16.msra.mxu0 %v13566_v25  ;;  %v4062_v25 = vsel %vm14069_vm2, %v4057_v61, %v15536_v23  ;;  %v15578_v50 = vrot.slane %v4131_v24, 5  ;;  %v4105_v3 = vrot.slane %v4104_v20, 4  ;;  %v4115_v23 = vrot.slane %v4114_v34, 4  ;;  %v13570_v24 = vld [vmem:[#allocation6 + $0x230] sm:$0xff]   ;;  %v13571_v35 = vld [vmem:[#allocation6 + $0x238] sm:$0xff]  }
 0x259   : > { %12390 = vmatprep.subr.bf16.mxu0 %v13567_v21  ;;  %v4170_v18 = vshrl.u32 %v11187_v14, 16  ;;  %v4141_v61 = vshll.u32 %v15301_v7, 16  ;;  %v4183_v53 = vshrl.u32 %v15362_v57, 16  ;;  %v4128_v6 = vor.u32 %v4127_v51, %v4124_v5 }
 0x25a   : > { %v4138_v48 = vor.u32 %v4137_v55, %v15578_v50  ;;  %v4148_v10 = vrot.slane %v4146_v32, 4  ;;  %v4151_v26 = vrot.slane %v4149_v40, 5  ;;  %v11206_v4 = vcombine.low %v4062_v25, %v4072_v63  ;;  %v11193_v32 = vld [vmem:[%s14032_s10 + $0xc0] sm:$0xf] }
 0x25b   : > { %v4110_v28 = vsel %vm14069_vm2, %v4105_v3, %v15561_v0  ;;  %v4120_v7 = vsel %vm14069_vm2, %v4115_v23, %v4119_v8  ;;  %v15596_v27 = vrot.slane %v4155_v9, 5  ;;  %v4161_v57 = vrot.slane %v4159_v52, 4 }
 0x25c   : > { %12391 = vmatpush3.bf16.msra.mxu0 %v13567_v21  ;;  %v4173_v21 = vshll.u32 %v11187_v14, 16  ;;  %v4172_v54 = vrot.slane %v4170_v18, 4  ;;  %v11207_v34 = vcombine.low %v4086_v1, %v4096_v44  ;;  %v4143_v29 = vrot.slane %v4141_v61, 5 }
 0x25d   : > { %12392 = vmatprep.subr.bf16.mxu0 %v13568_v38  ;;  %v4185_v60 = vrot.slane %v4183_v53, 4  ;;  %v4139_v25 = vrot.slane %v4138_v48, 4  ;;  %v4152_v0 = vor.u32 %v4151_v26, %v4148_v10  ;;  %v4165_v63 = vshll.u32 %v15307_v31, 16 }
 0x25e   : > { %v4175_v20 = vrot.slane %v4173_v21, 5  ;;  %v11208_v49 = vcombine.low %v4110_v28, %v4120_v7  ;;  %v4162_v5 = vor.u32 %v4161_v57, %v15596_v27  ;;  %v4189_v14 = vshll.u32 %v15365_v15, 16 }
 0x25f   : > { %12361 = vmatmul.mubr.bf16.gmra.mrb[8].mxu0 %v11204_v17  ;;  %v11190_v17 = vld [vmem:[%s14032_s10 + $0xb4] sm:$0xf]  ;;  %v4203_v3 = vshll.u32 %v15368_v36, 16  ;;  %v4207_v23 = vshrl.u32 %v15368_v36, 16  ;;  %v4144_v8 = vsel %vm14069_vm2, %v4139_v25, %v4143_v29  ;;  %v4167_v15 = vrot.slane %v4165_v63, 5 }
 0x260   : > { %12364 = vmatprep.mubr.bf16.mxu0 %v11205_v12  ;;  %12393 = vmatpush3.bf16.msra.mxu0 %v13568_v38  ;;  %v15598_v38 = vrot.slane %v4179_v56, 5  ;;  %v4129_v12 = vrot.slane %v4128_v6, 4  ;;  %v4176_v51 = vor.u32 %v4175_v20, %v4172_v54  ;;  %v4194_v55 = vshrl.u32 %v11190_v17, 16 }
 0x261   : > { %12394 = vmatprep.subr.bf16.mxu0 %v13569_v13  ;;  %v4197_v1 = vshll.u32 %v11190_v17, 16  ;;  %v4218_v9 = vshrl.u32 %v11193_v32, 16  ;;  %v4221_v52 = vshll.u32 %v11193_v32, 16  ;;  %v4227_v18 = vshll.u32 %v15433_v42, 16 }
 0x262   : > { %v4186_v40 = vor.u32 %v4185_v60, %v15598_v38  ;;  %v4134_v31 = vsel %vm14069_vm2, %v4129_v12, %v15578_v50  ;;  %v4231_v21 = vshrl.u32 %v15433_v42, 16  ;;  %v4163_v36 = vrot.slane %v4162_v5, 4 }
 0x263   : > { %v4177_v44 = vrot.slane %v4176_v51, 4  ;;  %v4191_v61 = vrot.slane %v4189_v14, 5  ;;  %v4196_v56 = vrot.slane %v4194_v55, 4  ;;  %v4199_v50 = vrot.slane %v4197_v1, 5 }
 0x264   : > { %12395 = vmatpush3.bf16.msra.mxu0 %v13569_v13  ;;  %v4153_v13 = vrot.slane %v4152_v0, 4  ;;  %v4187_v53 = vrot.slane %v4186_v40, 4  ;;  %v4205_v6 = vrot.slane %v4203_v3, 5  ;;  %v4209_v48 = vrot.slane %v4207_v23, 4 }
 0x265   : > { %12396 = vmatprep.subr.bf16.mxu0 %v13570_v24  ;;  %v11209_v10 = vcombine.low %v4134_v31, %v4144_v8  ;;  %v4220_v26 = vrot.slane %v4218_v9, 4  ;;  %v4229_v28 = vrot.slane %v4227_v18, 5  ;;  %v4233_v7 = vrot.slane %v4231_v21, 4  ;;  %v11223_v18 = vld [vmem:[%s14032_s10 + $0x18] sm:$0xe] }
 0x266   : > { %v4158_v42 = vsel %vm14069_vm2, %v4153_v13, %v15596_v27  ;;  %v4168_v57 = vsel %vm14069_vm2, %v4163_v36, %v4167_v15  ;;  %v4213_v54 = vshll.u32 %v15376_v62, 16  ;;  %v4182_v20 = vsel %vm14069_vm2, %v4177_v44, %v15598_v38 }
 0x267   : > { %12365 = vmatmul.mubr.bf16.gmra.mrb[12].mxu0 %v11206_v4  ;;  %v4223_v4 = vrot.slane %v4221_v52, 5  ;;  %v4200_v29 = vor.u32 %v4199_v50, %v4196_v56  ;;  %v4210_v60 = vor.u32 %v4209_v48, %v4205_v6  ;;  %v4251_v27 = vshll.u32 %v15439_v11, 16 }
 0x268   : > { %12368 = vmatprep.mubr.bf16.mxu0 %v11207_v34  ;;  %12397 = vmatpush3.bf16.msra.mxu0 %v13570_v24  ;;  %v11196_v24 = vld [vmem:[%s14032_s10 + $0xcc] sm:$0xf]  ;;  %v4192_v34 = vsel %vm14069_vm2, %v4187_v53, %v4191_v61  ;;  %v4255_v25 = vshrl.u32 %v15439_v11, 16  ;;  %v4234_v63 = vor.u32 %v4233_v7, %v4229_v28  ;;  %v4237_v62 = vshll.u32 %v15436_v47, 16 }
 0x269   : > { %12398 = vmatprep.subr.bf16.mxu0 %v13571_v35  ;;  %v4242_v17 = vshrl.u32 %v11196_v24, 16  ;;  %v4245_v12 = vshll.u32 %v11196_v24, 16  ;;  %v4224_v0 = vor.u32 %v4223_v4, %v4220_v26  ;;  %v4201_v5 = vrot.slane %v4200_v29, 4  ;;  %v11224_v4 = vld [vmem:[%s14032_s10 + $0x24] sm:$0xe] }
 0x26a   : > { %v4211_v38 = vrot.slane %v4210_v60, 4  ;;  %v4215_v51 = vrot.slane %v4213_v54, 5  ;;  %v4253_v32 = vrot.slane %v4251_v27, 5  ;;  %v4257_v40 = vrot.slane %v4255_v25, 4 }
 0x26b   : > { %v4244_v14 = vrot.slane %v4242_v17, 4  ;;  %v4247_v55 = vrot.slane %v4245_v12, 5  ;;  %v4225_v1 = vrot.slane %v4224_v0, 4  ;;  %v4235_v3 = vrot.slane %v4234_v63, 4  ;;  %v11226_v12 = vld [vmem:[%s14032_s10 + $0x3c] sm:$0xe] }
 0x26c   : > { %12399 = vmatpush3.bf16.msra.mxu0 %v13571_v35  ;;  %v11211_v35 = vcombine.low %v4182_v20, %v4192_v34  ;;  %v4239_v23 = vrot.slane %v4237_v62, 5  ;;  %v4206_v11 = vsel %vm14069_vm2, %v4201_v5, %v4205_v6  ;;  %v4216_v47 = vsel %vm14069_vm2, %v4211_v38, %v4215_v51 }
 0x26d   : > { %v4248_v31 = vor.u32 %v4247_v55, %v4244_v14  ;;  %v4258_v8 = vor.u32 %v4257_v40, %v4253_v32  ;;  %v4261_v13 = vshll.u32 %v15447_v39, 16  ;;  %v4230_v15 = vsel %vm14069_vm2, %v4225_v1, %v4229_v28  ;;  %v17253_v40 = vld [vmem:[#allocation29_spill] sm:$0xff] }
 0x26e   : > { %v4240_v9 = vsel %vm14069_vm2, %v4235_v3, %v4239_v23  ;;  %v4652_v52 = vrot.slane %v15190_v37, 5  ;;  %v11212_v21 = vcombine.low %v4206_v11, %v4216_v47  ;;  %v11239_v53 = vrot.slane %v11223_v18, 9  ;;  %v11229_v3 = vld [vmem:[%s14032_s10 + $0x60] sm:$0xe] }
 0x26f   : > { %12369 = vmatmul.mubr.bf16.gmra.mrb[16].mxu0 %v11208_v49  ;;  %v11210_v49 = vcombine.low %v4158_v42, %v4168_v57  ;;  %v11213_v36 = vcombine.low %v4230_v15, %v4240_v9  ;;  %v4249_v44 = vrot.slane %v4248_v31, 4  ;;  %v4259_v61 = vrot.slane %v4258_v8, 4 }
 0x270   : > { %12372 = vmatprep.mubr.bf16.mxu0 %v11209_v10  ;;  %v4263_v56 = vrot.slane %v4261_v13, 5  ;;  %v4654_v50 = vrot.slane %v4652_v52, 4  ;;  %v4655_v39 = vrot.slane %v15224_v2, 5  ;;  %v4659_v48 = vrot.slane %v15203_v22, 5  ;;  %v11225_v2 = vld [vmem:[%s14032_s10 + $0x30] sm:$0xe] }
 0x271   : > { %v4254_v6 = vsel %vm14069_vm2, %v4249_v44, %v4253_v32  ;;  %v4653_v10 = vsel %vm14363_vm5, %v11239_v53, %v4652_v52  ;;  %v4666_v28 = vrot.slane %v15259_v58, 5  ;;  %v11240_v42 = vrot.slane %v11224_v4, 9  ;;  %v11231_v52 = vld [vmem:[%s14032_s10 + $0x78] sm:$0xe] }
 0x272   : > { %v4264_v37 = vsel %vm14069_vm2, %v4259_v61, %v4263_v56  ;;  %v4656_v26 = vsel %vm14363_vm5, %v4654_v50, %v4655_v39  ;;  %v4661_v57 = vrot.slane %v4659_v48, 4  ;;  %v4662_v54 = vrot.slane %v15232_v41, 5  ;;  %v17254_v61 = vld [vmem:[#allocation16_spill] sm:$0xff]  ;;  %v17255_v56 = vld [vmem:[#allocation19_spill] sm:$0xff]  ;;  %v17264_v4 = vld [vmem:[#allocation13_spill] sm:$0xff] }
 0x273   : > { %v11214_v7 = vcombine.low %v4254_v6, %v4264_v37  ;;  %v11255_v24 = vcombine.low %v4653_v10, %v4656_v26  ;;  %v11241_v20 = vrot.slane %v11225_v2, 9  ;;  %v4668_v22 = vrot.slane %v4666_v28, 4  ;;  %v17257_v6 = vld [vmem:[#allocation17_spill] sm:$0xff]  ;;  %v17263_v26 = vld [vmem:[#allocation15_spill] sm:$0xff]  ;;  %v17266_v2 = vld [vmem:[#allocation22_spill] sm:$0xff] }
 0x274   : > { %v4669_v34 = vrot.slane %v15295_v59, 5  ;;  %v4660_v29 = vsel %vm14363_vm5, %v11240_v42, %v4659_v48  ;;  %v4663_v58 = vsel %vm14363_vm5, %v4661_v57, %v4662_v54  ;;  %v4673_v60 = vrot.slane %v15290_v30, 5  ;;  %v11227_v59 = vld [vmem:[%s14032_s10 + $0x48] sm:$0xe]  ;;  %v17261_v10 = vld [vmem:[#allocation21_spill] sm:$0xff]  ;;  %v17272_v54 = vld [vmem:[#allocation26_spill] sm:$0xff] }
 0x275   : > { %v4667_v17 = vsel %vm14363_vm5, %v11241_v20, %v4666_v28  ;;  %v4680_v27 = vrot.slane %v15352_v16, 5  ;;  %v11256_v25 = vcombine.low %v4660_v29, %v4663_v58  ;;  %v11242_v63 = vrot.slane %v11226_v12, 9  ;;  %v17252_v30 = vld [vmem:[#allocation28_spill] sm:$0xff]  ;;  %v17270_v42 = vld [vmem:[#allocation25_spill] sm:$0xff]  ;;  %v17273_v20 = vld [vmem:[#allocation27_spill] sm:$0xff] }
 0x276   : > { %v4670_v41 = vsel %vm14363_vm5, %v4668_v22, %v4669_v34  ;;  %v4675_v62 = vrot.slane %v4673_v60, 4  ;;  %v11243_v5 = vrot.slane %v11227_v59, 9  ;;  %v4683_v51 = vrot.slane %v17252_v30, 5  ;;  %v17260_v48 = vld [vmem:[#allocation20_spill] sm:$0xff]  ;;  %v17275_v34 = vld [vmem:[#allocation30_spill] sm:$0xff]  ;;  %v17276_v29 = vld [vmem:[#allocation31_spill] sm:$0xff] }
 0x277   : > { %12373 = vmatmul.mubr.bf16.gmra.mrb[20].mxu0 %v11210_v49  ;;  %v11257_v0 = vcombine.low %v4667_v17, %v4670_v41  ;;  %v17251_v49 = vld [vmem:[#allocation14_spill] sm:$0xff]  ;;  %v4682_v38 = vrot.slane %v4680_v27, 4  ;;  %v4674_v14 = vsel %vm14363_vm5, %v11242_v63, %v4673_v60  ;;  %v4694_v1 = vrot.slane %v17253_v40, 5  ;;  %v17278_v60 = vld [vmem:[#allocation32_spill] sm:$0xff]  ;;  %v17279_v17 = vld [vmem:[#allocation33_spill] sm:$0xff] }
 0x278   : > { %12376 = vmatprep.mubr.bf16.mxu0 %v11211_v35  ;;  %v4676_v35 = vrot.slane %v17251_v49, 5  ;;  %v4681_v55 = vsel %vm14363_vm5, %v11243_v5, %v4680_v27  ;;  %v11245_v47 = vrot.slane %v11229_v3, 9  ;;  %v4697_v8 = vrot.slane %v15505_v43, 5  ;;  %v13575_v12 = vld [vmem:[#allocation8 + $0x58] sm:$0xff]   ;;  %v13577_v63 = vld [vmem:[#allocation8 + $0x68] sm:$0xff]   ;;  %v15737_v40 = vld [vmem:[#allocation8] sm:$0xff]  }
 0x279   : > { %v4684_v32 = vsel %vm14363_vm5, %v4682_v38, %v4683_v51  ;;  %v4696_v31 = vrot.slane %v4694_v1, 4  ;;  %v4708_v9 = vrot.slane %v15523_v45, 5  ;;  %v4711_v44 = vrot.slane %v15558_v33, 5  ;;  %v17258_v45 = vld [vmem:[#allocation18_spill] sm:$0xff]  ;;  %12438 = vmatprep.subr.bf16.mxu1 %v13575_v12  ;;  %v13578_v38 = vld [vmem:[#allocation8 + $0x70] sm:$0xff]   ;;  %v13579_v30 = vld [vmem:[#allocation8 + $0x78] sm:$0xff]  }
 0x27a   : > { %v4677_v16 = vsel %vm14363_vm5, %v4675_v62, %v4676_v35  ;;  %v11259_v11 = vcombine.low %v4681_v55, %v4684_v32  ;;  %v4695_v13 = vsel %vm14363_vm5, %v11245_v47, %v4694_v1  ;;  %v17256_v53 = vcombine.low %v17254_v61, %v17255_v56  ;;  %12439 = vmatpush3.bf16.msra.mxu1 %v13575_v12  ;;  %v15743_v1 = vld [vmem:[%s17074_s2] ss:$0 sm:$0xff] }
 0x27b   : > { %v11258_v23 = vcombine.low %v4674_v14, %v4677_v16  ;;  %v4698_v15 = vsel %vm14363_vm5, %v4696_v31, %v4697_v8  ;;  %v17259_v37 = vcombine.low %v17257_v6, %v17258_v45  ;;  %v17262_v33 = vcombine.low %v17260_v48, %v17261_v10 }
 0x27c   : > { %v11261_v18 = vcombine.low %v4695_v13, %v4698_v15  ;;  %v17265_v28 = vcombine.low %v17263_v26, %v17264_v4  ;;  %v17271_v57 = vcombine.low %v17269_v46, %v17270_v42  ;;  %v17274_v22 = vcombine.low %v17272_v54, %v17273_v20 }
 0x27d   : > { %v17277_v58 = vcombine.low %v17275_v34, %v17276_v29  ;;  %v17280_v41 = vcombine.low %v17278_v60, %v17279_v17  ;;  %v275_v27 = vlaneseq  ;;  %v13820_v62 = vmov 0  }
 0x27e   : > { %5154 = vst [vmem:[#allocation2] sm:$0xff] %v13820_v62  ;;  %5155 = vst [vmem:[#allocation2 + $0x8] sm:$0xff] %v13820_v62  ;;  %v15727_v49 = vsel %vm5293_vm8, 65537, %v13820_v62 }
 0x27f   : > { %12377 = vmatmul.mubr.bf16.gmra.mrb[24].mxu0 %v11212_v21  ;;  %v11247_v21 = vrot.slane %v11231_v52, 9  ;;  %v15719_v59 = vshrl.u32 %v275_v27, 7  ;;  %5157 = vst [vmem:[#allocation2 + $0x110] sm:$0xff] %v13820_v62  ;;  %5158 = vst [vmem:[#allocation2 + $0x118] sm:$0xff] %v13820_v62 }
 0x280   : > { %12380 = vmatprep.mubr.bf16.mxu0 %v11213_v36  ;;  %v4710_v36 = vrot.slane %v4708_v9, 4 }
 0x281   : > { %v4709_v43 = vsel %vm14363_vm5, %v11247_v21, %v4708_v9  ;;  %vm278_vm11 = vcmp.ge.s32.totalorder %v15719_v59, 1 }
 0x282   : > { %v4712_v50 = vsel %vm14363_vm5, %v4710_v36, %v4711_v44  ;;  %vm5292_vm12 = vmpackc.low %vm278_vm11, %vm278_vm11 }
 0x283   : > { %v11263_v39 = vcombine.low %v4709_v43, %v4712_v50 }
 0x285   : > { %v15733_v51 = vld [vmem:[#allocation2 + $0x8] sm:$0xf]  ;;  %v5645_v14 = vld [vmem:[#allocation2] sm:$0xf0] }
 0x286   : > { %v5694_v16 = vrot.slane %v5645_v14, 4  ;;  %v5695_v55 = vrot.slane %v15733_v51, 4 }
 0x287   : > { %12381 = vmatmul.mubr.bf16.gmra.mrb[28].mxu0 %v11214_v7  ;;  %v17267_v7 = vld [vmem:[#allocation23_spill] sm:$0xff] }
 0x288   : > { %12400 = vmatprep.mubr.bf16.mxu0 %v11255_v24  ;;  %v17268_v24 = vcombine.low %v17266_v2, %v17267_v7  ;;  %v5696_v32 = vsel %vm5693_vm10, %v5694_v16, %v5695_v55 }
 0x289   : > { %12448 = vmatprep.mubr.bf16.mxu1 %v5696_v32 }
 0x28f   : > { %12401 = vmatmul.mubr.bf16.vlgmr.msra.gmra.mrb[0].mxu0 %v11256_v25  ;;  %v13576_v25 = vld [vmem:[#allocation8 + $0x60] sm:$0xff]  }
 0x290   : > { %12404 = vmatprep.mubr.bf16.mxu0 %v11257_v0  ;;  %v277_v0 = vadd.s32 8, %v15719_v59  ;;  %12440 = vmatprep.subr.bf16.mxu1 %v13576_v25 }
 0x291   : > { %12441 = vmatpush3.bf16.msra.mxu1 %v13576_v25 }
 0x292   : > { %vm281_vm6 = vcmp.le.s32.totalorder %v277_v0, 14  ;;  %12442 = vmatprep.subr.bf16.mxu1 %v13577_v63 }
 0x293   : > { %vm6213_vm9 = vmpackc.low %vm281_vm6, %vm281_vm6 }
 0x294   : > { %v6215_v35 = vsel %vm6213_vm9, 65537, %v13820_v62 }
 0x295   : > { %12443 = vmatpush3.bf16.msra.mxu1 %v13577_v63  ;;  %v15731_v5 = vcombine.low %v15727_v49, %v6215_v35 }
 0x296   : > { %12444 = vmatprep.subr.bf16.mxu1 %v13578_v38 }
 0x297   : > { %12405 = vmatmul.mubr.bf16.gmra.mrb[4].mxu0 %v11258_v23 }
 0x298   : > { %12408 = vmatprep.mubr.bf16.mxu0 %v11259_v11 }
 0x299   : > { %12445 = vmatpush3.bf16.msra.mxu1 %v13578_v38 }
 0x29a   : > { %12446 = vmatprep.subr.bf16.mxu1 %v13579_v30 }
 0x29d   : > { %12447 = vmatpush3.bf16.msra.mxu1 %v13579_v30  ;;  %v13581_v30 = vld [vmem:[#allocation8 + $0x8] sm:$0xff]  }
 0x29e   : > { %12480 = vmatprep.subr.bf16.mxu1 %v15737_v40 }
 0x29f   : > { %12409 = vmatmul.mubr.bf16.gmra.mrb[8].mxu0 %v17256_v53 }
 0x2a0   : > { %12412 = vmatprep.mubr.bf16.mxu0 %v11261_v18 }
 0x2a7   : > { %12413 = vmatmul.mubr.bf16.gmra.mrb[12].mxu0 %v17259_v37 }
 0x2a8   : > { %12416 = vmatprep.mubr.bf16.mxu0 %v11263_v39 }
 0x2af   : > { %12417 = vmatmul.mubr.bf16.gmra.mrb[16].mxu0 %v17262_v33 }
 0x2b0   : > { %12420 = vmatprep.mubr.bf16.mxu0 %v17265_v28 }
 0x2b7   : > { %12421 = vmatmul.mubr.bf16.gmra.mrb[20].mxu0 %v17268_v24 }
 0x2b8   : > { %12424 = vmatprep.mubr.bf16.mxu0 %v17271_v57 }
 0x2bf   : > { %12425 = vmatmul.mubr.bf16.gmra.mrb[24].mxu0 %v17274_v22 }
 0x2c0   : > { %12428 = vmatprep.mubr.bf16.mxu0 %v17277_v58 }
 0x2c7   : > { %12429 = vmatmul.mubr.bf16.gmra.mrb[28].mxu0 %v17280_v41 }
 0x362   : > { %v12402_v3 = vpop.f32.mrb[0].mxu0 }
 0x363   : > { %v5092_v23 = vadd.f32 %v12402_v3, %v15743_v1  ;;  %v4924_v11 = vpop.f32.mrb[1].mxu0 }
 0x364   : > { %v5090_v47 = vadd.f32 %v15743_v1, %v4924_v11  ;;  %v12403_v31 = vpop.f32.mrb[2].mxu0 }
 0x365   : > { %v5093_v8 = vadd.f32 %v12403_v31, %v15743_v1  ;;  %v4927_v13 = vpop.f32.mrb[3].mxu0  ;;  %v5124_v9 = vmax.f32 %v5092_v23, 0.0 }
 0x366   : > { %v5091_v15 = vadd.f32 %v15743_v1, %v4927_v13  ;;  %v5122_v18 = vmax.f32 %v5090_v47, 0.0 }
 0x367   : > { %v5125_v52 = vmax.f32 %v5093_v8, 0.0 }
 0x368   : > { %v5123_v21 = vmax.f32 %v5091_v15, 0.0 }
 0x369   : > { %v5160_v36 = vpack.c.bf16 %v5125_v52, %v5124_v9  ;;  %v13582_v9 = vld [vmem:[#allocation8 + $0x10] sm:$0xff]  }
 0x36a   : > { %v5159_v44 = vpack.c.bf16 %v5123_v21, %v5122_v18  ;;  %v12406_v61 = vpop.f32.mrb[4].mxu0 }
 0x36b   : > { %v5192_v56 = vrot.slane %v5160_v36, 4  ;;  %v5096_v53 = vadd.f32 %v12406_v61, %v15743_v1  ;;  %v4940_v43 = vpop.f32.mrb[5].mxu0 }
 0x36c   : > { %v5191_v50 = vrot.slane %v5159_v44, 4  ;;  %v5094_v39 = vadd.f32 %v15743_v1, %v4940_v43  ;;  %v12407_v6 = vpop.f32.mrb[6].mxu0 }
 0x36d   : > { %5226 = vst [vmem:[#allocation2 + $0x28] ss:$-4 sps:$4 sm:$0xff] %v5192_v56   ;;  %v5097_v45 = vadd.f32 %v12407_v6, %v15743_v1  ;;  %v4943_v37 = vpop.f32.mrb[7].mxu0  ;;  %v5128_v10 = vmax.f32 %v5096_v53, 0.0 }
 0x36e   : > { %5224 = vst [vmem:[#allocation2 + $0x18] ss:$-4 sps:$4 sm:$0xff] %v5191_v50   ;;  %v5095_v48 = vadd.f32 %v15743_v1, %v4943_v37  ;;  %v5126_v26 = vmax.f32 %v5094_v39, 0.0 }
 0x36f   : > { %v5129_v33 = vmax.f32 %v5097_v45, 0.0 }
 0x370   : > { %v5127_v4 = vmax.f32 %v5095_v48, 0.0 }
 0x371   : > { %v5162_v28 = vpack.c.bf16 %v5129_v33, %v5128_v10  ;;  %v13583_v10 = vld [vmem:[#allocation8 + $0x18] sm:$0xff]  }
 0x372   : > { %v5161_v2 = vpack.c.bf16 %v5127_v4, %v5126_v26  ;;  %v12410_v7 = vpop.f32.mrb[8].mxu0 }
 0x373   : > { %v5194_v24 = vrot.slane %v5162_v28, 4  ;;  %v5100_v46 = vadd.f32 %v12410_v7, %v15743_v1  ;;  %v4956_v42 = vpop.f32.mrb[9].mxu0 }
 0x374   : > { %v5193_v57 = vrot.slane %v5161_v2, 4  ;;  %v5098_v54 = vadd.f32 %v15743_v1, %v4956_v42  ;;  %v12411_v20 = vpop.f32.mrb[10].mxu0  ;;  %v15755_v22 = vld [vmem:[#allocation2 + $0x20] sm:$0xf0]  ;;  %v15765_v0 = vld [vmem:[#allocation2 + $0x28] sm:$0xf] }
 0x375   : > { %5230 = vst [vmem:[#allocation2 + $0x48] ss:$-4 sps:$4 sm:$0xff] %v5194_v24   ;;  %v5101_v34 = vadd.f32 %v12411_v20, %v15743_v1  ;;  %v4959_v29 = vpop.f32.mrb[11].mxu0  ;;  %v15758_v58 = vld [vmem:[#allocation2 + $0x18] sm:$0xf]  ;;  %v5132_v12 = vmax.f32 %v5100_v46, 0.0 }
 0x376   : > { %v15760_v60 = vld [vmem:[#allocation2 + $0x10] sm:$0xf0]  ;;  %5228 = vst [vmem:[#allocation2 + $0x38] ss:$-4 sps:$4 sm:$0xff] %v5193_v57   ;;  %v5099_v17 = vadd.f32 %v15743_v1, %v4959_v29  ;;  %v5698_v25 = vrot.slane %v15758_v58, 4  ;;  %v5130_v63 = vmax.f32 %v5098_v54, 0.0 }
 0x377   : > { %v5697_v41 = vrot.slane %v15760_v60, 4  ;;  %v5133_v27 = vmax.f32 %v5101_v34, 0.0  ;;  %v5700_v38 = vrot.slane %v15755_v22, 4  ;;  %v5701_v3 = vrot.slane %v15765_v0, 4  ;;  %v13584_v46 = vld [vmem:[#allocation8 + $0x20] sm:$0xff]  }
 0x378   : > { %v5131_v35 = vmax.f32 %v5099_v17, 0.0 }
 0x379   : > { %v5164_v14 = vpack.c.bf16 %v5133_v27, %v5132_v12  ;;  %v5699_v16 = vsel %vm5693_vm10, %v5697_v41, %v5698_v25  ;;  %v5702_v8 = vsel %vm5693_vm10, %v5700_v38, %v5701_v3  ;;  %v5294_v25 = vsel %vm5292_vm12, 65537, %v13820_v62 }
 0x37a   : > { %v5163_v55 = vpack.c.bf16 %v5131_v35, %v5130_v63  ;;  %12449 = vmatmul.mubr.bf16.vlgmr.msra.gmra.mrb[0].mxu1 %v5699_v16  ;;  %v12414_v32 = vpop.f32.mrb[12].mxu0 }
 0x37b   : > { %v5196_v23 = vrot.slane %v5164_v14, 4  ;;  %v5104_v11 = vadd.f32 %v12414_v32, %v15743_v1  ;;  %12481 = vmatpush3.bf16.msra.mxu1 %v15737_v40  ;;  %v4972_v47 = vpop.f32.mrb[13].mxu0  ;;  %12452 = vmatprep.mubr.bf16.mxu1 %v5702_v8  ;;  %v13585_v32 = vld [vmem:[#allocation8 + $0x28] sm:$0xff]  }
 0x37c   : > { %v5195_v31 = vrot.slane %v5163_v55, 4  ;;  %v12415_v13 = vpop.f32.mrb[14].mxu0  ;;  %12482 = vmatprep.subr.bf16.mxu1 %v13581_v30  ;;  %v15773_v15 = vld [vmem:[#allocation2 + $0x48] sm:$0xf]  ;;  %v5102_v52 = vadd.f32 %v15743_v1, %v4972_v47  ;;  %v15784_v53 = vld [vmem:[#allocation2 + $0x40] sm:$0xf0] }
 0x37d   : > { %5234 = vst [vmem:[#allocation2 + $0x68] ss:$-4 sps:$4 sm:$0xff] %v5196_v23   ;;  %v5105_v18 = vadd.f32 %v12415_v13, %v15743_v1  ;;  %v4975_v21 = vpop.f32.mrb[15].mxu0  ;;  %v15777_v36 = vld [vmem:[#allocation2 + $0x38] sm:$0xf]  ;;  %v5136_v43 = vmax.f32 %v5104_v11, 0.0 }
 0x37e   : > { %v15779_v44 = vld [vmem:[#allocation2 + $0x30] sm:$0xf0]  ;;  %5232 = vst [vmem:[#allocation2 + $0x58] ss:$-4 sps:$4 sm:$0xff] %v5195_v31   ;;  %v5103_v40 = vadd.f32 %v15743_v1, %v4975_v21  ;;  %v5704_v56 = vrot.slane %v15777_v36, 4  ;;  %v5134_v50 = vmax.f32 %v5102_v52, 0.0  ;;  %v11280_v31 = vcombine.low %v5294_v25, %v15727_v49 }
 0x37f   : > { %v5703_v61 = vrot.slane %v15779_v44, 4  ;;  %v5137_v39 = vmax.f32 %v5105_v18, 0.0  ;;  %12483 = vmatpush3.bf16.msra.mxu1 %v13581_v30  ;;  %v5706_v37 = vrot.slane %v15784_v53, 4  ;;  %v5707_v48 = vrot.slane %v15773_v15, 4  ;;  %v13586_v52 = vld [vmem:[#allocation8 + $0x30] sm:$0xff]  }
 0x380   : > { %v5135_v6 = vmax.f32 %v5103_v40, 0.0  ;;  %12484 = vmatprep.subr.bf16.mxu1 %v13582_v9 }
 0x381   : > { %v5705_v45 = vsel %vm5693_vm10, %v5703_v61, %v5704_v56  ;;  %v5166_v33 = vpack.c.bf16 %v5137_v39, %v5136_v43  ;;  %v5708_v28 = vsel %vm5693_vm10, %v5706_v37, %v5707_v48  ;;  %v5300_v37 = vshrl.u32 %v11280_v31, 16 }
 0x382   : > { %v5165_v26 = vpack.c.bf16 %v5135_v6, %v5134_v50  ;;  %12453 = vmatmul.mubr.bf16.gmra.mrb[4].mxu1 %v5705_v45  ;;  %v12418_v4 = vpop.f32.mrb[16].mxu0 }
 0x383   : > { %v5198_v2 = vrot.slane %v5166_v33, 4  ;;  %v5108_v7 = vadd.f32 %v12418_v4, %v15743_v1  ;;  %12456 = vmatprep.mubr.bf16.mxu1 %v5708_v28  ;;  %v4988_v24 = vpop.f32.mrb[17].mxu0  ;;  %12485 = vmatpush3.bf16.msra.mxu1 %v13582_v9 }
 0x384   : > { %v5197_v42 = vrot.slane %v5165_v26, 4  ;;  %v5106_v57 = vadd.f32 %v15743_v1, %v4988_v24  ;;  %v12419_v54 = vpop.f32.mrb[18].mxu0  ;;  %v15793_v20 = vld [vmem:[#allocation2 + $0x68] sm:$0xf]  ;;  %v15795_v59 = vld [vmem:[#allocation2 + $0x60] sm:$0xf0]  ;;  %12486 = vmatprep.subr.bf16.mxu1 %v13583_v10 }
 0x385   : > { %5238 = vst [vmem:[#allocation2 + $0x88] ss:$-4 sps:$4 sm:$0xff] %v5198_v2   ;;  %v5109_v34 = vadd.f32 %v12419_v54, %v15743_v1  ;;  %v4991_v29 = vpop.f32.mrb[19].mxu0  ;;  %v15798_v17 = vld [vmem:[#allocation2 + $0x58] sm:$0xf]  ;;  %v5140_v63 = vmax.f32 %v5108_v7, 0.0 }
 0x386   : > { %v15800_v41 = vld [vmem:[#allocation2 + $0x50] sm:$0xf0]  ;;  %5236 = vst [vmem:[#allocation2 + $0x78] ss:$-4 sps:$4 sm:$0xff] %v5197_v42   ;;  %v5107_v12 = vadd.f32 %v15743_v1, %v4991_v29  ;;  %v5710_v38 = vrot.slane %v15798_v17, 4  ;;  %v5138_v30 = vmax.f32 %v5106_v57, 0.0 }
 0x387   : > { %v5709_v27 = vrot.slane %v15800_v41, 4  ;;  %v5141_v35 = vmax.f32 %v5109_v34, 0.0  ;;  %12487 = vmatpush3.bf16.msra.mxu1 %v13583_v10  ;;  %v5712_v16 = vrot.slane %v15795_v59, 4  ;;  %v5713_v55 = vrot.slane %v15793_v20, 4  ;;  %v13587_v7 = vld [vmem:[#allocation8 + $0x38] sm:$0xff]  }
 0x388   : > { %v5139_v14 = vmax.f32 %v5107_v12, 0.0  ;;  %12488 = vmatprep.subr.bf16.mxu1 %v13584_v46  ;;  %v5303_v24 = vshll.u32 %v11280_v31, 16  ;;  %v5302_v29 = vrot.slane %v5300_v37, 4 }
 0x389   : > { %v5168_v3 = vpack.c.bf16 %v5141_v35, %v5140_v63  ;;  %v5711_v23 = vsel %vm5693_vm10, %v5709_v27, %v5710_v38  ;;  %v5714_v62 = vsel %vm5693_vm10, %v5712_v16, %v5713_v55  ;;  %v15830_v63 = vld [vmem:[#allocation8 + $0x80] sm:$0xff]  }
 0x38a   : > { %v5167_v11 = vpack.c.bf16 %v5139_v14, %v5138_v30  ;;  %12457 = vmatmul.mubr.bf16.gmra.mrb[8].mxu1 %v5711_v23  ;;  %v12422_v47 = vpop.f32.mrb[20].mxu0  ;;  %v5305_v55 = vrot.slane %v5303_v24, 5 }
 0x38b   : > { %v5200_v8 = vrot.slane %v5168_v3, 4  ;;  %v5112_v13 = vadd.f32 %v12422_v47, %v15743_v1  ;;  %12460 = vmatprep.mubr.bf16.mxu1 %v5714_v62  ;;  %v5004_v9 = vpop.f32.mrb[21].mxu0  ;;  %12489 = vmatpush3.bf16.msra.mxu1 %v13584_v46 }
 0x38c   : > { %v5199_v18 = vrot.slane %v5167_v11, 4  ;;  %v5110_v21 = vadd.f32 %v15743_v1, %v5004_v9  ;;  %v12423_v40 = vpop.f32.mrb[22].mxu0  ;;  %v15813_v61 = vld [vmem:[#allocation2 + $0x88] sm:$0xf]  ;;  %v15815_v56 = vld [vmem:[#allocation2 + $0x80] sm:$0xf0]  ;;  %12490 = vmatprep.subr.bf16.mxu1 %v13585_v32 }
 0x38d   : > { %5242 = vst [vmem:[#allocation2 + $0xa8] ss:$-4 sps:$4 sm:$0xff] %v5200_v8   ;;  %v5113_v43 = vadd.f32 %v12423_v40, %v15743_v1  ;;  %v5007_v49 = vpop.f32.mrb[23].mxu0  ;;  %v15818_v50 = vld [vmem:[#allocation2 + $0x78] sm:$0xf]  ;;  %v5144_v48 = vmax.f32 %v5112_v13, 0.0  ;;  %v5306_v40 = vor.u32 %v5305_v55, %v5302_v29 }
 0x38e   : > { %v15820_v39 = vld [vmem:[#allocation2 + $0x70] sm:$0xf0]  ;;  %5240 = vst [vmem:[#allocation2 + $0x98] ss:$-4 sps:$4 sm:$0xff] %v5199_v18   ;;  %v5111_v6 = vadd.f32 %v15743_v1, %v5007_v49  ;;  %v5716_v33 = vrot.slane %v15818_v50, 4  ;;  %v5142_v26 = vmax.f32 %v5110_v21, 0.0 }
 0x38f   : > { %v5715_v45 = vrot.slane %v15820_v39, 4  ;;  %v5145_v10 = vmax.f32 %v5113_v43, 0.0  ;;  %12491 = vmatpush3.bf16.msra.mxu1 %v13585_v32  ;;  %v5718_v28 = vrot.slane %v15815_v56, 4  ;;  %v5719_v2 = vrot.slane %v15813_v61, 4 }
 0x390   : > { %v5143_v4 = vmax.f32 %v5111_v6, 0.0  ;;  %12492 = vmatprep.subr.bf16.mxu1 %v13586_v52  ;;  %vm15856_vm13 = vcmp.ne.s16.totalorder %v5306_v40, 0 }
 0x391   : > { %v5170_v46 = vpack.c.bf16 %v5145_v10, %v5144_v48  ;;  %v5717_v42 = vsel %vm5693_vm10, %v5715_v45, %v5716_v33  ;;  %v5720_v34 = vsel %vm5693_vm10, %v5718_v28, %v5719_v2  ;;  %v5309_v29 = vsel %vm15856_vm13, %v15733_v51, 0 }
 0x392   : > { %v5169_v57 = vpack.c.bf16 %v5143_v4, %v5142_v26  ;;  %12461 = vmatmul.mubr.bf16.gmra.mrb[12].mxu1 %v5717_v42  ;;  %v12426_v54 = vpop.f32.mrb[24].mxu0  ;;  %v5256_v26 = vld [vmem:[#allocation2] sm:$0xf8] }
 0x393   : > { %v5202_v12 = vrot.slane %v5170_v46, 4  ;;  %v5116_v27 = vadd.f32 %v12426_v54, %v15743_v1  ;;  %12464 = vmatprep.mubr.bf16.mxu1 %v5720_v34  ;;  %v5020_v25 = vpop.f32.mrb[25].mxu0  ;;  %12493 = vmatpush3.bf16.msra.mxu1 %v13586_v52 }
 0x394   : > { %v5201_v35 = vrot.slane %v5169_v57, 4  ;;  %v5114_v38 = vadd.f32 %v15743_v1, %v5020_v25  ;;  %v12427_v30 = vpop.f32.mrb[26].mxu0  ;;  %v15833_v14 = vld [vmem:[#allocation2 + $0xa8] sm:$0xf]  ;;  %v15835_v16 = vld [vmem:[#allocation2 + $0xa0] sm:$0xf0]  ;;  %12494 = vmatprep.subr.bf16.mxu1 %v13587_v7 }
 0x395   : > { %5246 = vst [vmem:[#allocation2 + $0xc8] ss:$-4 sps:$4 sm:$0xff] %v5202_v12   ;;  %v5117_v32 = vadd.f32 %v12427_v30, %v15743_v1  ;;  %v5023_v3 = vpop.f32.mrb[27].mxu0  ;;  %v15838_v23 = vld [vmem:[#allocation2 + $0x98] sm:$0xf]  ;;  %v5148_v31 = vmax.f32 %v5116_v27, 0.0 }
 0x396   : > { %v15840_v11 = vld [vmem:[#allocation2 + $0x90] sm:$0xf0]  ;;  %5244 = vst [vmem:[#allocation2 + $0xb8] ss:$-4 sps:$4 sm:$0xff] %v5201_v35   ;;  %v5115_v47 = vadd.f32 %v15743_v1, %v5023_v3  ;;  %v5722_v13 = vrot.slane %v15838_v23, 4  ;;  %v5146_v9 = vmax.f32 %v5114_v38, 0.0 }
 0x397   : > { %v5721_v62 = vrot.slane %v15840_v11, 4  ;;  %v5149_v8 = vmax.f32 %v5117_v32, 0.0  ;;  %12495 = vmatpush3.bf16.msra.mxu1 %v13587_v7  ;;  %v5724_v18 = vrot.slane %v15835_v16, 4  ;;  %v5725_v21 = vrot.slane %v15833_v14, 4 }
 0x398   : > { %v5147_v52 = vmax.f32 %v5115_v47, 0.0  ;;  %12528 = vmatprep.subr.bf16.mxu1 %v15830_v63  ;;  %v5308_v30 = vsel %vm15856_vm13, %v5256_v26, 0 }
 0x399   : > { %v5172_v43 = vpack.c.bf16 %v5149_v8, %v5148_v31  ;;  %v5723_v49 = vsel %vm5693_vm10, %v5721_v62, %v5722_v13  ;;  %v5726_v37 = vsel %vm5693_vm10, %v5724_v18, %v5725_v21  ;;  %v5350_v8 = vshrl.u32 %v5309_v29, 16 }
 0x39a   : > { %v5171_v6 = vpack.c.bf16 %v5147_v52, %v5146_v9  ;;  %12465 = vmatmul.mubr.bf16.gmra.mrb[16].mxu1 %v5723_v49  ;;  %v12430_v45 = vpop.f32.mrb[28].mxu0  ;;  %v5353_v13 = vshll.u32 %v5309_v29, 16  ;;  %v5342_v52 = vshrl.u32 %v5308_v30, 16 }
 0x39b   : > { %v5204_v48 = vrot.slane %v5172_v43, 4  ;;  %v5120_v10 = vadd.f32 %v12430_v45, %v15743_v1  ;;  %12468 = vmatprep.mubr.bf16.mxu1 %v5726_v37  ;;  %v5036_v33 = vpop.f32.mrb[29].mxu0  ;;  %v5345_v43 = vshll.u32 %v5308_v30, 16  ;;  %v5258_v45 = vld [vmem:[#allocation2 + $0x10] sm:$0xf8] }
 0x39c   : > { %v5203_v4 = vrot.slane %v5171_v6, 4  ;;  %v5118_v28 = vadd.f32 %v15743_v1, %v5036_v33  ;;  %v12431_v2 = vpop.f32.mrb[30].mxu0  ;;  %v15852_v7 = vld [vmem:[#allocation2 + $0xc8] sm:$0xf]  ;;  %v15854_v24 = vld [vmem:[#allocation2 + $0xc0] sm:$0xf0] }
 0x39d   : > { %5250 = vst [vmem:[#allocation2 + $0xe8] ss:$-4 sps:$4 sm:$0xff] %v5204_v48   ;;  %v5121_v42 = vadd.f32 %v12431_v2, %v15743_v1  ;;  %v5039_v57 = vpop.f32.mrb[31].mxu0  ;;  %v15861_v54 = vld [vmem:[#allocation2 + $0xb8] sm:$0xf]  ;;  %v5152_v25 = vmax.f32 %v5120_v10, 0.0 }
 0x39e   : > { %v15863_v34 = vld [vmem:[#allocation2 + $0xb0] sm:$0xf0]  ;;  %5248 = vst [vmem:[#allocation2 + $0xd8] ss:$-4 sps:$4 sm:$0xff] %v5203_v4   ;;  %v5119_v12 = vadd.f32 %v15743_v1, %v5039_v57  ;;  %v5728_v38 = vrot.slane %v15861_v54, 4  ;;  %v5150_v55 = vmax.f32 %v5118_v28, 0.0 }
 0x39f   : > { %v5727_v27 = vrot.slane %v15863_v34, 4  ;;  %v5153_v35 = vmax.f32 %v5121_v42, 0.0  ;;  %v5730_v3 = vrot.slane %v15854_v24, 4  ;;  %v5731_v47 = vrot.slane %v15852_v7, 4  ;;  %v5260_v2 = vld [vmem:[#allocation2 + $0x20] sm:$0xf8] }
 0x3a0   : > { %v5151_v32 = vmax.f32 %v5119_v12, 0.0  ;;  %v5352_v33 = vrot.slane %v5350_v8, 3  ;;  %v5355_v26 = vrot.slane %v5353_v13, 4  ;;  %v5344_v28 = vrot.slane %v5342_v52, 3 }
 0x3a1   : > { %v5174_v62 = vpack.c.bf16 %v5153_v35, %v5152_v25  ;;  %v5729_v51 = vsel %vm5693_vm10, %v5727_v27, %v5728_v38  ;;  %v5732_v1 = vsel %vm5693_vm10, %v5730_v3, %v5731_v47  ;;  %v5311_v42 = vsel %vm15856_vm13, %v15758_v58, 0 }
 0x3a2   : > { %v5173_v31 = vpack.c.bf16 %v5151_v32, %v5150_v55  ;;  %12469 = vmatmul.mubr.bf16.gmra.mrb[20].mxu1 %v5729_v51  ;;  %v5347_v29 = vrot.slane %v5345_v43, 4  ;;  %v5310_v12 = vsel %vm15856_vm13, %v5258_v45, 0  ;;  %v5313_v27 = vsel %vm15856_vm13, %v15765_v0, 0 }
 0x3a3   : > { %v5206_v9 = vrot.slane %v5174_v62, 4  ;;  %12472 = vmatprep.mubr.bf16.mxu1 %v5732_v1  ;;  %v5312_v35 = vsel %vm15856_vm13, %v5260_v2, 0  ;;  %v5367_v38 = vshrl.u32 %v5311_v42, 16  ;;  %v5370_v30 = vshll.u32 %v5311_v42, 16 }
 0x3a4   : > { %v5205_v18 = vrot.slane %v5173_v31, 4  ;;  %v15877_v21 = vld [vmem:[#allocation2 + $0xe8] sm:$0xf]  ;;  %v15879_v40 = vld [vmem:[#allocation2 + $0xe0] sm:$0xf0]  ;;  %v5359_v58 = vshrl.u32 %v5310_v12, 16  ;;  %v5348_v32 = vor.u32 %v5347_v29, %v5344_v28  ;;  %v5356_v3 = vor.u32 %v5355_v26, %v5352_v33 }
 0x3a5   : > { %5254 = vst [vmem:[#allocation2 + $0x108] ss:$-4 sps:$4 sm:$0xff] %v5206_v9   ;;  %v15881_v49 = vld [vmem:[#allocation2 + $0xd8] sm:$0xf]  ;;  %v15883_v6 = vld [vmem:[#allocation2 + $0xd0] sm:$0xf0] }
 0x3a6   : > { %5252 = vst [vmem:[#allocation2 + $0xf8] ss:$-4 sps:$4 sm:$0xff] %v5205_v18   ;;  %v5733_v37 = vrot.slane %v15883_v6, 4  ;;  %v5734_v48 = vrot.slane %v15881_v49, 4  ;;  %v5736_v10 = vrot.slane %v15879_v40, 4  ;;  %v5737_v4 = vrot.slane %v15877_v21, 4 }
 0x3a7   : > { %v5362_v55 = vshll.u32 %v5310_v12, 16  ;;  %v5376_v51 = vshrl.u32 %v5312_v35, 16  ;;  %v5384_v0 = vshrl.u32 %v5313_v27, 16  ;;  %v5379_v8 = vshll.u32 %v5312_v35, 16  ;;  %v5262_v9 = vld [vmem:[#allocation2 + $0x30] sm:$0xf8] }
 0x3a8   : > { %v5735_v57 = vsel %vm5693_vm10, %v5733_v37, %v5734_v48  ;;  %v5738_v25 = vsel %vm5693_vm10, %v5736_v10, %v5737_v4  ;;  %v5387_v13 = vshll.u32 %v5313_v27, 16  ;;  %v5369_v52 = vrot.slane %v5367_v38, 3  ;;  %v5264_v37 = vld [vmem:[#allocation2 + $0x40] sm:$0xf8] }
 0x3a9   : > { %v5372_v18 = vrot.slane %v5370_v30, 4  ;;  %v5361_v43 = vrot.slane %v5359_v58, 3  ;;  %v5364_v45 = vrot.slane %v5362_v55, 4  ;;  %v5315_v48 = vsel %vm15856_vm13, %v15777_v36, 0 }
 0x3aa   : > { %12473 = vmatmul.mubr.bf16.gmra.mrb[24].mxu1 %v5735_v57  ;;  %v5357_v33 = vsel %vm5340_vm14, %v5348_v32, %v5356_v3  ;;  %v5317_v26 = vsel %vm15856_vm13, %v15773_v15, 0  ;;  %v5386_v4 = vrot.slane %v5384_v0, 3  ;;  %v5314_v28 = vsel %vm15856_vm13, %v5262_v9, 0  ;;  %v5266_v32 = vld [vmem:[#allocation2 + $0x50] sm:$0xf8] }
 0x3ab   : > { %12476 = vmatprep.mubr.bf16.mxu1 %v5738_v25  ;;  %v5378_v2 = vrot.slane %v5376_v51, 3  ;;  %v5381_v42 = vrot.slane %v5379_v8, 4  ;;  %v5389_v57 = vrot.slane %v5387_v13, 4  ;;  %v5316_v29 = vsel %vm15856_vm13, %v5264_v37, 0  ;;  %v5268_v8 = vld [vmem:[#allocation2 + $0x60] sm:$0xf8] }
 0x3ac   : > { %v5365_v36 = vor.u32 %v5364_v45, %v5361_v43  ;;  %v5373_v12 = vor.u32 %v5372_v18, %v5369_v52  ;;  %v5401_v27 = vshrl.u32 %v5315_v48, 16  ;;  %v5393_v25 = vshrl.u32 %v5314_v28, 16  ;;  %v13589_v18 = vld [vmem:[#allocation8 + $0x88] sm:$0xff]  }
 0x3ad   : > { %v15901_v47 = vld [vmem:[#allocation2 + $0xf8] sm:$0xf]  ;;  %v15903_v62 = vld [vmem:[#allocation2 + $0xf0] sm:$0xf0]  ;;  %v5396_v35 = vshll.u32 %v5314_v28, 16  ;;  %v5404_v38 = vshll.u32 %v5315_v48, 16  ;;  %v5382_v3 = vor.u32 %v5381_v42, %v5378_v2  ;;  %v5390_v0 = vor.u32 %v5389_v57, %v5386_v4 }
 0x3ae   : > { %v5739_v31 = vrot.slane %v15903_v62, 4  ;;  %v5740_v1 = vrot.slane %v15901_v47, 4  ;;  %v5410_v30 = vshrl.u32 %v5316_v29, 16  ;;  %v5413_v15 = vshll.u32 %v5316_v29, 16  ;;  %v13590_v29 = vld [vmem:[#allocation8 + $0x90] sm:$0xff]  }
 0x3af   : > { %v5418_v58 = vshrl.u32 %v5317_v26, 16  ;;  %v5421_v55 = vshll.u32 %v5317_v26, 16  ;;  %v5319_v51 = vsel %vm15856_vm13, %v15798_v17, 0  ;;  %v5395_v13 = vrot.slane %v5393_v25, 3 }
 0x3b0   : > { %v5741_v10 = vsel %vm5693_vm10, %v5739_v31, %v5740_v1  ;;  %v5374_v31 = vsel %vm5340_vm14, %v5365_v36, %v5373_v12  ;;  %v5403_v1 = vrot.slane %v5401_v27, 3  ;;  %v5398_v9 = vrot.slane %v5396_v35, 4 }
 0x3b1   : > { %v5406_v52 = vrot.slane %v5404_v38, 4  ;;  %v5318_v43 = vsel %vm15856_vm13, %v5266_v32, 0  ;;  %v5412_v45 = vrot.slane %v5410_v30, 3  ;;  %v5415_v37 = vrot.slane %v5413_v15, 4  ;;  %v5270_v30 = vld [vmem:[#allocation2 + $0x70] sm:$0xf8] }
 0x3b2   : > { %12477 = vmatmul.mubr.bf16.gmra.mrb[28].mxu1 %v5741_v10  ;;  %v5420_v48 = vrot.slane %v5418_v58, 3  ;;  %v5423_v10 = vrot.slane %v5421_v55, 4  ;;  %v5391_v17 = vsel %vm5340_vm14, %v5382_v3, %v5390_v0  ;;  %v5320_v26 = vsel %vm15856_vm13, %v5268_v8, 0  ;;  %v5272_v32 = vld [vmem:[#allocation2 + $0x80] sm:$0xf8] }
 0x3b3   : > { %12496 = vmatprep.mubr.bf16.mxu1 %v5357_v33  ;;  %v5321_v33 = vsel %vm15856_vm13, %v15793_v20, 0  ;;  %v5427_v4 = vshrl.u32 %v5318_v43, 16  ;;  %v5430_v28 = vshll.u32 %v5318_v43, 16  ;;  %v5435_v2 = vshrl.u32 %v5319_v51, 16 }
 0x3b4   : > { %v5438_v42 = vshll.u32 %v5319_v51, 16  ;;  %v5399_v57 = vor.u32 %v5398_v9, %v5395_v13  ;;  %v5407_v36 = vor.u32 %v5406_v52, %v5403_v1  ;;  %v5416_v12 = vor.u32 %v5415_v37, %v5412_v45  ;;  %v13591_v51 = vld [vmem:[#allocation8 + $0x98] sm:$0xff]  }
 0x3b5   : > { %v5424_v27 = vor.u32 %v5423_v10, %v5420_v48  ;;  %v5444_v20 = vshrl.u32 %v5320_v26, 16  ;;  %v5447_v25 = vshll.u32 %v5320_v26, 16  ;;  %v5452_v35 = vshrl.u32 %v5321_v33, 16 }
 0x3b6   : > { %v5455_v38 = vshll.u32 %v5321_v33, 16  ;;  %v5429_v15 = vrot.slane %v5427_v4, 3  ;;  %v5432_v58 = vrot.slane %v5430_v28, 4  ;;  %v5437_v55 = vrot.slane %v5435_v2, 3  ;;  %v13592_v33 = vld [vmem:[#allocation8 + $0xa0] sm:$0xff]  }
 0x3b7   : > { %v5323_v3 = vsel %vm15856_vm13, %v15818_v50, 0  ;;  %v5325_v0 = vsel %vm15856_vm13, %v15813_v61, 0  ;;  %v5425_v1 = vsel %vm5340_vm14, %v5416_v12, %v5424_v27  ;;  %v5446_v8 = vrot.slane %v5444_v20, 3  ;;  %v5274_v2 = vld [vmem:[#allocation2 + $0x90] sm:$0xf8] }
 0x3b8   : > { %v5322_v13 = vsel %vm15856_vm13, %v5270_v30, 0  ;;  %v5449_v9 = vrot.slane %v5447_v25, 4  ;;  %v5454_v52 = vrot.slane %v5452_v35, 3  ;;  %v5324_v50 = vsel %vm15856_vm13, %v5272_v32, 0  ;;  %v5276_v27 = vld [vmem:[#allocation2 + $0xa0] sm:$0xf8] }
 0x3b9   : > { %v5433_v43 = vor.u32 %v5432_v58, %v5429_v15  ;;  %v5469_v45 = vshrl.u32 %v5323_v3, 16  ;;  %v5461_v37 = vshrl.u32 %v5322_v13, 16  ;;  %v5464_v48 = vshll.u32 %v5322_v13, 16  ;;  %v13593_v30 = vld [vmem:[#allocation8 + $0xa8] sm:$0xff]  }
 0x3ba   : > { %12497 = vmatmul.mubr.bf16.vlgmr.msra.gmra.mrb[0].mxu1 %v5374_v31  ;;  %v5408_v31 = vsel %vm5340_vm14, %v5399_v57, %v5407_v36  ;;  %v5472_v10 = vshll.u32 %v5323_v3, 16  ;;  %v5481_v26 = vshll.u32 %v5324_v50, 16  ;;  %v5486_v4 = vshrl.u32 %v5325_v0, 16 }
 0x3bb   : > { %12500 = vmatprep.mubr.bf16.mxu1 %v5391_v17  ;;  %12529 = vmatpush3.bf16.msra.mxu1 %v15830_v63  ;;  %v5440_v63 = vrot.slane %v5438_v42, 4  ;;  %v5478_v17 = vshrl.u32 %v5324_v50, 16  ;;  %v5489_v28 = vshll.u32 %v5325_v0, 16  ;;  %v5450_v42 = vor.u32 %v5449_v9, %v5446_v8  ;;  %v13594_v9 = vld [vmem:[#allocation8 + $0xb0] sm:$0xff]  }
 0x3bc   : > { %12530 = vmatprep.subr.bf16.mxu1 %v13589_v18  ;;  %v5327_v36 = vsel %vm15856_vm13, %v15838_v23, 0  ;;  %v5463_v20 = vrot.slane %v5461_v37, 3  ;;  %v5466_v25 = vrot.slane %v5464_v48, 4  ;;  %v5474_v35 = vrot.slane %v5472_v10, 4 }
 0x3bd   : > { %v5441_v61 = vor.u32 %v5440_v63, %v5437_v55  ;;  %v5480_v15 = vrot.slane %v5478_v17, 3  ;;  %v5483_v58 = vrot.slane %v5481_v26, 4  ;;  %v5488_v55 = vrot.slane %v5486_v4, 3 }
 0x3be   : > { %v5491_v63 = vrot.slane %v5489_v28, 4  ;;  %v5329_v23 = vsel %vm15856_vm13, %v15833_v14, 0  ;;  %v5328_v3 = vsel %vm15856_vm13, %v5276_v27, 0  ;;  %v6220_v8 = vshrl.u32 %v15731_v5, 16 }
 0x3bf   : > { %12531 = vmatpush3.bf16.msra.mxu1 %v13589_v18  ;;  %v5457_v18 = vrot.slane %v5455_v38, 4  ;;  %v5442_v12 = vsel %vm5340_vm14, %v5433_v43, %v5441_v61  ;;  %v5326_v38 = vsel %vm15856_vm13, %v5274_v2, 0  ;;  %v5512_v50 = vshrl.u32 %v5328_v3, 16  ;;  %v5278_v43 = vld [vmem:[#allocation2 + $0xb0] sm:$0xf8] }
 0x3c0   : > { %12532 = vmatprep.subr.bf16.mxu1 %v13590_v29  ;;  %v5495_v0 = vshrl.u32 %v5326_v38, 16  ;;  %v5492_v14 = vor.u32 %v5491_v63, %v5488_v55  ;;  %v6223_v61 = vshll.u32 %v15731_v5, 16  ;;  %v5520_v37 = vshrl.u32 %v5329_v23, 16  ;;  %v15970_v63 = vld [vmem:[#allocation8 + $0xc0] sm:$0xff]  }
 0x3c1   : > { %v5458_v57 = vor.u32 %v5457_v18, %v5454_v52  ;;  %v5467_v52 = vor.u32 %v5466_v25, %v5463_v20  ;;  %v5484_v18 = vor.u32 %v5483_v58, %v5480_v15  ;;  %v5523_v48 = vshll.u32 %v5329_v23, 16 }
 0x3c2   : > { %12501 = vmatmul.mubr.bf16.gmra.mrb[4].mxu1 %v5408_v31  ;;  %v5503_v31 = vshrl.u32 %v5327_v36, 16  ;;  %v5497_v10 = vrot.slane %v5495_v0, 3  ;;  %v6222_v28 = vrot.slane %v6220_v8, 3  ;;  %v5331_v2 = vsel %vm15856_vm13, %v15861_v54, 0 }
 0x3c3   : > { %12504 = vmatprep.mubr.bf16.mxu1 %v5425_v1  ;;  %12533 = vmatpush3.bf16.msra.mxu1 %v13590_v29  ;;  %v5471_v29 = vrot.slane %v5469_v45, 3  ;;  %v5459_v32 = vsel %vm5340_vm14, %v5450_v42, %v5458_v57  ;;  %v5506_v1 = vshll.u32 %v5327_v36, 16  ;;  %v5515_v45 = vshll.u32 %v5328_v3, 16  ;;  %v13595_v57 = vld [vmem:[#allocation8 + $0xb8] sm:$0xff]  }
 0x3c4   : > { %12534 = vmatprep.subr.bf16.mxu1 %v13591_v51  ;;  %v5505_v26 = vrot.slane %v5503_v31, 3  ;;  %v5330_v42 = vsel %vm15856_vm13, %v5278_v43, 0  ;;  %v5333_v5 = vsel %vm15856_vm13, %v15852_v7, 0  ;;  %v5522_v20 = vrot.slane %v5520_v37, 3 }
 0x3c5   : > { %v5475_v13 = vor.u32 %v5474_v35, %v5471_v29  ;;  %v5508_v4 = vrot.slane %v5506_v1, 4  ;;  %v5514_v29 = vrot.slane %v5512_v50, 3  ;;  %v5517_v27 = vrot.slane %v5515_v45, 4 }
 0x3c6   : > { %v5525_v25 = vrot.slane %v5523_v48, 4  ;;  %v6225_v35 = vrot.slane %v6223_v61, 4  ;;  %v5529_v15 = vshrl.u32 %v5330_v42, 16  ;;  %v5532_v58 = vshll.u32 %v5330_v42, 16  ;;  %v5284_v61 = vld [vmem:[#allocation2 + $0xe0] sm:$0xf8] }
 0x3c7   : > { %12535 = vmatpush3.bf16.msra.mxu1 %v13591_v51  ;;  %v5498_v51 = vshll.u32 %v5326_v38, 16  ;;  %v5476_v36 = vsel %vm5340_vm14, %v5467_v52, %v5475_v13  ;;  %v5537_v7 = vshrl.u32 %v5331_v2, 16  ;;  %v5540_v55 = vshll.u32 %v5331_v2, 16 }
 0x3c8   : > { %12536 = vmatprep.subr.bf16.mxu1 %v13592_v33  ;;  %v5554_v3 = vshrl.u32 %v5333_v5, 16  ;;  %v5557_v0 = vshll.u32 %v5333_v5, 16  ;;  %v5518_v31 = vor.u32 %v5517_v27, %v5514_v29  ;;  %v5526_v1 = vor.u32 %v5525_v25, %v5522_v20 }
 0x3c9   : > { %v5500_v17 = vrot.slane %v5498_v51, 4  ;;  %v5282_v51 = vld [vmem:[#allocation2 + $0xd0] sm:$0xf8]  ;;  %v6226_v8 = vor.u32 %v6225_v35, %v6222_v28  ;;  %v5335_v13 = vsel %vm15856_vm13, %v15881_v49, 0  ;;  %v5531_v52 = vrot.slane %v5529_v15, 3 }
 0x3ca   : > { %12505 = vmatmul.mubr.bf16.gmra.mrb[8].mxu1 %v5442_v12  ;;  %v5493_v12 = vsel %vm5340_vm14, %v5484_v18, %v5492_v14  ;;  %v5534_v18 = vrot.slane %v5532_v58, 4  ;;  %v5539_v14 = vrot.slane %v5537_v7, 3  ;;  %v5542_v50 = vrot.slane %v5540_v55, 4  ;;  %v5286_v35 = vld [vmem:[#allocation2 + $0xf0] sm:$0xf8] }
 0x3cb   : > { %12508 = vmatprep.mubr.bf16.mxu1 %v5459_v32  ;;  %12537 = vmatpush3.bf16.msra.mxu1 %v13592_v33  ;;  %v5280_v33 = vld [vmem:[#allocation2 + $0xc0] sm:$0xf8]  ;;  %v5501_v38 = vor.u32 %v5500_v17, %v5497_v10  ;;  %v5334_v43 = vsel %vm15856_vm13, %v5282_v51, 0  ;;  %v5556_v48 = vrot.slane %v5554_v3, 3  ;;  %v5559_v10 = vrot.slane %v5557_v0, 4 }
 0x3cc   : > { %12538 = vmatprep.subr.bf16.mxu1 %v13593_v30  ;;  %v5332_v54 = vsel %vm15856_vm13, %v5280_v33, 0  ;;  %v5527_v49 = vsel %vm5340_vm14, %v5518_v31, %v5526_v1  ;;  %vm15980_vm15 = vcmp.ne.s16.totalorder %v6226_v8, 0  ;;  %v5563_v33 = vshrl.u32 %v5334_v43, 16 }
 0x3cd   : > { %v5546_v23 = vshrl.u32 %v5332_v54, 16  ;;  %v5549_v32 = vshll.u32 %v5332_v54, 16  ;;  %v5566_v28 = vshll.u32 %v5334_v43, 16  ;;  %v5571_v2 = vshrl.u32 %v5335_v13, 16 }
 0x3ce   : > { %v5574_v42 = vshll.u32 %v5335_v13, 16  ;;  %v5535_v5 = vor.u32 %v5534_v18, %v5531_v52  ;;  %v5560_v29 = vor.u32 %v5559_v10, %v5556_v48  ;;  %v5565_v15 = vrot.slane %v5563_v33, 3 }
 0x3cf   : > { %12539 = vmatpush3.bf16.msra.mxu1 %v13593_v30  ;;  %v5509_v30 = vor.u32 %v5508_v4, %v5505_v26  ;;  %v5548_v45 = vrot.slane %v5546_v23, 3  ;;  %v5551_v37 = vrot.slane %v5549_v32, 4  ;;  %v5337_v26 = vsel %vm15856_vm13, %v15877_v21, 0 }
 0x3d0   : > { %12540 = vmatprep.subr.bf16.mxu1 %v13594_v9  ;;  %v5336_v4 = vsel %vm15856_vm13, %v5284_v61, 0  ;;  %v5588_v25 = vshrl.u32 %v5337_v26, 16  ;;  %v5591_v54 = vshll.u32 %v5337_v26, 16  ;;  %v5568_v58 = vrot.slane %v5566_v28, 4 }
 0x3d1   : > { %v5580_v27 = vshrl.u32 %v5336_v4, 16  ;;  %v5583_v20 = vshll.u32 %v5336_v4, 16  ;;  %v5573_v7 = vrot.slane %v5571_v2, 3  ;;  %v5576_v55 = vrot.slane %v5574_v42, 4 }
 0x3d2   : > { %12509 = vmatmul.mubr.bf16.gmra.mrb[12].mxu1 %v5476_v36  ;;  %v5543_v36 = vor.u32 %v5542_v50, %v5539_v14  ;;  %v5339_v23 = vsel %vm15856_vm13, %v15901_v47, 0  ;;  %v5338_v0 = vsel %vm15856_vm13, %v5286_v35, 0  ;;  %v5590_v1 = vrot.slane %v5588_v25, 3 }
 0x3d3   : > { %12512 = vmatprep.mubr.bf16.mxu1 %v5493_v12  ;;  %12541 = vmatpush3.bf16.msra.mxu1 %v13594_v9  ;;  %v5510_v9 = vsel %vm5340_vm14, %v5501_v38, %v5509_v30  ;;  %v5552_v12 = vor.u32 %v5551_v37, %v5548_v45  ;;  %v13656_v38 = vld [vmem:[#allocation2] sm:$0xf0]  ;;  %v5582_v51 = vrot.slane %v5580_v27, 3  ;;  %v5585_v31 = vrot.slane %v5583_v20, 4  ;;  %v6193_v37 = vld [vmem:[#allocation2 + $0x18] sm:$0x1f] }
 0x3d4   : > { %12542 = vmatprep.subr.bf16.mxu1 %v13595_v57  ;;  %v6228_v21 = vsel %vm15980_vm15, %v13656_v38, 0  ;;  %v5544_v32 = vsel %vm5340_vm14, %v5535_v5, %v5543_v36  ;;  %v5593_v8 = vrot.slane %v5591_v54, 4  ;;  %v5569_v52 = vor.u32 %v5568_v58, %v5565_v15 }
 0x3d5   : > { %v5561_v3 = vsel %vm5340_vm14, %v5552_v12, %v5560_v29  ;;  %v6261_v13 = vshrl.u32 %v6228_v21, 16  ;;  %v5577_v18 = vor.u32 %v5576_v55, %v5573_v7  ;;  %v5597_v47 = vshrl.u32 %v5338_v0, 16 }
 0x3d6   : > { %v5600_v43 = vshll.u32 %v5338_v0, 16  ;;  %v5605_v61 = vshrl.u32 %v5339_v23, 16  ;;  %v5608_v45 = vshll.u32 %v5339_v23, 16  ;;  %v5586_v48 = vor.u32 %v5585_v31, %v5582_v51 }
 0x3d7   : > { %12543 = vmatpush3.bf16.msra.mxu1 %v13595_v57  ;;  %v6192_v57 = vld [vmem:[#allocation2 + $0x8] sm:$0x1f]  ;;  %v5594_v10 = vor.u32 %v5593_v8, %v5590_v1  ;;  %v6230_v4 = vsel %vm15980_vm15, %v15760_v60, 0  ;;  %v5578_v33 = vsel %vm5340_vm14, %v5569_v52, %v5577_v18  ;;  %v6231_v42 = vsel %vm15980_vm15, %v6193_v37, 0 }
 0x3d8   : > { %12576 = vmatprep.subr.bf16.mxu1 %v15970_v63  ;;  %v6229_v30 = vsel %vm15980_vm15, %v6192_v57, 0  ;;  %v6194_v57 = vld [vmem:[#allocation2 + $0x28] sm:$0x1f]  ;;  %v5599_v5 = vrot.slane %v5597_v47, 3  ;;  %v5602_v36 = vrot.slane %v5600_v43, 4  ;;  %v5607_v12 = vrot.slane %v5605_v61, 3 }
 0x3d9   : > { %v6269_v14 = vshrl.u32 %v6229_v30, 16  ;;  %v6272_v50 = vshll.u32 %v6229_v30, 16  ;;  %v5610_v29 = vrot.slane %v5608_v45, 4  ;;  %v6278_v27 = vshrl.u32 %v6230_v4, 16  ;;  %v6196_v1 = vld [vmem:[#allocation2 + $0x48] sm:$0x1f] }
 0x3da   : > { %12513 = vmatmul.mubr.bf16.gmra.mrb[16].mxu1 %v5510_v9  ;;  %v6264_v9 = vshll.u32 %v6228_v21, 16  ;;  %v6232_v20 = vsel %vm15980_vm15, %v15755_v22, 0  ;;  %v5595_v60 = vsel %vm5340_vm14, %v5586_v48, %v5594_v10  ;;  %v6281_v25 = vshll.u32 %v6230_v4, 16 }
 0x3db   : > { %12516 = vmatprep.mubr.bf16.mxu1 %v5527_v49  ;;  %v6263_v49 = vrot.slane %v6261_v13, 4  ;;  %v6271_v28 = vrot.slane %v6269_v14, 4  ;;  %v6274_v2 = vrot.slane %v6272_v50, 5  ;;  %v6286_v54 = vshrl.u32 %v6231_v42, 16 }
 0x3dc   : > { %v6266_v26 = vrot.slane %v6264_v9, 5  ;;  %v6289_v35 = vshll.u32 %v6231_v42, 16  ;;  %v6233_v38 = vsel %vm15980_vm15, %v6194_v57, 0  ;;  %v5603_v15 = vor.u32 %v5602_v36, %v5599_v5 }
 0x3dd   : > { %v6275_v30 = vor.u32 %v6274_v2, %v6271_v28  ;;  %v5611_v58 = vor.u32 %v5610_v29, %v5607_v12  ;;  %v6295_v7 = vshrl.u32 %v6232_v20, 16  ;;  %v6298_v55 = vshll.u32 %v6232_v20, 16  ;;  %v6197_v28 = vld [vmem:[#allocation2 + $0x58] sm:$0x1f] }
 0x3de   : > { %v6267_v21 = vor.u32 %v6266_v26, %v6263_v49  ;;  %v6303_v23 = vshrl.u32 %v6233_v38, 16  ;;  %v6280_v22 = vrot.slane %v6278_v27, 4  ;;  %v6283_v0 = vrot.slane %v6281_v25, 5  ;;  %v13597_v12 = vld [vmem:[#allocation8 + $0xc8] sm:$0xff]   ;;  %v6198_v25 = vld [vmem:[#allocation2 + $0x68] sm:$0x1f] }
 0x3df   : > { %v6288_v51 = vrot.slane %v6286_v54, 4  ;;  %v6291_v31 = vrot.slane %v6289_v35, 5  ;;  %v6234_v8 = vsel %vm15980_vm15, %v15779_v44, 0  ;;  %v6236_v9 = vsel %vm15980_vm15, %v15784_v53, 0 }
 0x3e0   : > { %v6276_v13 = vsel %vm346_vm0, %v6267_v21, %v6275_v30  ;;  %v5612_v52 = vsel %vm5340_vm14, %v5603_v15, %v5611_v58  ;;  %v6297_v18 = vrot.slane %v6295_v7, 4  ;;  %v6300_v50 = vrot.slane %v6298_v55, 5 }
 0x3e1   : > { %v6305_v47 = vrot.slane %v6303_v23, 4  ;;  %v6237_v61 = vsel %vm15980_vm15, %v6196_v1, 0  ;;  %v6284_v44 = vor.u32 %v6283_v0, %v6280_v22  ;;  %v6292_v45 = vor.u32 %v6291_v31, %v6288_v51 }
 0x3e2   : > { %12517 = vmatmul.mubr.bf16.gmra.mrb[20].mxu1 %v5544_v32  ;;  %v6306_v32 = vshll.u32 %v6233_v38, 16  ;;  %v6312_v37 = vshrl.u32 %v6234_v8, 16  ;;  %v6315_v48 = vshll.u32 %v6234_v8, 16  ;;  %v6329_v49 = vshrl.u32 %v6236_v9, 16 }
 0x3e3   : > { %12520 = vmatprep.mubr.bf16.mxu1 %v5561_v3  ;;  %v6195_v3 = vld [vmem:[#allocation2 + $0x38] sm:$0x1f]  ;;  %v6332_v26 = vshll.u32 %v6236_v9, 16  ;;  %v6337_v4 = vshrl.u32 %v6237_v61, 16  ;;  %v6301_v2 = vor.u32 %v6300_v50, %v6297_v18  ;;  %v6238_v57 = vsel %vm15980_vm15, %v15800_v41, 0 }
 0x3e4   : > { %v6235_v14 = vsel %vm15980_vm15, %v6195_v3, 0  ;;  %v6308_v43 = vrot.slane %v6306_v32, 5  ;;  %v6293_v5 = vsel %vm346_vm0, %v6284_v44, %v6292_v45  ;;  %v6314_v36 = vrot.slane %v6312_v37, 4  ;;  %v13598_v3 = vld [vmem:[#allocation8 + $0xd0] sm:$0xff]  }
 0x3e5   : > { %v6320_v10 = vshrl.u32 %v6235_v14, 16  ;;  %v6323_v53 = vshll.u32 %v6235_v14, 16  ;;  %v6317_v29 = vrot.slane %v6315_v48, 5  ;;  %v6331_v54 = vrot.slane %v6329_v49, 4  ;;  %v6200_v14 = vld [vmem:[#allocation2 + $0x88] sm:$0x1f] }
 0x3e6   : > { %v6309_v42 = vor.u32 %v6308_v43, %v6305_v47  ;;  %v6334_v35 = vrot.slane %v6332_v26, 5  ;;  %v6339_v38 = vrot.slane %v6337_v4, 4  ;;  %v6240_v30 = vsel %vm15980_vm15, %v15795_v59, 0  ;;  %v13599_v43 = vld [vmem:[#allocation8 + $0xd8] sm:$0xff]  }
 0x3e7   : > { %v6322_v27 = vrot.slane %v6320_v10, 4  ;;  %v6325_v20 = vrot.slane %v6323_v53, 5  ;;  %v6346_v15 = vshrl.u32 %v6238_v57, 16  ;;  %v6349_v58 = vshll.u32 %v6238_v57, 16 }
 0x3e8   : > { %v6310_v41 = vsel %vm346_vm0, %v6301_v2, %v6309_v42  ;;  %v6241_v23 = vsel %vm15980_vm15, %v6198_v25, 0  ;;  %v6318_v32 = vor.u32 %v6317_v29, %v6314_v36  ;;  %v6335_v0 = vor.u32 %v6334_v35, %v6331_v54  ;;  %v13600_v2 = vld [vmem:[#allocation8 + $0xe0] sm:$0xff]   ;;  %v6202_v54 = vld [vmem:[#allocation2 + $0xa8] sm:$0x1f] }
 0x3e9   : > { %v6326_v22 = vor.u32 %v6325_v20, %v6322_v27  ;;  %v6363_v59 = vshrl.u32 %v6240_v30, 16  ;;  %v6366_v31 = vshll.u32 %v6240_v30, 16  ;;  %v6371_v1 = vshrl.u32 %v6241_v23, 16 }
 0x3ea   : > { %12521 = vmatmul.mubr.bf16.gmra.mrb[24].mxu1 %v5578_v33  ;;  %v6340_v33 = vshll.u32 %v6237_v61, 16  ;;  %v6374_v8 = vshll.u32 %v6241_v23, 16  ;;  %v6348_v9 = vrot.slane %v6346_v15, 4  ;;  %v6242_v50 = vsel %vm15980_vm15, %v15820_v39, 0 }
 0x3eb   : > { %12524 = vmatprep.mubr.bf16.mxu1 %v5595_v60  ;;  %v6239_v60 = vsel %vm15980_vm15, %v6197_v28, 0  ;;  %v6244_v47 = vsel %vm15980_vm15, %v15815_v56, 0  ;;  %v6327_v61 = vsel %vm346_vm0, %v6318_v32, %v6326_v22  ;;  %v6365_v45 = vrot.slane %v6363_v59, 4 }
 0x3ec   : > { %v6342_v21 = vrot.slane %v6340_v33, 5  ;;  %v6354_v7 = vshrl.u32 %v6239_v60, 16  ;;  %v6357_v55 = vshll.u32 %v6239_v60, 16  ;;  %v6368_v48 = vrot.slane %v6366_v31, 5  ;;  %v13602_v31 = vld [vmem:[#allocation8 + $0xf0] sm:$0xff]  }
 0x3ed   : > { %v6373_v10 = vrot.slane %v6371_v1, 4  ;;  %v6376_v53 = vrot.slane %v6374_v8, 5  ;;  %v6245_v39 = vsel %vm15980_vm15, %v6200_v14, 0  ;;  %v6380_v26 = vshrl.u32 %v6242_v50, 16 }
 0x3ee   : > { %v6343_v51 = vor.u32 %v6342_v21, %v6339_v38  ;;  %v6359_v18 = vrot.slane %v6357_v55, 5  ;;  %v6383_v4 = vshll.u32 %v6242_v50, 16  ;;  %v6397_v42 = vshrl.u32 %v6244_v47, 16 }
 0x3ef   : > { %v6400_v57 = vshll.u32 %v6244_v47, 16  ;;  %v6408_v36 = vshll.u32 %v6245_v39, 16  ;;  %v6369_v29 = vor.u32 %v6368_v48, %v6365_v45  ;;  %v6377_v27 = vor.u32 %v6376_v53, %v6373_v10 }
 0x3f0   : > { %v6344_v44 = vsel %vm346_vm0, %v6335_v0, %v6343_v51  ;;  %v6246_v20 = vsel %vm15980_vm15, %v15840_v11, 0  ;;  %v6382_v25 = vrot.slane %v6380_v26, 4  ;;  %v6385_v35 = vrot.slane %v6383_v4, 5 }
 0x3f1   : > { %v6399_v15 = vrot.slane %v6397_v42, 4  ;;  %v6410_v55 = vrot.slane %v6408_v36, 5  ;;  %v6248_v11 = vsel %vm15980_vm15, %v15835_v16, 0  ;;  %v6378_v23 = vsel %vm346_vm0, %v6369_v29, %v6377_v27  ;;  %v6205_v27 = vld [vmem:[#allocation2 + $0xd8] sm:$0x1f] }
 0x3f2   : > { %12525 = vmatmul.mubr.bf16.gmra.mrb[28].mxu1 %v5612_v52  ;;  %v6356_v52 = vrot.slane %v6354_v7, 4  ;;  %v6414_v32 = vshrl.u32 %v6246_v20, 16  ;;  %v6249_v51 = vsel %vm15980_vm15, %v6202_v54, 0  ;;  %v6386_v59 = vor.u32 %v6385_v35, %v6382_v25 }
 0x3f3   : > { %12544 = vmatprep.mubr.bf16.mxu1 %v6276_v13  ;;  %v6199_v13 = vld [vmem:[#allocation2 + $0x78] sm:$0x1f]  ;;  %v6434_v16 = vshll.u32 %v6248_v11, 16  ;;  %v6252_v45 = vsel %vm15980_vm15, %v15854_v24, 0  ;;  %v6254_v25 = vsel %vm15980_vm15, %v15883_v6, 0  ;;  %v6256_v6 = vsel %vm15980_vm15, %v15879_v40, 0 }
 0x3f4   : > { %v6243_v37 = vsel %vm15980_vm15, %v6199_v13, 0  ;;  %v6360_v56 = vor.u32 %v6359_v18, %v6356_v52  ;;  %v6442_v52 = vshll.u32 %v6249_v51, 16  ;;  %v6203_v18 = vld [vmem:[#allocation2 + $0xb8] sm:$0x1f]  ;;  %v6416_v14 = vrot.slane %v6414_v32, 4 }
 0x3f5   : > { %v6388_v33 = vshrl.u32 %v6243_v37, 16  ;;  %v6391_v28 = vshll.u32 %v6243_v37, 16  ;;  %v13603_v37 = vld [vmem:[#allocation8 + $0xf8] sm:$0xff]   ;;  %v6468_v36 = vshll.u32 %v6252_v45, 16  ;;  %v6482_v32 = vshrl.u32 %v6254_v25, 16 }
 0x3f6   : > { %v6444_v26 = vrot.slane %v6442_v52, 5  ;;  %v6207_v40 = vld [vmem:[#allocation2 + $0xf8] sm:$0x1f]  ;;  %v6805_v52 = vld [vmem:[#allocation2 + $0x10] sm:$0xf8] }
 0x3f7   : > { %v6390_v38 = vrot.slane %v6388_v33, 4  ;;  %v6393_v21 = vrot.slane %v6391_v28, 5 }
 0x3f9   : > { %v6394_v1 = vor.u32 %v6393_v21, %v6390_v38 }
 0x3fa   : > { %12545 = vmatmul.mubr.bf16.vlgmr.msra.gmra.mrb[0].mxu1 %v6293_v5  ;;  %v6405_v5 = vshrl.u32 %v6245_v39, 16  ;;  %v6251_v39 = vsel %vm15980_vm15, %v6203_v18, 0  ;;  %v6484_v18 = vrot.slane %v6482_v32, 4 }
 0x3fb   : > { %12548 = vmatprep.mubr.bf16.mxu1 %v6310_v41  ;;  %12577 = vmatpush3.bf16.msra.mxu1 %v15970_v63  ;;  %v6351_v63 = vrot.slane %v6349_v58, 5  ;;  %v13601_v41 = vld [vmem:[#allocation8 + $0xe8] sm:$0xff]   ;;  %v6402_v58 = vrot.slane %v6400_v57, 5  ;;  %v6395_v48 = vsel %vm346_vm0, %v6386_v59, %v6394_v1  ;;  %v6459_v42 = vshll.u32 %v6251_v39, 16  ;;  %v16073_v57 = vld [vmem:[#allocation8 + $0x100] sm:$0xff]  }
 0x3fc   : > { %12578 = vmatprep.subr.bf16.mxu1 %v13597_v12  ;;  %v6407_v7 = vrot.slane %v6405_v5, 4  ;;  %v6465_v5 = vshrl.u32 %v6252_v45, 16 }
 0x3fd   : > { %v6352_v49 = vor.u32 %v6351_v63, %v6348_v9  ;;  %v6403_v8 = vor.u32 %v6402_v58, %v6399_v15  ;;  %v6431_v9 = vshrl.u32 %v6248_v11, 16  ;;  %v6439_v63 = vshrl.u32 %v6249_v51, 16  ;;  %v6206_v15 = vld [vmem:[#allocation2 + $0xe8] sm:$0x1f] }
 0x3fe   : > { %v6411_v13 = vor.u32 %v6410_v55, %v6407_v7  ;;  %v6467_v58 = vrot.slane %v6465_v5, 4  ;;  %v6470_v7 = vrot.slane %v6468_v36, 5  ;;  %v6257_v51 = vsel %vm15980_vm15, %v6206_v15, 0 }
 0x3ff   : > { %12579 = vmatpush3.bf16.msra.mxu1 %v13597_v12  ;;  %v6201_v12 = vld [vmem:[#allocation2 + $0x98] sm:$0x1f]  ;;  %v6361_v60 = vsel %vm346_vm0, %v6352_v49, %v6360_v56  ;;  %v6433_v53 = vrot.slane %v6431_v9, 4  ;;  %v6436_v49 = vrot.slane %v6434_v16, 5  ;;  %v6441_v56 = vrot.slane %v6439_v63, 4 }
 0x400   : > { %12580 = vmatprep.subr.bf16.mxu1 %v13598_v3  ;;  %v6247_v30 = vsel %vm15980_vm15, %v6201_v12, 0  ;;  %v6412_v10 = vsel %vm346_vm0, %v6403_v8, %v6411_v13  ;;  %v6471_v1 = vor.u32 %v6470_v7, %v6467_v58  ;;  %v6499_v13 = vshrl.u32 %v6256_v6, 16 }
 0x401   : > { %v6422_v22 = vshrl.u32 %v6247_v30, 16  ;;  %v6425_v0 = vshll.u32 %v6247_v30, 16  ;;  %v6461_v30 = vrot.slane %v6459_v42, 5  ;;  %v6502_v9 = vshll.u32 %v6256_v6, 16 }
 0x402   : > { %12549 = vmatmul.mubr.bf16.gmra.mrb[4].mxu1 %v6327_v61  ;;  %v6204_v61 = vld [vmem:[#allocation2 + $0xc8] sm:$0x1f]  ;;  %v6507_v16 = vshrl.u32 %v6257_v51, 16  ;;  %v6510_v63 = vshll.u32 %v6257_v51, 16 }
 0x403   : > { %12552 = vmatprep.mubr.bf16.mxu1 %v6344_v44  ;;  %12581 = vmatpush3.bf16.msra.mxu1 %v13598_v3  ;;  %v6417_v3 = vshll.u32 %v6246_v20, 16  ;;  %v6424_v47 = vrot.slane %v6422_v22, 4  ;;  %v6250_v44 = vsel %vm15980_vm15, %v15863_v34, 0  ;;  %v6253_v34 = vsel %vm15980_vm15, %v6204_v61, 0 }
 0x404   : > { %12582 = vmatprep.subr.bf16.mxu1 %v13599_v43  ;;  %v6448_v33 = vshrl.u32 %v6250_v44, 16  ;;  %v6451_v28 = vshll.u32 %v6250_v44, 16  ;;  %v6473_v12 = vshrl.u32 %v6253_v34, 16  ;;  %v6476_v29 = vshll.u32 %v6253_v34, 16 }
 0x405   : > { %v6419_v50 = vrot.slane %v6417_v3, 5  ;;  %v6437_v20 = vor.u32 %v6436_v49, %v6433_v53  ;;  %v6485_v3 = vshll.u32 %v6254_v25, 16  ;;  %v6258_v61 = vsel %vm15980_vm15, %v15903_v62, 0 }
 0x406   : > { %v6450_v35 = vrot.slane %v6448_v33, 4  ;;  %v6453_v38 = vrot.slane %v6451_v28, 5  ;;  %v6475_v55 = vrot.slane %v6473_v12, 4  ;;  %v6478_v11 = vrot.slane %v6476_v29, 5  ;;  %v6807_v28 = vld [vmem:[#allocation2 + $0x20] sm:$0xf8] }
 0x407   : > { %12583 = vmatpush3.bf16.msra.mxu1 %v13599_v43  ;;  %v6427_v43 = vrot.slane %v6425_v0, 5  ;;  %v6420_v4 = vor.u32 %v6419_v50, %v6416_v14  ;;  %v6487_v14 = vrot.slane %v6485_v3, 5  ;;  %v6509_v53 = vrot.slane %v6507_v16, 4  ;;  %v16102_v12 = vld [vmem:[#allocation2 + $0x28] sm:$0xf] }
 0x408   : > { %12584 = vmatprep.subr.bf16.mxu1 %v13600_v2  ;;  %v6454_v59 = vor.u32 %v6453_v38, %v6450_v35  ;;  %v6479_v8 = vor.u32 %v6478_v11, %v6475_v55  ;;  %v6837_v49 = vsel %vm15856_vm13, %v6805_v52, 0  ;;  %v6516_v34 = vshrl.u32 %v6258_v61, 16  ;;  %v6813_v52 = vld [vmem:[#allocation2 + $0x50] sm:$0xf8] }
 0x409   : > { %v6428_v24 = vor.u32 %v6427_v43, %v6424_v47  ;;  %v16088_v43 = vld [vmem:[#allocation2 + $0x18] sm:$0xf]  ;;  %v6488_v62 = vor.u32 %v6487_v14, %v6484_v18  ;;  %v6873_v42 = vshll.u32 %v6837_v49, 16  ;;  %v6839_v25 = vsel %vm15856_vm13, %v6807_v28, 0 }
 0x40a   : > { %12553 = vmatmul.mubr.bf16.gmra.mrb[8].mxu1 %v6361_v60  ;;  %v6445_v60 = vor.u32 %v6444_v26, %v6441_v56  ;;  %v6480_v45 = vsel %vm346_vm0, %v6471_v1, %v6479_v8  ;;  %v6838_v56 = vsel %vm15856_vm13, %v16088_v43, 0  ;;  %v6887_v6 = vshrl.u32 %v6839_v25, 16 }
 0x40b   : > { %12556 = vmatprep.mubr.bf16.mxu1 %v6378_v23  ;;  %12585 = vmatpush3.bf16.msra.mxu1 %v13600_v2  ;;  %v6456_v2 = vshrl.u32 %v6251_v39, 16  ;;  %v6429_v54 = vsel %vm346_vm0, %v6420_v4, %v6428_v24  ;;  %v6512_v39 = vrot.slane %v6510_v63, 5  ;;  %v6519_v4 = vshll.u32 %v6258_v61, 16  ;;  %v16120_v61 = vld [vmem:[#allocation2 + $0x58] sm:$0xf] }
 0x40c   : > { %12586 = vmatprep.subr.bf16.mxu1 %v13601_v41  ;;  %v6446_v23 = vsel %vm346_vm0, %v6437_v20, %v6445_v60  ;;  %v6878_v5 = vshrl.u32 %v6838_v56, 16  ;;  %v6881_v36 = vshll.u32 %v6838_v56, 16  ;;  %v6518_v60 = vrot.slane %v6516_v34, 4 }
 0x40d   : > { %v6458_v21 = vrot.slane %v6456_v2, 4  ;;  %v6870_v2 = vshrl.u32 %v6837_v49, 16  ;;  %v6521_v35 = vrot.slane %v6519_v4, 5  ;;  %v6875_v58 = vrot.slane %v6873_v42, 4 }
 0x40e   : > { %v6880_v7 = vrot.slane %v6878_v5, 3  ;;  %v6883_v55 = vrot.slane %v6881_v36, 4  ;;  %v6890_v32 = vshll.u32 %v6839_v25, 16  ;;  %v6889_v18 = vrot.slane %v6887_v6, 3 }
 0x40f   : > { %12587 = vmatpush3.bf16.msra.mxu1 %v13601_v41  ;;  %v6255_v41 = vsel %vm15980_vm15, %v6205_v27, 0  ;;  %v6513_v27 = vor.u32 %v6512_v39, %v6509_v53  ;;  %v6872_v15 = vrot.slane %v6870_v2, 3  ;;  %v6522_v51 = vor.u32 %v6521_v35, %v6518_v60  ;;  %v6815_v2 = vld [vmem:[#allocation2 + $0x60] sm:$0xf8] }
 0x410   : > { %12588 = vmatprep.subr.bf16.mxu1 %v13602_v31  ;;  %v6490_v22 = vshrl.u32 %v6255_v41, 16  ;;  %v6493_v0 = vshll.u32 %v6255_v41, 16  ;;  %v16110_v41 = vld [vmem:[#allocation2 + $0x38] sm:$0xf]  ;;  %v6884_v1 = vor.u32 %v6883_v55, %v6880_v7  ;;  %v6892_v14 = vrot.slane %v6890_v32, 4 }
 0x411   : > { %v6845_v56 = vsel %vm15856_vm13, %v6813_v52, 0  ;;  %v6847_v35 = vsel %vm15856_vm13, %v6815_v2, 0  ;;  %v13605_v7 = vld [vmem:[#allocation8 + $0x108] sm:$0xff]  }
 0x412   : > { %12557 = vmatmul.mubr.bf16.gmra.mrb[12].mxu1 %v6395_v48  ;;  %v6492_v50 = vrot.slane %v6490_v22, 4  ;;  %v6495_v47 = vrot.slane %v6493_v0, 5  ;;  %v6504_v48 = vrot.slane %v6502_v9, 5  ;;  %v6842_v0 = vsel %vm15856_vm13, %v16110_v41, 0  ;;  %v6811_v9 = vld [vmem:[#allocation2 + $0x40] sm:$0xf8] }
 0x413   : > { %12560 = vmatprep.mubr.bf16.mxu1 %v6412_v10  ;;  %12589 = vmatpush3.bf16.msra.mxu1 %v13602_v31  ;;  %v6462_v31 = vor.u32 %v6461_v30, %v6458_v21  ;;  %v6259_v10 = vsel %vm15980_vm15, %v6207_v40, 0  ;;  %v6840_v30 = vsel %vm15856_vm13, %v16102_v12, 0  ;;  %v6912_v16 = vshrl.u32 %v6842_v0, 16  ;;  %v16118_v40 = vld [vmem:[#allocation2 + $0x48] sm:$0xf] }
 0x414   : > { %12590 = vmatprep.subr.bf16.mxu1 %v13603_v37  ;;  %v6496_v26 = vor.u32 %v6495_v47, %v6492_v50  ;;  %v6524_v24 = vshrl.u32 %v6259_v10, 16  ;;  %v6527_v33 = vshll.u32 %v6259_v10, 16  ;;  %v6895_v3 = vshrl.u32 %v6840_v30, 16 }
 0x415   : > { %v6463_v44 = vsel %vm346_vm0, %v6454_v59, %v6462_v31  ;;  %v6898_v22 = vshll.u32 %v6840_v30, 16  ;;  %v6876_v31 = vor.u32 %v6875_v58, %v6872_v15  ;;  %v6915_v63 = vshll.u32 %v6842_v0, 16 }
 0x416   : > { %v6497_v20 = vsel %vm346_vm0, %v6488_v62, %v6496_v26  ;;  %v6526_v38 = vrot.slane %v6524_v24, 4  ;;  %v6529_v21 = vrot.slane %v6527_v33, 5  ;;  %v6897_v50 = vrot.slane %v6895_v3, 3 }
 0x417   : > { %12591 = vmatpush3.bf16.msra.mxu1 %v13603_v37  ;;  %v6501_v37 = vrot.slane %v6499_v13, 4  ;;  %v6900_v47 = vrot.slane %v6898_v22, 4  ;;  %v6844_v53 = vsel %vm15856_vm13, %v16118_v40, 0  ;;  %v6914_v39 = vrot.slane %v6912_v16, 3 }
 0x418   : > { %12624 = vmatprep.subr.bf16.mxu1 %v16073_v57  ;;  %v6530_v59 = vor.u32 %v6529_v21, %v6526_v38  ;;  %v6917_v49 = vrot.slane %v6915_v63, 4  ;;  %v6846_v62 = vsel %vm15856_vm13, %v16120_v61, 0  ;;  %v6893_v26 = vor.u32 %v6892_v14, %v6889_v18  ;;  %v6817_v38 = vld [vmem:[#allocation2 + $0x70] sm:$0xf8]  ;;  %v16139_v21 = vld [vmem:[#allocation2 + $0x78] sm:$0xf] }
 0x419   : > { %v6505_v29 = vor.u32 %v6504_v48, %v6501_v37  ;;  %v6885_v37 = vsel %vm5340_vm14, %v6876_v31, %v6884_v1  ;;  %v6901_v34 = vor.u32 %v6900_v47, %v6897_v50  ;;  %v6929_v33 = vshrl.u32 %v6844_v53, 16  ;;  %v6819_v14 = vld [vmem:[#allocation2 + $0x80] sm:$0xf8] }
 0x41a   : > { %12561 = vmatmul.mubr.bf16.gmra.mrb[16].mxu1 %v6429_v54  ;;  %v6809_v54 = vld [vmem:[#allocation2 + $0x30] sm:$0xf8]  ;;  %v6932_v28 = vshll.u32 %v6844_v53, 16  ;;  %v6938_v42 = vshrl.u32 %v6845_v56, 16  ;;  %v6941_v5 = vshll.u32 %v6845_v56, 16  ;;  %v6946_v36 = vshrl.u32 %v6846_v62, 16 }
 0x41b   : > { %12564 = vmatprep.mubr.bf16.mxu1 %v6446_v23  ;;  %v6514_v11 = vsel %vm346_vm0, %v6505_v29, %v6513_v27  ;;  %v6841_v23 = vsel %vm15856_vm13, %v6809_v54, 0  ;;  %v6949_v29 = vshll.u32 %v6846_v62, 16  ;;  %v16134_v27 = vld [vmem:[#allocation2 + $0x68] sm:$0xf]  ;;  %v6918_v60 = vor.u32 %v6917_v49, %v6914_v39  ;;  %v16153_v53 = vld [vmem:[#allocation2 + $0x98] sm:$0xf] }
 0x41c   : > { %v6904_v8 = vshrl.u32 %v6841_v23, 16  ;;  %v6907_v13 = vshll.u32 %v6841_v23, 16  ;;  %v6902_v25 = vsel %vm5340_vm14, %v6893_v26, %v6901_v34  ;;  %v6931_v15 = vrot.slane %v6929_v33, 3  ;;  %v13607_v56 = vld [vmem:[#allocation8 + $0x118] sm:$0xff]  }
 0x41d   : > { %v6934_v58 = vrot.slane %v6932_v28, 4  ;;  %v6848_v55 = vsel %vm15856_vm13, %v16134_v27, 0  ;;  %v6943_v6 = vrot.slane %v6941_v5, 4  ;;  %v6948_v23 = vrot.slane %v6946_v36, 3 }
 0x41e   : > { %v6906_v48 = vrot.slane %v6904_v8, 3  ;;  %v6909_v10 = vrot.slane %v6907_v13, 4  ;;  %v6951_v32 = vrot.slane %v6949_v29, 4  ;;  %v6955_v22 = vshrl.u32 %v6847_v35, 16 }
 0x41f   : > { %v6849_v0 = vsel %vm15856_vm13, %v6817_v38, 0  ;;  %v6966_v31 = vshll.u32 %v6848_v55, 16  ;;  %v6850_v1 = vsel %vm15856_vm13, %v16139_v21, 0  ;;  %v6935_v13 = vor.u32 %v6934_v58, %v6931_v15  ;;  %v16167_v58 = vld [vmem:[#allocation2 + $0xa8] sm:$0xf] }
 0x420   : > { %v6952_v63 = vor.u32 %v6951_v32, %v6948_v23  ;;  %v6972_v52 = vshrl.u32 %v6849_v0, 16  ;;  %v6975_v18 = vshll.u32 %v6849_v0, 16  ;;  %v6980_v50 = vshrl.u32 %v6850_v1, 16  ;;  %v6825_v32 = vld [vmem:[#allocation2 + $0xb0] sm:$0xf8] }
 0x421   : > { %v6983_v47 = vshll.u32 %v6850_v1, 16  ;;  %v6851_v49 = vsel %vm15856_vm13, %v6819_v14, 0  ;;  %v6854_v2 = vsel %vm15856_vm13, %v16153_v53, 0 }
 0x422   : > { %12565 = vmatmul.mubr.bf16.gmra.mrb[20].mxu1 %v6463_v44  ;;  %v6531_v44 = vsel %vm346_vm0, %v6522_v51, %v6530_v59  ;;  %v6958_v51 = vshll.u32 %v6847_v35, 16  ;;  %v6963_v59 = vshrl.u32 %v6848_v55, 16  ;;  %v6974_v26 = vrot.slane %v6972_v52, 3 }
 0x423   : > { %12568 = vmatprep.mubr.bf16.mxu1 %v6480_v45  ;;  %v6843_v45 = vsel %vm15856_vm13, %v6811_v9, 0  ;;  %v13606_v9 = vld [vmem:[#allocation8 + $0x110] sm:$0xff]   ;;  %v6977_v34 = vrot.slane %v6975_v18, 4  ;;  %v6985_v33 = vrot.slane %v6983_v47, 4  ;;  %v6989_v36 = vshrl.u32 %v6851_v49, 16 }
 0x424   : > { %v6921_v4 = vshrl.u32 %v6843_v45, 16  ;;  %v6924_v24 = vshll.u32 %v6843_v45, 16  ;;  %v6957_v45 = vrot.slane %v6955_v22, 3  ;;  %v6992_v29 = vshll.u32 %v6851_v49, 16  ;;  %v6827_v49 = vld [vmem:[#allocation2 + $0xc0] sm:$0xf8] }
 0x425   : > { %v7017_v15 = vshll.u32 %v6854_v2, 16  ;;  %v6857_v52 = vsel %vm15856_vm13, %v6825_v32, 0 }
 0x426   : > { %v6923_v54 = vrot.slane %v6921_v4, 3  ;;  %v6926_v30 = vrot.slane %v6924_v24, 4  ;;  %v6982_v24 = vrot.slane %v6980_v50, 3  ;;  %v6994_v22 = vrot.slane %v6992_v29, 4  ;;  %v13611_v29 = vld [vmem:[#allocation8 + $0x138] sm:$0xff]  }
 0x428   : > { %v6927_v8 = vor.u32 %v6926_v30, %v6923_v54  ;;  %v13608_v54 = vld [vmem:[#allocation8 + $0x120] sm:$0xff]   ;;  %v7014_v30 = vshrl.u32 %v6854_v2, 16  ;;  %v6986_v55 = vor.u32 %v6985_v33, %v6982_v24 }
 0x42a   : > { %12569 = vmatmul.mubr.bf16.gmra.mrb[24].mxu1 %v6497_v20  ;;  %v6910_v20 = vor.u32 %v6909_v10, %v6906_v48  ;;  %v6965_v48 = vrot.slane %v6963_v59, 3  ;;  %v6968_v10 = vrot.slane %v6966_v31, 4  ;;  %v6936_v39 = vsel %vm5340_vm14, %v6927_v8, %v6935_v13  ;;  %v13609_v31 = vld [vmem:[#allocation8 + $0x128] sm:$0xff]  }
 0x42b   : > { %12572 = vmatprep.mubr.bf16.mxu1 %v6514_v11  ;;  %v6940_v11 = vrot.slane %v6938_v42, 3  ;;  %v6856_v59 = vsel %vm15856_vm13, %v16167_v58, 0  ;;  %v7016_v13 = vrot.slane %v7014_v30, 3 }
 0x42c   : > { %v6919_v3 = vsel %vm5340_vm14, %v6910_v20, %v6918_v60  ;;  %v6969_v5 = vor.u32 %v6968_v10, %v6965_v48  ;;  %v7031_v14 = vshrl.u32 %v6856_v59, 16  ;;  %v7034_v50 = vshll.u32 %v6856_v59, 16 }
 0x42d   : > { %v6944_v16 = vor.u32 %v6943_v6, %v6940_v11  ;;  %v6991_v6 = vrot.slane %v6989_v36, 3  ;;  %v6859_v36 = vsel %vm15856_vm13, %v6827_v49, 0 }
 0x42e   : > { %v7036_v2 = vrot.slane %v7034_v50, 4 }
 0x42f   : > { %v6953_v62 = vsel %vm5340_vm14, %v6944_v16, %v6952_v63 }
 0x432   : > { %12573 = vmatmul.mubr.bf16.gmra.mrb[28].mxu1 %v6531_v44  ;;  %v16151_v44 = vld [vmem:[#allocation2 + $0x88] sm:$0xf] }
 0x433   : > { %12592 = vmatprep.mubr.bf16.mxu1 %v6885_v37  ;;  %v6960_v37 = vrot.slane %v6958_v51, 4  ;;  %v6852_v4 = vsel %vm15856_vm13, %v16151_v44, 0 }
 0x434   : > { %v6997_v20 = vshrl.u32 %v6852_v4, 16  ;;  %v7000_v60 = vshll.u32 %v6852_v4, 16  ;;  %v6829_v4 = vld [vmem:[#allocation2 + $0xd0] sm:$0xf8] }
 0x435   : > { %v6961_v42 = vor.u32 %v6960_v37, %v6957_v45  ;;  %v13610_v37 = vld [vmem:[#allocation8 + $0x130] sm:$0xff]  }
 0x436   : > { %v6999_v0 = vrot.slane %v6997_v20, 3  ;;  %v7002_v51 = vrot.slane %v7000_v60, 4 }
 0x437   : > { %v6970_v11 = vsel %vm5340_vm14, %v6961_v42, %v6969_v5  ;;  %v16185_v42 = vld [vmem:[#allocation2 + $0xd8] sm:$0xf] }
 0x438   : > { %v7003_v45 = vor.u32 %v7002_v51, %v6999_v0  ;;  %v16199_v0 = vld [vmem:[#allocation8 + $0x140] sm:$0xff]  }
 0x43a   : > { %12593 = vmatmul.mubr.bf16.vlgmr.msra.gmra.mrb[0].mxu1 %v6902_v25  ;;  %v6823_v25 = vld [vmem:[#allocation2 + $0xa0] sm:$0xf8] }
 0x43b   : > { %12596 = vmatprep.mubr.bf16.mxu1 %v6919_v3  ;;  %12625 = vmatpush3.bf16.msra.mxu1 %v16073_v57  ;;  %v6821_v57 = vld [vmem:[#allocation2 + $0x90] sm:$0xf8]  ;;  %v6855_v23 = vsel %vm15856_vm13, %v6823_v25, 0  ;;  %v16172_v3 = vld [vmem:[#allocation2 + $0xb8] sm:$0xf] }
 0x43c   : > { %12626 = vmatprep.subr.bf16.mxu1 %v13605_v7  ;;  %v6853_v28 = vsel %vm15856_vm13, %v6821_v57, 0  ;;  %v7023_v63 = vshrl.u32 %v6855_v23, 16  ;;  %v7026_v18 = vshll.u32 %v6855_v23, 16  ;;  %v6858_v47 = vsel %vm15856_vm13, %v16172_v3, 0 }
 0x43d   : > { %v7006_v35 = vshrl.u32 %v6853_v28, 16  ;;  %v7009_v38 = vshll.u32 %v6853_v28, 16  ;;  %v6995_v57 = vor.u32 %v6994_v22, %v6991_v6  ;;  %v7033_v28 = vrot.slane %v7031_v14, 3 }
 0x43e   : > { %v7025_v24 = vrot.slane %v7023_v63, 3  ;;  %v7028_v33 = vrot.slane %v7026_v18, 4  ;;  %v7060_v6 = vshll.u32 %v6859_v36, 16  ;;  %v6833_v18 = vld [vmem:[#allocation2 + $0xf0] sm:$0xf8] }
 0x43f   : > { %12627 = vmatpush3.bf16.msra.mxu1 %v13605_v7  ;;  %v6978_v7 = vor.u32 %v6977_v34, %v6974_v26  ;;  %v7008_v1 = vrot.slane %v7006_v35, 3  ;;  %v7011_v8 = vrot.slane %v7009_v38, 4  ;;  %v7048_v26 = vshrl.u32 %v6858_v47, 16 }
 0x440   : > { %12628 = vmatprep.subr.bf16.mxu1 %v13606_v9  ;;  %v7051_v34 = vshll.u32 %v6858_v47, 16  ;;  %v7004_v5 = vsel %vm5340_vm14, %v6995_v57, %v7003_v45  ;;  %v16206_v45 = vld [vmem:[#allocation2 + $0xf8] sm:$0xf] }
 0x441   : > { %v6987_v16 = vsel %vm5340_vm14, %v6978_v7, %v6986_v55  ;;  %v7012_v48 = vor.u32 %v7011_v8, %v7008_v1  ;;  %v7050_v38 = vrot.slane %v7048_v26, 3  ;;  %v7029_v7 = vor.u32 %v7028_v33, %v7025_v24  ;;  %v6831_v1 = vld [vmem:[#allocation2 + $0xe0] sm:$0xf8] }
 0x442   : > { %12597 = vmatmul.mubr.bf16.gmra.mrb[4].mxu1 %v6936_v39  ;;  %v7040_v39 = vshrl.u32 %v6857_v52, 16  ;;  %v7053_v30 = vrot.slane %v7051_v34, 4  ;;  %v7037_v55 = vor.u32 %v7036_v2, %v7033_v28  ;;  %v6863_v57 = vsel %vm15856_vm13, %v6831_v1, 0 }
 0x443   : > { %12600 = vmatprep.mubr.bf16.mxu1 %v6953_v62  ;;  %12629 = vmatpush3.bf16.msra.mxu1 %v13606_v9  ;;  %v7019_v9 = vrot.slane %v7017_v15, 4  ;;  %v7043_v62 = vshll.u32 %v6857_v52, 16  ;;  %v6862_v15 = vsel %vm15856_vm13, %v16185_v42, 0  ;;  %v7062_v52 = vrot.slane %v7060_v6, 4 }
 0x444   : > { %12630 = vmatprep.subr.bf16.mxu1 %v13607_v56  ;;  %v7042_v60 = vrot.slane %v7040_v39, 3  ;;  %v7082_v59 = vshrl.u32 %v6862_v15, 16  ;;  %v6866_v34 = vsel %vm15856_vm13, %v16206_v45, 0  ;;  %v7094_v24 = vshll.u32 %v6863_v57, 16 }
 0x445   : > { %v7020_v10 = vor.u32 %v7019_v9, %v7016_v13  ;;  %v7045_v35 = vrot.slane %v7043_v62, 4  ;;  %v7054_v13 = vor.u32 %v7053_v30, %v7050_v38  ;;  %v16201_v9 = vld [vmem:[#allocation2 + $0xe8] sm:$0xf]  ;;  %v6865_v62 = vsel %vm15856_vm13, %v6833_v18, 0 }
 0x446   : > { %v6864_v39 = vsel %vm15856_vm13, %v16201_v9, 0  ;;  %v7096_v30 = vrot.slane %v7094_v24, 4  ;;  %v16235_v24 = vld [vmem:[#allocation2 + $0x20] sm:$0xf0] }
 0x447   : > { %12631 = vmatpush3.bf16.msra.mxu1 %v13607_v56  ;;  %v16183_v56 = vld [vmem:[#allocation2 + $0xc8] sm:$0xf]  ;;  %v7021_v20 = vsel %vm5340_vm14, %v7012_v48, %v7020_v10  ;;  %v7046_v8 = vor.u32 %v7045_v35, %v7042_v60  ;;  %v7084_v48 = vrot.slane %v7082_v59, 3  ;;  %v7099_v33 = vshrl.u32 %v6864_v39, 16 }
 0x448   : > { %12632 = vmatprep.subr.bf16.mxu1 %v13608_v54  ;;  %v6860_v25 = vsel %vm15856_vm13, %v16183_v56, 0  ;;  %v7102_v28 = vshll.u32 %v6864_v39, 16  ;;  %v7116_v60 = vshrl.u32 %v6866_v34, 16  ;;  %v16218_v35 = vld [vmem:[#allocation2 + $0x108] sm:$0xf] }
 0x449   : > { %v7065_v23 = vshrl.u32 %v6860_v25, 16  ;;  %v7068_v32 = vshll.u32 %v6860_v25, 16  ;;  %v7055_v49 = vsel %vm5340_vm14, %v7046_v8, %v7054_v13  ;;  %v7119_v25 = vshll.u32 %v6866_v34, 16 }
 0x44a   : > { %12601 = vmatmul.mubr.bf16.gmra.mrb[8].mxu1 %v6970_v11  ;;  %v7057_v11 = vshrl.u32 %v6859_v36, 16  ;;  %v6868_v59 = vsel %vm15856_vm13, %v16218_v35, 0 }
 0x44b   : > { %12604 = vmatprep.mubr.bf16.mxu1 %v6987_v16  ;;  %12633 = vmatpush3.bf16.msra.mxu1 %v13608_v54  ;;  %v6861_v54 = vsel %vm15856_vm13, %v6829_v4, 0  ;;  %v7038_v16 = vsel %vm5340_vm14, %v7029_v7, %v7037_v55  ;;  %v7067_v14 = vrot.slane %v7065_v23, 3  ;;  %v7070_v50 = vrot.slane %v7068_v32, 4 }
 0x44c   : > { %12634 = vmatprep.subr.bf16.mxu1 %v13609_v31  ;;  %v7074_v22 = vshrl.u32 %v6861_v54, 16  ;;  %v7077_v51 = vshll.u32 %v6861_v54, 16  ;;  %v7059_v63 = vrot.slane %v7057_v11, 3  ;;  %v7091_v4 = vshrl.u32 %v6863_v57, 16  ;;  %v6835_v54 = vld [vmem:[#allocation2 + $0x100] sm:$0xf8] }
 0x44d   : > { %v7071_v2 = vor.u32 %v7070_v50, %v7067_v14  ;;  %v7104_v7 = vrot.slane %v7102_v28, 4  ;;  %v6867_v23 = vsel %vm15856_vm13, %v6835_v54, 0  ;;  %v7465_v28 = vrot.slane %v16235_v24, 4  ;;  %v13614_v54 = vld [vmem:[#allocation8 + $0x150] sm:$0xff]  }
 0x44e   : > { %v7076_v47 = vrot.slane %v7074_v22, 3  ;;  %v7063_v26 = vor.u32 %v7062_v52, %v7059_v63  ;;  %v7093_v38 = vrot.slane %v7091_v4, 3  ;;  %v7118_v22 = vrot.slane %v7116_v60, 3  ;;  %v16245_v60 = vld [vmem:[#allocation2 + $0x40] sm:$0xf0] }
 0x44f   : > { %12635 = vmatpush3.bf16.msra.mxu1 %v13609_v31  ;;  %v7085_v31 = vshll.u32 %v6862_v15, 16  ;;  %v7101_v15 = vrot.slane %v7099_v33, 3  ;;  %v7125_v8 = vshrl.u32 %v6867_v23, 16  ;;  %v7128_v13 = vshll.u32 %v6867_v23, 16  ;;  %v16237_v33 = vld [vmem:[#allocation2 + $0x30] sm:$0xf0] }
 0x450   : > { %12636 = vmatprep.subr.bf16.mxu1 %v13610_v37  ;;  %v7072_v55 = vsel %vm5340_vm14, %v7063_v26, %v7071_v2  ;;  %v7136_v63 = vshll.u32 %v6868_v59, 16  ;;  %v7463_v26 = vrot.slane %v16088_v43, 4  ;;  %v7466_v2 = vrot.slane %v16102_v12, 4 }
 0x451   : > { %v7087_v10 = vrot.slane %v7085_v31, 4  ;;  %v7097_v31 = vor.u32 %v7096_v30, %v7093_v38  ;;  %v7105_v1 = vor.u32 %v7104_v7, %v7101_v15  ;;  %v7127_v50 = vrot.slane %v7125_v8, 3  ;;  %v13615_v15 = vld [vmem:[#allocation8 + $0x158] sm:$0xff]  }
 0x452   : > { %12605 = vmatmul.mubr.bf16.gmra.mrb[12].mxu1 %v7004_v5  ;;  %v7467_v43 = vsel %vm5693_vm10, %v7465_v28, %v7466_v2  ;;  %v7471_v12 = vrot.slane %v16245_v60, 4  ;;  %v7472_v38 = vrot.slane %v16118_v40, 4  ;;  %v7475_v30 = vrot.slane %v16120_v61, 4  ;;  %v13616_v40 = vld [vmem:[#allocation8 + $0x160] sm:$0xff]   ;;  %v16298_v2 = vld [vmem:[#allocation2 + $0xe0] sm:$0xf0] }
 0x453   : > { %12608 = vmatprep.mubr.bf16.mxu1 %v7021_v20  ;;  %12637 = vmatpush3.bf16.msra.mxu1 %v13610_v37  ;;  %v7079_v37 = vrot.slane %v7077_v51, 4  ;;  %v7088_v36 = vor.u32 %v7087_v10, %v7084_v48  ;;  %v7111_v20 = vshll.u32 %v6865_v62, 16  ;;  %v7121_v51 = vrot.slane %v7119_v25, 4  ;;  %v16229_v10 = vld [vmem:[#allocation2 + $0x10] sm:$0xf0] }
 0x454   : > { %12638 = vmatprep.subr.bf16.mxu1 %v13611_v29  ;;  %v7106_v14 = vsel %vm5340_vm14, %v7097_v31, %v7105_v1  ;;  %v16248_v25 = vld [vmem:[#allocation2 + $0x50] sm:$0xf0]  ;;  %v7473_v7 = vsel %vm5693_vm10, %v7471_v12, %v7472_v38  ;;  %v7478_v61 = vrot.slane %v16134_v27, 4  ;;  %v16266_v31 = vld [vmem:[#allocation2 + $0x80] sm:$0xf0] }
 0x455   : > { %v7080_v5 = vor.u32 %v7079_v37, %v7076_v47  ;;  %v7113_v32 = vrot.slane %v7111_v20, 4  ;;  %v7122_v18 = vor.u32 %v7121_v51, %v7118_v22  ;;  %v7130_v47 = vrot.slane %v7128_v13, 4  ;;  %v13617_v22 = vld [vmem:[#allocation8 + $0x168] sm:$0xff]   ;;  %v16268_v1 = vld [vmem:[#allocation2 + $0x90] sm:$0xf0]  ;;  %v13618_v27 = vld [vmem:[#allocation8 + $0x170] sm:$0xff]  }
 0x456   : > { %v7138_v37 = vrot.slane %v7136_v63, 4  ;;  %v7483_v8 = vrot.slane %v16266_v31, 4  ;;  %v7486_v13 = vrot.slane %v16268_v1, 4  ;;  %v13619_v63 = vld [vmem:[#allocation8 + $0x178] sm:$0xff]  }
 0x457   : > { %12639 = vmatpush3.bf16.msra.mxu1 %v13611_v29  ;;  %v7108_v29 = vshrl.u32 %v6865_v62, 16  ;;  %v7089_v11 = vsel %vm5340_vm14, %v7080_v5, %v7088_v36  ;;  %v7131_v39 = vor.u32 %v7130_v47, %v7127_v50  ;;  %v7462_v62 = vrot.slane %v16229_v10, 4  ;;  %v16278_v50 = vld [vmem:[#allocation2 + $0xb0] sm:$0xf0] }
 0x458   : > { %12672 = vmatprep.subr.bf16.mxu1 %v16199_v0  ;;  %v7468_v5 = vrot.slane %v16237_v33, 4  ;;  %v7469_v36 = vrot.slane %v16110_v41, 4  ;;  %v7474_v41 = vrot.slane %v16248_v25, 4 }
 0x459   : > { %v7110_v6 = vrot.slane %v7108_v29, 3  ;;  %v7464_v4 = vsel %vm5693_vm10, %v7462_v62, %v7463_v26  ;;  %v13613_v29 = vld [vmem:[#allocation8 + $0x148] sm:$0xff]   ;;  %v16291_v62 = vld [vmem:[#allocation2 + $0xd0] sm:$0xf0] }
 0x45a   : > { %12609 = vmatmul.mubr.bf16.gmra.mrb[16].mxu1 %v7038_v16  ;;  %v7133_v16 = vshrl.u32 %v6868_v59, 16  ;;  %v7470_v20 = vsel %vm5693_vm10, %v7468_v5, %v7469_v36  ;;  %v7799_v5 = vsel %vm15980_vm15, %v16229_v10, 0 }
 0x45b   : > { %12612 = vmatprep.mubr.bf16.mxu1 %v7055_v49  ;;  %v7114_v52 = vor.u32 %v7113_v32, %v7110_v6  ;;  %v7481_v32 = vrot.slane %v16139_v21, 4  ;;  %v7484_v21 = vrot.slane %v16151_v44, 4  ;;  %v16280_v44 = vld [vmem:[#allocation8 + $0x180] sm:$0xff]  }
 0x45c   : > { %v7135_v57 = vrot.slane %v7133_v16, 3  ;;  %v7487_v16 = vrot.slane %v16153_v53, 4  ;;  %v7490_v53 = vrot.slane %v16167_v58, 4  ;;  %v7496_v58 = vrot.slane %v16183_v56, 4  ;;  %v16306_v56 = vld [vmem:[#allocation2 + $0xf0] sm:$0xf0] }
 0x45d   : > { %v7123_v48 = vsel %vm5340_vm14, %v7114_v52, %v7122_v18  ;;  %v7485_v52 = vsel %vm5693_vm10, %v7483_v8, %v7484_v21  ;;  %v7504_v10 = vrot.slane %v16306_v56, 4 }
 0x45e   : > { %v7139_v49 = vor.u32 %v7138_v37, %v7135_v57  ;;  %v7488_v18 = vsel %vm5693_vm10, %v7486_v13, %v7487_v16  ;;  %v7492_v57 = vrot.slane %v16278_v50, 4  ;;  %v7493_v37 = vrot.slane %v16172_v3, 4 }
 0x45f   : > { %v7499_v3 = vrot.slane %v16185_v42, 4  ;;  %v7501_v42 = vrot.slane %v16298_v2, 4  ;;  %v7508_v13 = vrot.slane %v16218_v35, 4  ;;  %v7807_v35 = vsel %vm15980_vm15, %v16248_v25, 0 }
 0x460   : > { %v7140_v34 = vsel %vm5340_vm14, %v7131_v39, %v7139_v49  ;;  %v7494_v39 = vsel %vm5693_vm10, %v7492_v57, %v7493_v37  ;;  %v16289_v49 = vld [vmem:[#allocation2 + $0xc0] sm:$0xf0] }
 0x461   : > { %v7495_v26 = vrot.slane %v16289_v49, 4 }
 0x462   : > { %12613 = vmatmul.mubr.bf16.gmra.mrb[20].mxu1 %v7072_v55  ;;  %v16256_v55 = vld [vmem:[#allocation2 + $0x60] sm:$0xf0] }
 0x463   : > { %12616 = vmatprep.mubr.bf16.mxu1 %v7089_v11  ;;  %v16258_v11 = vld [vmem:[#allocation2 + $0x70] sm:$0xf0]  ;;  %v7477_v6 = vrot.slane %v16256_v55, 4  ;;  %v7497_v28 = vsel %vm5693_vm10, %v7495_v26, %v7496_v58  ;;  %v7787_v26 = vld [vmem:[#allocation2 + $0x58] sm:$0x1f]  ;;  %v7805_v58 = vsel %vm15980_vm15, %v16245_v60, 0 }
 0x464   : > { %v7480_v23 = vrot.slane %v16258_v11, 4  ;;  %v7886_v25 = vshll.u32 %v7805_v58, 16 }
 0x465   : > { %v7479_v51 = vsel %vm5693_vm10, %v7477_v6, %v7478_v61 }
 0x466   : > { %v7482_v59 = vsel %vm5693_vm10, %v7480_v23, %v7481_v32 }
 0x46a   : > { %12617 = vmatmul.mubr.bf16.gmra.mrb[24].mxu1 %v7106_v14  ;;  %v16276_v14 = vld [vmem:[#allocation2 + $0xa0] sm:$0xf0] }
 0x46b   : > { %12620 = vmatprep.mubr.bf16.mxu1 %v7123_v48  ;;  %v7489_v47 = vrot.slane %v16276_v14, 4 }
 0x46d   : > { %v7491_v48 = vsel %vm5693_vm10, %v7489_v47, %v7490_v53  ;;  %v7786_v53 = vld [vmem:[#allocation2 + $0x48] sm:$0x1f] }
 0x472   : > { %12621 = vmatmul.mubr.bf16.gmra.mrb[28].mxu1 %v7140_v34  ;;  %v7498_v34 = vrot.slane %v16291_v62, 4 }
 0x473   : > { %12640 = vmatprep.mubr.bf16.mxu1 %v7464_v4  ;;  %v7783_v4 = vld [vmem:[#allocation2 + $0x18] sm:$0x1f] }
 0x474   : > { %v7500_v36 = vsel %vm5693_vm10, %v7498_v34, %v7499_v3 }
 0x47a   : > { %12641 = vmatmul.mubr.bf16.vlgmr.msra.gmra.mrb[0].mxu1 %v7467_v43  ;;  %v7502_v43 = vrot.slane %v16201_v9, 4  ;;  %v16318_v9 = vld [vmem:[#allocation2 + $0x100] sm:$0xf0] }
 0x47b   : > { %12644 = vmatprep.mubr.bf16.mxu1 %v7470_v20  ;;  %12673 = vmatpush3.bf16.msra.mxu1 %v16199_v0  ;;  %v7476_v0 = vsel %vm5693_vm10, %v7474_v41, %v7475_v30  ;;  %v7832_v20 = vshrl.u32 %v7799_v5, 16  ;;  %v7784_v41 = vld [vmem:[#allocation2 + $0x28] sm:$0x1f]  ;;  %v7505_v30 = vrot.slane %v16206_v45, 4  ;;  %v7803_v45 = vsel %vm15980_vm15, %v16237_v33, 0 }
 0x47c   : > { %12674 = vmatprep.subr.bf16.mxu1 %v13613_v29  ;;  %v7507_v21 = vrot.slane %v16318_v9, 4 }
 0x47d   : > { %v7834_v6 = vrot.slane %v7832_v20, 4  ;;  %v7883_v20 = vshrl.u32 %v7805_v58, 16 }
 0x47e   : > { %v7509_v34 = vsel %vm5693_vm10, %v7507_v21, %v7508_v13  ;;  %v7811_v13 = vsel %vm15980_vm15, %v16258_v11, 0 }
 0x47f   : > { %12675 = vmatpush3.bf16.msra.mxu1 %v13613_v29  ;;  %v7800_v29 = vsel %vm15980_vm15, %v7783_v4, 0  ;;  %v7934_v11 = vshrl.u32 %v7811_v13, 16 }
 0x480   : > { %12676 = vmatprep.subr.bf16.mxu1 %v13614_v54  ;;  %v7840_v12 = vshrl.u32 %v7800_v29, 16  ;;  %v7843_v38 = vshll.u32 %v7800_v29, 16 }
 0x482   : > { %12645 = vmatmul.mubr.bf16.gmra.mrb[4].mxu1 %v7473_v7  ;;  %v7503_v7 = vsel %vm5693_vm10, %v7501_v42, %v7502_v43  ;;  %v7842_v23 = vrot.slane %v7840_v12, 4  ;;  %v7845_v32 = vrot.slane %v7843_v38, 5  ;;  %v7808_v42 = vsel %vm15980_vm15, %v7787_v26, 0 }
 0x483   : > { %12648 = vmatprep.mubr.bf16.mxu1 %v7476_v0  ;;  %12677 = vmatpush3.bf16.msra.mxu1 %v13614_v54  ;;  %v7835_v54 = vshll.u32 %v7799_v5, 16  ;;  %v7802_v0 = vsel %vm15980_vm15, %v7784_v41, 0  ;;  %v7900_v38 = vshrl.u32 %v7807_v35, 16  ;;  %v7903_v41 = vshll.u32 %v7807_v35, 16  ;;  %v7790_v35 = vld [vmem:[#allocation2 + $0x88] sm:$0x1f] }
 0x484   : > { %12678 = vmatprep.subr.bf16.mxu1 %v13615_v15 }
 0x485   : > { %v7837_v61 = vrot.slane %v7835_v54, 5 }
 0x487   : > { %12679 = vmatpush3.bf16.msra.mxu1 %v13615_v15  ;;  %v7801_v15 = vsel %vm15980_vm15, %v16235_v24, 0  ;;  %v7838_v16 = vor.u32 %v7837_v61, %v7834_v6  ;;  %v7885_v61 = vrot.slane %v7883_v20, 4  ;;  %v7814_v20 = vsel %vm15980_vm15, %v7790_v35, 0 }
 0x488   : > { %12680 = vmatprep.subr.bf16.mxu1 %v13616_v40  ;;  %v7849_v24 = vshrl.u32 %v7801_v15, 16 }
 0x48a   : > { %12649 = vmatmul.mubr.bf16.gmra.mrb[8].mxu1 %v7479_v51  ;;  %v7852_v51 = vshll.u32 %v7801_v15, 16  ;;  %v7851_v57 = vrot.slane %v7849_v24, 4  ;;  %v7788_v15 = vld [vmem:[#allocation2 + $0x68] sm:$0x1f]  ;;  %v13621_v24 = vld [vmem:[#allocation8 + $0x188] sm:$0xff]  }
 0x48b   : > { %12652 = vmatprep.mubr.bf16.mxu1 %v7482_v59  ;;  %12681 = vmatpush3.bf16.msra.mxu1 %v13616_v40  ;;  %v7785_v40 = vld [vmem:[#allocation2 + $0x38] sm:$0x1f]  ;;  %v7857_v59 = vshrl.u32 %v7802_v0, 16 }
 0x48c   : > { %12682 = vmatprep.subr.bf16.mxu1 %v13617_v22  ;;  %v7804_v8 = vsel %vm15980_vm15, %v7785_v40, 0  ;;  %v7854_v37 = vrot.slane %v7852_v51, 5  ;;  %v7809_v40 = vsel %vm15980_vm15, %v16256_v55, 0  ;;  %v7810_v51 = vsel %vm15980_vm15, %v7788_v15, 0 }
 0x48d   : > { %v7874_v33 = vshrl.u32 %v7804_v8, 16  ;;  %v7877_v47 = vshll.u32 %v7804_v8, 16  ;;  %v7962_v15 = vshll.u32 %v7814_v20, 16 }
 0x48e   : > { %v7855_v60 = vor.u32 %v7854_v37, %v7851_v57 }
 0x48f   : > { %12683 = vmatpush3.bf16.msra.mxu1 %v13617_v22  ;;  %v7506_v22 = vsel %vm5693_vm10, %v7504_v10, %v7505_v30  ;;  %v7879_v29 = vrot.slane %v7877_v47, 5  ;;  %v7908_v10 = vshrl.u32 %v7808_v42, 16  ;;  %v7911_v30 = vshll.u32 %v7808_v42, 16 }
 0x490   : > { %12684 = vmatprep.subr.bf16.mxu1 %v13618_v27 }
 0x491   : > { %v7910_v8 = vrot.slane %v7908_v10, 4  ;;  %v7913_v21 = vrot.slane %v7911_v30, 5  ;;  %v7959_v30 = vshrl.u32 %v7814_v20, 16  ;;  %v13627_v20 = vld [vmem:[#allocation8 + $0x1b8] sm:$0xff]  }
 0x492   : > { %12653 = vmatmul.mubr.bf16.gmra.mrb[12].mxu1 %v7485_v52  ;;  %v7866_v52 = vshrl.u32 %v7803_v45, 16 }
 0x493   : > { %12656 = vmatprep.mubr.bf16.mxu1 %v7488_v18  ;;  %12685 = vmatpush3.bf16.msra.mxu1 %v13618_v27  ;;  %v7860_v27 = vshll.u32 %v7802_v0, 16  ;;  %v7869_v18 = vshll.u32 %v7803_v45, 16 }
 0x494   : > { %12686 = vmatprep.subr.bf16.mxu1 %v13619_v63  ;;  %v7868_v4 = vrot.slane %v7866_v52, 4  ;;  %v7925_v52 = vshrl.u32 %v7810_v51, 16 }
 0x495   : > { %v7871_v5 = vrot.slane %v7869_v18, 5  ;;  %v7928_v18 = vshll.u32 %v7810_v51, 16 }
 0x497   : > { %12687 = vmatpush3.bf16.msra.mxu1 %v13619_v63  ;;  %v7846_v63 = vor.u32 %v7845_v32, %v7842_v23  ;;  %v7789_v23 = vld [vmem:[#allocation2 + $0x78] sm:$0x1f]  ;;  %v7888_v32 = vrot.slane %v7886_v25, 5 }
 0x498   : > { %12720 = vmatprep.subr.bf16.mxu1 %v16280_v44 }
 0x499   : > { %v7847_v3 = vsel %vm346_vm0, %v7838_v16, %v7846_v63  ;;  %v7917_v16 = vshrl.u32 %v7809_v40, 16  ;;  %v7920_v63 = vshll.u32 %v7809_v40, 16  ;;  %v7889_v47 = vor.u32 %v7888_v32, %v7885_v61 }
 0x49a   : > { %12657 = vmatmul.mubr.bf16.gmra.mrb[16].mxu1 %v7491_v48  ;;  %v7859_v48 = vrot.slane %v7857_v59, 4  ;;  %v7902_v59 = vrot.slane %v7900_v38, 4 }
 0x49b   : > { %12660 = vmatprep.mubr.bf16.mxu1 %v7494_v39  ;;  %v7862_v39 = vrot.slane %v7860_v27, 5  ;;  %v7905_v27 = vrot.slane %v7903_v41, 5 }
 0x49d   : > { %v7863_v43 = vor.u32 %v7862_v39, %v7859_v48  ;;  %v7906_v37 = vor.u32 %v7905_v27, %v7902_v59  ;;  %v7914_v48 = vor.u32 %v7913_v21, %v7910_v8  ;;  %v7937_v39 = vshll.u32 %v7811_v13, 16  ;;  %v7793_v59 = vld [vmem:[#allocation2 + $0xb8] sm:$0x1f] }
 0x49e   : > { %v7961_v8 = vrot.slane %v7959_v30, 4  ;;  %v7964_v21 = vrot.slane %v7962_v15, 5 }
 0x49f   : > { %v7864_v6 = vsel %vm346_vm0, %v7855_v60, %v7863_v43  ;;  %v7915_v60 = vsel %vm346_vm0, %v7906_v37, %v7914_v48  ;;  %v7936_v43 = vrot.slane %v7934_v11, 4  ;;  %v7939_v25 = vrot.slane %v7937_v39, 5  ;;  %v13626_v39 = vld [vmem:[#allocation8 + $0x1b0] sm:$0xff]  }
 0x4a0   : > { %v7820_v48 = vsel %vm15980_vm15, %v7793_v59, 0 }
 0x4a1   : > { %v7940_v32 = vor.u32 %v7939_v25, %v7936_v43  ;;  %v7823_v43 = vsel %vm15980_vm15, %v16291_v62, 0 }
 0x4a2   : > { %12661 = vmatmul.mubr.bf16.gmra.mrb[20].mxu1 %v7497_v28  ;;  %v7806_v28 = vsel %vm15980_vm15, %v7786_v53, 0  ;;  %v13622_v53 = vld [vmem:[#allocation8 + $0x190] sm:$0xff]  }
 0x4a3   : > { %12664 = vmatprep.mubr.bf16.mxu1 %v7500_v36  ;;  %v7876_v36 = vrot.slane %v7874_v33, 4  ;;  %v7891_v54 = vshrl.u32 %v7806_v28, 16  ;;  %v7894_v12 = vshll.u32 %v7806_v28, 16  ;;  %v7812_v33 = vsel %vm15980_vm15, %v7789_v23, 0  ;;  %v7791_v28 = vld [vmem:[#allocation2 + $0x98] sm:$0x1f] }
 0x4a4   : > { %v7942_v26 = vshrl.u32 %v7812_v33, 16  ;;  %v7945_v58 = vshll.u32 %v7812_v33, 16  ;;  %v7792_v23 = vld [vmem:[#allocation2 + $0xa8] sm:$0x1f] }
 0x4a5   : > { %v7880_v0 = vor.u32 %v7879_v29, %v7876_v36  ;;  %v7893_v45 = vrot.slane %v7891_v54, 4  ;;  %v7815_v36 = vsel %vm15980_vm15, %v16268_v1, 0  ;;  %v13623_v29 = vld [vmem:[#allocation8 + $0x198] sm:$0xff]   ;;  %v7818_v13 = vsel %vm15980_vm15, %v7792_v23, 0 }
 0x4a6   : > { %v7944_v54 = vrot.slane %v7942_v26, 4  ;;  %v7971_v40 = vshll.u32 %v7815_v36, 16  ;;  %v7996_v37 = vshll.u32 %v7818_v13, 16  ;;  %v7965_v26 = vor.u32 %v7964_v21, %v7961_v8 }
 0x4aa   : > { %12665 = vmatmul.mubr.bf16.gmra.mrb[24].mxu1 %v7503_v7  ;;  %v7872_v7 = vor.u32 %v7871_v5, %v7868_v4  ;;  %v7930_v4 = vrot.slane %v7928_v18, 5  ;;  %v7813_v5 = vsel %vm15980_vm15, %v16266_v31, 0  ;;  %v7816_v31 = vsel %vm15980_vm15, %v7791_v28, 0 }
 0x4ab   : > { %12668 = vmatprep.mubr.bf16.mxu1 %v7506_v22  ;;  %v7896_v22 = vrot.slane %v7894_v12, 5  ;;  %v7947_v12 = vrot.slane %v7945_v58, 5  ;;  %v7951_v41 = vshrl.u32 %v7813_v5, 16  ;;  %v7954_v10 = vshll.u32 %v7813_v5, 16 }
 0x4ac   : > { %v7881_v55 = vsel %vm346_vm0, %v7872_v7, %v7880_v0  ;;  %v13624_v7 = vld [vmem:[#allocation8 + $0x1a0] sm:$0xff]   ;;  %v7968_v0 = vshrl.u32 %v7815_v36, 16  ;;  %v7979_v61 = vshll.u32 %v7816_v31, 16 }
 0x4ad   : > { %v7897_v57 = vor.u32 %v7896_v22, %v7893_v45  ;;  %v7948_v45 = vor.u32 %v7947_v12, %v7944_v54  ;;  %v7817_v22 = vsel %vm15980_vm15, %v16276_v14, 0  ;;  %v7953_v51 = vrot.slane %v7951_v41, 4 }
 0x4ae   : > { %v7956_v27 = vrot.slane %v7954_v10, 5  ;;  %v7981_v18 = vrot.slane %v7979_v61, 5  ;;  %v7819_v14 = vsel %vm15980_vm15, %v16278_v50, 0  ;;  %v8039_v61 = vshll.u32 %v7823_v43, 16 }
 0x4af   : > { %v7898_v42 = vsel %vm346_vm0, %v7889_v47, %v7897_v57  ;;  %v7949_v33 = vsel %vm346_vm0, %v7940_v32, %v7948_v45  ;;  %v7985_v47 = vshrl.u32 %v7817_v22, 16  ;;  %v7993_v57 = vshrl.u32 %v7818_v13, 16  ;;  %v7796_v45 = vld [vmem:[#allocation2 + $0xe8] sm:$0x1f] }
 0x4b0   : > { %v7957_v11 = vor.u32 %v7956_v27, %v7953_v51  ;;  %v8005_v50 = vshll.u32 %v7819_v14, 16  ;;  %v7825_v51 = vsel %vm15980_vm15, %v16298_v2, 0  ;;  %v7827_v2 = vsel %vm15980_vm15, %v16306_v56, 0  ;;  %v7798_v56 = vld [vmem:[#allocation2 + $0x108] sm:$0x1f] }
 0x4b1   : > { %v7987_v28 = vrot.slane %v7985_v47, 4  ;;  %v7995_v36 = vrot.slane %v7993_v57, 4  ;;  %v8053_v47 = vshrl.u32 %v7825_v51, 16 }
 0x4b2   : > { %12669 = vmatmul.mubr.bf16.gmra.mrb[28].mxu1 %v7509_v34  ;;  %v7919_v34 = vrot.slane %v7917_v16, 4  ;;  %v7970_v16 = vrot.slane %v7968_v0, 4  ;;  %v7966_v25 = vsel %vm346_vm0, %v7957_v11, %v7965_v26 }
 0x4b3   : > { %12688 = vmatprep.mubr.bf16.mxu1 %v7847_v3  ;;  %v7927_v3 = vrot.slane %v7925_v52, 4 }
 0x4b5   : > { %v7931_v1 = vor.u32 %v7930_v4, %v7927_v3  ;;  %v8013_v3 = vshll.u32 %v7820_v48, 16  ;;  %v7794_v4 = vld [vmem:[#allocation2 + $0xc8] sm:$0x1f] }
 0x4b7   : > { %v8015_v41 = vrot.slane %v8013_v3, 5  ;;  %v8377_v3 = vld [vmem:[#allocation2 + $0x20] sm:$0xf8] }
 0x4ba   : > { %12689 = vmatmul.mubr.bf16.vlgmr.msra.gmra.mrb[0].mxu1 %v7864_v6  ;;  %v7976_v6 = vshrl.u32 %v7816_v31, 16  ;;  %v7822_v31 = vsel %vm15980_vm15, %v7794_v4, 0  ;;  %v8055_v4 = vrot.slane %v8053_v47, 4 }
 0x4bb   : > { %12692 = vmatprep.mubr.bf16.mxu1 %v7881_v55  ;;  %12721 = vmatpush3.bf16.msra.mxu1 %v16280_v44  ;;  %v7922_v44 = vrot.slane %v7920_v63, 5  ;;  %v13625_v55 = vld [vmem:[#allocation8 + $0x1a8] sm:$0xff]   ;;  %v7973_v63 = vrot.slane %v7971_v40, 5  ;;  %v8030_v0 = vshll.u32 %v7822_v31, 16  ;;  %v16389_v40 = vld [vmem:[#allocation8 + $0x1c0] sm:$0xff]  }
 0x4bc   : > { %12722 = vmatprep.subr.bf16.mxu1 %v13621_v24  ;;  %v7978_v52 = vrot.slane %v7976_v6, 4  ;;  %v8036_v6 = vshrl.u32 %v7823_v43, 16 }
 0x4bd   : > { %v7923_v38 = vor.u32 %v7922_v44, %v7919_v34  ;;  %v7974_v58 = vor.u32 %v7973_v63, %v7970_v16  ;;  %v8002_v34 = vshrl.u32 %v7819_v14, 16  ;;  %v8010_v44 = vshrl.u32 %v7820_v48, 16  ;;  %v7797_v16 = vld [vmem:[#allocation2 + $0xf8] sm:$0x1f] }
 0x4be   : > { %v7982_v35 = vor.u32 %v7981_v18, %v7978_v52  ;;  %v8032_v13 = vrot.slane %v8030_v0, 5  ;;  %v8038_v63 = vrot.slane %v8036_v6, 4  ;;  %v8041_v52 = vrot.slane %v8039_v61, 5 }
 0x4bf   : > { %12723 = vmatpush3.bf16.msra.mxu1 %v13621_v24  ;;  %v7932_v24 = vsel %vm346_vm0, %v7923_v38, %v7931_v1  ;;  %v8004_v12 = vrot.slane %v8002_v34, 4  ;;  %v8007_v38 = vrot.slane %v8005_v50, 5  ;;  %v8012_v1 = vrot.slane %v8010_v44, 4 }
 0x4c0   : > { %12724 = vmatprep.subr.bf16.mxu1 %v13622_v53  ;;  %v7983_v54 = vsel %vm346_vm0, %v7974_v58, %v7982_v35  ;;  %v7828_v48 = vsel %vm15980_vm15, %v7797_v16, 0  ;;  %v8042_v26 = vor.u32 %v8041_v52, %v8038_v63  ;;  %v8070_v35 = vshrl.u32 %v7827_v2, 16 }
 0x4c1   : > { %v8073_v34 = vshll.u32 %v7827_v2, 16  ;;  %v8078_v50 = vshrl.u32 %v7828_v48, 16  ;;  %v8081_v44 = vshll.u32 %v7828_v48, 16 }
 0x4c2   : > { %12693 = vmatmul.mubr.bf16.gmra.mrb[4].mxu1 %v7898_v42  ;;  %v7795_v42 = vld [vmem:[#allocation2 + $0xd8] sm:$0x1f] }
 0x4c3   : > { %12696 = vmatprep.mubr.bf16.mxu1 %v7915_v60  ;;  %12725 = vmatpush3.bf16.msra.mxu1 %v13622_v53  ;;  %v7988_v53 = vshll.u32 %v7817_v22, 16  ;;  %v7821_v60 = vsel %vm15980_vm15, %v16289_v49, 0  ;;  %v7824_v49 = vsel %vm15980_vm15, %v7795_v42, 0  ;;  %v8008_v22 = vor.u32 %v8007_v38, %v8004_v12 }
 0x4c4   : > { %12726 = vmatprep.subr.bf16.mxu1 %v13623_v29  ;;  %v8019_v30 = vshrl.u32 %v7821_v60, 16  ;;  %v8022_v15 = vshll.u32 %v7821_v60, 16  ;;  %v8044_v23 = vshrl.u32 %v7824_v49, 16  ;;  %v8047_v32 = vshll.u32 %v7824_v49, 16 }
 0x4c5   : > { %v7990_v5 = vrot.slane %v7988_v53, 5  ;;  %v8056_v53 = vshll.u32 %v7825_v51, 16  ;;  %v7829_v42 = vsel %vm15980_vm15, %v16318_v9, 0  ;;  %v8080_v12 = vrot.slane %v8078_v50, 4 }
 0x4c6   : > { %v8021_v27 = vrot.slane %v8019_v30, 4  ;;  %v8024_v8 = vrot.slane %v8022_v15, 5  ;;  %v8046_v18 = vrot.slane %v8044_v23, 4  ;;  %v8049_v14 = vrot.slane %v8047_v32, 5  ;;  %v8379_v15 = vld [vmem:[#allocation2 + $0x30] sm:$0xf8] }
 0x4c7   : > { %12727 = vmatpush3.bf16.msra.mxu1 %v13623_v29  ;;  %v7998_v29 = vrot.slane %v7996_v37, 5  ;;  %v7991_v10 = vor.u32 %v7990_v5, %v7987_v28  ;;  %v8058_v28 = vrot.slane %v8056_v53, 5  ;;  %v8409_v38 = vsel %vm15856_vm13, %v8377_v3, 0  ;;  %v16418_v23 = vld [vmem:[#allocation2 + $0x38] sm:$0xf] }
 0x4c8   : > { %12728 = vmatprep.subr.bf16.mxu1 %v13624_v7  ;;  %v8025_v11 = vor.u32 %v8024_v8, %v8021_v27  ;;  %v8050_v58 = vor.u32 %v8049_v14, %v8046_v18  ;;  %v8087_v49 = vshrl.u32 %v7829_v42, 16  ;;  %v8445_v0 = vshll.u32 %v8409_v38, 16  ;;  %v8385_v3 = vld [vmem:[#allocation2 + $0x60] sm:$0xf8] }
 0x4c9   : > { %v7999_v62 = vor.u32 %v7998_v29, %v7995_v36  ;;  %v16404_v29 = vld [vmem:[#allocation2 + $0x28] sm:$0xf]  ;;  %v8059_v9 = vor.u32 %v8058_v28, %v8055_v4  ;;  %v8411_v51 = vsel %vm15856_vm13, %v8379_v15, 0 }
 0x4ca   : > { %12697 = vmatmul.mubr.bf16.gmra.mrb[8].mxu1 %v7932_v24  ;;  %v8016_v24 = vor.u32 %v8015_v41, %v8012_v1  ;;  %v8051_v43 = vsel %vm346_vm0, %v8042_v26, %v8050_v58  ;;  %v8410_v1 = vsel %vm15856_vm13, %v16404_v29, 0  ;;  %v8447_v63 = vrot.slane %v8445_v0, 4 }
 0x4cb   : > { %12700 = vmatprep.mubr.bf16.mxu1 %v7949_v33  ;;  %12729 = vmatpush3.bf16.msra.mxu1 %v13624_v7  ;;  %v8027_v7 = vshrl.u32 %v7822_v31, 16  ;;  %v8000_v59 = vsel %vm346_vm0, %v7991_v10, %v7999_v62  ;;  %v8083_v31 = vrot.slane %v8081_v44, 5  ;;  %v8090_v10 = vshll.u32 %v7829_v42, 16  ;;  %v16436_v42 = vld [vmem:[#allocation2 + $0x68] sm:$0xf] }
 0x4cc   : > { %12730 = vmatprep.subr.bf16.mxu1 %v13625_v55  ;;  %v8017_v33 = vsel %vm346_vm0, %v8008_v22, %v8016_v24  ;;  %v8450_v6 = vshrl.u32 %v8410_v1, 16  ;;  %v8453_v61 = vshll.u32 %v8410_v1, 16  ;;  %v8089_v24 = vrot.slane %v8087_v49, 4 }
 0x4cd   : > { %v8029_v21 = vrot.slane %v8027_v7, 4  ;;  %v8442_v7 = vshrl.u32 %v8409_v38, 16  ;;  %v8092_v27 = vrot.slane %v8090_v10, 5  ;;  %v8459_v2 = vshrl.u32 %v8411_v51, 16 }
 0x4ce   : > { %v8452_v52 = vrot.slane %v8450_v6, 3  ;;  %v8455_v18 = vrot.slane %v8453_v61, 4  ;;  %v8462_v47 = vshll.u32 %v8411_v51, 16  ;;  %v8417_v1 = vsel %vm15856_vm13, %v8385_v3, 0 }
 0x4cf   : > { %12731 = vmatpush3.bf16.msra.mxu1 %v13625_v55  ;;  %v7826_v55 = vsel %vm15980_vm15, %v7796_v45, 0  ;;  %v8084_v45 = vor.u32 %v8083_v31, %v8080_v12  ;;  %v8444_v16 = vrot.slane %v8442_v7, 3  ;;  %v8093_v48 = vor.u32 %v8092_v27, %v8089_v24  ;;  %v8387_v7 = vld [vmem:[#allocation2 + $0x70] sm:$0xf8] }
 0x4d0   : > { %12732 = vmatprep.subr.bf16.mxu1 %v13626_v39  ;;  %v8061_v57 = vshrl.u32 %v7826_v55, 16  ;;  %v8064_v37 = vshll.u32 %v7826_v55, 16  ;;  %v16426_v55 = vld [vmem:[#allocation2 + $0x48] sm:$0xf]  ;;  %v8456_v26 = vor.u32 %v8455_v18, %v8452_v52  ;;  %v8461_v4 = vrot.slane %v8459_v2, 3  ;;  %v13629_v52 = vld [vmem:[#allocation8 + $0x1c8] sm:$0xff]  }
 0x4d1   : > { %v8464_v28 = vrot.slane %v8462_v47, 4  ;;  %v8510_v0 = vshrl.u32 %v8417_v1, 16  ;;  %v8513_v6 = vshll.u32 %v8417_v1, 16  ;;  %v8419_v27 = vsel %vm15856_vm13, %v8387_v7, 0  ;;  %v13631_v1 = vld [vmem:[#allocation8 + $0x1d8] sm:$0xff]  }
 0x4d2   : > { %12701 = vmatmul.mubr.bf16.gmra.mrb[12].mxu1 %v7966_v25  ;;  %v8063_v5 = vrot.slane %v8061_v57, 4  ;;  %v8066_v36 = vrot.slane %v8064_v37, 5  ;;  %v8075_v25 = vrot.slane %v8073_v34, 5  ;;  %v8414_v37 = vsel %vm15856_vm13, %v16426_v55, 0  ;;  %v8383_v34 = vld [vmem:[#allocation2 + $0x50] sm:$0xf8] }
 0x4d3   : > { %12704 = vmatprep.mubr.bf16.mxu1 %v7983_v54  ;;  %12733 = vmatpush3.bf16.msra.mxu1 %v13626_v39  ;;  %v8033_v39 = vor.u32 %v8032_v13, %v8029_v21  ;;  %v7830_v54 = vsel %vm15980_vm15, %v7798_v56, 0  ;;  %v8412_v13 = vsel %vm15856_vm13, %v16418_v23, 0  ;;  %v8484_v50 = vshrl.u32 %v8414_v37, 16  ;;  %v16434_v56 = vld [vmem:[#allocation2 + $0x58] sm:$0xf] }
 0x4d4   : > { %12734 = vmatprep.subr.bf16.mxu1 %v13627_v20  ;;  %v8067_v41 = vor.u32 %v8066_v36, %v8063_v5  ;;  %v8095_v62 = vshrl.u32 %v7830_v54, 16  ;;  %v8098_v30 = vshll.u32 %v7830_v54, 16  ;;  %v8467_v53 = vshrl.u32 %v8412_v13, 16 }
 0x4d5   : > { %v8034_v60 = vsel %vm346_vm0, %v8025_v11, %v8033_v39  ;;  %v8470_v57 = vshll.u32 %v8412_v13, 16  ;;  %v8448_v39 = vor.u32 %v8447_v63, %v8444_v16  ;;  %v8487_v44 = vshll.u32 %v8414_v37, 16 }
 0x4d6   : > { %v8068_v22 = vsel %vm346_vm0, %v8059_v9, %v8067_v41  ;;  %v8097_v8 = vrot.slane %v8095_v62, 4  ;;  %v8100_v21 = vrot.slane %v8098_v30, 5  ;;  %v8469_v5 = vrot.slane %v8467_v53, 3 }
 0x4d7   : > { %12735 = vmatpush3.bf16.msra.mxu1 %v13627_v20  ;;  %v8072_v20 = vrot.slane %v8070_v35, 4  ;;  %v8472_v36 = vrot.slane %v8470_v57, 4  ;;  %v8416_v12 = vsel %vm15856_vm13, %v16434_v56, 0  ;;  %v8486_v31 = vrot.slane %v8484_v50, 3 }
 0x4d8   : > { %12768 = vmatprep.subr.bf16.mxu1 %v16389_v40  ;;  %v8101_v11 = vor.u32 %v8100_v21, %v8097_v8  ;;  %v8489_v38 = vrot.slane %v8487_v44, 4  ;;  %v8418_v9 = vsel %vm15856_vm13, %v16436_v42, 0  ;;  %v8465_v41 = vor.u32 %v8464_v28, %v8461_v4  ;;  %v8389_v8 = vld [vmem:[#allocation2 + $0x80] sm:$0xf8]  ;;  %v16455_v21 = vld [vmem:[#allocation2 + $0x88] sm:$0xf] }
 0x4d9   : > { %v8076_v32 = vor.u32 %v8075_v25, %v8072_v20  ;;  %v8457_v20 = vsel %vm5340_vm14, %v8448_v39, %v8456_v26  ;;  %v8473_v49 = vor.u32 %v8472_v36, %v8469_v5  ;;  %v8501_v30 = vshrl.u32 %v8416_v12, 16  ;;  %v8391_v28 = vld [vmem:[#allocation2 + $0x90] sm:$0xf8] }
 0x4da   : > { %12705 = vmatmul.mubr.bf16.gmra.mrb[16].mxu1 %v8000_v59  ;;  %v8381_v59 = vld [vmem:[#allocation2 + $0x40] sm:$0xf8]  ;;  %v8504_v15 = vshll.u32 %v8416_v12, 16  ;;  %v8518_v61 = vshrl.u32 %v8418_v9, 16  ;;  %v8490_v24 = vor.u32 %v8489_v38, %v8486_v31  ;;  %v8515_v2 = vrot.slane %v8513_v6, 4 }
 0x4db   : > { %12708 = vmatprep.mubr.bf16.mxu1 %v8017_v33  ;;  %v8085_v14 = vsel %vm346_vm0, %v8076_v32, %v8084_v45  ;;  %v8413_v33 = vsel %vm15856_vm13, %v8381_v59, 0  ;;  %v8521_v32 = vshll.u32 %v8418_v9, 16  ;;  %v16450_v45 = vld [vmem:[#allocation2 + $0x78] sm:$0xf]  ;;  %v8474_v51 = vsel %vm5340_vm14, %v8465_v41, %v8473_v49  ;;  %v16469_v12 = vld [vmem:[#allocation2 + $0xa8] sm:$0xf] }
 0x4dc   : > { %v8476_v58 = vshrl.u32 %v8413_v33, 16  ;;  %v8479_v35 = vshll.u32 %v8413_v33, 16  ;;  %v8503_v16 = vrot.slane %v8501_v30, 3  ;;  %v8506_v63 = vrot.slane %v8504_v15, 4 }
 0x4dd   : > { %v8420_v18 = vsel %vm15856_vm13, %v16450_v45, 0  ;;  %v8520_v33 = vrot.slane %v8518_v61, 3  ;;  %v8523_v47 = vrot.slane %v8521_v32, 4  ;;  %v8527_v57 = vshrl.u32 %v8419_v27, 16 }
 0x4de   : > { %v8478_v25 = vrot.slane %v8476_v58, 3  ;;  %v8481_v54 = vrot.slane %v8479_v35, 4  ;;  %v8421_v37 = vsel %vm15856_vm13, %v8389_v8, 0  ;;  %v8538_v39 = vshll.u32 %v8420_v18, 16 }
 0x4df   : > { %v8422_v26 = vsel %vm15856_vm13, %v16455_v21, 0  ;;  %v8507_v35 = vor.u32 %v8506_v63, %v8503_v16  ;;  %v8524_v44 = vor.u32 %v8523_v47, %v8520_v33  ;;  %v8544_v3 = vshrl.u32 %v8421_v37, 16  ;;  %v16483_v63 = vld [vmem:[#allocation2 + $0xb8] sm:$0xf]  ;;  %v8397_v47 = vld [vmem:[#allocation2 + $0xc0] sm:$0xf8] }
 0x4e0   : > { %v8547_v4 = vshll.u32 %v8421_v37, 16  ;;  %v8552_v5 = vshrl.u32 %v8422_v26, 16  ;;  %v8555_v36 = vshll.u32 %v8422_v26, 16  ;;  %v8423_v38 = vsel %vm15856_vm13, %v8391_v28, 0 }
 0x4e1   : > { %v8546_v41 = vrot.slane %v8544_v3, 3  ;;  %v8426_v7 = vsel %vm15856_vm13, %v16469_v12, 0  ;;  %v8561_v61 = vshrl.u32 %v8423_v38, 16  ;;  %v8564_v32 = vshll.u32 %v8423_v38, 16  ;;  %v8399_v38 = vld [vmem:[#allocation2 + $0xd0] sm:$0xf8] }
 0x4e2   : > { %12709 = vmatmul.mubr.bf16.gmra.mrb[20].mxu1 %v8034_v60  ;;  %v8102_v60 = vsel %vm346_vm0, %v8093_v48, %v8101_v11  ;;  %v8530_v48 = vshll.u32 %v8419_v27, 16  ;;  %v8535_v11 = vshrl.u32 %v8420_v18, 16  ;;  %v8549_v49 = vrot.slane %v8547_v4, 4 }
 0x4e3   : > { %12712 = vmatprep.mubr.bf16.mxu1 %v8051_v43  ;;  %v8415_v43 = vsel %vm15856_vm13, %v8383_v34, 0  ;;  %v13630_v34 = vld [vmem:[#allocation8 + $0x1d0] sm:$0xff]   ;;  %v8557_v30 = vrot.slane %v8555_v36, 4  ;;  %v8589_v16 = vshll.u32 %v8426_v7, 16  ;;  %v8429_v3 = vsel %vm15856_vm13, %v8397_v47, 0 }
 0x4e4   : > { %v8493_v10 = vshrl.u32 %v8415_v43, 16  ;;  %v8496_v62 = vshll.u32 %v8415_v43, 16  ;;  %v8529_v43 = vrot.slane %v8527_v57, 3  ;;  %v8566_v57 = vrot.slane %v8564_v32, 4  ;;  %v13635_v32 = vld [vmem:[#allocation8 + $0x1f8] sm:$0xff]  }
 0x4e6   : > { %v8495_v59 = vrot.slane %v8493_v10, 3  ;;  %v8498_v13 = vrot.slane %v8496_v62, 4  ;;  %v8554_v62 = vrot.slane %v8552_v5, 3 }
 0x4e8   : > { %v8499_v58 = vor.u32 %v8498_v13, %v8495_v59  ;;  %v13632_v59 = vld [vmem:[#allocation8 + $0x1e0] sm:$0xff]   ;;  %v8586_v13 = vshrl.u32 %v8426_v7, 16  ;;  %v8558_v18 = vor.u32 %v8557_v30, %v8554_v62 }
 0x4ea   : > { %12713 = vmatmul.mubr.bf16.gmra.mrb[24].mxu1 %v8068_v22  ;;  %v8482_v22 = vor.u32 %v8481_v54, %v8478_v25  ;;  %v8537_v25 = vrot.slane %v8535_v11, 3  ;;  %v8540_v54 = vrot.slane %v8538_v39, 4  ;;  %v8508_v31 = vsel %vm5340_vm14, %v8499_v58, %v8507_v35  ;;  %v13633_v39 = vld [vmem:[#allocation8 + $0x1e8] sm:$0xff]  }
 0x4eb   : > { %12716 = vmatprep.mubr.bf16.mxu1 %v8085_v14  ;;  %v8512_v14 = vrot.slane %v8510_v0, 3  ;;  %v8428_v11 = vsel %vm15856_vm13, %v16483_v63, 0  ;;  %v8588_v35 = vrot.slane %v8586_v13, 3 }
 0x4ec   : > { %v8491_v53 = vsel %vm5340_vm14, %v8482_v22, %v8490_v24  ;;  %v8541_v6 = vor.u32 %v8540_v54, %v8537_v25  ;;  %v8603_v28 = vshrl.u32 %v8428_v11, 16  ;;  %v8606_v5 = vshll.u32 %v8428_v11, 16 }
 0x4ed   : > { %v8516_v50 = vor.u32 %v8515_v2, %v8512_v14  ;;  %v8563_v2 = vrot.slane %v8561_v61, 3  ;;  %v8431_v61 = vsel %vm15856_vm13, %v8399_v38, 0 }
 0x4ee   : > { %v8608_v7 = vrot.slane %v8606_v5, 4 }
 0x4ef   : > { %v8525_v9 = vsel %vm5340_vm14, %v8516_v50, %v8524_v44 }
 0x4f2   : > { %12717 = vmatmul.mubr.bf16.gmra.mrb[28].mxu1 %v8102_v60  ;;  %v16467_v60 = vld [vmem:[#allocation2 + $0x98] sm:$0xf] }
 0x4f3   : > { %12736 = vmatprep.mubr.bf16.mxu1 %v8457_v20  ;;  %v8532_v20 = vrot.slane %v8530_v48, 4  ;;  %v8424_v10 = vsel %vm15856_vm13, %v16467_v60, 0 }
 0x4f4   : > { %v8569_v22 = vshrl.u32 %v8424_v10, 16  ;;  %v8572_v24 = vshll.u32 %v8424_v10, 16  ;;  %v16499_v10 = vld [vmem:[#allocation2 + $0xd8] sm:$0xf] }
 0x4f5   : > { %v8533_v0 = vor.u32 %v8532_v20, %v8529_v43  ;;  %v13634_v20 = vld [vmem:[#allocation8 + $0x1f0] sm:$0xff]  }
 0x4f6   : > { %v8571_v37 = vrot.slane %v8569_v22, 3  ;;  %v8574_v48 = vrot.slane %v8572_v24, 4 }
 0x4f7   : > { %v8542_v14 = vsel %vm5340_vm14, %v8533_v0, %v8541_v6  ;;  %v16501_v0 = vld [vmem:[#allocation2 + $0xe8] sm:$0xf] }
 0x4f8   : > { %v8575_v43 = vor.u32 %v8574_v48, %v8571_v37  ;;  %v16515_v37 = vld [vmem:[#allocation8 + $0x200] sm:$0xff]  }
 0x4fa   : > { %12737 = vmatmul.mubr.bf16.vlgmr.msra.gmra.mrb[0].mxu1 %v8474_v51  ;;  %v8395_v51 = vld [vmem:[#allocation2 + $0xb0] sm:$0xf8] }
 0x4fb   : > { %12740 = vmatprep.mubr.bf16.mxu1 %v8491_v53  ;;  %12769 = vmatpush3.bf16.msra.mxu1 %v16389_v40  ;;  %v8393_v40 = vld [vmem:[#allocation2 + $0xa0] sm:$0xf8]  ;;  %v8427_v33 = vsel %vm15856_vm13, %v8395_v51, 0  ;;  %v16488_v53 = vld [vmem:[#allocation2 + $0xc8] sm:$0xf]  ;;  %v8432_v51 = vsel %vm15856_vm13, %v16499_v10, 0 }
 0x4fc   : > { %12770 = vmatprep.subr.bf16.mxu1 %v13629_v52  ;;  %v8425_v15 = vsel %vm15856_vm13, %v8393_v40, 0  ;;  %v8595_v44 = vshrl.u32 %v8427_v33, 16  ;;  %v8598_v4 = vshll.u32 %v8427_v33, 16  ;;  %v8430_v36 = vsel %vm15856_vm13, %v16488_v53, 0 }
 0x4fd   : > { %v8578_v27 = vshrl.u32 %v8425_v15, 16  ;;  %v8581_v8 = vshll.u32 %v8425_v15, 16  ;;  %v8567_v40 = vor.u32 %v8566_v57, %v8563_v2  ;;  %v8605_v15 = vrot.slane %v8603_v28, 3 }
 0x4fe   : > { %v8597_v62 = vrot.slane %v8595_v44, 3  ;;  %v8600_v30 = vrot.slane %v8598_v4, 4  ;;  %v8632_v2 = vshll.u32 %v8431_v61, 16  ;;  %v8637_v33 = vshrl.u32 %v8432_v51, 16  ;;  %v16518_v44 = vld [vmem:[#allocation2 + $0xf8] sm:$0xf] }
 0x4ff   : > { %12771 = vmatpush3.bf16.msra.mxu1 %v13629_v52  ;;  %v8550_v52 = vor.u32 %v8549_v49, %v8546_v41  ;;  %v8580_v26 = vrot.slane %v8578_v27, 3  ;;  %v8583_v58 = vrot.slane %v8581_v8, 4  ;;  %v8620_v41 = vshrl.u32 %v8430_v36, 16 }
 0x500   : > { %12772 = vmatprep.subr.bf16.mxu1 %v13630_v34  ;;  %v8623_v49 = vshll.u32 %v8430_v36, 16  ;;  %v8576_v6 = vsel %vm5340_vm14, %v8567_v40, %v8575_v43  ;;  %v8640_v47 = vshll.u32 %v8432_v51, 16  ;;  %v8634_v4 = vrot.slane %v8632_v2, 4  ;;  %v16520_v40 = vld [vmem:[#allocation2 + $0x108] sm:$0xf] }
 0x501   : > { %v8559_v50 = vsel %vm5340_vm14, %v8550_v52, %v8558_v18  ;;  %v8584_v25 = vor.u32 %v8583_v58, %v8580_v26  ;;  %v8622_v8 = vrot.slane %v8620_v41, 3  ;;  %v8601_v52 = vor.u32 %v8600_v30, %v8597_v62 }
 0x502   : > { %12741 = vmatmul.mubr.bf16.gmra.mrb[4].mxu1 %v8508_v31  ;;  %v8612_v31 = vshrl.u32 %v8429_v3, 16  ;;  %v8625_v13 = vrot.slane %v8623_v49, 4  ;;  %v8609_v18 = vor.u32 %v8608_v7, %v8605_v15  ;;  %v8639_v28 = vrot.slane %v8637_v33, 3 }
 0x503   : > { %12744 = vmatprep.mubr.bf16.mxu1 %v8525_v9  ;;  %12773 = vmatpush3.bf16.msra.mxu1 %v13630_v34  ;;  %v8591_v34 = vrot.slane %v8589_v16, 4  ;;  %v8615_v9 = vshll.u32 %v8429_v3, 16  ;;  %v8434_v16 = vsel %vm15856_vm13, %v16501_v0, 0  ;;  %v8405_v3 = vld [vmem:[#allocation2 + $0x100] sm:$0xf8]  ;;  %v8642_v5 = vrot.slane %v8640_v47, 4 }
 0x504   : > { %12774 = vmatprep.subr.bf16.mxu1 %v13631_v1  ;;  %v8614_v24 = vrot.slane %v8612_v31, 3  ;;  %v8654_v11 = vshrl.u32 %v8434_v16, 16  ;;  %v8626_v58 = vor.u32 %v8625_v13, %v8622_v8  ;;  %v8436_v38 = vsel %vm15856_vm13, %v16518_v44, 0 }
 0x505   : > { %v8592_v54 = vor.u32 %v8591_v34, %v8588_v35  ;;  %v8617_v27 = vrot.slane %v8615_v9, 4  ;;  %v8403_v35 = vld [vmem:[#allocation2 + $0xf0] sm:$0xf8]  ;;  %v8610_v34 = vsel %vm5340_vm14, %v8601_v52, %v8609_v18  ;;  %v8438_v9 = vsel %vm15856_vm13, %v16520_v40, 0 }
 0x506   : > { %v8643_v49 = vor.u32 %v8642_v5, %v8639_v28 }
 0x507   : > { %12775 = vmatpush3.bf16.msra.mxu1 %v13631_v1  ;;  %v8401_v1 = vld [vmem:[#allocation2 + $0xe0] sm:$0xf8]  ;;  %v8593_v22 = vsel %vm5340_vm14, %v8584_v25, %v8592_v54  ;;  %v8618_v26 = vor.u32 %v8617_v27, %v8614_v24  ;;  %v8435_v54 = vsel %vm15856_vm13, %v8403_v35, 0  ;;  %v8691_v27 = vshll.u32 %v8438_v9, 16 }
 0x508   : > { %12776 = vmatprep.subr.bf16.mxu1 %v13632_v59  ;;  %v8663_v62 = vshrl.u32 %v8435_v54, 16  ;;  %v8666_v30 = vshll.u32 %v8435_v54, 16 }
 0x509   : > { %v8627_v31 = vsel %vm5340_vm14, %v8618_v26, %v8626_v58 }
 0x50a   : > { %12745 = vmatmul.mubr.bf16.gmra.mrb[8].mxu1 %v8542_v14  ;;  %v8629_v14 = vshrl.u32 %v8431_v61, 16  ;;  %v8674_v61 = vshll.u32 %v8436_v38, 16  ;;  %v8665_v13 = vrot.slane %v8663_v62, 3  ;;  %v16553_v62 = vld [vmem:[#allocation2 + $0x40] sm:$0xf0] }
 0x50b   : > { %12748 = vmatprep.mubr.bf16.mxu1 %v8559_v50  ;;  %12777 = vmatpush3.bf16.msra.mxu1 %v13632_v59  ;;  %v8433_v59 = vsel %vm15856_vm13, %v8401_v1, 0  ;;  %v8437_v1 = vsel %vm15856_vm13, %v8405_v3, 0 }
 0x50c   : > { %12778 = vmatprep.subr.bf16.mxu1 %v13633_v39  ;;  %v8646_v57 = vshrl.u32 %v8433_v59, 16  ;;  %v8649_v48 = vshll.u32 %v8433_v59, 16  ;;  %v8631_v50 = vrot.slane %v8629_v14, 3  ;;  %v8680_v24 = vshrl.u32 %v8437_v1, 16 }
 0x50d   : > { %v8683_v51 = vshll.u32 %v8437_v1, 16  ;;  %v8688_v59 = vshrl.u32 %v8438_v9, 16  ;;  %v8668_v14 = vrot.slane %v8666_v30, 4  ;;  %v8676_v33 = vrot.slane %v8674_v61, 4  ;;  %v13637_v61 = vld [vmem:[#allocation8 + $0x208] sm:$0xff]  }
 0x50e   : > { %v8648_v36 = vrot.slane %v8646_v57, 3  ;;  %v8651_v43 = vrot.slane %v8649_v48, 4  ;;  %v8635_v41 = vor.u32 %v8634_v4, %v8631_v50  ;;  %v8682_v47 = vrot.slane %v8680_v24, 3  ;;  %v16561_v24 = vld [vmem:[#allocation2 + $0x50] sm:$0xf0] }
 0x50f   : > { %12779 = vmatpush3.bf16.msra.mxu1 %v13633_v39  ;;  %v8657_v39 = vshll.u32 %v8434_v16, 16  ;;  %v8685_v57 = vrot.slane %v8683_v51, 4  ;;  %v8690_v48 = vrot.slane %v8688_v59, 3  ;;  %v9035_v1 = vrot.slane %v16404_v29, 4  ;;  %v16564_v51 = vld [vmem:[#allocation2 + $0x60] sm:$0xf0] }
 0x510   : > { %12780 = vmatprep.subr.bf16.mxu1 %v13634_v20  ;;  %v8652_v15 = vor.u32 %v8651_v43, %v8648_v36  ;;  %v8644_v8 = vsel %vm5340_vm14, %v8635_v41, %v8643_v49  ;;  %v16551_v49 = vld [vmem:[#allocation2 + $0x30] sm:$0xf0]  ;;  %v13638_v59 = vld [vmem:[#allocation8 + $0x210] sm:$0xff]  }
 0x511   : > { %v8659_v25 = vrot.slane %v8657_v39, 4  ;;  %v8686_v3 = vor.u32 %v8685_v57, %v8682_v47  ;;  %v9037_v30 = vrot.slane %v16551_v49, 4  ;;  %v13641_v47 = vld [vmem:[#allocation8 + $0x228] sm:$0xff]  }
 0x512   : > { %12749 = vmatmul.mubr.bf16.gmra.mrb[12].mxu1 %v8576_v6  ;;  %v8671_v6 = vshrl.u32 %v8436_v38, 16 }
 0x513   : > { %12752 = vmatprep.mubr.bf16.mxu1 %v8593_v22  ;;  %12781 = vmatpush3.bf16.msra.mxu1 %v13634_v20  ;;  %v8656_v20 = vrot.slane %v8654_v11, 3  ;;  %v16534_v22 = vld [vmem:[#allocation2 + $0x118] sm:$0xf]  ;;  %v8693_v11 = vrot.slane %v8691_v27, 4  ;;  %v9044_v27 = vrot.slane %v16434_v56, 4  ;;  %v13640_v56 = vld [vmem:[#allocation8 + $0x220] sm:$0xff]  }
 0x514   : > { %12782 = vmatprep.subr.bf16.mxu1 %v13635_v32  ;;  %v8440_v52 = vsel %vm15856_vm13, %v16534_v22, 0  ;;  %v8673_v2 = vrot.slane %v8671_v6, 3  ;;  %v9041_v6 = vrot.slane %v16426_v55, 4  ;;  %v9046_v55 = vrot.slane %v16564_v51, 4 }
 0x515   : > { %v8660_v7 = vor.u32 %v8659_v25, %v8656_v20  ;;  %v8705_v58 = vshrl.u32 %v8440_v52, 16  ;;  %v8708_v35 = vshll.u32 %v8440_v52, 16  ;;  %v8694_v46 = vor.u32 %v8693_v11, %v8690_v48  ;;  %v16572_v52 = vld [vmem:[#allocation2 + $0x70] sm:$0xf0] }
 0x516   : > { %v8677_v50 = vor.u32 %v8676_v33, %v8673_v2  ;;  %v9053_v33 = vrot.slane %v16455_v21, 4  ;;  %v16582_v11 = vld [vmem:[#allocation2 + $0x90] sm:$0xf0]  ;;  %v9056_v21 = vrot.slane %v16467_v60, 4 }
 0x517   : > { %12783 = vmatpush3.bf16.msra.mxu1 %v13635_v32  ;;  %v8407_v32 = vld [vmem:[#allocation2 + $0x110] sm:$0xf8]  ;;  %v8661_v18 = vsel %vm5340_vm14, %v8652_v15, %v8660_v7  ;;  %v8707_v5 = vrot.slane %v8705_v58, 3  ;;  %v8710_v36 = vrot.slane %v8708_v35, 4  ;;  %v8695_v20 = vsel %vm5340_vm14, %v8686_v3, %v8694_v46 }
 0x518   : > { %12816 = vmatprep.subr.bf16.mxu1 %v16515_v37  ;;  %v8439_v16 = vsel %vm15856_vm13, %v8407_v32, 0  ;;  %v9038_v15 = vrot.slane %v16418_v23, 4  ;;  %v9040_v7 = vrot.slane %v16553_v62, 4  ;;  %v9043_v23 = vrot.slane %v16561_v24, 4  ;;  %v16592_v46 = vld [vmem:[#allocation2 + $0xb0] sm:$0xf0] }
 0x519   : > { %v8697_v39 = vshrl.u32 %v8439_v16, 16  ;;  %v8700_v26 = vshll.u32 %v8439_v16, 16  ;;  %v8711_v54 = vor.u32 %v8710_v36, %v8707_v5  ;;  %v9059_v35 = vrot.slane %v16469_v12, 4 }
 0x51a   : > { %12753 = vmatmul.mubr.bf16.gmra.mrb[16].mxu1 %v8610_v34  ;;  %v8669_v34 = vor.u32 %v8668_v14, %v8665_v13  ;;  %v9039_v29 = vsel %vm5693_vm10, %v9037_v30, %v9038_v15  ;;  %v9042_v32 = vsel %vm5693_vm10, %v9040_v7, %v9041_v6  ;;  %v13639_v13 = vld [vmem:[#allocation8 + $0x218] sm:$0xff]   ;;  %v9045_v16 = vsel %vm5693_vm10, %v9043_v23, %v9044_v27 }
 0x51b   : > { %12756 = vmatprep.mubr.bf16.mxu1 %v8627_v31  ;;  %v8699_v4 = vrot.slane %v8697_v39, 3  ;;  %v8702_v28 = vrot.slane %v8700_v26, 4  ;;  %v16545_v31 = vld [vmem:[#allocation2 + $0x20] sm:$0xf0]  ;;  %v9049_v14 = vrot.slane %v16572_v52, 4  ;;  %v9055_v26 = vrot.slane %v16582_v11, 4 }
 0x51c   : > { %v8678_v43 = vsel %vm5340_vm14, %v8669_v34, %v8677_v50  ;;  %v9034_v38 = vrot.slane %v16545_v31, 4  ;;  %v16584_v39 = vld [vmem:[#allocation2 + $0xa0] sm:$0xf0]  ;;  %v13643_v34 = vld [vmem:[#allocation8 + $0x238] sm:$0xff]   ;;  %v9061_v60 = vrot.slane %v16592_v46, 4  ;;  %v9065_v5 = vrot.slane %v16488_v53, 4 }
 0x51d   : > { %v8703_v25 = vor.u32 %v8702_v28, %v8699_v4  ;;  %v9058_v58 = vrot.slane %v16584_v39, 4  ;;  %v9057_v50 = vsel %vm5693_vm10, %v9055_v26, %v9056_v21  ;;  %v16594_v4 = vld [vmem:[#allocation2 + $0xc0] sm:$0xf0]  ;;  %v9062_v28 = vrot.slane %v16483_v63, 4  ;;  %v9355_v53 = vld [vmem:[#allocation2 + $0x28] sm:$0x1f] }
 0x51e   : > { %v9036_v41 = vsel %vm5693_vm10, %v9034_v38, %v9035_v1  ;;  %v9064_v12 = vrot.slane %v16594_v4, 4  ;;  %v9068_v38 = vrot.slane %v16499_v10, 4  ;;  %v9071_v1 = vrot.slane %v16501_v0, 4  ;;  %v16619_v10 = vld [vmem:[#allocation2 + $0x100] sm:$0xf0] }
 0x51f   : > { %v8712_v9 = vsel %vm5340_vm14, %v8703_v25, %v8711_v54  ;;  %v9060_v3 = vsel %vm5693_vm10, %v9058_v58, %v9059_v35  ;;  %v9063_v36 = vsel %vm5693_vm10, %v9061_v60, %v9062_v28  ;;  %v16604_v25 = vld [vmem:[#allocation2 + $0xe0] sm:$0xf0]  ;;  %v9371_v30 = vsel %vm15980_vm15, %v16545_v31, 0  ;;  %v9358_v60 = vld [vmem:[#allocation2 + $0x58] sm:$0x1f] }
 0x520   : > { %v9070_v63 = vrot.slane %v16604_v25, 4  ;;  %v9372_v7 = vsel %vm15980_vm15, %v9355_v53, 0  ;;  %v9074_v6 = vrot.slane %v16518_v44, 4  ;;  %v9076_v31 = vrot.slane %v16619_v10, 4 }
 0x521   : > { %v9415_v23 = vshll.u32 %v9372_v7, 16  ;;  %v9077_v27 = vrot.slane %v16520_v40, 4  ;;  %v9375_v44 = vsel %vm15980_vm15, %v16553_v62, 0  ;;  %v9080_v62 = vrot.slane %v16534_v22, 4 }
 0x522   : > { %12757 = vmatmul.mubr.bf16.gmra.mrb[20].mxu1 %v8644_v8  ;;  %v9047_v8 = vrot.slane %v16436_v42, 4  ;;  %v9050_v42 = vrot.slane %v16450_v45, 4  ;;  %v13642_v45 = vld [vmem:[#allocation8 + $0x230] sm:$0xff]   ;;  %v9072_v15 = vsel %vm5693_vm10, %v9070_v63, %v9071_v1  ;;  %v9438_v58 = vshrl.u32 %v9375_v44, 16 }
 0x523   : > { %12760 = vmatprep.mubr.bf16.mxu1 %v8661_v18  ;;  %v16574_v18 = vld [vmem:[#allocation2 + $0x80] sm:$0xf0]  ;;  %v9417_v40 = vrot.slane %v9415_v23, 5  ;;  %v9377_v22 = vsel %vm15980_vm15, %v16561_v24, 0  ;;  %v9378_v1 = vsel %vm15980_vm15, %v9358_v60, 0 }
 0x524   : > { %v9052_v2 = vrot.slane %v16574_v18, 4  ;;  %v9051_v57 = vsel %vm5693_vm10, %v9049_v14, %v9050_v42  ;;  %v9440_v63 = vrot.slane %v9438_v58, 4 }
 0x526   : > { %v9054_v48 = vsel %vm5693_vm10, %v9052_v2, %v9053_v33  ;;  %v9078_v2 = vsel %vm5693_vm10, %v9076_v31, %v9077_v27  ;;  %v9360_v31 = vld [vmem:[#allocation2 + $0x78] sm:$0x1f] }
 0x52a   : > { %12761 = vmatmul.mubr.bf16.gmra.mrb[24].mxu1 %v8678_v43  ;;  %v9066_v43 = vsel %vm5693_vm10, %v9064_v12, %v9065_v5 }
 0x52b   : > { %12764 = vmatprep.mubr.bf16.mxu1 %v8695_v20  ;;  %v16602_v20 = vld [vmem:[#allocation2 + $0xd0] sm:$0xf0] }
 0x52c   : > { %v9067_v54 = vrot.slane %v16602_v20, 4 }
 0x532   : > { %12765 = vmatmul.mubr.bf16.gmra.mrb[28].mxu1 %v8712_v9  ;;  %v9069_v9 = vsel %vm5693_vm10, %v9067_v54, %v9068_v38  ;;  %v9379_v54 = vsel %vm15980_vm15, %v16564_v51, 0  ;;  %v9466_v51 = vshll.u32 %v9378_v1, 16 }
 0x533   : > { %12784 = vmatprep.mubr.bf16.mxu1 %v9036_v41  ;;  %v16611_v41 = vld [vmem:[#allocation2 + $0xf0] sm:$0xf0] }
 0x534   : > { %v9073_v0 = vrot.slane %v16611_v41, 4 }
 0x53a   : > { %12785 = vmatmul.mubr.bf16.vlgmr.msra.gmra.mrb[0].mxu1 %v9039_v29  ;;  %v9404_v29 = vshrl.u32 %v9371_v30, 16 }
 0x53b   : > { %12788 = vmatprep.mubr.bf16.mxu1 %v9042_v32  ;;  %12817 = vmatpush3.bf16.msra.mxu1 %v16515_v37  ;;  %v9048_v37 = vsel %vm5693_vm10, %v9046_v55, %v9047_v8  ;;  %v9407_v32 = vshll.u32 %v9371_v30, 16  ;;  %v9373_v55 = vsel %vm15980_vm15, %v16551_v49, 0 }
 0x53c   : > { %12818 = vmatprep.subr.bf16.mxu1 %v13637_v61  ;;  %v9421_v49 = vshrl.u32 %v9373_v55, 16  ;;  %v9424_v33 = vshll.u32 %v9373_v55, 16 }
 0x53d   : > { %v9409_v14 = vrot.slane %v9407_v32, 5  ;;  %v9475_v32 = vshll.u32 %v9379_v54, 16 }
 0x53e   : > { %v9423_v35 = vrot.slane %v9421_v49, 4  ;;  %v9426_v12 = vrot.slane %v9424_v33, 5 }
 0x53f   : > { %12819 = vmatpush3.bf16.msra.mxu1 %v13637_v61  ;;  %v9356_v61 = vld [vmem:[#allocation2 + $0x38] sm:$0x1f]  ;;  %v9477_v49 = vrot.slane %v9475_v32, 5 }
 0x540   : > { %12820 = vmatprep.subr.bf16.mxu1 %v13638_v59  ;;  %v9374_v8 = vsel %vm15980_vm15, %v9356_v61, 0  ;;  %v9463_v61 = vshrl.u32 %v9378_v1, 16 }
 0x542   : > { %12789 = vmatmul.mubr.bf16.gmra.mrb[4].mxu1 %v9045_v16  ;;  %v16634_v16 = vld [vmem:[#allocation2 + $0x110] sm:$0xf0] }
 0x543   : > { %12792 = vmatprep.mubr.bf16.mxu1 %v9048_v37  ;;  %12821 = vmatpush3.bf16.msra.mxu1 %v13638_v59  ;;  %v9412_v59 = vshrl.u32 %v9372_v7, 16  ;;  %v9357_v37 = vld [vmem:[#allocation2 + $0x48] sm:$0x1f]  ;;  %v9427_v7 = vor.u32 %v9426_v12, %v9423_v35 }
 0x544   : > { %12822 = vmatprep.subr.bf16.mxu1 %v13639_v13 }
 0x545   : > { %v9414_v42 = vrot.slane %v9412_v59, 4 }
 0x547   : > { %12823 = vmatpush3.bf16.msra.mxu1 %v13639_v13  ;;  %v9075_v13 = vsel %vm5693_vm10, %v9073_v0, %v9074_v6  ;;  %v9418_v21 = vor.u32 %v9417_v40, %v9414_v42  ;;  %v9455_v0 = vshrl.u32 %v9377_v22, 16  ;;  %v9458_v6 = vshll.u32 %v9377_v22, 16  ;;  %v9361_v40 = vld [vmem:[#allocation2 + $0x88] sm:$0x1f] }
 0x548   : > { %12824 = vmatprep.subr.bf16.mxu1 %v13640_v56  ;;  %v9382_v42 = vsel %vm15980_vm15, %v9360_v31, 0 }
 0x54a   : > { %12793 = vmatmul.mubr.bf16.gmra.mrb[8].mxu1 %v9051_v57  ;;  %v9079_v57 = vrot.slane %v16634_v16, 4 }
 0x54b   : > { %12796 = vmatprep.mubr.bf16.mxu1 %v9054_v48  ;;  %12825 = vmatpush3.bf16.msra.mxu1 %v13640_v56  ;;  %v9406_v56 = vrot.slane %v9404_v29, 4  ;;  %v9432_v48 = vshll.u32 %v9374_v8, 16  ;;  %v9472_v29 = vshrl.u32 %v9379_v54, 16  ;;  %v9363_v54 = vld [vmem:[#allocation2 + $0xa8] sm:$0x1f] }
 0x54c   : > { %12826 = vmatprep.subr.bf16.mxu1 %v13641_v47  ;;  %v9081_v28 = vsel %vm5693_vm10, %v9079_v57, %v9080_v62  ;;  %v9383_v57 = vsel %vm15980_vm15, %v16574_v18, 0  ;;  %v9362_v18 = vld [vmem:[#allocation2 + $0x98] sm:$0x1f] }
 0x54d   : > { %v9410_v26 = vor.u32 %v9409_v14, %v9406_v56  ;;  %v9465_v56 = vrot.slane %v9463_v61, 4  ;;  %v9468_v14 = vrot.slane %v9466_v51, 5  ;;  %v9509_v60 = vshll.u32 %v9383_v57, 16 }
 0x54f   : > { %12827 = vmatpush3.bf16.msra.mxu1 %v13641_v47  ;;  %v9429_v47 = vshrl.u32 %v9374_v8, 16  ;;  %v9419_v38 = vsel %vm346_vm0, %v9410_v26, %v9418_v21  ;;  %v9381_v8 = vsel %vm15980_vm15, %v16572_v52, 0  ;;  %v9500_v26 = vshll.u32 %v9382_v42, 16 }
 0x550   : > { %12828 = vmatprep.subr.bf16.mxu1 %v13642_v45  ;;  %v9489_v62 = vshrl.u32 %v9381_v8, 16  ;;  %v9384_v21 = vsel %vm15980_vm15, %v9361_v40, 0  ;;  %v9469_v35 = vor.u32 %v9468_v14, %v9465_v56 }
 0x551   : > { %v9431_v5 = vrot.slane %v9429_v47, 4  ;;  %v9517_v12 = vshll.u32 %v9384_v21, 16  ;;  %v9502_v22 = vrot.slane %v9500_v26, 5 }
 0x552   : > { %12797 = vmatmul.mubr.bf16.gmra.mrb[12].mxu1 %v9057_v50 }
 0x553   : > { %12800 = vmatprep.mubr.bf16.mxu1 %v9060_v3  ;;  %12829 = vmatpush3.bf16.msra.mxu1 %v13642_v45  ;;  %v9376_v45 = vsel %vm15980_vm15, %v9357_v37, 0  ;;  %v9460_v37 = vrot.slane %v9458_v6, 5 }
 0x554   : > { %12830 = vmatprep.subr.bf16.mxu1 %v13643_v34  ;;  %v9446_v50 = vshrl.u32 %v9376_v45, 16  ;;  %v9449_v3 = vshll.u32 %v9376_v45, 16  ;;  %v9497_v45 = vshrl.u32 %v9382_v42, 16 }
 0x556   : > { %v9451_v30 = vrot.slane %v9449_v3, 5  ;;  %v9506_v3 = vshrl.u32 %v9383_v57, 16 }
 0x557   : > { %12831 = vmatpush3.bf16.msra.mxu1 %v13643_v34  ;;  %v9441_v34 = vshll.u32 %v9375_v44, 16 }
 0x559   : > { %v9443_v53 = vrot.slane %v9441_v34, 5 }
 0x55a   : > { %12801 = vmatmul.mubr.bf16.gmra.mrb[16].mxu1 %v9063_v36  ;;  %v9434_v36 = vrot.slane %v9432_v48, 5  ;;  %v9492_v48 = vshll.u32 %v9381_v8, 16 }
 0x55b   : > { %12804 = vmatprep.mubr.bf16.mxu1 %v9066_v43  ;;  %v9359_v43 = vld [vmem:[#allocation2 + $0x68] sm:$0x1f]  ;;  %v9444_v27 = vor.u32 %v9443_v53, %v9440_v63  ;;  %v9387_v63 = vsel %vm15980_vm15, %v16584_v39, 0 }
 0x55c   : > { %v9435_v24 = vor.u32 %v9434_v36, %v9431_v5  ;;  %v9491_v5 = vrot.slane %v9489_v62, 4  ;;  %v9494_v36 = vrot.slane %v9492_v48, 5  ;;  %v9540_v32 = vshrl.u32 %v9387_v63, 16 }
 0x55e   : > { %v9436_v44 = vsel %vm346_vm0, %v9427_v7, %v9435_v24  ;;  %v9519_v24 = vrot.slane %v9517_v12, 5 }
 0x562   : > { %12805 = vmatmul.mubr.bf16.gmra.mrb[20].mxu1 %v9069_v9  ;;  %v9448_v9 = vrot.slane %v9446_v50, 4 }
 0x563   : > { %12808 = vmatprep.mubr.bf16.mxu1 %v9072_v15  ;;  %v9380_v15 = vsel %vm15980_vm15, %v9359_v43, 0  ;;  %v9499_v43 = vrot.slane %v9497_v45, 4 }
 0x564   : > { %v9480_v59 = vshrl.u32 %v9380_v15, 16  ;;  %v9483_v23 = vshll.u32 %v9380_v15, 16  ;;  %v9452_v55 = vor.u32 %v9451_v30, %v9448_v9  ;;  %v9508_v9 = vrot.slane %v9506_v3, 4 }
 0x565   : > { %v9386_v30 = vsel %vm15980_vm15, %v9362_v18, 0  ;;  %v9511_v15 = vrot.slane %v9509_v60, 5  ;;  %v9503_v6 = vor.u32 %v9502_v22, %v9499_v43  ;;  %v9367_v22 = vld [vmem:[#allocation2 + $0xe8] sm:$0x1f] }
 0x566   : > { %v9482_v33 = vrot.slane %v9480_v59, 4  ;;  %v9485_v47 = vrot.slane %v9483_v23, 5  ;;  %v9453_v52 = vsel %vm346_vm0, %v9444_v27, %v9452_v55  ;;  %v9531_v51 = vshrl.u32 %v9386_v30, 16  ;;  %v9364_v27 = vld [vmem:[#allocation2 + $0xb8] sm:$0x1f] }
 0x567   : > { %v9543_v59 = vshll.u32 %v9387_v63, 16  ;;  %v9512_v55 = vor.u32 %v9511_v15, %v9508_v9  ;;  %v9390_v40 = vsel %vm15980_vm15, %v9364_v27, 0 }
 0x568   : > { %v9486_v50 = vor.u32 %v9485_v47, %v9482_v33  ;;  %v9533_v14 = vrot.slane %v9531_v51, 4  ;;  %v9565_v45 = vshrl.u32 %v9390_v40, 16  ;;  %v9568_v26 = vshll.u32 %v9390_v40, 16 }
 0x569   : > { %v9545_v33 = vrot.slane %v9543_v59, 5 }
 0x56a   : > { %12809 = vmatmul.mubr.bf16.gmra.mrb[24].mxu1 %v9075_v13  ;;  %v9457_v13 = vrot.slane %v9455_v0, 4  ;;  %v9388_v0 = vsel %vm15980_vm15, %v9363_v54, 0  ;;  %v9570_v43 = vrot.slane %v9568_v26, 5  ;;  %v9393_v54 = vsel %vm15980_vm15, %v16602_v20, 0 }
 0x56b   : > { %12812 = vmatprep.mubr.bf16.mxu1 %v9078_v2  ;;  %v9474_v2 = vrot.slane %v9472_v29, 4  ;;  %v9534_v29 = vshll.u32 %v9386_v30, 16  ;;  %v9548_v23 = vshrl.u32 %v9388_v0, 16  ;;  %v9551_v31 = vshll.u32 %v9388_v0, 16 }
 0x56c   : > { %v9461_v58 = vor.u32 %v9460_v37, %v9457_v13 }
 0x56d   : > { %v9478_v34 = vor.u32 %v9477_v49, %v9474_v2  ;;  %v9536_v42 = vrot.slane %v9534_v29, 5  ;;  %v9365_v2 = vld [vmem:[#allocation2 + $0xc8] sm:$0x1f]  ;;  %v9542_v49 = vrot.slane %v9540_v32, 4  ;;  %v9550_v47 = vrot.slane %v9548_v23, 4 }
 0x56e   : > { %v9470_v1 = vsel %vm346_vm0, %v9461_v58, %v9469_v35  ;;  %v9553_v57 = vrot.slane %v9551_v31, 5  ;;  %v9397_v31 = vsel %vm15980_vm15, %v16611_v41, 0  ;;  %v9399_v41 = vsel %vm15980_vm15, %v16619_v10, 0 }
 0x56f   : > { %v9487_v53 = vsel %vm346_vm0, %v9478_v34, %v9486_v50  ;;  %v9537_v35 = vor.u32 %v9536_v42, %v9533_v14  ;;  %v9546_v34 = vor.u32 %v9545_v33, %v9542_v49  ;;  %v9401_v10 = vsel %vm15980_vm15, %v16634_v16, 0 }
 0x570   : > { %v9554_v50 = vor.u32 %v9553_v57, %v9550_v47 }
 0x572   : > { %12813 = vmatmul.mubr.bf16.gmra.mrb[28].mxu1 %v9081_v28  ;;  %v9514_v28 = vshrl.u32 %v9384_v21, 16  ;;  %v9392_v21 = vsel %vm15980_vm15, %v9365_v2, 0 }
 0x573   : > { %12832 = vmatprep.mubr.bf16.mxu1 %v9419_v38  ;;  %v9385_v38 = vsel %vm15980_vm15, %v16582_v11, 0  ;;  %v9495_v11 = vor.u32 %v9494_v36, %v9491_v5  ;;  %v9585_v12 = vshll.u32 %v9392_v21, 16  ;;  %v9567_v36 = vrot.slane %v9565_v45, 4 }
 0x574   : > { %v9516_v7 = vrot.slane %v9514_v28, 4  ;;  %v9523_v61 = vshrl.u32 %v9385_v38, 16  ;;  %v9526_v39 = vshll.u32 %v9385_v38, 16  ;;  %v9582_v28 = vshrl.u32 %v9392_v21, 16 }
 0x575   : > { %v9504_v13 = vsel %vm346_vm0, %v9495_v11, %v9503_v6  ;;  %v9395_v38 = vsel %vm15980_vm15, %v16604_v25, 0  ;;  %v9571_v0 = vor.u32 %v9570_v43, %v9567_v36  ;;  %v9591_v11 = vshrl.u32 %v9393_v54, 16 }
 0x576   : > { %v9520_v8 = vor.u32 %v9519_v24, %v9516_v7  ;;  %v9525_v37 = vrot.slane %v9523_v61, 4  ;;  %v9528_v56 = vrot.slane %v9526_v39, 5  ;;  %v9584_v15 = vrot.slane %v9582_v28, 4 }
 0x577   : > { %v9587_v7 = vrot.slane %v9585_v12, 5  ;;  %v9396_v24 = vsel %vm15980_vm15, %v9367_v22, 0  ;;  %v9594_v25 = vshll.u32 %v9393_v54, 16  ;;  %v9608_v39 = vshrl.u32 %v9395_v38, 16 }
 0x578   : > { %v9529_v58 = vor.u32 %v9528_v56, %v9525_v37  ;;  %v9611_v51 = vshll.u32 %v9395_v38, 16  ;;  %v9616_v29 = vshrl.u32 %v9396_v24, 16  ;;  %v9619_v32 = vshll.u32 %v9396_v24, 16  ;;  %v9369_v56 = vld [vmem:[#allocation2 + $0x108] sm:$0x1f] }
 0x579   : > { %v9588_v23 = vor.u32 %v9587_v7, %v9584_v15  ;;  %v9610_v14 = vrot.slane %v9608_v39, 4  ;;  %v9400_v47 = vsel %vm15980_vm15, %v9369_v56, 0 }
 0x57a   : > { %12833 = vmatmul.mubr.bf16.vlgmr.msra.gmra.mrb[0].mxu1 %v9436_v44  ;;  %v9389_v44 = vsel %vm15980_vm15, %v16592_v46, 0  ;;  %v9521_v46 = vsel %vm346_vm0, %v9512_v55, %v9520_v8  ;;  %v9538_v63 = vsel %vm346_vm0, %v9529_v58, %v9537_v35  ;;  %v9368_v55 = vld [vmem:[#allocation2 + $0xf8] sm:$0x1f]  ;;  %v9593_v8 = vrot.slane %v9591_v11, 4 }
 0x57b   : > { %12836 = vmatprep.mubr.bf16.mxu1 %v9453_v52  ;;  %v9391_v52 = vsel %vm15980_vm15, %v16594_v4, 0  ;;  %v9557_v62 = vshrl.u32 %v9389_v44, 16  ;;  %v9560_v48 = vshll.u32 %v9389_v44, 16  ;;  %v9366_v4 = vld [vmem:[#allocation2 + $0xd8] sm:$0x1f]  ;;  %v9596_v44 = vrot.slane %v9594_v25, 5 }
 0x57c   : > { %v9574_v3 = vshrl.u32 %v9391_v52, 16  ;;  %v9577_v60 = vshll.u32 %v9391_v52, 16  ;;  %v9394_v9 = vsel %vm15980_vm15, %v9366_v4, 0  ;;  %v9613_v42 = vrot.slane %v9611_v51, 5  ;;  %v9370_v58 = vld [vmem:[#allocation2 + $0x118] sm:$0x1f] }
 0x57d   : > { %v9559_v18 = vrot.slane %v9557_v62, 4  ;;  %v9562_v5 = vrot.slane %v9560_v48, 5  ;;  %v9599_v6 = vshrl.u32 %v9394_v9, 16  ;;  %v9602_v61 = vshll.u32 %v9394_v9, 16  ;;  %v11357_v51 = vld [vmem:[%s14032_s10 + $0x18] sm:$0xf] }
 0x57e   : > { %v9579_v30 = vrot.slane %v9577_v60, 5  ;;  %v9618_v40 = vrot.slane %v9616_v29, 4  ;;  %v9621_v2 = vrot.slane %v9619_v32, 5  ;;  %v9398_v33 = vsel %vm15980_vm15, %v9368_v55, 0  ;;  %v11358_v29 = vld [vmem:[%s14032_s10 + $0x1c] sm:$0xf] }
 0x57f   : > { %v9563_v20 = vor.u32 %v9562_v5, %v9559_v18  ;;  %v9604_v37 = vrot.slane %v9602_v61, 5  ;;  %v9597_v57 = vor.u32 %v9596_v44, %v9593_v8  ;;  %v9628_v62 = vshll.u32 %v9397_v31, 16  ;;  %v11354_v32 = vld [vmem:[%s14032_s10 + $0xc] sm:$0xf] }
 0x580   : > { %v9614_v48 = vor.u32 %v9613_v42, %v9610_v14  ;;  %v9622_v45 = vor.u32 %v9621_v2, %v9618_v40  ;;  %v9633_v26 = vshrl.u32 %v9398_v33, 16  ;;  %v9636_v21 = vshll.u32 %v9398_v33, 16  ;;  %v11359_v33 = vld [vmem:[%s14032_s10 + $0x20] sm:$0x1] }
 0x581   : > { %v9572_v27 = vsel %vm346_vm0, %v9563_v20, %v9571_v0  ;;  %v9642_v35 = vshrl.u32 %v9399_v41, 16  ;;  %v9402_v12 = vsel %vm15980_vm15, %v9370_v58, 0  ;;  %v9630_v18 = vrot.slane %v9628_v62, 5 }
 0x582   : > { %12837 = vmatmul.mubr.bf16.gmra.mrb[4].mxu1 %v9470_v1  ;;  %v9555_v1 = vsel %vm346_vm0, %v9546_v34, %v9554_v50  ;;  %v9645_v34 = vshll.u32 %v9399_v41, 16  ;;  %v9650_v50 = vshrl.u32 %v9400_v47, 16  ;;  %v9623_v4 = vsel %vm346_vm0, %v9614_v48, %v9622_v45 }
 0x583   : > { %12840 = vmatprep.mubr.bf16.mxu1 %v9487_v53  ;;  %v9576_v53 = vrot.slane %v9574_v3, 4  ;;  %v9653_v3 = vshll.u32 %v9400_v47, 16  ;;  %v9635_v5 = vrot.slane %v9633_v26, 4  ;;  %v9638_v36 = vrot.slane %v9636_v21, 5  ;;  %v11361_v21 = vld [vmem:[%s14032_s10 + $0x28] sm:$0xf] }
 0x584   : > { %v9644_v43 = vrot.slane %v9642_v35, 4  ;;  %v9647_v22 = vrot.slane %v9645_v34, 5  ;;  %v9652_v54 = vrot.slane %v9650_v50, 4  ;;  %v9667_v16 = vshrl.u32 %v9402_v12, 16  ;;  %v11356_v35 = vld [vmem:[%s14032_s10 + $0x14] sm:$0x1] }
 0x585   : > { %v9580_v59 = vor.u32 %v9579_v30, %v9576_v53  ;;  %v9655_v38 = vrot.slane %v9653_v3, 5  ;;  %v9670_v53 = vshll.u32 %v9402_v12, 16  ;;  %v9639_v30 = vor.u32 %v9638_v36, %v9635_v5 }
 0x586   : > { %v9648_v17 = vor.u32 %v9647_v22, %v9644_v43  ;;  %v9669_v20 = vrot.slane %v9667_v16, 4  ;;  %v10030_v55 = vshll.u32 %v11358_v29, 16  ;;  %v10034_v8 = vshrl.u32 %v11358_v29, 16  ;;  %v11365_v16 = vld [vmem:[%s14032_s10 + $0x38] sm:$0x1] }
 0x587   : > { %v9589_v49 = vsel %vm346_vm0, %v9580_v59, %v9588_v23  ;;  %v9656_v15 = vor.u32 %v9655_v38, %v9652_v54  ;;  %v9672_v0 = vrot.slane %v9670_v53, 5  ;;  %v10021_v59 = vshrl.u32 %v11357_v51, 16 }
 0x588   : > { %v10024_v23 = vshll.u32 %v11357_v51, 16  ;;  %v9997_v44 = vshrl.u32 %v11354_v32, 16  ;;  %v10036_v41 = vrot.slane %v10034_v8, 4  ;;  %v10040_v50 = vshll.u32 %v11359_v33, 16 }
 0x589   : > { %v9657_v25 = vsel %vm346_vm0, %v9648_v17, %v9656_v15  ;;  %v9673_v61 = vor.u32 %v9672_v0, %v9669_v20  ;;  %v10023_v40 = vrot.slane %v10021_v59, 4  ;;  %v10054_v12 = vshll.u32 %v11361_v21, 16  ;;  %v11362_v0 = vld [vmem:[%s14032_s10 + $0x2c] sm:$0x1] }
 0x58a   : > { %12841 = vmatmul.mubr.bf16.gmra.mrb[8].mxu1 %v9504_v13  ;;  %v9601_v13 = vrot.slane %v9599_v6, 4  ;;  %v10026_v2 = vrot.slane %v10024_v23, 5  ;;  %v9999_v47 = vrot.slane %v9997_v44, 4  ;;  %v10016_v36 = vshll.u32 %v11356_v35, 16 }
 0x58b   : > { %12844 = vmatprep.mubr.bf16.mxu1 %v9521_v46  ;;  %v9625_v46 = vshrl.u32 %v9397_v31, 16  ;;  %v11355_v31 = vld [vmem:[%s14032_s10 + $0x10] sm:$0xf]  ;;  %v10042_v38 = vrot.slane %v10040_v50, 5  ;;  %v10064_v59 = vshll.u32 %v11362_v0, 16 }
 0x58c   : > { %v9605_v52 = vor.u32 %v9604_v37, %v9601_v13  ;;  %v10000_v13 = vshll.u32 %v11354_v32, 16  ;;  %v10006_v37 = vshll.u32 %v11355_v31, 16  ;;  %v10010_v56 = vshrl.u32 %v11355_v31, 16  ;;  %v11373_v50 = vld [vmem:[%s14032_s10 + $0x58] sm:$0xf] }
 0x58d   : > { %v9627_v28 = vrot.slane %v9625_v46, 4  ;;  %v11360_v46 = vld [vmem:[%s14032_s10 + $0x24] sm:$0xf]  ;;  %v10027_v58 = vor.u32 %v10026_v2, %v10023_v40 }
 0x58e   : > { %v9606_v60 = vsel %vm346_vm0, %v9597_v57, %v9605_v52  ;;  %v10002_v57 = vrot.slane %v10000_v13, 5  ;;  %v11364_v52 = vld [vmem:[%s14032_s10 + $0x34] sm:$0xf]  ;;  %v10008_v62 = vrot.slane %v10006_v37, 5  ;;  %v10012_v48 = vrot.slane %v10010_v56, 4 }
 0x58f   : > { %v9631_v9 = vor.u32 %v9630_v18, %v9627_v28  ;;  %v10078_v3 = vshll.u32 %v11364_v52, 16  ;;  %v10048_v28 = vshll.u32 %v11360_v46, 16  ;;  %v10028_v22 = vrot.slane %v10027_v58, 4 }
 0x590   : > { %v10003_v18 = vor.u32 %v10002_v57, %v9999_v47  ;;  %v10013_v5 = vor.u32 %v10012_v48, %v10008_v62  ;;  %v11367_v47 = vld [vmem:[%s14032_s10 + $0x40] sm:$0xf] }
 0x591   : > { %v9640_v11 = vsel %vm346_vm0, %v9631_v9, %v9639_v30  ;;  %v10050_v53 = vrot.slane %v10048_v28, 5  ;;  %v16734_v9 = vrot.slane %v10054_v12, 5  ;;  %v11375_v48 = vld [vmem:[%s14032_s10 + $0x60] sm:$0xf]  ;;  %v11371_v28 = vld [vmem:[%s14032_s10 + $0x50] sm:$0x1] }
 0x592   : > { %12845 = vmatmul.mubr.bf16.gmra.mrb[12].mxu1 %v9538_v63  ;;  %v9659_v63 = vshrl.u32 %v9401_v10, 16  ;;  %v10004_v15 = vrot.slane %v10003_v18, 4  ;;  %v10168_v18 = vshll.u32 %v11375_v48, 16 }
 0x593   : > { %12848 = vmatprep.mubr.bf16.mxu1 %v9555_v1  ;;  %v9662_v1 = vshll.u32 %v9401_v10, 16  ;;  %v10045_v10 = vshrl.u32 %v11360_v46, 16 }
 0x594   : > { %v9661_v7 = vrot.slane %v9659_v63, 4  ;;  %v10080_v63 = vrot.slane %v10078_v3, 5  ;;  %v10009_v23 = vsel %vm14069_vm2, %v10004_v15, %v10008_v62 }
 0x595   : > { %v9664_v24 = vrot.slane %v9662_v1, 5  ;;  %v10047_v1 = vrot.slane %v10045_v10, 4  ;;  %v16762_v57 = vunpack.c.l.bf16 %v10009_v23  ;;  %v10102_v10 = vshll.u32 %v11367_v47, 16  ;;  %v11374_v23 = vld [vmem:[%s14032_s10 + $0x5c] sm:$0x1] }
 0x597   : > { %v9665_v6 = vor.u32 %v9664_v24, %v9661_v7  ;;  %v10014_v7 = vrot.slane %v10013_v5, 4  ;;  %v10018_v24 = vrot.slane %v10016_v36, 5  ;;  %v10051_v51 = vor.u32 %v10050_v53, %v10047_v1 }
 0x598   : > { %v10136_v53 = vshll.u32 %v11371_v28, 16 }
 0x599   : > { %v9674_v39 = vsel %vm346_vm0, %v9665_v6, %v9673_v61  ;;  %v11369_v6 = vld [vmem:[%s14032_s10 + $0x48] sm:$0xf]  ;;  %v11370_v61 = vld [vmem:[%s14032_s10 + $0x4c] sm:$0xf]  ;;  %v10052_v2 = vrot.slane %v10051_v51, 4 }
 0x59a   : > { %12849 = vmatmul.mubr.bf16.gmra.mrb[16].mxu1 %v9572_v27  ;;  %v11363_v27 = vld [vmem:[%s14032_s10 + $0x30] sm:$0xf]  ;;  %v10117_v8 = vshrl.u32 %v11369_v6, 16  ;;  %v10120_v44 = vshll.u32 %v11369_v6, 16  ;;  %v10126_v13 = vshll.u32 %v11370_v61, 16 }
 0x59b   : > { %12852 = vmatprep.mubr.bf16.mxu1 %v9589_v49  ;;  %v10069_v14 = vshrl.u32 %v11363_v27, 16  ;;  %v10072_v42 = vshll.u32 %v11363_v27, 16  ;;  %v10032_v49 = vrot.slane %v10030_v55, 5  ;;  %v10019_v27 = vsel %vm14069_vm2, %v10014_v7, %v10018_v24  ;;  %v11381_v24 = vld [vmem:[%s14032_s10 + $0x78] sm:$0xf] }
 0x59c   : > { %v16766_v46 = vunpack.c.l.bf16 %v10019_v27  ;;  %v10122_v58 = vrot.slane %v10120_v44, 5  ;;  %v16773_v35 = vrot.slane %v10126_v13, 5  ;;  %v10216_v27 = vshll.u32 %v11381_v24, 16 }
 0x59d   : > { %v10071_v45 = vrot.slane %v10069_v14, 4  ;;  %v10074_v26 = vrot.slane %v10072_v42, 5  ;;  %v10037_v34 = vor.u32 %v10036_v41, %v10032_v49  ;;  %v10130_v42 = vshrl.u32 %v11370_v61, 16 }
 0x59e   : > { %v16759_v41 = vrot.slane %v10064_v59, 5  ;;  %v10138_v44 = vrot.slane %v10136_v53, 5 }
 0x59f   : > { %v10075_v43 = vor.u32 %v10074_v26, %v10071_v45  ;;  %v10038_v54 = vrot.slane %v10037_v34, 4  ;;  %v11376_v45 = vld [vmem:[%s14032_s10 + $0x64] sm:$0xf]  ;;  %v11372_v26 = vld [vmem:[%s14032_s10 + $0x54] sm:$0xf]  ;;  %v10132_v12 = vrot.slane %v10130_v42, 4 }
 0x5a0   : > { %v10174_v5 = vshll.u32 %v11376_v45, 16  ;;  %v10141_v36 = vshrl.u32 %v11372_v26, 16 }
 0x5a1   : > { %v10076_v20 = vrot.slane %v10075_v43, 4  ;;  %v10043_v31 = vsel %vm14069_vm2, %v10038_v54, %v10042_v38  ;;  %v10178_v43 = vshrl.u32 %v11376_v45, 16  ;;  %v10150_v54 = vshll.u32 %v11373_v50, 16 }
 0x5a2   : > { %12853 = vmatmul.mubr.bf16.gmra.mrb[20].mxu1 %v9606_v60  ;;  %v10082_v60 = vshrl.u32 %v11364_v52, 16  ;;  %v16764_v52 = vunpack.c.l.bf16 %v10043_v31  ;;  %v10154_v38 = vshrl.u32 %v11373_v50, 16  ;;  %v10133_v15 = vor.u32 %v10132_v12, %v16773_v35 }
 0x5a3   : > { %12856 = vmatprep.mubr.bf16.mxu1 %v9623_v4  ;;  %v10058_v4 = vshrl.u32 %v11361_v21, 16  ;;  %v10081_v55 = vsel %vm14069_vm2, %v10076_v20, %v10080_v63  ;;  %v10119_v21 = vrot.slane %v10117_v8, 4  ;;  %v11368_v20 = vld [vmem:[%s14032_s10 + $0x44] sm:$0x1]  ;;  %v16791_v61 = vrot.slane %v10150_v54, 5 }
 0x5a4   : > { %v10084_v30 = vrot.slane %v10082_v60, 4  ;;  %v16768_v62 = vunpack.c.l.bf16 %v10081_v55  ;;  %v10106_v60 = vshrl.u32 %v11367_v47, 16  ;;  %v10180_v51 = vrot.slane %v10178_v43, 4 }
 0x5a5   : > { %v10060_v17 = vrot.slane %v10058_v4, 4  ;;  %v10165_v4 = vshrl.u32 %v11375_v48, 16  ;;  %v10213_v31 = vshrl.u32 %v11381_v24, 16  ;;  %v10134_v8 = vrot.slane %v10133_v15, 4 }
 0x5a6   : > { %v10085_v29 = vor.u32 %v10084_v30, %v10080_v63  ;;  %v10057_v63 = vsel %vm14069_vm2, %v10052_v2, %v16734_v9  ;;  %v10108_v7 = vrot.slane %v10106_v60, 4  ;;  %v10112_v13 = vshll.u32 %v11368_v20, 16 }
 0x5a7   : > { %v10061_v32 = vor.u32 %v10060_v17, %v16734_v9  ;;  %v16784_v17 = vrot.slane %v10102_v10, 5  ;;  %v10167_v0 = vrot.slane %v10165_v4, 4  ;;  %v16789_v9 = vrot.slane %v10174_v5, 5 }
 0x5a8   : > { %v10114_v50 = vrot.slane %v10112_v13, 5  ;;  %v10139_v28 = vsel %vm14069_vm2, %v10134_v8, %v10138_v44 }
 0x5a9   : > { %v16757_v33 = vrot.slane %v10061_v32, 4  ;;  %v16794_v32 = vunpack.c.l.bf16 %v10057_v63  ;;  %v10109_v42 = vor.u32 %v10108_v7, %v16784_v17  ;;  %v10181_v48 = vor.u32 %v10180_v51, %v16789_v9  ;;  %v16840_v51 = vld [vmem:[%s17076_s4] ss:$0 sm:$0xff] }
 0x5aa   : > { %12857 = vmatmul.mubr.bf16.gmra.mrb[24].mxu1 %v9640_v11  ;;  %v10088_v11 = vshll.u32 %v11365_v16, 16  ;;  %v10123_v16 = vor.u32 %v10122_v58, %v10119_v21  ;;  %v16821_v7 = vunpack.c.l.bf16 %v10139_v28 }
 0x5ab   : > { %12860 = vmatprep.mubr.bf16.mxu1 %v9657_v25  ;;  %v10033_v25 = vsel %vm14069_vm2, %v10028_v22, %v10032_v49  ;;  %v16755_v49 = vrot.slane %v10085_v29, 4  ;;  %v10144_v22 = vshll.u32 %v11372_v26, 16  ;;  %v10156_v29 = vrot.slane %v10154_v38, 4 }
 0x5ac   : > { %v16751_v56 = vunpack.c.l.bf16 %v10033_v25  ;;  %v16753_v14 = vrot.slane %v10088_v11, 5  ;;  %v10170_v11 = vrot.slane %v10168_v18, 5  ;;  %v10143_v25 = vrot.slane %v10141_v36, 4 }
 0x5ad   : > { %v10146_v6 = vrot.slane %v10144_v22, 5  ;;  %v10067_v59 = vsel %vm14069_vm2, %v16757_v33, %v16759_v41  ;;  %v10124_v55 = vrot.slane %v10123_v16, 4  ;;  %v10157_v45 = vor.u32 %v10156_v29, %v16791_v61 }
 0x5ae   : > { %v10091_v1 = vsel %vm14069_vm2, %v16755_v49, %v16753_v14  ;;  %v11382_v49 = vld [vmem:[%s14032_s10 + $0x7c] sm:$0xf]  ;;  %v10160_v33 = vshll.u32 %v11374_v23, 16  ;;  %v10215_v41 = vrot.slane %v10213_v31, 4  ;;  %v10218_v26 = vrot.slane %v10216_v27, 5 }
 0x5af   : > { %v10147_v47 = vor.u32 %v10146_v6, %v10143_v25  ;;  %v10226_v10 = vshrl.u32 %v11382_v49, 16  ;;  %v10110_v12 = vrot.slane %v10109_v42, 4  ;;  %v10182_v5 = vrot.slane %v10181_v48, 4  ;;  %v11380_v31 = vld [vmem:[%s14032_s10 + $0x74] sm:$0x1] }
 0x5b0   : > { %v10162_v43 = vrot.slane %v10160_v33, 5  ;;  %v10158_v22 = vrot.slane %v10157_v45, 4  ;;  %v10219_v54 = vor.u32 %v10218_v26, %v10215_v41  ;;  %v16815_v16 = vunpack.c.l.bf16 %v10091_v1 }
 0x5b1   : > { %v10148_v18 = vrot.slane %v10147_v47, 4  ;;  %v16817_v53 = vunpack.c.l.bf16 %v10067_v59  ;;  %v10115_v24 = vsel %vm14069_vm2, %v10110_v12, %v10114_v50  ;;  %v10208_v48 = vshll.u32 %v11380_v31, 16 }
 0x5b2   : > { %12861 = vmatmul.mubr.bf16.gmra.mrb[28].mxu1 %v9674_v39  ;;  %v11366_v39 = vld [vmem:[%s14032_s10 + $0x3c] sm:$0xf]  ;;  %v10220_v29 = vrot.slane %v10219_v54, 4  ;;  %v16845_v27 = vunpack.c.l.bf16 %v10115_v24 }
 0x5b3   : > { %v10093_v37 = vshrl.u32 %v11366_v39, 16  ;;  %v10096_v40 = vshll.u32 %v11366_v39, 16  ;;  %v11377_v39 = vld [vmem:[%s14032_s10 + $0x68] sm:$0x1]  ;;  %v10153_v1 = vsel %vm14069_vm2, %v10148_v18, %v16791_v61 }
 0x5b4   : > { %v10184_v2 = vshll.u32 %v11377_v39, 16  ;;  %v11387_v39 = vld [vmem:[%s14032_s10 + $0x90] sm:$0xf]  ;;  %v16849_v13 = vunpack.c.l.bf16 %v10153_v1 }
 0x5b5   : > { %v10095_v34 = vrot.slane %v10093_v37, 4  ;;  %v10098_v3 = vrot.slane %v10096_v40, 5  ;;  %v11378_v37 = vld [vmem:[%s14032_s10 + $0x6c] sm:$0xf]  ;;  %v10171_v40 = vor.u32 %v10170_v11, %v10167_v0  ;;  %v11383_v0 = vld [vmem:[%s14032_s10 + $0x80] sm:$0x1] }
 0x5b6   : > { %v10189_v21 = vshrl.u32 %v11378_v37, 16  ;;  %v10192_v58 = vshll.u32 %v11378_v37, 16  ;;  %v10186_v36 = vrot.slane %v10184_v2, 5  ;;  %v10232_v8 = vshll.u32 %v11383_v0, 16 }
 0x5b7   : > { %v10099_v30 = vor.u32 %v10098_v3, %v10095_v34  ;;  %v10129_v34 = vsel %vm14069_vm2, %v10124_v55, %v16773_v35  ;;  %v10222_v3 = vshll.u32 %v11382_v49, 16  ;;  %v10172_v4 = vrot.slane %v10171_v40, 4  ;;  %v11379_v35 = vld [vmem:[%s14032_s10 + $0x70] sm:$0xf] }
 0x5b8   : > { %v10191_v38 = vrot.slane %v10189_v21, 4  ;;  %v10194_v63 = vrot.slane %v10192_v58, 5  ;;  %v16819_v15 = vunpack.c.l.bf16 %v10129_v34  ;;  %v10187_v25 = vsel %vm14069_vm2, %v10182_v5, %v10186_v36  ;;  %v11388_v58 = vld [vmem:[%s14032_s10 + $0x94] sm:$0xf]  ;;  %v11384_v5 = vld [vmem:[%s14032_s10 + $0x84] sm:$0xf] }
 0x5b9   : > { %v10100_v14 = vrot.slane %v10099_v30, 4  ;;  %v10224_v30 = vrot.slane %v10222_v3, 5  ;;  %v10177_v20 = vsel %vm14069_vm2, %v10172_v4, %v16789_v9  ;;  %v10198_v6 = vshll.u32 %v11379_v35, 16 }
 0x5ba   : > { %v10163_v9 = vsel %vm14069_vm2, %v10158_v22, %v10162_v43  ;;  %v10195_v59 = vor.u32 %v10194_v63, %v10191_v38  ;;  %v10202_v23 = vshrl.u32 %v11379_v35, 16  ;;  %v16847_v61 = vunpack.c.l.bf16 %v10177_v20  ;;  %v11385_v63 = vld [vmem:[%s14032_s10 + $0x88] sm:$0xf] }
 0x5bb   : > { %v10105_v60 = vsel %vm14069_vm2, %v10100_v14, %v16784_v17  ;;  %v10228_v17 = vrot.slane %v10226_v10, 4  ;;  %v16851_v37 = vunpack.c.l.bf16 %v10187_v25  ;;  %v10261_v14 = vshrl.u32 %v11387_v39, 16 }
 0x5bc   : > { %v16829_v11 = vunpack.c.l.bf16 %v10105_v60  ;;  %v10264_v42 = vshll.u32 %v11387_v39, 16  ;;  %v16854_v49 = vunpack.c.l.bf16 %v10163_v9  ;;  %v10200_v47 = vrot.slane %v10198_v6, 5 }
 0x5bd   : > { %v10229_v55 = vor.u32 %v10228_v17, %v10224_v30  ;;  %v10225_v41 = vsel %vm14069_vm2, %v10220_v29, %v10224_v30  ;;  %v10196_v26 = vrot.slane %v10195_v59, 4  ;;  %v10204_v21 = vrot.slane %v10202_v23, 4 }
 0x5be   : > { %v10234_v60 = vrot.slane %v10232_v8, 5  ;;  %v10263_v4 = vrot.slane %v10261_v14, 4  ;;  %v10266_v18 = vrot.slane %v10264_v42, 5  ;;  %v16867_v43 = vunpack.c.l.bf16 %v10225_v41 }
 0x5bf   : > { %v10230_v10 = vrot.slane %v10229_v55, 4  ;;  %v16869_v22 = vrot.slane %v10208_v48, 5  ;;  %v10201_v35 = vsel %vm14069_vm2, %v10196_v26, %v10200_v47  ;;  %v10205_v38 = vor.u32 %v10204_v21, %v10200_v47  ;;  %v11386_v21 = vld [vmem:[%s14032_s10 + $0x8c] sm:$0x1] }
 0x5c0   : > { %v10267_v25 = vor.u32 %v10266_v18, %v10263_v4  ;;  %v10240_v6 = vshll.u32 %v11384_v5, 16  ;;  %v10246_v59 = vshll.u32 %v11385_v63, 16  ;;  %v10250_v8 = vshrl.u32 %v11385_v63, 16 }
 0x5c1   : > { %v10235_v24 = vsel %vm14069_vm2, %v10230_v10, %v10234_v60  ;;  %v10206_v47 = vrot.slane %v10205_v38, 4 }
 0x5c2   : > { %v10268_v41 = vrot.slane %v10267_v25, 4  ;;  %v10242_v26 = vrot.slane %v10240_v6, 5  ;;  %v16895_v10 = vrot.slane %v10246_v59, 5 }
 0x5c3   : > { %v10211_v18 = vsel %vm14069_vm2, %v10206_v47, %v16869_v22 }
 0x64d   : > { %v12834_v44 = vpop.f32.mrb[0].mxu1 }
 0x64e   : > { %v10453_v40 = vadd.f32 %v12834_v44, %v16840_v51  ;;  %v9789_v2 = vpop.f32.mrb[1].mxu1  ;;  %v11389_v44 = vld [vmem:[%s14032_s10 + $0x98] sm:$0x1] }
 0x64f   : > { %v10451_v45 = vadd.f32 %v16840_v51, %v9789_v2  ;;  %v12835_v33 = vpop.f32.mrb[2].mxu1 }
 0x650   : > { %v10485_v34 = vadd.f32 %v10453_v40, %v16751_v56  ;;  %v10454_v50 = vadd.f32 %v12835_v33, %v16840_v51  ;;  %v9792_v3 = vpop.f32.mrb[3].mxu1  ;;  %v10270_v56 = vshll.u32 %v11388_v58, 16 }
 0x651   : > { %v10483_v28 = vadd.f32 %v10451_v45, %v16762_v57  ;;  %v10452_v12 = vadd.f32 %v16840_v51, %v9792_v3  ;;  %v10274_v57 = vshrl.u32 %v11388_v58, 16 }
 0x652   : > { %v10486_v36 = vadd.f32 %v10454_v50, %v16764_v52  ;;  %v10517_v30 = vmax.f32 %v10485_v34, 0.0  ;;  %v10237_v52 = vshrl.u32 %v11384_v5, 16  ;;  %v10272_v29 = vrot.slane %v10270_v56, 5 }
 0x653   : > { %v10484_v54 = vadd.f32 %v10452_v12, %v16766_v46  ;;  %v10515_v20 = vmax.f32 %v10483_v28, 0.0  ;;  %v10276_v14 = vrot.slane %v10274_v57, 4  ;;  %v16890_v34 = vunpack.c.l.bf16 %v10201_v35  ;;  %v11393_v12 = vld [vmem:[%s14032_s10 + $0xa8] sm:$0xf] }
 0x654   : > { %v10518_v17 = vmax.f32 %v10486_v36, 0.0  ;;  %v10239_v48 = vrot.slane %v10237_v52, 4  ;;  %v16892_v50 = vunpack.c.l.bf16 %v10235_v24  ;;  %v10252_v28 = vrot.slane %v10250_v8, 4 }
 0x655   : > { %v10516_v0 = vmax.f32 %v10484_v54, 0.0  ;;  %v12838_v1 = vpop.f32.mrb[4].mxu1  ;;  %v10277_v60 = vor.u32 %v10276_v14, %v10272_v29  ;;  %v10256_v5 = vshll.u32 %v11386_v21, 16 }
 0x656   : > { %v11481_v39 = vpack.c.bf16 %v10518_v17, %v10517_v30  ;;  %v10457_v46 = vadd.f32 %v12838_v1, %v16840_v51  ;;  %v9805_v9 = vpop.f32.mrb[5].mxu1  ;;  %v10243_v54 = vor.u32 %v10242_v26, %v10239_v48  ;;  %v10309_v30 = vshrl.u32 %v11393_v12, 16 }
 0x657   : > { %v11476_v23 = vpack.c.bf16 %v10516_v0, %v10515_v20  ;;  %v10455_v31 = vadd.f32 %v16840_v51, %v9805_v9  ;;  %v12839_v55 = vpop.f32.mrb[6].mxu1  ;;  %v10278_v52 = vrot.slane %v10277_v60, 4  ;;  %v10253_v20 = vor.u32 %v10252_v28, %v16895_v10  ;;  %v11394_v0 = vld [vmem:[%s14032_s10 + $0xac] sm:$0xf] }
 0x658   : > { %11553 = vst [vmem:[%s16880_s12 + $0x8] sm:$0xff] %v11481_v39   ;;  %v10489_v42 = vadd.f32 %v10457_v46, %v16768_v62  ;;  %v10458_v40 = vadd.f32 %v12839_v55, %v16840_v51  ;;  %v9808_v2 = vpop.f32.mrb[7].mxu1  ;;  %v10280_v62 = vshll.u32 %v11389_v44, 16  ;;  %v16910_v39 = vunpack.c.l.bf16 %v10211_v18 }
 0x659   : > { %11477 = vst [vmem:[%s16880_s12] sm:$0xff] %v11476_v23   ;;  %v10487_v45 = vadd.f32 %v10455_v31, %v16794_v32  ;;  %v10456_v33 = vadd.f32 %v16840_v51, %v9808_v2  ;;  %v10312_v46 = vshll.u32 %v11393_v12, 16  ;;  %v10244_v23 = vrot.slane %v10243_v54, 4  ;;  %v11390_v31 = vld [vmem:[%s14032_s10 + $0x9c] sm:$0xf] }
 0x65a   : > { %v10490_v58 = vadd.f32 %v10458_v40, %v16815_v16  ;;  %v10521_v32 = vmax.f32 %v10489_v42, 0.0  ;;  %v10282_v63 = vrot.slane %v10280_v62, 5  ;;  %v10258_v8 = vrot.slane %v10256_v5, 5 }
 0x65b   : > { %v10488_v3 = vadd.f32 %v10456_v33, %v16817_v53  ;;  %v10519_v16 = vmax.f32 %v10487_v45, 0.0  ;;  %v10273_v53 = vsel %vm14069_vm2, %v10268_v41, %v10272_v29  ;;  %v10318_v44 = vshll.u32 %v11394_v0, 16  ;;  %v11391_v45 = vld [vmem:[%s14032_s10 + $0xa0] sm:$0xf] }
 0x65c   : > { %v10522_v4 = vmax.f32 %v10490_v58, 0.0  ;;  %v16915_v59 = vunpack.c.l.bf16 %v10273_v53  ;;  %v10283_v42 = vsel %vm14069_vm2, %v10278_v52, %v10282_v63  ;;  %v10254_v40 = vrot.slane %v10253_v20, 4 }
 0x65d   : > { %v10520_v36 = vmax.f32 %v10488_v3, 0.0  ;;  %v12842_v56 = vpop.f32.mrb[8].mxu1  ;;  %v10322_v2 = vshrl.u32 %v11394_v0, 16  ;;  %v10314_v48 = vrot.slane %v10312_v46, 5  ;;  %v10285_v33 = vshrl.u32 %v11390_v31, 16 }
 0x65e   : > { %v11491_v35 = vpack.c.bf16 %v10522_v4, %v10521_v32  ;;  %v10461_v38 = vadd.f32 %v12842_v56, %v16840_v51  ;;  %v9821_v57 = vpop.f32.mrb[9].mxu1  ;;  %v10249_v21 = vsel %vm14069_vm2, %v10244_v23, %v16895_v10  ;;  %v16927_v60 = vunpack.c.l.bf16 %v10283_v42 }
 0x65f   : > { %v11486_v17 = vpack.c.bf16 %v10520_v36, %v10519_v16  ;;  %v10459_v22 = vadd.f32 %v16840_v51, %v9821_v57  ;;  %v12843_v24 = vpop.f32.mrb[10].mxu1  ;;  %v16929_v28 = vrot.slane %v10318_v44, 5  ;;  %v10294_v18 = vshll.u32 %v11391_v45, 16  ;;  %v11395_v16 = vld [vmem:[%s14032_s10 + $0xb0] sm:$0x1] }
 0x660   : > { %11555 = vst [vmem:[%s16880_s12 + $0x18] sm:$0xff] %v11491_v35   ;;  %v10493_v1 = vadd.f32 %v10461_v38, %v16819_v15  ;;  %v10462_v25 = vadd.f32 %v12843_v24, %v16840_v51  ;;  %v9824_v6 = vpop.f32.mrb[11].mxu1  ;;  %v10311_v15 = vrot.slane %v10309_v30, 4  ;;  %v10298_v5 = vshrl.u32 %v11391_v45, 16  ;;  %v11392_v35 = vld [vmem:[%s14032_s10 + $0xa4] sm:$0x1] }
 0x661   : > { %11554 = vst [vmem:[%s16880_s12 + $0x10] sm:$0xff] %v11486_v17   ;;  %v10491_v9 = vadd.f32 %v10459_v22, %v16829_v11  ;;  %v10460_v29 = vadd.f32 %v16840_v51, %v9824_v6  ;;  %v16936_v53 = vunpack.c.l.bf16 %v10249_v21  ;;  %v10287_v63 = vrot.slane %v10285_v33, 4  ;;  %v11399_v17 = vld [vmem:[%s14032_s10 + $0xc0] sm:$0xf] }
 0x662   : > { %v10494_v55 = vadd.f32 %v10462_v25, %v16821_v7  ;;  %v10525_v11 = vmax.f32 %v10493_v1, 0.0  ;;  %v10315_v54 = vor.u32 %v10314_v48, %v10311_v15  ;;  %v10324_v24 = vrot.slane %v10322_v2, 4  ;;  %v11396_v48 = vld [vmem:[%s14032_s10 + $0xb4] sm:$0xf] }
 0x663   : > { %v10492_v14 = vadd.f32 %v10460_v29, %v16845_v27  ;;  %v10523_v41 = vmax.f32 %v10491_v9, 0.0  ;;  %v10288_v27 = vshll.u32 %v11390_v31, 16  ;;  %v10328_v52 = vshll.u32 %v11395_v16, 16 }
 0x664   : > { %v10526_v47 = vmax.f32 %v10494_v55, 0.0  ;;  %v16947_v0 = vrot.slane %v10294_v18, 5  ;;  %v10300_v1 = vrot.slane %v10298_v5, 4  ;;  %v10304_v25 = vshll.u32 %v11392_v35, 16 }
 0x665   : > { %v10524_v26 = vmax.f32 %v10492_v14, 0.0  ;;  %v12846_v7 = vpop.f32.mrb[12].mxu1  ;;  %v10290_v30 = vrot.slane %v10288_v27, 5  ;;  %v16949_v46 = vrot.slane %v10315_v54, 4  ;;  %v10357_v9 = vshrl.u32 %v11399_v17, 16 }
 0x666   : > { %v11501_v58 = vpack.c.bf16 %v10526_v47, %v10525_v11  ;;  %v10465_v62 = vadd.f32 %v12846_v7, %v16840_v51  ;;  %v9837_v3 = vpop.f32.mrb[13].mxu1  ;;  %v10325_v44 = vor.u32 %v10324_v24, %v16929_v28  ;;  %v16955_v14 = vrot.slane %v10328_v52, 5  ;;  %v11400_v7 = vld [vmem:[%s14032_s10 + $0xc4] sm:$0xf] }
 0x667   : > { %v11496_v12 = vpack.c.bf16 %v10524_v26, %v10523_v41  ;;  %v10463_v32 = vadd.f32 %v16840_v51, %v9837_v3  ;;  %v12847_v4 = vpop.f32.mrb[14].mxu1  ;;  %v10291_v55 = vor.u32 %v10290_v30, %v10287_v63  ;;  %v10301_v11 = vor.u32 %v10300_v1, %v16947_v0 }
 0x668   : > { %11557 = vst [vmem:[%s16880_s12 + $0x28] sm:$0xff] %v11501_v58   ;;  %v10497_v10 = vadd.f32 %v10465_v62, %v16847_v61  ;;  %v10466_v36 = vadd.f32 %v12847_v4, %v16840_v51  ;;  %v9840_v56 = vpop.f32.mrb[15].mxu1  ;;  %v10259_v61 = vsel %vm14069_vm2, %v10254_v40, %v10258_v8  ;;  %v16959_v47 = vrot.slane %v10304_v25, 5 }
 0x669   : > { %11556 = vst [vmem:[%s16880_s12 + $0x20] sm:$0xff] %v11496_v12   ;;  %v10495_v38 = vadd.f32 %v10463_v32, %v16849_v13  ;;  %v10464_v57 = vadd.f32 %v16840_v51, %v9840_v56  ;;  %v16951_v31 = vunpack.c.l.bf16 %v10259_v61  ;;  %v10321_v26 = vsel %vm14069_vm2, %v16949_v46, %v16929_v28  ;;  %v11397_v12 = vld [vmem:[%s14032_s10 + $0xb8] sm:$0xf] }
 0x66a   : > { %v10498_v22 = vadd.f32 %v10466_v36, %v16851_v37  ;;  %v10529_v6 = vmax.f32 %v10497_v10, 0.0  ;;  %v16970_v21 = vrot.slane %v10357_v9, 4  ;;  %v10292_v62 = vrot.slane %v10291_v55, 4  ;;  %v11401_v9 = vld [vmem:[%s14032_s10 + $0xc8] sm:$0x1] }
 0x66b   : > { %v10496_v20 = vadd.f32 %v10464_v57, %v16854_v49  ;;  %v10527_v29 = vmax.f32 %v10495_v38, 0.0  ;;  %v10360_v3 = vshll.u32 %v11399_v17, 16  ;;  %v10326_v32 = vrot.slane %v10325_v44, 4 }
 0x66c   : > { %v10530_v13 = vmax.f32 %v10498_v22, 0.0  ;;  %v10333_v4 = vshrl.u32 %v11396_v48, 16  ;;  %v10336_v18 = vshll.u32 %v11396_v48, 16  ;;  %v10302_v16 = vrot.slane %v10301_v11, 4 }
 0x66d   : > { %v10528_v37 = vmax.f32 %v10496_v20, 0.0  ;;  %v12850_v23 = vpop.f32.mrb[16].mxu1  ;;  %v10366_v28 = vshll.u32 %v11400_v7, 16  ;;  %v10370_v10 = vshrl.u32 %v11400_v7, 16  ;;  %v10342_v54 = vshll.u32 %v11397_v12, 16 }
 0x66e   : > { %v11511_v8 = vpack.c.bf16 %v10530_v13, %v10529_v6  ;;  %v10469_v49 = vadd.f32 %v12850_v23, %v16840_v51  ;;  %v9853_v15 = vpop.f32.mrb[17].mxu1  ;;  %v10346_v35 = vshrl.u32 %v11397_v12, 16  ;;  %v10362_v63 = vrot.slane %v10360_v3, 5 }
 0x66f   : > { %v11506_v42 = vpack.c.bf16 %v10528_v37, %v10527_v29  ;;  %v10467_v40 = vadd.f32 %v16840_v51, %v9853_v15  ;;  %v12851_v2 = vpop.f32.mrb[18].mxu1  ;;  %v10335_v22 = vrot.slane %v10333_v4, 4  ;;  %v10338_v61 = vrot.slane %v10336_v18, 5 }
 0x670   : > { %11559 = vst [vmem:[%s16880_s12 + $0x38] sm:$0xff] %v11511_v8   ;;  %v10501_v45 = vadd.f32 %v10469_v49, %v16867_v43  ;;  %v10470_v33 = vadd.f32 %v12851_v2, %v16840_v51  ;;  %v9856_v41 = vpop.f32.mrb[19].mxu1  ;;  %v10368_v1 = vrot.slane %v10366_v28, 5  ;;  %v10372_v25 = vrot.slane %v10370_v10, 4  ;;  %v11398_v49 = vld [vmem:[%s14032_s10 + $0xbc] sm:$0x1] }
 0x671   : > { %11558 = vst [vmem:[%s16880_s12 + $0x30] sm:$0xff] %v11506_v42   ;;  %v10499_v27 = vadd.f32 %v10467_v40, %v16890_v34  ;;  %v10468_v58 = vadd.f32 %v16840_v51, %v9856_v41  ;;  %v10344_v46 = vrot.slane %v10342_v54, 5  ;;  %v10348_v29 = vrot.slane %v10346_v35, 4  ;;  %s13749_s10 = scalar_lea.vmem %s13748_s9, 4096 }
 0x672   : > { %v10502_v43 = vadd.f32 %v10470_v33, %v16892_v50  ;;  %v10533_v36 = vmax.f32 %v10501_v45, 0.0  ;;  %v10297_v50 = vsel %vm14069_vm2, %v10292_v62, %v16947_v0  ;;  %v10438_v55 = vunpack.c.l.bf16 %v10321_v26  ;;  %p13751_p13 = scmp.lt.s32.totalorder %s13749_s10, %s13743_s14 }
 0x673   : > { %v10500_v5 = vadd.f32 %v10468_v58, %v16910_v39  ;;  %v10531_v34 = vmax.f32 %v10499_v27, 0.0  ;;  %v10363_v8 = vor.u32 %v10362_v63, %v16970_v21  ;;  %v10436_v44 = vunpack.c.l.bf16 %v10297_v50 }
 0x674   : > { %v10534_v56 = vmax.f32 %v10502_v43, 0.0  ;;  %v10339_v42 = vor.u32 %v10338_v61, %v10335_v22  ;;  %v10373_v2 = vor.u32 %v10372_v25, %v10368_v1  ;;  %v10376_v11 = vshll.u32 %v11401_v9, 16  ;;  %p13752_p3 = por %p13751_p13, %p13750_p11 }
 0x675   : > { %v10532_v38 = vmax.f32 %v10500_v5, 0.0  ;;  %v12854_v57 = vpop.f32.mrb[20].mxu1  ;;  %v10349_v33 = vor.u32 %v10348_v29, %v10344_v46  ;;  %v10352_v41 = vshll.u32 %v11398_v49, 16  ;;  %v10364_v27 = vrot.slane %v10363_v8, 4 }
 0x676   : > { %v11521_v30 = vpack.c.bf16 %v10534_v56, %v10533_v36  ;;  %v10473_v39 = vadd.f32 %v12854_v57, %v16840_v51  ;;  %v9869_v17 = vpop.f32.mrb[21].mxu1  ;;  %v10340_v3 = vrot.slane %v10339_v42, 4  ;;  %v10378_v4 = vrot.slane %v10376_v11, 5  ;;  %p13753_p7 = pnand %p13752_p3, %p13746_p8 }
 0x677   : > { %v11516_v24 = vpack.c.bf16 %v10532_v38, %v10531_v34  ;;  %v10471_v52 = vadd.f32 %v16840_v51, %v9869_v17  ;;  %v12855_v20 = vpop.f32.mrb[22].mxu1  ;;  %v10350_v28 = vrot.slane %v10349_v33, 4  ;;  %v10354_v10 = vrot.slane %v10352_v41, 5 }
 0x678   : > { %11561 = vst [vmem:[%s16880_s12 + $0x48] sm:$0xff] %v11521_v30   ;;  %v10505_v6 = vadd.f32 %v10473_v39, %v16915_v59  ;;  %v10474_v0 = vadd.f32 %v12855_v20, %v16840_v51  ;;  %v9872_v13 = vpop.f32.mrb[23].mxu1  ;;  %v10331_v59 = vsel %vm14069_vm2, %v10326_v32, %v16955_v14  ;;  %v10374_v32 = vrot.slane %v10373_v2, 4 }
 0x679   : > { %11560 = vst [vmem:[%s16880_s12 + $0x40] sm:$0xff] %v11516_v24   ;;  %v10503_v37 = vadd.f32 %v10471_v52, %v16936_v53  ;;  %v10472_v23 = vadd.f32 %v16840_v51, %v9872_v13  ;;  %v10307_v53 = vsel %vm14069_vm2, %v10302_v16, %v16959_v47  ;;  %v10439_v21 = vunpack.c.l.bf16 %v10331_v59 }
 0x67a   : > { %v10506_v15 = vadd.f32 %v10474_v0, %v16927_v60  ;;  %v10537_v48 = vmax.f32 %v10505_v6, 0.0  ;;  %v10437_v62 = vunpack.c.l.bf16 %v10307_v53  ;;  %v10369_v54 = vsel %vm14069_vm2, %v10364_v27, %v10368_v1 }
 0x67b   : > { %v10504_v40 = vadd.f32 %v10472_v23, %v16951_v31  ;;  %v10535_v60 = vmax.f32 %v10503_v37, 0.0  ;;  %v10345_v34 = vsel %vm14069_vm2, %v10340_v3, %v10344_v46  ;;  %v10379_v57 = vsel %vm14069_vm2, %v10374_v32, %v10378_v4 }
 0x67c   : > { %v10538_v45 = vmax.f32 %v10506_v15, 0.0  ;;  %v10442_v30 = vunpack.c.l.bf16 %v10369_v54  ;;  %v10355_v39 = vsel %vm14069_vm2, %v10350_v28, %v10354_v10  ;;  %v10440_v24 = vunpack.c.l.bf16 %v10345_v34 }
 0x67d   : > { %v10536_v26 = vmax.f32 %v10504_v40, 0.0  ;;  %v12858_v7 = vpop.f32.mrb[24].mxu1  ;;  %v10443_v25 = vunpack.c.l.bf16 %v10379_v57  ;;  %v10441_v46 = vunpack.c.l.bf16 %v10355_v39 }
 0x67e   : > { %v11531_v14 = vpack.c.bf16 %v10538_v45, %v10537_v48  ;;  %v10477_v31 = vadd.f32 %v12858_v7, %v16840_v51  ;;  %v9885_v58 = vpop.f32.mrb[25].mxu1 }
 0x67f   : > { %v11526_v47 = vpack.c.bf16 %v10536_v26, %v10535_v60  ;;  %v10475_v12 = vadd.f32 %v16840_v51, %v9885_v58  ;;  %v12859_v43 = vpop.f32.mrb[26].mxu1 }
 0x680   : > { %11563 = vst [vmem:[%s16880_s12 + $0x58] sm:$0xff] %v11531_v14   ;;  %v10509_v18 = vadd.f32 %v10477_v31, %v10438_v55  ;;  %v10478_v5 = vadd.f32 %v12859_v43, %v16840_v51  ;;  %v9888_v16 = vpop.f32.mrb[27].mxu1 }
 0x681   : > { %11562 = vst [vmem:[%s16880_s12 + $0x50] sm:$0xff] %v11526_v47   ;;  %v10507_v36 = vadd.f32 %v10475_v12, %v10436_v44  ;;  %v10476_v56 = vadd.f32 %v16840_v51, %v9888_v16 }
 0x682   : > { %v10510_v35 = vadd.f32 %v10478_v5, %v10439_v21  ;;  %v10541_v50 = vmax.f32 %v10509_v18, 0.0 }
 0x683   : > { %v10508_v38 = vadd.f32 %v10476_v56, %v10437_v62  ;;  %v10539_v17 = vmax.f32 %v10507_v36, 0.0 }
 0x684   : > { %v10542_v63 = vmax.f32 %v10510_v35, 0.0 }
 0x685   : > { %v10540_v22 = vmax.f32 %v10508_v38, 0.0  ;;  %v12862_v61 = vpop.f32.mrb[28].mxu1 }
 0x686   : > { %v11541_v52 = vpack.c.bf16 %v10542_v63, %v10541_v50  ;;  %v10481_v20 = vadd.f32 %v12862_v61, %v16840_v51  ;;  %v9901_v1 = vpop.f32.mrb[29].mxu1 }
 0x687   : > { %v11536_v6 = vpack.c.bf16 %v10540_v22, %v10539_v17  ;;  %v10479_v0 = vadd.f32 %v16840_v51, %v9901_v1  ;;  %v12863_v13 = vpop.f32.mrb[30].mxu1 }
 0x688   : > { %11565 = vst [vmem:[%s16880_s12 + $0x68] sm:$0xff] %v11541_v52   ;;  %v10513_v19 = vadd.f32 %v10481_v20, %v10442_v30  ;;  %v10482_v9 = vadd.f32 %v12863_v13, %v16840_v51  ;;  %v9904_v29 = vpop.f32.mrb[31].mxu1 }
 0x689   : > { %11564 = vst [vmem:[%s16880_s12 + $0x60] sm:$0xff] %v11536_v6   ;;  %v10511_v37 = vadd.f32 %v10479_v0, %v10440_v24  ;;  %v10480_v23 = vadd.f32 %v16840_v51, %v9904_v29 }
 0x68a   : > { %v10514_v55 = vadd.f32 %v10482_v9, %v10443_v25  ;;  %v10545_v49 = vmax.f32 %v10513_v19, 0.0 }
 0x68b   : > { %v10512_v8 = vadd.f32 %v10480_v23, %v10441_v46  ;;  %v10543_v44 = vmax.f32 %v10511_v37, 0.0 }
 0x68c   : > { %v10546_v15 = vmax.f32 %v10514_v55, 0.0 }
 0x68d   : > { %v10544_v59 = vmax.f32 %v10512_v8, 0.0 }
 0x68e   : > { %v11551_v42 = vpack.c.bf16 %v10546_v15, %v10545_v49 }
 0x68f   : > { %v11546_v51 = vpack.c.bf16 %v10544_v59, %v10543_v44 }
 0x690   : > { %11567 = vst [vmem:[%s16880_s12 + $0x78] sm:$0xff] %v11551_v42  }
 0x691   : > { %11566 = vst [vmem:[%s16880_s12 + $0x70] sm:$0xff] %v11546_v51  }
 0x692   : > { %13756 = shalt.err (!%p13753_p7)
}
 0x693   : > { %s13757_s24 = scalar_lea.hbm %s17025_s15, 2048  ;;  %s13761_s8 = scalar_lea.hbm %s17077_s5, 8192 }
 0x694   : > { %p13758_p9 = scmp.ne.s32.totalorder %s17025_s15, %s13757_s24  ;;  %p13762_p5 = scmp.lt.u32.totalorder %s17025_s15, %s17077_s5 }
 0x695   : > { %p13763_p10 = scmp.lt.u32.totalorder %s13761_s8, %s13757_s24  ;;  %p13765_p2 = scmp.lt.u32.totalorder %s13757_s24, %s17025_s15 }
 0x696   : > { %p13759_p12 = pnand %p13758_p9, %p13973_p6 }
 0x697   : > { %p13764_p1 = por %p13763_p10, %p13762_p5 }
 0x698   : > { %p13760_p0 = pneg %p13759_p12 }
 0x699   : > { %p13766_p4 = por %p13765_p2, %p13764_p1 }
 0x69b   : > { %p13767_p8 = pnand %p13766_p4, %p13760_p0 }
 0x69d   : > { %13770 = shalt.err (!%p13767_p8)
}
 0x69e   : > { %s13823_s13 = smov 64   ;;  %s13824_s7 = smov 4  }
 0x69f   : > { %13389 = dma.vmem_to_hbm [thread:$0]  (%p13973_p6), %s17027_s30, 2048, %s17025_s15, %s10708_s22, %s13823_s13, %s13823_s13, %s13824_s7  }
 0x6a0 PF: > { %p13411_p11 = scmp.ge.s32.totalorder %s13813_s21, 2  ;;  %s10736_s28 = sand.u32 1, %s13801_s18  }
 0x6a1   : > { %p17285_p13 = scmp.ne.s32.totalorder %s17131_s25, 0  ;;  %s10737_s14 = scalar_lea.sflag [#allocation5], %s10736_s28 }
 0x6a3   : > { %p13403_p3 = pnand %p13411_p11, %p17285_p13 }
 0x6a5   : > { %13796 = dma.done.wait (!%p13403_p3), %s10737_s14, 2048  }
 0x6a6   : > { %13798 = vsyncadd (!%p13403_p3), %s10737_s14, 4294965248  ;;  %p19_p7 = scmp.ge.s32.totalorder %s13963_s29, 6   ;;  %s17286_s18 = smov %s13805_s19 }
 0x6a7   : > { %s17287_s19 = smov %s13809_s20  ;;  %s17288_s20 = smov %s13979_s27 }
 0x6a8   : > { %s17289_s21 = smov %s13963_s29  ;;  %21 = sbr.rel (!%p19_p7) target bundleno = 6 (0x6), region = 98 }
 0x6af   :  { %10742 = vsyncpa [#allocation4], 1 }
 0x6b0   :  { %10744 = vsyncpa [#allocation4 + $0x1], 1 }
 0x6b1   :  { %10745 = vsyncpa [#allocation7], 1 }
 0x6b2   :  { %10746 = vsyncpa [#allocation5], 1 }
 0x6b3   :  { %10748 = vsyncpa [#allocation5 + $0x1], 1 }

</bundles_post_ra>
